<compile_context>
chip_gen: v7x
topology: tpu7x:2x2x1
jax: 0.10.0
libtpu: 0.0.40
codegen_flags: <defaults>
</compile_context>

<pallas_src>
import numpy as np
import jax
import jax.numpy as jnp
from jax.experimental import pallas as pl
from jax.experimental.pallas import tpu as pltpu

BN_EPS = 1e-5


# -----------------------------------------------------------------------------
# Pass 1: bilinear x2 upsample (align_corners=True) + zero-pad + 3x3 conv,
#         plus per-sample per-channel sum / sum-of-squares for BatchNorm.
# Grid: one batch sample per step ("parallel" -> megacore on v7x).
# -----------------------------------------------------------------------------
def _upsample_conv_kernel(xh_ref, uh_ref, uwt_ref, w_ref,
                          conv_ref, stats_ref,
                          up1_ref, up_ref, upt_ref):
    # xh_ref   : (1, H, Cin*W)      bf16  one sample, layout (h, c*W + w)
    # uh_ref   : (H2p, H)           f32   zero-padded bilinear x2 row operator
    # uwt_ref  : (W, W2p)           f32   zero-padded bilinear x2 col operator^T
    # w_ref    : (9, Cout, Cin)     bf16  conv taps, k = dy*3 + dx
    # conv_ref : (1, H2, Cout, W2)  f32   conv output block (pre-BN)
    # stats_ref: (1, Cout, 2)       f32   per-sample [sum, sum_sq] per channel
    # up1_ref  : (H2p, Cin*W)       f32   scratch: H-upsampled (+ pad rows)
    # up_ref   : (Cin, H2p, W2p)    f32   scratch: fully upsampled, zero border
    # upt_ref  : (H2p, Cin, W2p)    bf16  scratch: channel-interleaved copy
    H2p, H = uh_ref.shape
    W, W2p = uwt_ref.shape
    _, Cout, Cin = w_ref.shape
    H2, W2 = H2p - 2, W2p - 2

    # H-direction bilinear upsample (+ zero rows for conv padding): one MXU dot
    # covering all input channels.
    x2d = xh_ref[0].astype(jnp.float32)                               # (H, Cin*W)
    up1_ref[...] = jnp.dot(uh_ref[...], x2d,
                           preferred_element_type=jnp.float32)        # (H2p, Cin*W)

    # W-direction bilinear upsample (+ zero cols): one dot per input channel.
    # (Cin is tiny here; at large Cin this loop would be re-tiled.)
    for c in range(Cin):
        a_c = up1_ref[:, c * W:(c + 1) * W]                           # (H2p, W)
        up_ref[c] = jnp.dot(a_c, uwt_ref[...],
                            preferred_element_type=jnp.float32)       # (H2p, W2p)

    # One relayout so the conv taps see (row, channel, col); also cast the
    # upsampled activation to bf16 for the MXU.
    upt_ref[...] = jnp.transpose(up_ref[...], (1, 0, 2)).astype(jnp.bfloat16)

    # 3x3 conv with padding=1 as 9 shifted windows of the padded upsampled
    # image.  Each tap is a bf16 batched MXU matmul contracting over Cin with
    # f32 accumulation directly into the output block.  (Conv bias omitted:
    # it cancels exactly under batch-statistics BatchNorm.)
    for k in range(9):
        dy, dx = divmod(k, 3)
        sl = upt_ref[dy:dy + H2, :, dx:dx + W2]                       # (H2, Cin, W2)
        wkb = jnp.broadcast_to(w_ref[k][None], (H2, Cout, Cin))       # (H2, Cout, Cin)
        tap = jax.lax.dot_general(
            wkb, sl,
            dimension_numbers=(((2,), (1,)), ((0,), (0,))),
            preferred_element_type=jnp.float32)                       # (H2, Cout, W2)
        if k == 0:
            conv_ref[0] = tap
        else:
            conv_ref[0] += tap

    # Per-sample, per-channel statistics for the two-pass BatchNorm.
    conv = conv_ref[0]                                                # (H2, Cout, W2)
    s = jnp.sum(jnp.sum(conv, axis=0), axis=1, keepdims=True)         # (Cout, 1)
    ss = jnp.sum(jnp.sum(conv * conv, axis=0), axis=1, keepdims=True)  # (Cout, 1)
    stats_ref[0, :, 0:1] = s
    stats_ref[0, :, 1:2] = ss


# -----------------------------------------------------------------------------
# Pass 2: batch-statistics BatchNorm (affine) + ReLU.
# -----------------------------------------------------------------------------
def _bn_relu_kernel(conv_ref, stats_ref, g_ref, b_ref, out_ref):
    # conv_ref : (1, H2, Cout, W2) f32   conv output block of this sample
    # stats_ref: (N, Cout, 2)      f32   per-sample [sum, sum_sq] (full array)
    # g_ref    : (Cout, 1)         f32   BN gamma
    # b_ref    : (Cout, 1)         f32   BN beta
    # out_ref  : (1, H2, Cout, W2) f32
    n = stats_ref.shape[0]
    _, H2, Cout, W2 = conv_ref.shape
    inv_cnt = 1.0 / float(n * H2 * W2)

    tot = jnp.sum(stats_ref[...], axis=0)                             # (Cout, 2)
    mean = tot[:, 0:1] * inv_cnt                                      # (Cout, 1)
    var = tot[:, 1:2] * inv_cnt - mean * mean                         # biased var
    inv_std = jax.lax.rsqrt(var + BN_EPS)                             # (Cout, 1)
    scale = g_ref[...] * inv_std                                      # (Cout, 1)
    shift = b_ref[...] - mean * scale                                 # (Cout, 1)

    y = conv_ref[0] * scale + shift                                   # (H2, Cout, W2)
    out_ref[0] = jnp.maximum(y, 0.0)


# -----------------------------------------------------------------------------
# Separable bilinear x2 (align_corners=True) operators, conv zero-pad folded in.
# -----------------------------------------------------------------------------
def _bilinear_matrix(n_in: int) -> np.ndarray:
    """U (2*n_in, n_in): out = U @ in, bilinear x2 upsample, align_corners=True."""
    n_out = 2 * n_in
    U = np.zeros((n_out, n_in), np.float32)
    if n_in == 1:
        U[:, 0] = 1.0
        return U
    scale = (n_in - 1) / (n_out - 1)
    for i in range(n_out):
        src = i * scale
        i0 = min(int(np.floor(src)), n_in - 1)
        i1 = min(i0 + 1, n_in - 1)
        f = src - i0
        U[i, i0] += 1.0 - f
        U[i, i1] += f
    return U


def _padded_row_operator(n: int) -> np.ndarray:
    """(2n+2, n): bilinear x2 with one zero row of conv padding on each side."""
    n2 = 2 * n
    P = np.zeros((n2 + 2, n), np.float32)
    P[1:n2 + 1] = _bilinear_matrix(n)
    return P


def _padded_col_operator_t(n: int) -> np.ndarray:
    """(n, 2n+2): transposed column operator (right-multiply form)."""
    return np.ascontiguousarray(_padded_row_operator(n).T)


# -----------------------------------------------------------------------------
# Wrapper
# -----------------------------------------------------------------------------
def up_conv_pallas(x, weight, bias, gamma, beta):
    """x: (N, Cin, H, W) f32 NCHW -> (N, Cout, 2H, 2W) f32 NCHW."""
    del bias  # cancels exactly under training-mode (batch-statistics) BatchNorm
    N, Cin, H, W = x.shape
    Cout = weight.shape[0]
    H2, W2 = 2 * H, 2 * W
    H2p, W2p = H2 + 2, W2 + 2

    uh = jnp.asarray(_padded_row_operator(H))                         # (H2p, H) f32
    uwt = jnp.asarray(_padded_col_operator_t(W))                      # (W, W2p) f32
    xh = jnp.transpose(x, (0, 2, 1, 3)).reshape(N, H, Cin * W).astype(jnp.bfloat16)
    w9 = jnp.transpose(weight, (2, 3, 0, 1)).reshape(9, Cout, Cin).astype(jnp.bfloat16)
    g2 = gamma.reshape(Cout, 1).astype(jnp.float32)
    b2 = beta.reshape(Cout, 1).astype(jnp.float32)

    params = pltpu.CompilerParams(
        dimension_semantics=("parallel",),
        vmem_limit_bytes=32 * 1024 * 1024,
    )

    # Pass 1: upsample + conv, emit conv tiles and per-sample BN partial sums.
    # (At this small test size every block spans the full trailing dims; at
    # realistic H, W one would additionally tile the spatial axis.)
    conv, stats = pl.pallas_call(
        _upsample_conv_kernel,
        grid=(N,),
        in_specs=[
            pl.BlockSpec((1, H, Cin * W), lambda n: (n, 0, 0)),
            pl.BlockSpec((H2p, H), lambda n: (0, 0)),
            pl.BlockSpec((W, W2p), lambda n: (0, 0)),
            pl.BlockSpec((9, Cout, Cin), lambda n: (0, 0, 0)),
        ],
        out_specs=[
            pl.BlockSpec((1, H2, Cout, W2), lambda n: (n, 0, 0, 0)),
            pl.BlockSpec((1, Cout, 2), lambda n: (n, 0, 0)),
        ],
        out_shape=[
            jax.ShapeDtypeStruct((N, H2, Cout, W2), jnp.float32),
            jax.ShapeDtypeStruct((N, Cout, 2), jnp.float32),
        ],
        scratch_shapes=[
            pltpu.VMEM((H2p, Cin * W), jnp.float32),
            pltpu.VMEM((Cin, H2p, W2p), jnp.float32),
            pltpu.VMEM((H2p, Cin, W2p), jnp.bfloat16),
        ],
        compiler_params=params,
    )(xh, uh, uwt, w9)

    # Pass 2: finalize batch statistics, affine + ReLU.
    y = pl.pallas_call(
        _bn_relu_kernel,
        grid=(N,),
        in_specs=[
            pl.BlockSpec((1, H2, Cout, W2), lambda n: (n, 0, 0, 0)),
            pl.BlockSpec((N, Cout, 2), lambda n: (0, 0, 0)),
            pl.BlockSpec((Cout, 1), lambda n: (0, 0)),
            pl.BlockSpec((Cout, 1), lambda n: (0, 0)),
        ],
        out_specs=pl.BlockSpec((1, H2, Cout, W2), lambda n: (n, 0, 0, 0)),
        out_shape=jax.ShapeDtypeStruct((N, H2, Cout, W2), jnp.float32),
        compiler_params=params,
    )(conv, stats, g2, b2)

    # (N, H2, Cout, W2) -> NCHW (N, Cout, 2H, 2W)
    return jnp.transpose(y, (0, 2, 1, 3))


# -----------------------------------------------------------------------------
# Pure numpy reference (float64), faithful to the PyTorch module semantics.
# -----------------------------------------------------------------------------
def up_conv_reference(x, weight, bias, gamma, beta):
    x = np.asarray(x, np.float64)
    w = np.asarray(weight, np.float64)
    b = np.asarray(bias, np.float64)
    g = np.asarray(gamma, np.float64)
    be = np.asarray(beta, np.float64)
    N, Cin, H, W = x.shape
    Cout = w.shape[0]
    H2, W2 = 2 * H, 2 * W

    Uh = _bilinear_matrix(H).astype(np.float64)
    Uw = _bilinear_matrix(W).astype(np.float64)
    xu = np.einsum('ph,nchw,qw->ncpq', Uh, x, Uw)                     # upsample
    pad = np.zeros((N, Cin, H2 + 2, W2 + 2))
    pad[:, :, 1:H2 + 1, 1:W2 + 1] = xu

    y = np.zeros((N, Cout, H2, W2))
    for dy in range(3):
        for dx in range(3):
            y += np.einsum('oc,ncyx->noyx', w[:, :, dy, dx],
                           pad[:, :, dy:dy + H2, dx:dx + W2])
    y += b[None, :, None, None]

    mean = y.mean(axis=(0, 2, 3), keepdims=True)
    var = y.var(axis=(0, 2, 3), keepdims=True)                        # biased
    yn = (y - mean) / np.sqrt(var + BN_EPS)
    yn = yn * g[None, :, None, None] + be[None, :, None, None]
    return np.maximum(yn, 0.0)


# -----------------------------------------------------------------------------
if __name__ == "__main__":
    key = jax.random.PRNGKey(0)
    k1, k2, k3, k4, k5 = jax.random.split(key, 5)

    N, Cin, Cout, H, W = 2, 4, 8, 16, 16          # up_conv(ch_in=4, ch_out=8)

    x = jax.random.normal(k1, (N, Cin, H, W), jnp.float32)
    conv_w = 0.1 * jax.random.normal(k2, (Cout, Cin, 3, 3), jnp.float32)
    conv_b = 0.1 * jax.random.normal(k3, (Cout,), jnp.float32)
    bn_gamma = 1.0 + 0.1 * jax.random.normal(k4, (Cout,), jnp.float32)
    bn_beta = 0.1 * jax.random.normal(k5, (Cout,), jnp.float32)

    out = up_conv_pallas(x, conv_w, conv_b, bn_gamma, bn_beta)
    out = jax.block_until_ready(out)
    assert out.shape == (N, Cout, 2 * H, 2 * W)

    ref = up_conv_reference(x, conv_w, conv_b, bn_gamma, bn_beta)
    max_err = float(np.max(np.abs(np.asarray(out, np.float64) - ref)))
    # bf16 operands (x, conv weights, upsampled activation) with f32 accumulate.
    assert np.allclose(np.asarray(out), ref, rtol=3e-2, atol=3e-2), max_err

    print("KERNEL_OK")
</pallas_src>

<mosaic_0001>
module attributes {stable_mosaic.version = 11 : i64} {
  func.func @_upsample_conv_kernel(%arg0: i32, %arg1: memref<1x16x64xbf16, #tpu.memory_space<vmem>>, %arg2: memref<34x16xf32, #tpu.memory_space<vmem>>, %arg3: memref<16x34xf32, #tpu.memory_space<vmem>>, %arg4: memref<9x8x4xbf16, #tpu.memory_space<vmem>>, %arg5: memref<1x32x8x32xf32, #tpu.memory_space<vmem>>, %arg6: memref<1x8x2xf32, #tpu.memory_space<vmem>>, %arg7: memref<34x64xf32, #tpu.memory_space<vmem>>, %arg8: memref<4x34x34xf32, #tpu.memory_space<vmem>>, %arg9: memref<34x4x34xbf16, #tpu.memory_space<vmem>>) attributes {dimension_semantics = [#tpu.dimension_semantics<parallel>], iteration_bounds = array<i64: 2>, scalar_prefetch = 0 : i64, scratch_operands = 3 : i64, tpu.core_type = #tpu.core_type<tc>, window_params = [{transform_indices = @transform_0, window_bounds = array<i64: 1, 16, 64>}, {pipeline_mode = #tpu.pipeline_mode<synchronous>, transform_indices = @transform_1, window_bounds = array<i64: 34, 16>}, {pipeline_mode = #tpu.pipeline_mode<synchronous>, transform_indices = @transform_2, window_bounds = array<i64: 16, 34>}, {pipeline_mode = #tpu.pipeline_mode<synchronous>, transform_indices = @transform_3, window_bounds = array<i64: 9, 8, 4>}, {transform_indices = @transform_4, window_bounds = array<i64: 1, 32, 8, 32>}, {transform_indices = @transform_5, window_bounds = array<i64: 1, 8, 2>}]} {
    %c0 = arith.constant 0 : index
    %c0_0 = arith.constant 0 : index
    %c0_1 = arith.constant 0 : index
    %0 = vector.load %arg1[%c0, %c0_0, %c0_1] : memref<1x16x64xbf16, #tpu.memory_space<vmem>>, vector<1x16x64xbf16>
    %1 = vector.shape_cast %0 : vector<1x16x64xbf16> to vector<16x64xbf16>
    %2 = arith.extf %1 : vector<16x64xbf16> to vector<16x64xf32>
    %c0_2 = arith.constant 0 : index
    %c0_3 = arith.constant 0 : index
    %3 = vector.load %arg2[%c0_2, %c0_3] : memref<34x16xf32, #tpu.memory_space<vmem>>, vector<34x16xf32>
    %cst = arith.constant dense<0.000000e+00> : vector<34x64xf32>
    %4 = tpu.matmul %3, %2, %cst {dimension_numbers = #tpu.dot_dimension_numbers<[1], [0], [0], [1], [0, 0, 1, 1], [], []>} : vector<34x16xf32>, vector<16x64xf32>, vector<34x64xf32> -> vector<34x64xf32>
    %c0_4 = arith.constant 0 : index
    %c0_5 = arith.constant 0 : index
    %5 = vector.load %arg7[%c0_4, %c0_5] : memref<34x64xf32, #tpu.memory_space<vmem>>, vector<34x64xf32>
    tpu.vector_store %arg7[%c0_4, %c0_5], %4 {strides = array<i32>} : memref<34x64xf32, #tpu.memory_space<vmem>>, vector<34x64xf32>,
    %c0_6 = arith.constant 0 : index
    %c0_7 = arith.constant 0 : index
    %6 = vector.load %arg7[%c0_6, %c0_7] : memref<34x64xf32, #tpu.memory_space<vmem>>, vector<34x16xf32>
    %c0_8 = arith.constant 0 : index
    %c0_9 = arith.constant 0 : index
    %7 = vector.load %arg3[%c0_8, %c0_9] : memref<16x34xf32, #tpu.memory_space<vmem>>, vector<16x34xf32>
    %cst_10 = arith.constant dense<0.000000e+00> : vector<34x34xf32>
    %8 = tpu.matmul %6, %7, %cst_10 {dimension_numbers = #tpu.dot_dimension_numbers<[1], [0], [0], [1], [0, 0, 1, 1], [], []>} : vector<34x16xf32>, vector<16x34xf32>, vector<34x34xf32> -> vector<34x34xf32>
    %c0_11 = arith.constant 0 : index
    %c0_12 = arith.constant 0 : index
    %c0_13 = arith.constant 0 : index
    %9 = vector.load %arg8[%c0_11, %c0_12, %c0_13] : memref<4x34x34xf32, #tpu.memory_space<vmem>>, vector<1x34x34xf32>
    %10 = vector.shape_cast %9 : vector<1x34x34xf32> to vector<34x34xf32>
    %11 = vector.shape_cast %8 : vector<34x34xf32> to vector<1x34x34xf32>
    tpu.vector_store %arg8[%c0_11, %c0_12, %c0_13], %11 {strides = array<i32>} : memref<4x34x34xf32, #tpu.memory_space<vmem>>, vector<1x34x34xf32>,
    %c0_14 = arith.constant 0 : index
    %c16 = arith.constant 16 : index
    %12 = vector.load %arg7[%c0_14, %c16] : memref<34x64xf32, #tpu.memory_space<vmem>>, vector<34x16xf32>
    %c0_15 = arith.constant 0 : index
    %c0_16 = arith.constant 0 : index
    %13 = vector.load %arg3[%c0_15, %c0_16] : memref<16x34xf32, #tpu.memory_space<vmem>>, vector<16x34xf32>
    %cst_17 = arith.constant dense<0.000000e+00> : vector<34x34xf32>
    %14 = tpu.matmul %12, %13, %cst_17 {dimension_numbers = #tpu.dot_dimension_numbers<[1], [0], [0], [1], [0, 0, 1, 1], [], []>} : vector<34x16xf32>, vector<16x34xf32>, vector<34x34xf32> -> vector<34x34xf32>
    %c1 = arith.constant 1 : index
    %c0_18 = arith.constant 0 : index
    %c0_19 = arith.constant 0 : index
    %15 = vector.load %arg8[%c1, %c0_18, %c0_19] : memref<4x34x34xf32, #tpu.memory_space<vmem>>, vector<1x34x34xf32>
    %16 = vector.shape_cast %15 : vector<1x34x34xf32> to vector<34x34xf32>
    %17 = vector.shape_cast %14 : vector<34x34xf32> to vector<1x34x34xf32>
    tpu.vector_store %arg8[%c1, %c0_18, %c0_19], %17 {strides = array<i32>} : memref<4x34x34xf32, #tpu.memory_space<vmem>>, vector<1x34x34xf32>,
    %c0_20 = arith.constant 0 : index
    %c32 = arith.constant 32 : index
    %18 = vector.load %arg7[%c0_20, %c32] : memref<34x64xf32, #tpu.memory_space<vmem>>, vector<34x16xf32>
    %c0_21 = arith.constant 0 : index
    %c0_22 = arith.constant 0 : index
    %19 = vector.load %arg3[%c0_21, %c0_22] : memref<16x34xf32, #tpu.memory_space<vmem>>, vector<16x34xf32>
    %cst_23 = arith.constant dense<0.000000e+00> : vector<34x34xf32>
    %20 = tpu.matmul %18, %19, %cst_23 {dimension_numbers = #tpu.dot_dimension_numbers<[1], [0], [0], [1], [0, 0, 1, 1], [], []>} : vector<34x16xf32>, vector<16x34xf32>, vector<34x34xf32> -> vector<34x34xf32>
    %c2 = arith.constant 2 : index
    %c0_24 = arith.constant 0 : index
    %c0_25 = arith.constant 0 : index
    %21 = vector.load %arg8[%c2, %c0_24, %c0_25] : memref<4x34x34xf32, #tpu.memory_space<vmem>>, vector<1x34x34xf32>
    %22 = vector.shape_cast %21 : vector<1x34x34xf32> to vector<34x34xf32>
    %23 = vector.shape_cast %20 : vector<34x34xf32> to vector<1x34x34xf32>
    tpu.vector_store %arg8[%c2, %c0_24, %c0_25], %23 {strides = array<i32>} : memref<4x34x34xf32, #tpu.memory_space<vmem>>, vector<1x34x34xf32>,
    %c0_26 = arith.constant 0 : index
    %c48 = arith.constant 48 : index
    %24 = vector.load %arg7[%c0_26, %c48] : memref<34x64xf32, #tpu.memory_space<vmem>>, vector<34x16xf32>
    %c0_27 = arith.constant 0 : index
    %c0_28 = arith.constant 0 : index
    %25 = vector.load %arg3[%c0_27, %c0_28] : memref<16x34xf32, #tpu.memory_space<vmem>>, vector<16x34xf32>
    %cst_29 = arith.constant dense<0.000000e+00> : vector<34x34xf32>
    %26 = tpu.matmul %24, %25, %cst_29 {dimension_numbers = #tpu.dot_dimension_numbers<[1], [0], [0], [1], [0, 0, 1, 1], [], []>} : vector<34x16xf32>, vector<16x34xf32>, vector<34x34xf32> -> vector<34x34xf32>
    %c3 = arith.constant 3 : index
    %c0_30 = arith.constant 0 : index
    %c0_31 = arith.constant 0 : index
    %27 = vector.load %arg8[%c3, %c0_30, %c0_31] : memref<4x34x34xf32, #tpu.memory_space<vmem>>, vector<1x34x34xf32>
    %28 = vector.shape_cast %27 : vector<1x34x34xf32> to vector<34x34xf32>
    %29 = vector.shape_cast %26 : vector<34x34xf32> to vector<1x34x34xf32>
    tpu.vector_store %arg8[%c3, %c0_30, %c0_31], %29 {strides = array<i32>} : memref<4x34x34xf32, #tpu.memory_space<vmem>>, vector<1x34x34xf32>,
    %c0_32 = arith.constant 0 : index
    %c0_33 = arith.constant 0 : index
    %c0_34 = arith.constant 0 : index
    %30 = vector.load %arg8[%c0_32, %c0_33, %c0_34] : memref<4x34x34xf32, #tpu.memory_space<vmem>>, vector<4x34x34xf32>
    %31 = tpu.transpose %30, [1, 0, 2] : vector<4x34x34xf32> -> vector<34x4x34xf32>
    %32 = arith.truncf %31 : vector<34x4x34xf32> to vector<34x4x34xbf16>
    %c0_35 = arith.constant 0 : index
    %c0_36 = arith.constant 0 : index
    %c0_37 = arith.constant 0 : index
    %33 = vector.load %arg9[%c0_35, %c0_36, %c0_37] : memref<34x4x34xbf16, #tpu.memory_space<vmem>>, vector<34x4x34xbf16>
    tpu.vector_store %arg9[%c0_35, %c0_36, %c0_37], %32 {strides = array<i32>} : memref<34x4x34xbf16, #tpu.memory_space<vmem>>, vector<34x4x34xbf16>,
    %c0_38 = arith.constant 0 : index
    %c0_39 = arith.constant 0 : index
    %c0_40 = arith.constant 0 : index
    %34 = vector.load %arg9[%c0_38, %c0_39, %c0_40] : memref<34x4x34xbf16, #tpu.memory_space<vmem>>, vector<32x4x32xbf16>
    %c0_41 = arith.constant 0 : index
    %c0_42 = arith.constant 0 : index
    %c0_43 = arith.constant 0 : index
    %35 = vector.load %arg4[%c0_41, %c0_42, %c0_43] : memref<9x8x4xbf16, #tpu.memory_space<vmem>>, vector<1x8x4xbf16>
    %36 = vector.shape_cast %35 : vector<1x8x4xbf16> to vector<8x4xbf16>
    %37 = vector.shape_cast %36 : vector<8x4xbf16> to vector<1x8x4xbf16>
    %38 = vector.shape_cast %37 : vector<1x8x4xbf16> to vector<1x8x4xbf16>
    %39 = vector.broadcast %38 : vector<1x8x4xbf16> to vector<32x8x4xbf16>
    %cst_44 = arith.constant dense<0.000000e+00> : vector<32x8x32xf32>
    %40 = tpu.matmul %39, %34, %cst_44 {dimension_numbers = #tpu.dot_dimension_numbers<[2], [1], [1], [2], [0, 0, 0, 1, 1, 2], [0], [0]>} : vector<32x8x4xbf16>, vector<32x4x32xbf16>, vector<32x8x32xf32> -> vector<32x8x32xf32>
    %c0_45 = arith.constant 0 : index
    %c0_46 = arith.constant 0 : index
    %c0_47 = arith.constant 0 : index
    %c0_48 = arith.constant 0 : index
    %41 = vector.load %arg5[%c0_45, %c0_46, %c0_47, %c0_48] : memref<1x32x8x32xf32, #tpu.memory_space<vmem>>, vector<1x32x8x32xf32>
    %42 = vector.shape_cast %41 : vector<1x32x8x32xf32> to vector<32x8x32xf32>
    %43 = vector.shape_cast %40 : vector<32x8x32xf32> to vector<1x32x8x32xf32>
    tpu.vector_store %arg5[%c0_45, %c0_46, %c0_47, %c0_48], %43 {strides = array<i32>} : memref<1x32x8x32xf32, #tpu.memory_space<vmem>>, vector<1x32x8x32xf32>,
    %c0_49 = arith.constant 0 : index
    %c0_50 = arith.constant 0 : index
    %c1_51 = arith.constant 1 : index
    %44 = vector.load %arg9[%c0_49, %c0_50, %c1_51] : memref<34x4x34xbf16, #tpu.memory_space<vmem>>, vector<32x4x32xbf16>
    %c1_52 = arith.constant 1 : index
    %c0_53 = arith.constant 0 : index
    %c0_54 = arith.constant 0 : index
    %45 = vector.load %arg4[%c1_52, %c0_53, %c0_54] : memref<9x8x4xbf16, #tpu.memory_space<vmem>>, vector<1x8x4xbf16>
    %46 = vector.shape_cast %45 : vector<1x8x4xbf16> to vector<8x4xbf16>
    %47 = vector.shape_cast %46 : vector<8x4xbf16> to vector<1x8x4xbf16>
    %48 = vector.shape_cast %47 : vector<1x8x4xbf16> to vector<1x8x4xbf16>
    %49 = vector.broadcast %48 : vector<1x8x4xbf16> to vector<32x8x4xbf16>
    %cst_55 = arith.constant dense<0.000000e+00> : vector<32x8x32xf32>
    %50 = tpu.matmul %49, %44, %cst_55 {dimension_numbers = #tpu.dot_dimension_numbers<[2], [1], [1], [2], [0, 0, 0, 1, 1, 2], [0], [0]>} : vector<32x8x4xbf16>, vector<32x4x32xbf16>, vector<32x8x32xf32> -> vector<32x8x32xf32>
    %c0_56 = arith.constant 0 : index
    %c0_57 = arith.constant 0 : index
    %c0_58 = arith.constant 0 : index
    %c0_59 = arith.constant 0 : index
    %51 = vector.load %arg5[%c0_56, %c0_57, %c0_58, %c0_59] : memref<1x32x8x32xf32, #tpu.memory_space<vmem>>, vector<1x32x8x32xf32>
    %52 = vector.shape_cast %51 : vector<1x32x8x32xf32> to vector<32x8x32xf32>
    %53 = arith.addf %52, %50 : vector<32x8x32xf32>
    %c0_60 = arith.constant 0 : index
    %c0_61 = arith.constant 0 : index
    %c0_62 = arith.constant 0 : index
    %c0_63 = arith.constant 0 : index
    %54 = vector.load %arg5[%c0_60, %c0_61, %c0_62, %c0_63] : memref<1x32x8x32xf32, #tpu.memory_space<vmem>>, vector<1x32x8x32xf32>
    %55 = vector.shape_cast %54 : vector<1x32x8x32xf32> to vector<32x8x32xf32>
    %56 = vector.shape_cast %53 : vector<32x8x32xf32> to vector<1x32x8x32xf32>
    tpu.vector_store %arg5[%c0_60, %c0_61, %c0_62, %c0_63], %56 {strides = array<i32>} : memref<1x32x8x32xf32, #tpu.memory_space<vmem>>, vector<1x32x8x32xf32>,
    %c0_64 = arith.constant 0 : index
    %c0_65 = arith.constant 0 : index
    %c2_66 = arith.constant 2 : index
    %57 = vector.load %arg9[%c0_64, %c0_65, %c2_66] : memref<34x4x34xbf16, #tpu.memory_space<vmem>>, vector<32x4x32xbf16>
    %c2_67 = arith.constant 2 : index
    %c0_68 = arith.constant 0 : index
    %c0_69 = arith.constant 0 : index
    %58 = vector.load %arg4[%c2_67, %c0_68, %c0_69] : memref<9x8x4xbf16, #tpu.memory_space<vmem>>, vector<1x8x4xbf16>
    %59 = vector.shape_cast %58 : vector<1x8x4xbf16> to vector<8x4xbf16>
    %60 = vector.shape_cast %59 : vector<8x4xbf16> to vector<1x8x4xbf16>
    %61 = vector.shape_cast %60 : vector<1x8x4xbf16> to vector<1x8x4xbf16>
    %62 = vector.broadcast %61 : vector<1x8x4xbf16> to vector<32x8x4xbf16>
    %cst_70 = arith.constant dense<0.000000e+00> : vector<32x8x32xf32>
    %63 = tpu.matmul %62, %57, %cst_70 {dimension_numbers = #tpu.dot_dimension_numbers<[2], [1], [1], [2], [0, 0, 0, 1, 1, 2], [0], [0]>} : vector<32x8x4xbf16>, vector<32x4x32xbf16>, vector<32x8x32xf32> -> vector<32x8x32xf32>
    %c0_71 = arith.constant 0 : index
    %c0_72 = arith.constant 0 : index
    %c0_73 = arith.constant 0 : index
    %c0_74 = arith.constant 0 : index
    %64 = vector.load %arg5[%c0_71, %c0_72, %c0_73, %c0_74] : memref<1x32x8x32xf32, #tpu.memory_space<vmem>>, vector<1x32x8x32xf32>
    %65 = vector.shape_cast %64 : vector<1x32x8x32xf32> to vector<32x8x32xf32>
    %66 = arith.addf %65, %63 : vector<32x8x32xf32>
    %c0_75 = arith.constant 0 : index
    %c0_76 = arith.constant 0 : index
    %c0_77 = arith.constant 0 : index
    %c0_78 = arith.constant 0 : index
    %67 = vector.load %arg5[%c0_75, %c0_76, %c0_77, %c0_78] : memref<1x32x8x32xf32, #tpu.memory_space<vmem>>, vector<1x32x8x32xf32>
    %68 = vector.shape_cast %67 : vector<1x32x8x32xf32> to vector<32x8x32xf32>
    %69 = vector.shape_cast %66 : vector<32x8x32xf32> to vector<1x32x8x32xf32>
    tpu.vector_store %arg5[%c0_75, %c0_76, %c0_77, %c0_78], %69 {strides = array<i32>} : memref<1x32x8x32xf32, #tpu.memory_space<vmem>>, vector<1x32x8x32xf32>,
    %c1_79 = arith.constant 1 : index
    %c0_80 = arith.constant 0 : index
    %c0_81 = arith.constant 0 : index
    %70 = vector.load %arg9[%c1_79, %c0_80, %c0_81] : memref<34x4x34xbf16, #tpu.memory_space<vmem>>, vector<32x4x32xbf16>
    %c3_82 = arith.constant 3 : index
    %c0_83 = arith.constant 0 : index
    %c0_84 = arith.constant 0 : index
    %71 = vector.load %arg4[%c3_82, %c0_83, %c0_84] : memref<9x8x4xbf16, #tpu.memory_space<vmem>>, vector<1x8x4xbf16>
    %72 = vector.shape_cast %71 : vector<1x8x4xbf16> to vector<8x4xbf16>
    %73 = vector.shape_cast %72 : vector<8x4xbf16> to vector<1x8x4xbf16>
    %74 = vector.shape_cast %73 : vector<1x8x4xbf16> to vector<1x8x4xbf16>
    %75 = vector.broadcast %74 : vector<1x8x4xbf16> to vector<32x8x4xbf16>
    %cst_85 = arith.constant dense<0.000000e+00> : vector<32x8x32xf32>
    %76 = tpu.matmul %75, %70, %cst_85 {dimension_numbers = #tpu.dot_dimension_numbers<[2], [1], [1], [2], [0, 0, 0, 1, 1, 2], [0], [0]>} : vector<32x8x4xbf16>, vector<32x4x32xbf16>, vector<32x8x32xf32> -> vector<32x8x32xf32>
    %c0_86 = arith.constant 0 : index
    %c0_87 = arith.constant 0 : index
    %c0_88 = arith.constant 0 : index
    %c0_89 = arith.constant 0 : index
    %77 = vector.load %arg5[%c0_86, %c0_87, %c0_88, %c0_89] : memref<1x32x8x32xf32, #tpu.memory_space<vmem>>, vector<1x32x8x32xf32>
    %78 = vector.shape_cast %77 : vector<1x32x8x32xf32> to vector<32x8x32xf32>
    %79 = arith.addf %78, %76 : vector<32x8x32xf32>
    %c0_90 = arith.constant 0 : index
    %c0_91 = arith.constant 0 : index
    %c0_92 = arith.constant 0 : index
    %c0_93 = arith.constant 0 : index
    %80 = vector.load %arg5[%c0_90, %c0_91, %c0_92, %c0_93] : memref<1x32x8x32xf32, #tpu.memory_space<vmem>>, vector<1x32x8x32xf32>
    %81 = vector.shape_cast %80 : vector<1x32x8x32xf32> to vector<32x8x32xf32>
    %82 = vector.shape_cast %79 : vector<32x8x32xf32> to vector<1x32x8x32xf32>
    tpu.vector_store %arg5[%c0_90, %c0_91, %c0_92, %c0_93], %82 {strides = array<i32>} : memref<1x32x8x32xf32, #tpu.memory_space<vmem>>, vector<1x32x8x32xf32>,
    %c1_94 = arith.constant 1 : index
    %c0_95 = arith.constant 0 : index
    %c1_96 = arith.constant 1 : index
    %83 = vector.load %arg9[%c1_94, %c0_95, %c1_96] : memref<34x4x34xbf16, #tpu.memory_space<vmem>>, vector<32x4x32xbf16>
    %c4 = arith.constant 4 : index
    %c0_97 = arith.constant 0 : index
    %c0_98 = arith.constant 0 : index
    %84 = vector.load %arg4[%c4, %c0_97, %c0_98] : memref<9x8x4xbf16, #tpu.memory_space<vmem>>, vector<1x8x4xbf16>
    %85 = vector.shape_cast %84 : vector<1x8x4xbf16> to vector<8x4xbf16>
    %86 = vector.shape_cast %85 : vector<8x4xbf16> to vector<1x8x4xbf16>
    %87 = vector.shape_cast %86 : vector<1x8x4xbf16> to vector<1x8x4xbf16>
    %88 = vector.broadcast %87 : vector<1x8x4xbf16> to vector<32x8x4xbf16>
    %cst_99 = arith.constant dense<0.000000e+00> : vector<32x8x32xf32>
    %89 = tpu.matmul %88, %83, %cst_99 {dimension_numbers = #tpu.dot_dimension_numbers<[2], [1], [1], [2], [0, 0, 0, 1, 1, 2], [0], [0]>} : vector<32x8x4xbf16>, vector<32x4x32xbf16>, vector<32x8x32xf32> -> vector<32x8x32xf32>
    %c0_100 = arith.constant 0 : index
    %c0_101 = arith.constant 0 : index
    %c0_102 = arith.constant 0 : index
    %c0_103 = arith.constant 0 : index
    %90 = vector.load %arg5[%c0_100, %c0_101, %c0_102, %c0_103] : memref<1x32x8x32xf32, #tpu.memory_space<vmem>>, vector<1x32x8x32xf32>
    %91 = vector.shape_cast %90 : vector<1x32x8x32xf32> to vector<32x8x32xf32>
    %92 = arith.addf %91, %89 : vector<32x8x32xf32>
    %c0_104 = arith.constant 0 : index
    %c0_105 = arith.constant 0 : index
    %c0_106 = arith.constant 0 : index
    %c0_107 = arith.constant 0 : index
    %93 = vector.load %arg5[%c0_104, %c0_105, %c0_106, %c0_107] : memref<1x32x8x32xf32, #tpu.memory_space<vmem>>, vector<1x32x8x32xf32>
    %94 = vector.shape_cast %93 : vector<1x32x8x32xf32> to vector<32x8x32xf32>
    %95 = vector.shape_cast %92 : vector<32x8x32xf32> to vector<1x32x8x32xf32>
    tpu.vector_store %arg5[%c0_104, %c0_105, %c0_106, %c0_107], %95 {strides = array<i32>} : memref<1x32x8x32xf32, #tpu.memory_space<vmem>>, vector<1x32x8x32xf32>,
    %c1_108 = arith.constant 1 : index
    %c0_109 = arith.constant 0 : index
    %c2_110 = arith.constant 2 : index
    %96 = vector.load %arg9[%c1_108, %c0_109, %c2_110] : memref<34x4x34xbf16, #tpu.memory_space<vmem>>, vector<32x4x32xbf16>
    %c5 = arith.constant 5 : index
    %c0_111 = arith.constant 0 : index
    %c0_112 = arith.constant 0 : index
    %97 = vector.load %arg4[%c5, %c0_111, %c0_112] : memref<9x8x4xbf16, #tpu.memory_space<vmem>>, vector<1x8x4xbf16>
    %98 = vector.shape_cast %97 : vector<1x8x4xbf16> to vector<8x4xbf16>
    %99 = vector.shape_cast %98 : vector<8x4xbf16> to vector<1x8x4xbf16>
    %100 = vector.shape_cast %99 : vector<1x8x4xbf16> to vector<1x8x4xbf16>
    %101 = vector.broadcast %100 : vector<1x8x4xbf16> to vector<32x8x4xbf16>
    %cst_113 = arith.constant dense<0.000000e+00> : vector<32x8x32xf32>
    %102 = tpu.matmul %101, %96, %cst_113 {dimension_numbers = #tpu.dot_dimension_numbers<[2], [1], [1], [2], [0, 0, 0, 1, 1, 2], [0], [0]>} : vector<32x8x4xbf16>, vector<32x4x32xbf16>, vector<32x8x32xf32> -> vector<32x8x32xf32>
    %c0_114 = arith.constant 0 : index
    %c0_115 = arith.constant 0 : index
    %c0_116 = arith.constant 0 : index
    %c0_117 = arith.constant 0 : index
    %103 = vector.load %arg5[%c0_114, %c0_115, %c0_116, %c0_117] : memref<1x32x8x32xf32, #tpu.memory_space<vmem>>, vector<1x32x8x32xf32>
    %104 = vector.shape_cast %103 : vector<1x32x8x32xf32> to vector<32x8x32xf32>
    %105 = arith.addf %104, %102 : vector<32x8x32xf32>
    %c0_118 = arith.constant 0 : index
    %c0_119 = arith.constant 0 : index
    %c0_120 = arith.constant 0 : index
    %c0_121 = arith.constant 0 : index
    %106 = vector.load %arg5[%c0_118, %c0_119, %c0_120, %c0_121] : memref<1x32x8x32xf32, #tpu.memory_space<vmem>>, vector<1x32x8x32xf32>
    %107 = vector.shape_cast %106 : vector<1x32x8x32xf32> to vector<32x8x32xf32>
    %108 = vector.shape_cast %105 : vector<32x8x32xf32> to vector<1x32x8x32xf32>
    tpu.vector_store %arg5[%c0_118, %c0_119, %c0_120, %c0_121], %108 {strides = array<i32>} : memref<1x32x8x32xf32, #tpu.memory_space<vmem>>, vector<1x32x8x32xf32>,
    %c2_122 = arith.constant 2 : index
    %c0_123 = arith.constant 0 : index
    %c0_124 = arith.constant 0 : index
    %109 = vector.load %arg9[%c2_122, %c0_123, %c0_124] : memref<34x4x34xbf16, #tpu.memory_space<vmem>>, vector<32x4x32xbf16>
    %c6 = arith.constant 6 : index
    %c0_125 = arith.constant 0 : index
    %c0_126 = arith.constant 0 : index
    %110 = vector.load %arg4[%c6, %c0_125, %c0_126] : memref<9x8x4xbf16, #tpu.memory_space<vmem>>, vector<1x8x4xbf16>
    %111 = vector.shape_cast %110 : vector<1x8x4xbf16> to vector<8x4xbf16>
    %112 = vector.shape_cast %111 : vector<8x4xbf16> to vector<1x8x4xbf16>
    %113 = vector.shape_cast %112 : vector<1x8x4xbf16> to vector<1x8x4xbf16>
    %114 = vector.broadcast %113 : vector<1x8x4xbf16> to vector<32x8x4xbf16>
    %cst_127 = arith.constant dense<0.000000e+00> : vector<32x8x32xf32>
    %115 = tpu.matmul %114, %109, %cst_127 {dimension_numbers = #tpu.dot_dimension_numbers<[2], [1], [1], [2], [0, 0, 0, 1, 1, 2], [0], [0]>} : vector<32x8x4xbf16>, vector<32x4x32xbf16>, vector<32x8x32xf32> -> vector<32x8x32xf32>
    %c0_128 = arith.constant 0 : index
    %c0_129 = arith.constant 0 : index
    %c0_130 = arith.constant 0 : index
    %c0_131 = arith.constant 0 : index
    %116 = vector.load %arg5[%c0_128, %c0_129, %c0_130, %c0_131] : memref<1x32x8x32xf32, #tpu.memory_space<vmem>>, vector<1x32x8x32xf32>
    %117 = vector.shape_cast %116 : vector<1x32x8x32xf32> to vector<32x8x32xf32>
    %118 = arith.addf %117, %115 : vector<32x8x32xf32>
    %c0_132 = arith.constant 0 : index
    %c0_133 = arith.constant 0 : index
    %c0_134 = arith.constant 0 : index
    %c0_135 = arith.constant 0 : index
    %119 = vector.load %arg5[%c0_132, %c0_133, %c0_134, %c0_135] : memref<1x32x8x32xf32, #tpu.memory_space<vmem>>, vector<1x32x8x32xf32>
    %120 = vector.shape_cast %119 : vector<1x32x8x32xf32> to vector<32x8x32xf32>
    %121 = vector.shape_cast %118 : vector<32x8x32xf32> to vector<1x32x8x32xf32>
    tpu.vector_store %arg5[%c0_132, %c0_133, %c0_134, %c0_135], %121 {strides = array<i32>} : memref<1x32x8x32xf32, #tpu.memory_space<vmem>>, vector<1x32x8x32xf32>,
    %c2_136 = arith.constant 2 : index
    %c0_137 = arith.constant 0 : index
    %c1_138 = arith.constant 1 : index
    %122 = vector.load %arg9[%c2_136, %c0_137, %c1_138] : memref<34x4x34xbf16, #tpu.memory_space<vmem>>, vector<32x4x32xbf16>
    %c7 = arith.constant 7 : index
    %c0_139 = arith.constant 0 : index
    %c0_140 = arith.constant 0 : index
    %123 = vector.load %arg4[%c7, %c0_139, %c0_140] : memref<9x8x4xbf16, #tpu.memory_space<vmem>>, vector<1x8x4xbf16>
    %124 = vector.shape_cast %123 : vector<1x8x4xbf16> to vector<8x4xbf16>
    %125 = vector.shape_cast %124 : vector<8x4xbf16> to vector<1x8x4xbf16>
    %126 = vector.shape_cast %125 : vector<1x8x4xbf16> to vector<1x8x4xbf16>
    %127 = vector.broadcast %126 : vector<1x8x4xbf16> to vector<32x8x4xbf16>
    %cst_141 = arith.constant dense<0.000000e+00> : vector<32x8x32xf32>
    %128 = tpu.matmul %127, %122, %cst_141 {dimension_numbers = #tpu.dot_dimension_numbers<[2], [1], [1], [2], [0, 0, 0, 1, 1, 2], [0], [0]>} : vector<32x8x4xbf16>, vector<32x4x32xbf16>, vector<32x8x32xf32> -> vector<32x8x32xf32>
    %c0_142 = arith.constant 0 : index
    %c0_143 = arith.constant 0 : index
    %c0_144 = arith.constant 0 : index
    %c0_145 = arith.constant 0 : index
    %129 = vector.load %arg5[%c0_142, %c0_143, %c0_144, %c0_145] : memref<1x32x8x32xf32, #tpu.memory_space<vmem>>, vector<1x32x8x32xf32>
    %130 = vector.shape_cast %129 : vector<1x32x8x32xf32> to vector<32x8x32xf32>
    %131 = arith.addf %130, %128 : vector<32x8x32xf32>
    %c0_146 = arith.constant 0 : index
    %c0_147 = arith.constant 0 : index
    %c0_148 = arith.constant 0 : index
    %c0_149 = arith.constant 0 : index
    %132 = vector.load %arg5[%c0_146, %c0_147, %c0_148, %c0_149] : memref<1x32x8x32xf32, #tpu.memory_space<vmem>>, vector<1x32x8x32xf32>
    %133 = vector.shape_cast %132 : vector<1x32x8x32xf32> to vector<32x8x32xf32>
    %134 = vector.shape_cast %131 : vector<32x8x32xf32> to vector<1x32x8x32xf32>
    tpu.vector_store %arg5[%c0_146, %c0_147, %c0_148, %c0_149], %134 {strides = array<i32>} : memref<1x32x8x32xf32, #tpu.memory_space<vmem>>, vector<1x32x8x32xf32>,
    %c2_150 = arith.constant 2 : index
    %c0_151 = arith.constant 0 : index
    %c2_152 = arith.constant 2 : index
    %135 = vector.load %arg9[%c2_150, %c0_151, %c2_152] : memref<34x4x34xbf16, #tpu.memory_space<vmem>>, vector<32x4x32xbf16>
    %c8 = arith.constant 8 : index
    %c0_153 = arith.constant 0 : index
    %c0_154 = arith.constant 0 : index
    %136 = vector.load %arg4[%c8, %c0_153, %c0_154] : memref<9x8x4xbf16, #tpu.memory_space<vmem>>, vector<1x8x4xbf16>
    %137 = vector.shape_cast %136 : vector<1x8x4xbf16> to vector<8x4xbf16>
    %138 = vector.shape_cast %137 : vector<8x4xbf16> to vector<1x8x4xbf16>
    %139 = vector.shape_cast %138 : vector<1x8x4xbf16> to vector<1x8x4xbf16>
    %140 = vector.broadcast %139 : vector<1x8x4xbf16> to vector<32x8x4xbf16>
    %cst_155 = arith.constant dense<0.000000e+00> : vector<32x8x32xf32>
    %141 = tpu.matmul %140, %135, %cst_155 {dimension_numbers = #tpu.dot_dimension_numbers<[2], [1], [1], [2], [0, 0, 0, 1, 1, 2], [0], [0]>} : vector<32x8x4xbf16>, vector<32x4x32xbf16>, vector<32x8x32xf32> -> vector<32x8x32xf32>
    %c0_156 = arith.constant 0 : index
    %c0_157 = arith.constant 0 : index
    %c0_158 = arith.constant 0 : index
    %c0_159 = arith.constant 0 : index
    %142 = vector.load %arg5[%c0_156, %c0_157, %c0_158, %c0_159] : memref<1x32x8x32xf32, #tpu.memory_space<vmem>>, vector<1x32x8x32xf32>
    %143 = vector.shape_cast %142 : vector<1x32x8x32xf32> to vector<32x8x32xf32>
    %144 = arith.addf %143, %141 : vector<32x8x32xf32>
    %c0_160 = arith.constant 0 : index
    %c0_161 = arith.constant 0 : index
    %c0_162 = arith.constant 0 : index
    %c0_163 = arith.constant 0 : index
    %145 = vector.load %arg5[%c0_160, %c0_161, %c0_162, %c0_163] : memref<1x32x8x32xf32, #tpu.memory_space<vmem>>, vector<1x32x8x32xf32>
    %146 = vector.shape_cast %145 : vector<1x32x8x32xf32> to vector<32x8x32xf32>
    %147 = vector.shape_cast %144 : vector<32x8x32xf32> to vector<1x32x8x32xf32>
    tpu.vector_store %arg5[%c0_160, %c0_161, %c0_162, %c0_163], %147 {strides = array<i32>} : memref<1x32x8x32xf32, #tpu.memory_space<vmem>>, vector<1x32x8x32xf32>,
    %c0_164 = arith.constant 0 : index
    %c0_165 = arith.constant 0 : index
    %c0_166 = arith.constant 0 : index
    %c0_167 = arith.constant 0 : index
    %148 = vector.load %arg5[%c0_164, %c0_165, %c0_166, %c0_167] : memref<1x32x8x32xf32, #tpu.memory_space<vmem>>, vector<1x32x8x32xf32>
    %149 = vector.shape_cast %148 : vector<1x32x8x32xf32> to vector<32x8x32xf32>
    %cst_168 = arith.constant dense<0.000000e+00> : vector<8x32xf32>
    %150 = vector.multi_reduction <add>, %149, %cst_168 [0] : vector<32x8x32xf32> to vector<8x32xf32>
    %cst_169 = arith.constant dense<0.000000e+00> : vector<8xf32>
    %151 = vector.multi_reduction <add>, %150, %cst_169 [1] : vector<8x32xf32> to vector<8xf32>
    %152 = vector.shape_cast %151 : vector<8xf32> to vector<8x1xf32>
    %153 = arith.mulf %149, %149 : vector<32x8x32xf32>
    %cst_170 = arith.constant dense<0.000000e+00> : vector<8x32xf32>
    %154 = vector.multi_reduction <add>, %153, %cst_170 [0] : vector<32x8x32xf32> to vector<8x32xf32>
    %cst_171 = arith.constant dense<0.000000e+00> : vector<8xf32>
    %155 = vector.multi_reduction <add>, %154, %cst_171 [1] : vector<8x32xf32> to vector<8xf32>
    %156 = vector.shape_cast %155 : vector<8xf32> to vector<8x1xf32>
    %c0_172 = arith.constant 0 : index
    %c0_173 = arith.constant 0 : index
    %c0_174 = arith.constant 0 : index
    %157 = vector.load %arg6[%c0_172, %c0_173, %c0_174] : memref<1x8x2xf32, #tpu.memory_space<vmem>>, vector<1x8x1xf32>
    %158 = vector.shape_cast %157 : vector<1x8x1xf32> to vector<8x1xf32>
    %159 = vector.shape_cast %152 : vector<8x1xf32> to vector<1x8x1xf32>
    tpu.vector_store %arg6[%c0_172, %c0_173, %c0_174], %159 {strides = array<i32>} : memref<1x8x2xf32, #tpu.memory_space<vmem>>, vector<1x8x1xf32>,
    %c0_175 = arith.constant 0 : index
    %c0_176 = arith.constant 0 : index
    %c1_177 = arith.constant 1 : index
    %160 = vector.load %arg6[%c0_175, %c0_176, %c1_177] : memref<1x8x2xf32, #tpu.memory_space<vmem>>, vector<1x8x1xf32>
    %161 = vector.shape_cast %160 : vector<1x8x1xf32> to vector<8x1xf32>
    %162 = vector.shape_cast %156 : vector<8x1xf32> to vector<1x8x1xf32>
    tpu.vector_store %arg6[%c0_175, %c0_176, %c1_177], %162 {strides = array<i32>} : memref<1x8x2xf32, #tpu.memory_space<vmem>>, vector<1x8x1xf32>,
    return
  }
  func.func @transform_0(%arg0: i32) -> (i32, i32, i32) {
    %c0_i32 = arith.constant 0 : i32
    %c0_i32_0 = arith.constant 0 : i32
    %c0_i32_1 = arith.constant 0 : i32
    return %arg0, %c0_i32, %c0_i32_0 : i32, i32, i32
  }
  func.func @transform_1(%arg0: i32) -> (i32, i32) {
    %c0_i32 = arith.constant 0 : i32
    %c0_i32_0 = arith.constant 0 : i32
    %c0_i32_1 = arith.constant 0 : i32
    return %c0_i32, %c0_i32_0 : i32, i32
  }
  func.func @transform_2(%arg0: i32) -> (i32, i32) {
    %c0_i32 = arith.constant 0 : i32
    %c0_i32_0 = arith.constant 0 : i32
    %c0_i32_1 = arith.constant 0 : i32
    return %c0_i32, %c0_i32_0 : i32, i32
  }
  func.func @transform_3(%arg0: i32) -> (i32, i32, i32) {
    %c0_i32 = arith.constant 0 : i32
    %c0_i32_0 = arith.constant 0 : i32
    %c0_i32_1 = arith.constant 0 : i32
    %c0_i32_2 = arith.constant 0 : i32
    return %c0_i32, %c0_i32_0, %c0_i32_1 : i32, i32, i32
  }
  func.func @transform_4(%arg0: i32) -> (i32, i32, i32, i32) {
    %c0_i32 = arith.constant 0 : i32
    %c0_i32_0 = arith.constant 0 : i32
    %c0_i32_1 = arith.constant 0 : i32
    %c0_i32_2 = arith.constant 0 : i32
    return %arg0, %c0_i32, %c0_i32_0, %c0_i32_1 : i32, i32, i32, i32
  }
  func.func @transform_5(%arg0: i32) -> (i32, i32, i32) {
    %c0_i32 = arith.constant 0 : i32
    %c0_i32_0 = arith.constant 0 : i32
    %c0_i32_1 = arith.constant 0 : i32
    return %arg0, %c0_i32, %c0_i32_0 : i32, i32, i32
  }
}

</mosaic_0001>

<bundles_post_ra>
// kernel: tpu_custom_call.1
= control target key start
LH: loop header
LB: loop body
LE: loop exit
PB: predicated region body
PF: predicated region fallthrough
CT: control target
= control target key end

     0   :  { %11 = vsyncpa [#allocation6], 0  ;;  %s23959_s0 = inlined_call_operand.vmem [shape: bf16[2,16,64], index: 0, kind: input, shape index: {}]   ;;  %s23960_s1 = inlined_call_operand.vmem [shape: f32[34,16], index: 1, kind: input, shape index: {}]   ;;  %s23961_s2 = inlined_call_operand.vmem [shape: f32[16,34], index: 2, kind: input, shape index: {}]   ;;  %s23962_s3 = inlined_call_operand.vmem [shape: bf16[9,8,4], index: 3, kind: input, shape index: {}]   ;;  %s23963_s4 = inlined_call_operand.hbm [shape: f32[2,32,8,32], index: 4, kind: output, shape index: {0}]   ;;  %s23964_s5 = inlined_call_operand.vmem [shape: f32[2,8,2], index: 5, kind: output, shape index: {1}]  }
   0x1   :  { %13 = vsyncpa [#allocation6 + $0x1], 0  ;;  %s20132_s18 = smov 0   ;;  %s20134_s19 = smov 0  }
   0x2   :  { %s20136_s20 = smov 0   ;;  %s20138_s21 = smov 0  }
   0x3 LB: > { %s20153_s22 = sadd.s32 4294967295, %s20087_s21   ;;  %s16993_s23 = sadd.s32 4294967294, %s20087_s21   ;;  %s20087_s21 = sphi %s20138_s21, %s23970_s21   ;;  %s20083_s20 = sphi %s20136_s20, %s23969_s20   ;;  %s20079_s19 = sphi %s20134_s19, %s23968_s19   ;;  %s20075_s18 = sphi %s20132_s18, %s23967_s18  }
   0x4   : > { %s20157_s24 = sadd.s32 1, %s20087_s21   ;;  %s115_s25 = sadd.s32 1, %s20083_s20 }
   0x5   : > { %s112_s26 = ssub.s32 %s20087_s21, %s20157_s24  ;;  %p125_p0 = scmp.ne.s32.totalorder %s20083_s20, %s20079_s19 }
   0x6   : > { %p113_p1 = scmp.eq.s32.totalorder %s112_s26, 0  ;;  %p126_p2 = scmp.eq.s32.totalorder %s20153_s22, 1 }
   0x7   : > { %p131_p3 = scmp.ne.s32.totalorder %s20079_s19, %s20075_s18  ;;  %p132_p4 = scmp.eq.s32.totalorder %s16993_s23, 1 }
   0x8   : > { %s20168_s27 = scalar_select %p113_p1, %s20083_s20, %s115_s25  }
   0x9   : > { %p20170_p5 = por %p126_p2, %p125_p0  ;;  %p20174_p6 = por %p132_p4, %p131_p3 }
   0xa   : > { %p16996_p7 = scmp.ge.s32.totalorder %s20087_s21, 1  ;;  %p193_p8 = scmp.lt.s32.totalorder %s20087_s21, 3 }
   0xc   : > { %p194_p9 = pnand %p16996_p7, %p193_p8 }
   0xd   : > { %p225_p10 = scmp.lt.s32.totalorder (!%p194_p9), %s20153_s22, 1  ;;  %v20089_v0 = vmov (!%p194_p9), 0.0|0.0   ;;  %vm20090_vm0 = vmmov (!%p194_p9), 0   ;;  %v20091_v1 = vmov (!%p194_p9), 0.0   ;;  %v239_v3 = vld [vmem:[%s23960_s1] sm:$0xff] (!%p194_p9)  ;;  %vm244_vm1 = vcmask (!%p194_p9), 130048  }
   0xe   : > { %197 = sbr.rel (%p194_p9) target bundleno = 2153 (0x869), region = 36  ;;  %19959 = vmatprep.subr.bf16.mxu0 (!%p194_p9), %v20089_v0  ;;  %18140 = vmatprep.mubr.msk.f32.mxu0 (!%p194_p9), %vm20090_vm0, %v20091_v1  ;;  %v240_v4 = vld [vmem:[%s23960_s1 + $0x8] sm:$0xff] (!%p194_p9)  ;;  %v241_v5 = vld [vmem:[%s23960_s1 + $0x10] sm:$0xff] (!%p194_p9)  ;;  %v242_v6 = vld [vmem:[%s23960_s1 + $0x18] sm:$0xff] (!%p194_p9)  ;;  %vm350_vm2 = vcmask (!%p194_p9), 523264   ;;  %s20092_s10 = smov (!%p194_p9), 112  }
   0xf   : > { %19962 = vmatprep.subr.bf16.mxu1 (!%p194_p9), %v20089_v0  ;;  %18159 = vmatprep.mubr.msk.f32.mxu1 (!%p194_p9), %vm20090_vm0, %v20091_v1  ;;  %v243_v7 = vld [vmem:[%s23960_s1 + $0x20] sm:$0x3] (!%p194_p9)  ;;  %v363_v9 = vld [vmem:[%s23961_s2 + $0x8] sm:$0xff] (!%p194_p9)  ;;  %vm355_vm3 = vcmask (!%p194_p9), 517120   ;;  %s20093_s11 = smov (!%p194_p9), 96   ;;  %s20094_s12 = smov (!%p194_p9), 80  }
  0x10   : > { %v362_v8 = vld [vmem:[%s23961_s2] sm:$0xff] (!%p194_p9)  ;;  %vm469_vm4 = vcmask (!%p194_p9), 277504   ;;  %vm474_vm5 = vcmask (!%p194_p9), 271360   ;;  %vm1282_vm6 = vcmask (!%p194_p9), 1041408   ;;  %vm1278_vm7 = vcmask (!%p194_p9), 31744   ;;  %s20097_s13 = smov (!%p194_p9), 127  }
  0x11   : > { %v20230_v10 = vpack.c.bf16 (!%p194_p9), %v363_v9, %v362_v8  ;;  %s20098_s16 = smov (!%p194_p9), 126   ;;  %s216_s25 = sand.u32 (!%p194_p9), 1, %s20079_s19   ;;  %vm2659_vm8 = vcmask (!%p194_p9), 261120  }
  0x12   : > { %s16997_s26 = sshll.u32 (!%p194_p9), %s216_s25, 8  ;;  %s23913_s15 = scalar_lea.sflag (!%p194_p9), [#allocation6], %s216_s25 }
  0x13   : > { %19964 = vmatpush3.bf16.msra.mxu1 (!%p194_p9), %v20230_v10  ;;  %s21182_s7 = scalar_lea.vmem (!%p194_p9), [#allocation5], %s16997_s26 }
  0x14   : > { %19968 = vmatprep.subr.bf16.mxu1 (!%p194_p9), %v20089_v0  ;;  %s16904_s14 = sshll.u32 (!%p194_p9), %s21182_s7, 4  ;;  %s23909_s14 = int_to_ptr.vmem [resolvable:$true] %s16904_s14 }
  0x15   : > { %s20184_s30 = scalar_select %p225_p10, %s20153_s22, 1 }
  0x17   : > { %s17519_s6 = sshll.u32 %s20184_s30, 3 }
  0x18   : > { %s229_s9 = scalar_lea.vmem %s23959_s0, %s17519_s6 }
  0x19   : > { %v17522_v2 = vld [vmem:[%s229_s9] sm:$0xff]  }
  0x1a   : > { %19961 = vmatpush3.bf16.msra.mxu0 %v17522_v2 }
  0x1b   : > { %19965 = vmatprep.subr.bf16.mxu0 %v20089_v0 }
  0x1d   : > { %18141 = vmatmul.mubr.msk.f32.vlgmr.msra.gmra.mrb[0].mxu0 %vm244_vm1, %v239_v3  ;;  %v20095_v3 = vmov 1983009808  }
  0x1e   : > { %18143 = vmatprep.mubr.msk.f32.mxu0 %vm20090_vm0, %v20091_v1  ;;  %19967 = vmatpush3.bf16.msra.mxu0 %v20230_v10 }
  0x1f   : > { %19971 = vmatprep.subr.bf16.mxu0 %v20089_v0 }
  0x21   : > { %18144 = vmatmul.mubr.msk.f32.gmra.mrb[2].mxu0 %vm244_vm1, %v240_v4  ;;  %v883_v4 = vunpack.c.l.s4 %v20095_v3 }
  0x22   : > { %18146 = vmatprep.mubr.msk.f32.mxu0 %vm20090_vm0, %v20091_v1 }
  0x25   : > { %18147 = vmatmul.mubr.msk.f32.gmra.mrb[4].mxu0 %vm244_vm1, %v241_v5  ;;  %v885_v5 = vlaneseq }
  0x26   : > { %18149 = vmatprep.mubr.msk.f32.mxu0 %vm20090_vm0, %v20091_v1 }
  0x29   : > { %18150 = vmatmul.mubr.msk.f32.gmra.mrb[6].mxu0 %vm244_vm1, %v242_v6 }
  0x2a   : > { %18152 = vmatprep.mubr.msk.f32.mxu0 %vm20090_vm0, %v20091_v1 }
  0x2d   : > { %18153 = vmatmul.mubr.msk.f32.gmra.mrb[8].mxu0 %vm244_vm1, %v243_v7 }
  0x2e   : > { %18178 = vmatprep.mubr.msk.f32.mxu0 %vm20090_vm0, %v20091_v1 }
  0xf0   : > { %v326_v11 = vpop.f32.mrb[0].mxu0 }
  0xf1   : > { %351 = vst.msk [vmem:[#allocation2] sm:$0xff] %vm350_vm2, %v326_v11  ;;  %v18142_v12 = vpop.f32.mrb[1].mxu0  ;;  %v886_v11 = vshrl.u32 %v885_v5, 7 }
  0xf2   : > { %v20096_v12 = vmov 1934713408  }
  0xf4   : > { %v331_v13 = vpop.f32.mrb[2].mxu0 }
  0xf5   : > { %352 = vst.msk [vmem:[#allocation2 + $0x8] sm:$0xff] %vm350_vm2, %v331_v13  ;;  %v18145_v14 = vpop.f32.mrb[3].mxu0  ;;  %v915_v13 = vunpack.c.l.s4 %v20096_v12 }
  0xf8   : > { %v336_v15 = vpop.f32.mrb[4].mxu0  ;;  %v476_v16 = vld [vmem:[#allocation2] sm:$0xff] }
  0xf9   : > { %353 = vst.msk [vmem:[#allocation2 + $0x10] sm:$0xff] %vm350_vm2, %v336_v15  ;;  %488 = vrot.lane.b32.xlu0 %v476_v16, %s20092_s10  ;;  %v18148_v17 = vpop.f32.mrb[5].mxu0  ;;  %18160 = vmatmul.mubr.msk.f32.vlgmr.msra.gmra.mrb[0].mxu1 %vm244_vm1, %v476_v16 }
  0xfa   : > { %18162 = vmatprep.mubr.msk.f32.mxu1 %vm20090_vm0, %v20091_v1  ;;  %19970 = vmatpush3.bf16.msra.mxu1 %v20230_v10 }
  0xfb   : > { %18231 = vmatprep.subr.bf16.mxu1 %v20091_v1 }
  0xfc   : > { %v341_v18 = vpop.f32.mrb[6].mxu0  ;;  %v477_v19 = vld [vmem:[#allocation2 + $0x8] sm:$0xff] }
  0xfd   : > { %354 = vst.msk [vmem:[#allocation2 + $0x18] sm:$0xff] %vm350_vm2, %v341_v18  ;;  %490 = vrot.lane.b32.xlu0 %v477_v19, %s20092_s10  ;;  %v18151_v20 = vpop.f32.mrb[7].mxu0  ;;  %18163 = vmatmul.mubr.msk.f32.gmra.mrb[2].mxu1 %vm244_vm1, %v477_v19 }
  0xfe   : > { %18165 = vmatprep.mubr.msk.f32.mxu1 %vm20090_vm0, %v20091_v1 }
 0x100   : > { %v346_v21 = vpop.f32.mrb[8].mxu0  ;;  %v478_v22 = vld [vmem:[#allocation2 + $0x10] sm:$0xff] }
 0x101   : > { %356 = vst.msk [vmem:[#allocation2 + $0x20] sm:$0x3] %vm355_vm3, %v346_v21  ;;  %492 = vrot.lane.b32.xlu1 %v478_v22, %s20092_s10  ;;  %v18154_v23 = vpop.f32.mrb[9].mxu0  ;;  %18166 = vmatmul.mubr.msk.f32.gmra.mrb[4].mxu1 %vm244_vm1, %v478_v22 }
 0x102   : > { %18168 = vmatprep.mubr.msk.f32.mxu1 %vm20090_vm0, %v20091_v1 }
 0x104   : > { %v479_v24 = vld [vmem:[#allocation2 + $0x18] sm:$0xff] }
 0x105   : > { %494 = vrot.lane.b32.xlu1 %v479_v24, %s20092_s10  ;;  %18169 = vmatmul.mubr.msk.f32.gmra.mrb[6].mxu1 %vm244_vm1, %v479_v24 }
 0x106   : > { %18171 = vmatprep.mubr.msk.f32.mxu1 %vm20090_vm0, %v20091_v1 }
 0x108   : > { %v480_v25 = vld [vmem:[#allocation2 + $0x20] sm:$0x3] }
 0x109   : > { %v361_v26 = vld [vmem:[#allocation2 + $0x20] sm:$0x3]  ;;  %616 = vrot.lane.b32.xlu1 %v476_v16, %s20093_s11  ;;  %496 = vrot.lane.b32.xlu0 %v480_v25, %s20092_s10  ;;  %s17520_s10 = sshll.u32 %s20153_s22, 12  ;;  %s20099_s22 = smov [#allocation5]  }
 0x10a   : > { %18172 = vmatmul.mubr.msk.f32.gmra.mrb[8].mxu1 %vm244_vm1, %v361_v26  ;;  %v608_v27 = vld [vmem:[#allocation2 + $0x20] sm:$0x3]  ;;  %s20029_s17 = sshll.u32 %s20099_s22, 4  ;;  %s20030_s17 = int_to_ptr.vmem [resolvable:$false] %s20029_s17 }
 0x10b   : > { %18197 = vmatprep.mubr.msk.f32.mxu1 %vm20090_vm0, %v20091_v1  ;;  %v736_v28 = vld [vmem:[#allocation2 + $0x20] sm:$0x3]  ;;  %s20031_s23 = scalar_lea.vmem %s20030_s17, 8192  ;;  %p20032_p0 = scmp.lt.s32.totalorder %s23909_s14, %s20030_s17 }
 0x10d   : > { %618 = vrot.lane.b32.xlu1 %v477_v19, %s20093_s11  ;;  %744 = vrot.lane.b32.xlu0 %v476_v16, %s20094_s12 }
 0x111   : > { %620 = vrot.lane.b32.xlu1 %v478_v22, %s20093_s11  ;;  %746 = vrot.lane.b32.xlu0 %v477_v19, %s20094_s12 }
 0x115   : > { %622 = vrot.lane.b32.xlu1 %v479_v24, %s20093_s11  ;;  %748 = vrot.lane.b32.xlu0 %v478_v22, %s20094_s12  ;;  %v916_v22 = vunpack.c.0.s8 %v915_v13 }
 0x119   : > { %624 = vrot.lane.b32.xlu1 %v608_v27, %s20093_s11  ;;  %750 = vrot.lane.b32.xlu0 %v479_v24, %s20094_s12 }
 0x11d   : > { %752 = vrot.lane.b32.xlu0 %v736_v28, %s20094_s12 }
 0x16b   : > { %v489_v29 = vpop.permute.xlu0 %488 }
 0x16c   : > { %18179 = vmatmul.mubr.msk.f32.vlgmr.msra.gmra.mrb[10].mxu0 %vm244_vm1, %v489_v29 }
 0x16d   : > { %18181 = vmatprep.mubr.msk.f32.mxu0 %vm20090_vm0, %v20091_v1  ;;  %19973 = vmatpush3.bf16.msra.mxu0 %v20230_v10  ;;  %v884_v10 = vunpack.c.0.s8 %v883_v4 }
 0x16e   : > { %18249 = vmatprep.subr.bf16.mxu0 %v20091_v1 }
 0x16f   : > { %v491_v30 = vpop.permute.xlu0 %490  ;;  %v20322_v21 = vsub.s32 %v884_v10, %v886_v11 }
 0x170   : > { %18182 = vmatmul.mubr.msk.f32.gmra.mrb[12].mxu0 %vm244_vm1, %v491_v30 }
 0x171   : > { %18184 = vmatprep.mubr.msk.f32.mxu0 %vm20090_vm0, %v20091_v1 }
 0x173   : > { %v493_v31 = vpop.permute.xlu1 %492 }
 0x174   : > { %18185 = vmatmul.mubr.msk.f32.gmra.mrb[14].mxu0 %vm244_vm1, %v493_v31 }
 0x175   : > { %18187 = vmatprep.mubr.msk.f32.mxu0 %vm20090_vm0, %v20091_v1 }
 0x177   : > { %v495_v32 = vpop.permute.xlu1 %494 }
 0x178   : > { %18188 = vmatmul.mubr.msk.f32.gmra.mrb[16].mxu0 %vm244_vm1, %v495_v32 }
 0x179   : > { %18190 = vmatprep.mubr.msk.f32.mxu0 %vm20090_vm0, %v20091_v1 }
 0x17b   : > { %v617_v33 = vpop.permute.xlu1 %616  ;;  %v497_v34 = vpop.permute.xlu0 %496 }
 0x17c   : > { %18191 = vmatmul.mubr.msk.f32.gmra.mrb[18].mxu0 %vm244_vm1, %v497_v34  ;;  %18198 = vmatmul.mubr.msk.f32.vlgmr.msra.gmra.mrb[10].mxu1 %vm244_vm1, %v617_v33 }
 0x17d   : > { %18216 = vmatprep.mubr.msk.f32.mxu0 %vm20090_vm0, %v20091_v1  ;;  %18200 = vmatprep.mubr.msk.f32.mxu1 %vm20090_vm0, %v20091_v1 }
 0x17f   : > { %v619_v35 = vpop.permute.xlu1 %618  ;;  %v745_v36 = vpop.permute.xlu0 %744 }
 0x180   : > { %18201 = vmatmul.mubr.msk.f32.gmra.mrb[12].mxu1 %vm244_vm1, %v619_v35  ;;  %18217 = vmatmul.mubr.msk.f32.vlgmr.msra.gmra.mrb[20].mxu0 %vm244_vm1, %v745_v36  ;;  %v20327_v36 = vsub.s32 %v916_v22, %v886_v11 }
 0x181   : > { %18219 = vmatprep.mubr.msk.f32.mxu0 %vm20090_vm0, %v20091_v1  ;;  %18203 = vmatprep.mubr.msk.f32.mxu1 %vm20090_vm0, %v20091_v1 }
 0x183   : > { %v621_v37 = vpop.permute.xlu1 %620  ;;  %v747_v38 = vpop.permute.xlu0 %746 }
 0x184   : > { %18204 = vmatmul.mubr.msk.f32.gmra.mrb[14].mxu1 %vm244_vm1, %v621_v37  ;;  %18220 = vmatmul.mubr.msk.f32.gmra.mrb[22].mxu0 %vm244_vm1, %v747_v38 }
 0x185   : > { %18222 = vmatprep.mubr.msk.f32.mxu0 %vm20090_vm0, %v20091_v1  ;;  %18206 = vmatprep.mubr.msk.f32.mxu1 %vm20090_vm0, %v20091_v1 }
 0x187   : > { %v623_v39 = vpop.permute.xlu1 %622  ;;  %v749_v40 = vpop.permute.xlu0 %748 }
 0x188   : > { %18207 = vmatmul.mubr.msk.f32.gmra.mrb[16].mxu1 %vm244_vm1, %v623_v39  ;;  %18223 = vmatmul.mubr.msk.f32.gmra.mrb[24].mxu0 %vm244_vm1, %v749_v40 }
 0x189   : > { %18225 = vmatprep.mubr.msk.f32.mxu0 %vm20090_vm0, %v20091_v1  ;;  %18209 = vmatprep.mubr.msk.f32.mxu1 %vm20090_vm0, %v20091_v1 }
 0x18b   : > { %v625_v41 = vpop.permute.xlu1 %624  ;;  %v751_v42 = vpop.permute.xlu0 %750 }
 0x18c   : > { %18210 = vmatmul.mubr.msk.f32.gmra.mrb[18].mxu1 %vm244_vm1, %v625_v41  ;;  %18226 = vmatmul.mubr.msk.f32.gmra.mrb[26].mxu0 %vm244_vm1, %v751_v42 }
 0x18d   : > { %18228 = vmatprep.mubr.msk.f32.mxu0 %vm20090_vm0, %v20091_v1  ;;  %18233 = vmatprep.mubr.msk.bf16.mxu1 %vm20090_vm0, %v20091_v1 }
 0x18f   : > { %v753_v43 = vpop.permute.xlu0 %752 }
 0x190   : > { %18229 = vmatmul.mubr.msk.f32.gmra.mrb[28].mxu0 %vm244_vm1, %v753_v43 }
 0x191   : > { %18251 = vmatprep.mubr.msk.bf16.mxu0 %vm20090_vm0, %v20091_v1 }
 0x1cc   : > { %v445_v44 = vpop.f32.mrb[0].mxu1 }
 0x1cd   : > { %470 = vst.msk [vmem:[#allocation3] sm:$0xff] %vm469_vm4, %v445_v44  ;;  %v18161_v45 = vpop.f32.mrb[1].mxu1 }
 0x1d0   : > { %v450_v46 = vpop.f32.mrb[2].mxu1 }
 0x1d1   : > { %471 = vst.msk [vmem:[#allocation3 + $0x8] sm:$0xff] %vm469_vm4, %v450_v46  ;;  %v18164_v47 = vpop.f32.mrb[3].mxu1 }
 0x1d4   : > { %v455_v48 = vpop.f32.mrb[4].mxu1  ;;  %v860_v17 = vld [vmem:[#allocation3] sm:$0xff] }
 0x1d5   : > { %472 = vst.msk [vmem:[#allocation3 + $0x10] sm:$0xff] %vm469_vm4, %v455_v48  ;;  %v18167_v49 = vpop.f32.mrb[5].mxu1 }
 0x1d8   : > { %v460_v50 = vpop.f32.mrb[6].mxu1  ;;  %v861_v29 = vld [vmem:[#allocation3 + $0x8] sm:$0xff] }
 0x1d9   : > { %473 = vst.msk [vmem:[#allocation3 + $0x18] sm:$0xff] %vm469_vm4, %v460_v50  ;;  %v18170_v51 = vpop.f32.mrb[7].mxu1 }
 0x1dc   : > { %v862_v41 = vld [vmem:[#allocation3 + $0x10] sm:$0xff] }
 0x1dd   : > { %v465_v52 = vpop.f32.mrb[8].mxu1 }
 0x1de   : > { %475 = vst.msk [vmem:[#allocation3 + $0x20] sm:$0x3] %vm474_vm5, %v465_v52  ;;  %v18173_v53 = vpop.f32.mrb[9].mxu1 }
 0x23f   : > { %v574_v54 = vpop.f32.mrb[10].mxu0 }
 0x240   : > { %599 = vst.msk [vmem:[#allocation3 + $0x28] sm:$0xff] %vm469_vm4, %v574_v54  ;;  %v18180_v55 = vpop.f32.mrb[11].mxu0 }
 0x243   : > { %v579_v56 = vpop.f32.mrb[12].mxu0 }
 0x244   : > { %600 = vst.msk [vmem:[#allocation3 + $0x30] sm:$0xff] %vm469_vm4, %v579_v56  ;;  %v18183_v57 = vpop.f32.mrb[13].mxu0 }
 0x245   : > { %v20337_v57 = vld [vmem:[#allocation3 + $0x18] sm:$0xff] }
 0x247   : > { %v584_v58 = vpop.f32.mrb[14].mxu0  ;;  %v865_v24 = vld [vmem:[#allocation3 + $0x28] sm:$0xff] }
 0x248   : > { %601 = vst.msk [vmem:[#allocation3 + $0x38] sm:$0xff] %vm469_vm4, %v584_v58  ;;  %v18186_v59 = vpop.f32.mrb[15].mxu0 }
 0x24b   : > { %v589_v60 = vpop.f32.mrb[16].mxu0  ;;  %v866_v46 = vld [vmem:[#allocation3 + $0x30] sm:$0xff] }
 0x24c   : > { %602 = vst.msk [vmem:[#allocation3 + $0x40] sm:$0xff] %vm469_vm4, %v589_v60  ;;  %v18189_v61 = vpop.f32.mrb[17].mxu0 }
 0x24f   : > { %v594_v62 = vpop.f32.mrb[18].mxu0  ;;  %v702_v63 = vpop.f32.mrb[10].mxu1 }
 0x250   : > { %603 = vst.msk [vmem:[#allocation3 + $0x48] sm:$0x3] %vm474_vm5, %v594_v62  ;;  %v18192_v0 = vpop.f32.mrb[19].mxu0  ;;  %v18199_v2 = vpop.f32.mrb[11].mxu1  ;;  %v867_v62 = vld [vmem:[#allocation3 + $0x38] sm:$0xff] }
 0x251   : > { %727 = vst.msk [vmem:[#allocation3 + $0x50] sm:$0xff] %vm469_vm4, %v702_v63 }
 0x253   : > { %v707_v6 = vpop.f32.mrb[12].mxu1  ;;  %v830_v7 = vpop.f32.mrb[20].mxu0  ;;  %v868_v22 = vld [vmem:[#allocation3 + $0x40] sm:$0xff] }
 0x254   : > { %728 = vst.msk [vmem:[#allocation3 + $0x58] sm:$0xff] %vm469_vm4, %v707_v6  ;;  %855 = vst.msk [vmem:[#allocation3 + $0x78] sm:$0xff] %vm469_vm4, %v830_v7  ;;  %v18202_v8 = vpop.f32.mrb[13].mxu1  ;;  %v18218_v9 = vpop.f32.mrb[21].mxu0 }
 0x257   : > { %v712_v15 = vpop.f32.mrb[14].mxu1  ;;  %v835_v16 = vpop.f32.mrb[22].mxu0 }
 0x258   : > { %v870_v14 = vld [vmem:[#allocation3 + $0x50] sm:$0xff]  ;;  %729 = vst.msk [vmem:[#allocation3 + $0x60] sm:$0xff] %vm469_vm4, %v712_v15  ;;  %856 = vst.msk [vmem:[#allocation3 + $0x80] sm:$0xff] %vm469_vm4, %v835_v16  ;;  %v18205_v18 = vpop.f32.mrb[15].mxu1  ;;  %v18221_v19 = vpop.f32.mrb[23].mxu0 }
 0x259   : > { %v880_v20 = vcombine.low %v860_v17, %v870_v14  ;;  %v881_v23 = vcombine.high %v860_v17, %v870_v14  ;;  %v864_v16 = vld [vmem:[#allocation3 + $0x20] sm:$0x3] }
 0x25b   : > { %v871_v25 = vld [vmem:[#allocation3 + $0x58] sm:$0xff]  ;;  %v717_v27 = vpop.f32.mrb[16].mxu1  ;;  %v840_v28 = vpop.f32.mrb[24].mxu0  ;;  %v888_v34 = vrot.slane %v880_v20, %v20322_v21  ;;  %v895_v37 = vrot.slane %v881_v23, %v20322_v21 }
 0x25c   : > { %v875_v26 = vld [vmem:[#allocation3 + $0x78] sm:$0xff]  ;;  %730 = vst.msk [vmem:[#allocation3 + $0x68] sm:$0xff] %vm469_vm4, %v717_v27  ;;  %857 = vst.msk [vmem:[#allocation3 + $0x88] sm:$0xff] %vm469_vm4, %v840_v28  ;;  %v18208_v32 = vpop.f32.mrb[17].mxu1  ;;  %v18224_v33 = vpop.f32.mrb[25].mxu0  ;;  %v948_v35 = vcombine.low %v861_v29, %v871_v25  ;;  %v949_v38 = vcombine.high %v861_v29, %v871_v25 }
 0x25d   : > { %v896_v30 = vcombine.low %v865_v24, %v875_v26  ;;  %v897_v31 = vcombine.high %v865_v24, %v875_v26 }
 0x25e   : > { %v20335_v53 = vrot.slane %v948_v35, %v20322_v21  ;;  %v20340_v58 = vrot.slane %v949_v38, %v20322_v21 }
 0x25f   : > { %v904_v39 = vrot.slane %v896_v30, %v20322_v21  ;;  %v911_v40 = vrot.slane %v897_v31, %v20322_v21  ;;  %v872_v42 = vld [vmem:[#allocation3 + $0x60] sm:$0xff]  ;;  %v722_v44 = vpop.f32.mrb[18].mxu1  ;;  %v845_v45 = vpop.f32.mrb[26].mxu0 }
 0x260   : > { %v876_v43 = vld [vmem:[#allocation3 + $0x80] sm:$0xff]  ;;  %v1016_v49 = vcombine.low %v862_v41, %v872_v42  ;;  %v1017_v50 = vcombine.high %v862_v41, %v872_v42  ;;  %731 = vst.msk [vmem:[#allocation3 + $0x70] sm:$0x3] %vm474_vm5, %v722_v44  ;;  %v18211_v51 = vpop.f32.mrb[19].mxu1  ;;  %v18227_v52 = vpop.f32.mrb[27].mxu0 }
 0x261   : > { %v913_v47 = vcombine.high %v888_v34, %v904_v39  ;;  %v928_v48 = vcombine.low %v895_v37, %v911_v40  ;;  %858 = vst.msk [vmem:[#allocation3 + $0x90] sm:$0xff] %vm469_vm4, %v845_v45  ;;  %v964_v54 = vcombine.low %v866_v46, %v876_v43  ;;  %v912_v55 = vcombine.low %v888_v34, %v904_v39  ;;  %v869_v42 = vld [vmem:[#allocation3 + $0x48] sm:$0x3] }
 0x262   : > { %v929_v56 = vcombine.high %v895_v37, %v911_v40  ;;  %v20343_v59 = vrot.slane %v1016_v49, %v20322_v21  ;;  %v965_v60 = vcombine.high %v866_v46, %v876_v43  ;;  %v20347_v63 = vrot.slane %v1017_v50, %v20322_v21 }
 0x263   : > { %v927_v61 = vrot.slane %v913_v47, %v20327_v36  ;;  %v972_v0 = vrot.slane %v964_v54, %v20322_v21  ;;  %v20350_v2 = vld [vmem:[#allocation3 + $0x68] sm:$0xff]  ;;  %v850_v4 = vpop.f32.mrb[28].mxu0  ;;  %v920_v5 = vrot.slane %v912_v55, %v20327_v36  ;;  %v936_v6 = vrot.slane %v928_v48, %v20327_v36 }
 0x264   : > { %v877_v3 = vld [vmem:[#allocation3 + $0x88] sm:$0xff]  ;;  %v1084_v7 = vcombine.low %v20337_v57, %v20350_v2  ;;  %859 = vst.msk [vmem:[#allocation3 + $0x98] sm:$0x3] %vm474_vm5, %v850_v4  ;;  %v18230_v10 = vpop.f32.mrb[29].mxu0  ;;  %v943_v11 = vrot.slane %v929_v56, %v20327_v36  ;;  %v979_v17 = vrot.slane %v965_v60, %v20322_v21  ;;  %v1085_v18 = vcombine.high %v20337_v57, %v20350_v2 }
 0x265   : > { %v1032_v8 = vcombine.low %v867_v62, %v877_v3  ;;  %v1033_v9 = vcombine.high %v867_v62, %v877_v3  ;;  %v1177_v12 = vpack.c.bf16 %v920_v5, %v920_v5  ;;  %v944_v13 = vcombine.high %v920_v5, %v20091_v1  ;;  %v20414_v3 = vld [vmem:[%s23962_s3] sm:$0xf] }
 0x266   : > { %v945_v14 = vcombine.high %v927_v61, %v20091_v1  ;;  %v1179_v15 = vpack.c.bf16 %v927_v61, %v927_v61  ;;  %v20364_v19 = vrot.slane %v1084_v7, %v20322_v21  ;;  %v946_v27 = vcombine.high %v936_v6, %v20091_v1 }
 0x267   : > { %v20367_v20 = vrot.slane %v1032_v8, %v20322_v21  ;;  %v874_v23 = vld [vmem:[#allocation3 + $0x70] sm:$0x3]  ;;  %1211 = vst.msk [vmem:[#allocation4] sm:$0x3] %vm474_vm5, %v1177_v12  ;;  %v1178_v25 = vpack.c.bf16 %v944_v13, %v944_v13  ;;  %v1181_v28 = vpack.c.bf16 %v936_v6, %v936_v6  ;;  %v20373_v29 = vrot.slane %v1033_v9, %v20322_v21 }
 0x268   : > { %v878_v24 = vld [vmem:[#allocation3 + $0x90] sm:$0xff]  ;;  %v1180_v26 = vpack.c.bf16 %v945_v14, %v945_v14  ;;  %1213 = vst.msk [vmem:[#allocation4 + $0x4] sm:$0x3] %vm474_vm5, %v1179_v15  ;;  %v1152_v30 = vcombine.low %v864_v16, %v874_v23  ;;  %v1183_v32 = vpack.c.bf16 %v943_v11, %v943_v11  ;;  %v1182_v33 = vpack.c.bf16 %v946_v27, %v946_v27 }
 0x269   : > { %v1100_v31 = vcombine.low %v868_v22, %v878_v24  ;;  %1212 = vst.msk [vmem:[#allocation4 + $0x2] sm:$0x3] %vm474_vm5, %v1178_v25  ;;  %1215 = vst.msk [vmem:[#allocation4 + $0x8] sm:$0x3] %vm474_vm5, %v1181_v28  ;;  %v947_v34 = vcombine.high %v943_v11, %v20091_v1  ;;  %v980_v35 = vcombine.low %v20335_v53, %v972_v0 }
 0x26a   : > { %1214 = vst.msk [vmem:[#allocation4 + $0x6] sm:$0x3] %vm474_vm5, %v1180_v26  ;;  %v981_v37 = vcombine.high %v20335_v53, %v972_v0  ;;  %v20382_v38 = vrot.slane %v1152_v30, %v20322_v21  ;;  %v1101_v39 = vcombine.high %v868_v22, %v878_v24  ;;  %1217 = vst.msk [vmem:[#allocation4 + $0xc] sm:$0x3] %vm474_vm5, %v1183_v32 }
 0x26b   : > { %v20385_v40 = vrot.slane %v1100_v31, %v20322_v21  ;;  %v996_v41 = vcombine.low %v20340_v58, %v979_v17  ;;  %v879_v43 = vld [vmem:[#allocation3 + $0x98] sm:$0x3]  ;;  %1216 = vst.msk [vmem:[#allocation4 + $0xa] sm:$0x3] %vm474_vm5, %v1182_v33  ;;  %v1184_v44 = vpack.c.bf16 %v947_v34, %v947_v34  ;;  %v988_v45 = vrot.slane %v980_v35, %v20327_v36 }
 0x26c   : > { %v995_v46 = vrot.slane %v981_v37, %v20327_v36  ;;  %v997_v47 = vcombine.high %v20340_v58, %v979_v17  ;;  %v1160_v48 = vcombine.low %v869_v42, %v879_v43  ;;  %v1048_v50 = vcombine.low %v20343_v59, %v20367_v20 }
 0x26d   : > { %v1004_v49 = vrot.slane %v996_v41, %v20327_v36  ;;  %v1049_v51 = vcombine.high %v20343_v59, %v20367_v20  ;;  %1218 = vst.msk [vmem:[#allocation4 + $0xe] sm:$0x3] %vm474_vm5, %v1184_v44  ;;  %v1185_v52 = vpack.c.bf16 %v988_v45, %v988_v45  ;;  %v1012_v53 = vcombine.high %v988_v45, %v20091_v1 }
 0x26e   : > { %v1187_v54 = vpack.c.bf16 %v995_v46, %v995_v46  ;;  %v1013_v55 = vcombine.high %v995_v46, %v20091_v1  ;;  %v20402_v56 = vrot.slane %v1160_v48, %v20322_v21  ;;  %v20404_v58 = vld.sshfl [vmem:[#allocation4] sm:$0x3 pattern:$0x76325410]  ;;  %v1011_v0 = vrot.slane %v997_v47, %v20327_v36 }
 0x26f   : > { %v1245_v60 = vld [vmem:[#allocation4] sm:$0x3]  ;;  %v1189_v61 = vpack.c.bf16 %v1004_v49, %v1004_v49  ;;  %v1014_v62 = vcombine.high %v1004_v49, %v20091_v1  ;;  %2734 = vrot.lane.b32.xlu1 %v20404_v58, %s20097_s13  ;;  %1219 = vst.msk [vmem:[#allocation4 + $0x10] sm:$0x3] %vm474_vm5, %v1185_v52  ;;  %v1186_v4 = vpack.c.bf16 %v1012_v53, %v1012_v53  ;;  %v1247_v43 = vld [vmem:[#allocation4 + $0x4] sm:$0x3] }
 0x270   : > { %v1284_v59 = vsel %vm1282_vm6, %v1245_v60, 0  ;;  %1221 = vst.msk [vmem:[#allocation4 + $0x14] sm:$0x3] %vm474_vm5, %v1187_v54  ;;  %v1188_v5 = vpack.c.bf16 %v1013_v55, %v1013_v55  ;;  %v1056_v6 = vrot.slane %v1048_v50, %v20327_v36  ;;  %v20420_v7 = vrot.slane %v1101_v39, %v20322_v21  ;;  %v1246_v14 = vld [vmem:[#allocation4 + $0x2] sm:$0x3] }
 0x271   : > { %18232 = vmatpush3.bf16.msra.mxu1 %v1284_v59  ;;  %v20422_v8 = vld.sshfl [vmem:[#allocation4 + $0x2] sm:$0x3 pattern:$0x76325410]  ;;  %v1248_v9 = vld [vmem:[#allocation4 + $0x6] sm:$0x3]  ;;  %v1190_v10 = vpack.c.bf16 %v1014_v62, %v1014_v62  ;;  %v1191_v11 = vpack.c.bf16 %v1011_v0, %v1011_v0  ;;  %v1015_v12 = vcombine.high %v1011_v0, %v20091_v1  ;;  %v1063_v17 = vrot.slane %v1049_v51, %v20327_v36 }
 0x272   : > { %1223 = vst.msk [vmem:[#allocation4 + $0x18] sm:$0x3] %vm474_vm5, %v1189_v61  ;;  %2790 = vrot.lane.b32.xlu0 %v20422_v8, %s20097_s13  ;;  %v1413_v13 = vsel %vm1282_vm6, %v1248_v9, 0  ;;  %18237 = vmatprep.subr.bf16.mxu1 %v20091_v1  ;;  %1220 = vst.msk [vmem:[#allocation4 + $0x12] sm:$0x3] %vm474_vm5, %v1186_v4  ;;  %v1193_v15 = vpack.c.bf16 %v1056_v6, %v1056_v6  ;;  %v1080_v16 = vcombine.high %v1056_v6, %v20091_v1 }
 0x273   : > { %1222 = vst.msk [vmem:[#allocation4 + $0x16] sm:$0x3] %vm474_vm5, %v1188_v5  ;;  %v20438_v20 = vrot.slane %v1085_v18, %v20322_v21  ;;  %v1168_v22 = vcombine.low %v20382_v38, %v20402_v56  ;;  %18250 = vmatpush3.bf16.msra.mxu0 %v1413_v13  ;;  %v20442_v23 = vld.sshfl [vmem:[#allocation4 + $0x4] sm:$0x3 pattern:$0x76325410]  ;;  %v1192_v24 = vpack.c.bf16 %v1015_v12, %v1015_v12 }
 0x274   : > { %1224 = vst.msk [vmem:[#allocation4 + $0x1a] sm:$0x3] %vm474_vm5, %v1190_v10  ;;  %1225 = vst.msk [vmem:[#allocation4 + $0x1c] sm:$0x3] %vm474_vm5, %v1191_v11  ;;  %v1064_v25 = vcombine.low %v20347_v63, %v20373_v29  ;;  %2843 = vrot.lane.b32.xlu1 %v20442_v23, %s20097_s13  ;;  %18234 = vmatmul.mubr.msk.bf16.vlgmr.msra.gmra.mrb[20].mxu1 %vm1278_vm7, %v20414_v3  ;;  %v1327_v21 = vsel %vm1282_vm6, %v1246_v14, 0  ;;  %v1194_v2 = vpack.c.bf16 %v1080_v16, %v1080_v16 }
 0x275   : > { %v1250_v57 = vld [vmem:[#allocation4 + $0xa] sm:$0x3]  ;;  %1227 = vst.msk [vmem:[#allocation4 + $0x20] sm:$0x3] %vm474_vm5, %v1193_v15  ;;  %v1195_v18 = vpack.c.bf16 %v1063_v17, %v1063_v17  ;;  %v1081_v26 = vcombine.high %v1063_v17, %v20091_v1  ;;  %18238 = vmatpush3.bf16.msra.mxu1 %v1327_v21  ;;  %18261 = vmatprep.subr.bf16.mxu0 %v20091_v1  ;;  %1226 = vst.msk [vmem:[#allocation4 + $0x1e] sm:$0x3] %vm474_vm5, %v1192_v24 }
 0x276   : > { %v20456_v27 = vld.sshfl [vmem:[#allocation4 + $0x6] sm:$0x3 pattern:$0x76325410]  ;;  %v1072_v28 = vrot.slane %v1064_v25, %v20327_v36  ;;  %v1065_v30 = vcombine.high %v20347_v63, %v20373_v29  ;;  %v1116_v31 = vcombine.low %v20364_v19, %v20385_v40  ;;  %18252 = vmatmul.mubr.msk.bf16.vlgmr.msra.gmra.mrb[32].mxu0 %vm1278_vm7, %v20414_v3  ;;  %v1499_v32 = vsel %vm1282_vm6, %v1250_v57, 0  ;;  %18239 = vmatprep.mubr.msk.bf16.mxu1 %vm20090_vm0, %v20091_v1 }
 0x277   : > { %2896 = vrot.lane.b32.xlu0 %v20456_v27, %s20097_s13  ;;  %1228 = vst.msk [vmem:[#allocation4 + $0x22] sm:$0x3] %vm474_vm5, %v1194_v2  ;;  %1229 = vst.msk [vmem:[#allocation4 + $0x24] sm:$0x3] %vm474_vm5, %v1195_v18  ;;  %v1196_v33 = vpack.c.bf16 %v1081_v26, %v1081_v26  ;;  %v1117_v34 = vcombine.high %v20364_v19, %v20385_v40  ;;  %v1132_v63 = vcombine.low %v20438_v20, %v20420_v7  ;;  %v1252_v52 = vld [vmem:[#allocation4 + $0xe] sm:$0x3] }
 0x278   : > { %18262 = vmatpush3.bf16.msra.mxu0 %v1499_v32  ;;  %v20475_v29 = vld.sshfl [vmem:[#allocation4 + $0x8] sm:$0x3 pattern:$0x76325410]  ;;  %v1197_v35 = vpack.c.bf16 %v1072_v28, %v1072_v28  ;;  %v1082_v37 = vcombine.high %v1072_v28, %v20091_v1  ;;  %v1079_v39 = vrot.slane %v1065_v30, %v20327_v36  ;;  %18243 = vmatprep.subr.bf16.mxu1 %v20091_v1  ;;  %v1370_v60 = vsel %vm1282_vm6, %v1247_v43, 0 }
 0x279   : > { %2949 = vrot.lane.b32.xlu1 %v20475_v29, %s20097_s13  ;;  %1230 = vst.msk [vmem:[#allocation4 + $0x26] sm:$0x3] %vm474_vm5, %v1196_v33  ;;  %v1124_v19 = vrot.slane %v1116_v31, %v20327_v36  ;;  %v1131_v40 = vrot.slane %v1117_v34, %v20327_v36  ;;  %v1140_v41 = vrot.slane %v1132_v63, %v20327_v36  ;;  %v20488_v42 = vld.sshfl [vmem:[#allocation4 + $0xa] sm:$0x3 pattern:$0x76325410] }
 0x27a   : > { %18263 = vmatprep.mubr.msk.bf16.mxu0 %vm20090_vm0, %v20091_v1  ;;  %18273 = vmatprep.subr.bf16.mxu0 %v20091_v1  ;;  %1231 = vst.msk [vmem:[#allocation4 + $0x28] sm:$0x3] %vm474_vm5, %v1197_v35  ;;  %v1198_v44 = vpack.c.bf16 %v1082_v37, %v1082_v37  ;;  %v1199_v45 = vpack.c.bf16 %v1079_v39, %v1079_v39  ;;  %v20499_v51 = vld.sshfl [vmem:[#allocation4 + $0xc] sm:$0x3 pattern:$0x76325410] }
 0x27b   : > { %v1083_v46 = vcombine.high %v1079_v39, %v20091_v1  ;;  %3002 = vrot.lane.b32.xlu0 %v20488_v42, %s20097_s13  ;;  %v1201_v47 = vpack.c.bf16 %v1124_v19, %v1124_v19  ;;  %v1148_v48 = vcombine.high %v1124_v19, %v20091_v1  ;;  %v1203_v49 = vpack.c.bf16 %v1131_v40, %v1131_v40  ;;  %v20513_v59 = vld.sshfl [vmem:[#allocation4 + $0xe] sm:$0x3 pattern:$0x76325410]  ;;  %v1249_v12 = vld [vmem:[#allocation4 + $0x8] sm:$0x3] }
 0x27c   : > { %v1149_v50 = vcombine.high %v1131_v40, %v20091_v1  ;;  %1232 = vst.msk [vmem:[#allocation4 + $0x2a] sm:$0x3] %vm474_vm5, %v1198_v44  ;;  %1233 = vst.msk [vmem:[#allocation4 + $0x2c] sm:$0x3] %vm474_vm5, %v1199_v45  ;;  %v1205_v54 = vpack.c.bf16 %v1140_v41, %v1140_v41  ;;  %v1150_v55 = vcombine.high %v1140_v41, %v20091_v1  ;;  %18240 = vmatmul.mubr.msk.bf16.vlgmr.msra.gmra.mrb[24].mxu1 %vm1278_vm7, %v20414_v3  ;;  %v1254_v16 = vld [vmem:[#allocation4 + $0x12] sm:$0x3] }
 0x27d   : > { %v1200_v53 = vpack.c.bf16 %v1083_v46, %v1083_v46  ;;  %3055 = vrot.lane.b32.xlu1 %v20499_v51, %s20097_s13  ;;  %1235 = vst.msk [vmem:[#allocation4 + $0x30] sm:$0x3] %vm474_vm5, %v1201_v47  ;;  %v1202_v61 = vpack.c.bf16 %v1148_v48, %v1148_v48  ;;  %1237 = vst.msk [vmem:[#allocation4 + $0x34] sm:$0x3] %vm474_vm5, %v1203_v49  ;;  %v1133_v0 = vcombine.high %v20438_v20, %v20420_v7  ;;  %v1251_v21 = vld [vmem:[#allocation4 + $0xc] sm:$0x3] }
 0x27e   : > { %v1204_v62 = vpack.c.bf16 %v1149_v50, %v1149_v50  ;;  %18244 = vmatpush3.bf16.msra.mxu1 %v1370_v60  ;;  %18245 = vmatprep.mubr.msk.bf16.mxu1 %vm20090_vm0, %v20091_v1  ;;  %1239 = vst.msk [vmem:[#allocation4 + $0x38] sm:$0x3] %vm474_vm5, %v1205_v54  ;;  %v1206_v4 = vpack.c.bf16 %v1150_v55, %v1150_v55  ;;  %v1585_v6 = vsel %vm1282_vm6, %v1252_v52, 0  ;;  %v1456_v17 = vsel %vm1282_vm6, %v1249_v12, 0  ;;  %v1256_v2 = vld [vmem:[#allocation4 + $0x16] sm:$0x3] }
 0x27f   : > { %1234 = vst.msk [vmem:[#allocation4 + $0x2e] sm:$0x3] %vm474_vm5, %v1200_v53  ;;  %v1175_v5 = vrot.slane %v1168_v22, %v20327_v36  ;;  %18264 = vmatmul.mubr.msk.bf16.vlgmr.msra.gmra.mrb[36].mxu0 %vm1278_vm7, %v20414_v3  ;;  %3108 = vrot.lane.b32.xlu0 %v20513_v59, %s20097_s13  ;;  %1236 = vst.msk [vmem:[#allocation4 + $0x32] sm:$0x3] %vm474_vm5, %v1202_v61  ;;  %v1147_v7 = vrot.slane %v1133_v0, %v20327_v36  ;;  %v1671_v22 = vsel %vm1282_vm6, %v1254_v16, 0 }
 0x280   : > { %1238 = vst.msk [vmem:[#allocation4 + $0x36] sm:$0x3] %vm474_vm5, %v1204_v62  ;;  %18274 = vmatpush3.bf16.msra.mxu0 %v1585_v6  ;;  %v20531_v9 = vld.sshfl [vmem:[#allocation4 + $0x10] sm:$0x3 pattern:$0x76325410]  ;;  %18255 = vmatprep.subr.bf16.mxu1 %v20091_v1 }
 0x281   : > { %1240 = vst.msk [vmem:[#allocation4 + $0x3a] sm:$0x3] %vm474_vm5, %v1206_v4  ;;  %v1209_v38 = vpack.c.bf16 %v1175_v5, %v1175_v5  ;;  %v1176_v56 = vcombine.high %v1175_v5, %v20091_v1  ;;  %3161 = vrot.lane.b32.xlu1 %v20531_v9, %s20097_s13  ;;  %18275 = vmatprep.mubr.msk.bf16.mxu0 %vm20090_vm0, %v20091_v1  ;;  %v20541_v36 = vld.sshfl [vmem:[#allocation4 + $0x12] sm:$0x3 pattern:$0x76325410] }
 0x282   : > { %v1207_v10 = vpack.c.bf16 %v1147_v7, %v1147_v7  ;;  %v1151_v11 = vcombine.high %v1147_v7, %v20091_v1  ;;  %18285 = vmatprep.subr.bf16.mxu0 %v20091_v1  ;;  %v20548_v15 = vld.sshfl [vmem:[#allocation4 + $0x14] sm:$0x3 pattern:$0x76325410]  ;;  %v1542_v18 = vsel %vm1282_vm6, %v1251_v21, 0  ;;  %v1757_v28 = vsel %vm1282_vm6, %v1256_v2, 0 }
 0x283   : > { %1243 = vst.msk [vmem:[#allocation4 + $0x40] sm:$0x3] %vm474_vm5, %v1209_v38  ;;  %v1210_v13 = vpack.c.bf16 %v1176_v56, %v1176_v56  ;;  %3214 = vrot.lane.b32.xlu0 %v20541_v36, %s20097_s13  ;;  %v20557_v20 = vld.sshfl [vmem:[#allocation4 + $0x16] sm:$0x3 pattern:$0x76325410] }
 0x284   : > { %1241 = vst.msk [vmem:[#allocation4 + $0x3c] sm:$0x3] %vm474_vm5, %v1207_v10  ;;  %v1208_v14 = vpack.c.bf16 %v1151_v11, %v1151_v11  ;;  %18246 = vmatmul.mubr.msk.bf16.vlgmr.msra.gmra.mrb[28].mxu1 %vm1278_vm7, %v20414_v3  ;;  %v20566_v24 = vld.sshfl [vmem:[#allocation4 + $0x18] sm:$0x3 pattern:$0x76325410] }
 0x285   : > { %1244 = vst.msk [vmem:[#allocation4 + $0x42] sm:$0x3] %vm474_vm5, %v1210_v13  ;;  %3267 = vrot.lane.b32.xlu1 %v20548_v15, %s20097_s13  ;;  %18256 = vmatpush3.bf16.msra.mxu1 %v1456_v17  ;;  %v20573_v25 = vld.sshfl [vmem:[#allocation4 + $0x1a] sm:$0x3 pattern:$0x76325410] }
 0x286   : > { %1242 = vst.msk [vmem:[#allocation4 + $0x3e] sm:$0x3] %vm474_vm5, %v1208_v14  ;;  %18257 = vmatprep.mubr.msk.bf16.mxu1 %vm20090_vm0, %v20091_v1  ;;  %18267 = vmatprep.subr.bf16.mxu1 %v20091_v1  ;;  %v20578_v57 = vld.sshfl [vmem:[#allocation4 + $0x1c] sm:$0x3 pattern:$0x76325410] }
 0x287   : > { %18276 = vmatmul.mubr.msk.bf16.vlgmr.msra.gmra.mrb[40].mxu0 %vm1278_vm7, %v20414_v3  ;;  %3320 = vrot.lane.b32.xlu0 %v20557_v20, %s20097_s13  ;;  %v20585_v26 = vld.sshfl [vmem:[#allocation4 + $0x1e] sm:$0x3 pattern:$0x76325410]  ;;  %v1253_v32 = vld [vmem:[#allocation4 + $0x10] sm:$0x3] }
 0x288   : > { %18286 = vmatpush3.bf16.msra.mxu0 %v1671_v22  ;;  %18287 = vmatprep.mubr.msk.bf16.mxu0 %vm20090_vm0, %v20091_v1  ;;  %v20594_v30 = vld.sshfl [vmem:[#allocation4 + $0x20] sm:$0x3 pattern:$0x76325410]  ;;  %v1258_v34 = vld [vmem:[#allocation4 + $0x1a] sm:$0x3] }
 0x289   : > { %3373 = vrot.lane.b32.xlu1 %v20566_v24, %s20097_s13  ;;  %18297 = vmatprep.subr.bf16.mxu0 %v20091_v1  ;;  %v20601_v31 = vld.sshfl [vmem:[#allocation4 + $0x22] sm:$0x3 pattern:$0x76325410]  ;;  %v1628_v63 = vsel %vm1282_vm6, %v1253_v32, 0  ;;  %v1843_v37 = vsel %vm1282_vm6, %v1258_v34, 0 }
 0x28a   : > { %v20606_v33 = vld.sshfl [vmem:[#allocation4 + $0x24] sm:$0x3 pattern:$0x76325410]  ;;  %v1255_v40 = vld [vmem:[#allocation4 + $0x14] sm:$0x3] }
 0x28b   : > { %3426 = vrot.lane.b32.xlu0 %v20573_v25, %s20097_s13  ;;  %v20613_v35 = vld.sshfl [vmem:[#allocation4 + $0x26] sm:$0x3 pattern:$0x76325410]  ;;  %v1260_v43 = vld [vmem:[#allocation4 + $0x1e] sm:$0x3] }
 0x28c   : > { %18258 = vmatmul.mubr.msk.bf16.vlgmr.msra.gmra.mrb[32].mxu1 %vm1278_vm7, %v20414_v3  ;;  %v20622_v39 = vld.sshfl [vmem:[#allocation4 + $0x28] sm:$0x3 pattern:$0x76325410]  ;;  %v1714_v44 = vsel %vm1282_vm6, %v1255_v40, 0  ;;  %v1929_v46 = vsel %vm1282_vm6, %v1260_v43, 0 }
 0x28d   : > { %3479 = vrot.lane.b32.xlu1 %v20578_v57, %s20097_s13  ;;  %18268 = vmatpush3.bf16.msra.mxu1 %v1542_v18  ;;  %v20629_v19 = vld.sshfl [vmem:[#allocation4 + $0x2a] sm:$0x3 pattern:$0x76325410]  ;;  %v1257_v49 = vld [vmem:[#allocation4 + $0x18] sm:$0x3] }
 0x28e   : > { %18269 = vmatprep.mubr.msk.bf16.mxu1 %vm20090_vm0, %v20091_v1  ;;  %18279 = vmatprep.subr.bf16.mxu1 %v20091_v1  ;;  %v20634_v41 = vld.sshfl [vmem:[#allocation4 + $0x2c] sm:$0x3 pattern:$0x76325410]  ;;  %v1262_v52 = vld [vmem:[#allocation4 + $0x22] sm:$0x3] }
 0x28f   : > { %3532 = vrot.lane.b32.xlu0 %v20585_v26, %s20097_s13  ;;  %18288 = vmatmul.mubr.msk.bf16.vlgmr.msra.gmra.mrb[44].mxu0 %vm1278_vm7, %v20414_v3  ;;  %v20641_v45 = vld.sshfl [vmem:[#allocation4 + $0x2e] sm:$0x3 pattern:$0x76325410]  ;;  %v1800_v53 = vsel %vm1282_vm6, %v1257_v49, 0  ;;  %v2015_v55 = vsel %vm1282_vm6, %v1262_v52, 0 }
 0x290   : > { %18298 = vmatpush3.bf16.msra.mxu0 %v1757_v28  ;;  %18299 = vmatprep.mubr.msk.bf16.mxu0 %vm20090_vm0, %v20091_v1  ;;  %v20650_v47 = vld.sshfl [vmem:[#allocation4 + $0x30] sm:$0x3 pattern:$0x76325410]  ;;  %v1259_v62 = vld [vmem:[#allocation4 + $0x1c] sm:$0x3] }
 0x291   : > { %3585 = vrot.lane.b32.xlu1 %v20594_v30, %s20097_s13  ;;  %18309 = vmatprep.subr.bf16.mxu0 %v20091_v1  ;;  %v20657_v48 = vld.sshfl [vmem:[#allocation4 + $0x32] sm:$0x3 pattern:$0x76325410]  ;;  %v1264_v4 = vld [vmem:[#allocation4 + $0x26] sm:$0x3] }
 0x292   : > { %v20662_v50 = vld.sshfl [vmem:[#allocation4 + $0x34] sm:$0x3 pattern:$0x76325410]  ;;  %v1886_v5 = vsel %vm1282_vm6, %v1259_v62, 0  ;;  %v2101_v7 = vsel %vm1282_vm6, %v1264_v4, 0 }
 0x293   : > { %3638 = vrot.lane.b32.xlu0 %v20601_v31, %s20097_s13  ;;  %v20669_v54 = vld.sshfl [vmem:[#allocation4 + $0x36] sm:$0x3 pattern:$0x76325410]  ;;  %v1261_v38 = vld [vmem:[#allocation4 + $0x20] sm:$0x3] }
 0x294   : > { %18270 = vmatmul.mubr.msk.bf16.vlgmr.msra.gmra.mrb[36].mxu1 %vm1278_vm7, %v20414_v3  ;;  %v20678_v60 = vld.sshfl [vmem:[#allocation4 + $0x38] sm:$0x3 pattern:$0x76325410]  ;;  %v1266_v56 = vld [vmem:[#allocation4 + $0x2a] sm:$0x3] }
 0x295   : > { %3691 = vrot.lane.b32.xlu1 %v20606_v33, %s20097_s13  ;;  %18280 = vmatpush3.bf16.msra.mxu1 %v1628_v63  ;;  %v20685_v61 = vld.sshfl [vmem:[#allocation4 + $0x3a] sm:$0x3 pattern:$0x76325410]  ;;  %v1972_v10 = vsel %vm1282_vm6, %v1261_v38, 0 }
 0x296   : > { %18281 = vmatprep.mubr.msk.bf16.mxu1 %vm20090_vm0, %v20091_v1  ;;  %18291 = vmatprep.subr.bf16.mxu1 %v20091_v1  ;;  %v20690_v0 = vld.sshfl [vmem:[#allocation4 + $0x3c] sm:$0x3 pattern:$0x76325410]  ;;  %v1263_v11 = vld [vmem:[#allocation4 + $0x24] sm:$0x3] }
 0x297   : > { %18300 = vmatmul.mubr.msk.bf16.vlgmr.msra.gmra.mrb[48].mxu0 %vm1278_vm7, %v20414_v3  ;;  %3744 = vrot.lane.b32.xlu0 %v20613_v35, %s20097_s13  ;;  %v20697_v6 = vld.sshfl [vmem:[#allocation4 + $0x3e] sm:$0x3 pattern:$0x76325410]  ;;  %v1268_v12 = vld [vmem:[#allocation4 + $0x2e] sm:$0x3] }
 0x298   : > { %18310 = vmatpush3.bf16.msra.mxu0 %v1843_v37  ;;  %18311 = vmatprep.mubr.msk.bf16.mxu0 %vm20090_vm0, %v20091_v1  ;;  %v2058_v13 = vsel %vm1282_vm6, %v1263_v11, 0  ;;  %v2273_v14 = vsel %vm1282_vm6, %v1268_v12, 0  ;;  %v1265_v16 = vld [vmem:[#allocation4 + $0x28] sm:$0x3]  ;;  %v1270_v17 = vld [vmem:[#allocation4 + $0x32] sm:$0x3] }
 0x299   : > { %3797 = vrot.lane.b32.xlu1 %v20622_v39, %s20097_s13  ;;  %18321 = vmatprep.subr.bf16.mxu0 %v20091_v1  ;;  %v2144_v22 = vsel %vm1282_vm6, %v1265_v16, 0  ;;  %v2359_v21 = vsel %vm1282_vm6, %v1270_v17, 0  ;;  %v1267_v2 = vld [vmem:[#allocation4 + $0x2c] sm:$0x3]  ;;  %v1272_v18 = vld [vmem:[#allocation4 + $0x36] sm:$0x3] }
 0x29a   : > { %v2230_v28 = vsel %vm1282_vm6, %v1267_v2, 0  ;;  %v2445_v32 = vsel %vm1282_vm6, %v1272_v18, 0  ;;  %v1269_v34 = vld [vmem:[#allocation4 + $0x30] sm:$0x3]  ;;  %v1274_v63 = vld [vmem:[#allocation4 + $0x3a] sm:$0x3] }
 0x29b   : > { %3850 = vrot.lane.b32.xlu0 %v20629_v19, %s20097_s13  ;;  %v2316_v37 = vsel %vm1282_vm6, %v1269_v34, 0  ;;  %v2531_v40 = vsel %vm1282_vm6, %v1274_v63, 0  ;;  %v1271_v43 = vld [vmem:[#allocation4 + $0x34] sm:$0x3]  ;;  %v1273_v52 = vld [vmem:[#allocation4 + $0x38] sm:$0x3] }
 0x29c   : > { %18282 = vmatmul.mubr.msk.bf16.vlgmr.msra.gmra.mrb[40].mxu1 %vm1278_vm7, %v20414_v3  ;;  %v2488_v62 = vsel %vm1282_vm6, %v1273_v52, 0  ;;  %v1275_v38 = vld [vmem:[#allocation4 + $0x3c] sm:$0x3] }
 0x29d   : > { %3903 = vrot.lane.b32.xlu1 %v20634_v41, %s20097_s13  ;;  %18292 = vmatpush3.bf16.msra.mxu1 %v1714_v44  ;;  %v1276_v44 = vld [vmem:[#allocation4 + $0x3e] sm:$0x3]  ;;  %v2574_v11 = vsel %vm1282_vm6, %v1275_v38, 0 }
 0x29e   : > { %18293 = vmatprep.mubr.msk.bf16.mxu1 %vm20090_vm0, %v20091_v1  ;;  %18303 = vmatprep.subr.bf16.mxu1 %v20091_v1  ;;  %v2617_v49 = vsel %vm1282_vm6, %v1276_v44, 0  ;;  %v17287_v34 = vld.sshfl [vmem:[#allocation4 + $0x2] sm:$0x3 pattern:$0x76325410] }
 0x29f   : > { %18312 = vmatmul.mubr.msk.bf16.vlgmr.msra.gmra.mrb[52].mxu0 %vm1278_vm7, %v20414_v3  ;;  %3956 = vrot.lane.b32.xlu0 %v20641_v45, %s20097_s13  ;;  %v21090_v44 = vld.sshfl [vmem:[#allocation4 + $0x8] sm:$0x3 pattern:$0x76325410] }
 0x2a0   : > { %18322 = vmatpush3.bf16.msra.mxu0 %v1929_v46  ;;  %18323 = vmatprep.mubr.msk.bf16.mxu0 %vm20090_vm0, %v20091_v1  ;;  %v2402_v46 = vsel %vm1282_vm6, %v1271_v43, 0 }
 0x2a1   : > { %4009 = vrot.lane.b32.xlu1 %v20650_v47, %s20097_s13  ;;  %18333 = vmatprep.subr.bf16.mxu0 %v20091_v1 }
 0x2a3   : > { %4062 = vrot.lane.b32.xlu0 %v20657_v48, %s20097_s13 }
 0x2a4   : > { %18294 = vmatmul.mubr.msk.bf16.vlgmr.msra.gmra.mrb[44].mxu1 %vm1278_vm7, %v20414_v3 }
 0x2a5   : > { %4115 = vrot.lane.b32.xlu1 %v20662_v50, %s20097_s13  ;;  %18304 = vmatpush3.bf16.msra.mxu1 %v1800_v53 }
 0x2a6   : > { %18305 = vmatprep.mubr.msk.bf16.mxu1 %vm20090_vm0, %v20091_v1  ;;  %18315 = vmatprep.subr.bf16.mxu1 %v20091_v1 }
 0x2a7   : > { %18324 = vmatmul.mubr.msk.bf16.vlgmr.msra.gmra.mrb[56].mxu0 %vm1278_vm7, %v20414_v3  ;;  %4168 = vrot.lane.b32.xlu0 %v20669_v54, %s20097_s13 }
 0x2a8   : > { %18334 = vmatpush3.bf16.msra.mxu0 %v2015_v55  ;;  %18335 = vmatprep.mubr.msk.bf16.mxu0 %vm20090_vm0, %v20091_v1 }
 0x2a9   : > { %4221 = vrot.lane.b32.xlu1 %v20678_v60, %s20097_s13  ;;  %18345 = vmatprep.subr.bf16.mxu0 %v20091_v1 }
 0x2ab   : > { %4274 = vrot.lane.b32.xlu0 %v20685_v61, %s20097_s13 }
 0x2ac   : > { %18306 = vmatmul.mubr.msk.bf16.vlgmr.msra.gmra.mrb[48].mxu1 %vm1278_vm7, %v20414_v3 }
 0x2ad   : > { %4327 = vrot.lane.b32.xlu1 %v20690_v0, %s20097_s13  ;;  %18316 = vmatpush3.bf16.msra.mxu1 %v1886_v5 }
 0x2ae   : > { %18317 = vmatprep.mubr.msk.bf16.mxu1 %vm20090_vm0, %v20091_v1  ;;  %18327 = vmatprep.subr.bf16.mxu1 %v20091_v1 }
 0x2af   : > { %18336 = vmatmul.mubr.msk.bf16.vlgmr.msra.gmra.mrb[60].mxu0 %vm1278_vm7, %v20414_v3  ;;  %4380 = vrot.lane.b32.xlu0 %v20697_v6, %s20097_s13 }
 0x2b0   : > { %18346 = vmatpush3.bf16.msra.mxu0 %v2101_v7  ;;  %18347 = vmatprep.mubr.msk.bf16.mxu0 %vm20090_vm0, %v20091_v1 }
 0x2b1   : > { %4563 = vrot.lane.b32.xlu1 %v20404_v58, %s20098_s16  ;;  %18357 = vmatprep.subr.bf16.mxu0 %v20091_v1  ;;  %v2187_v58 = vsel %vm1282_vm6, %v1266_v56, 0 }
 0x2b3   : > { %4619 = vrot.lane.b32.xlu0 %v20422_v8, %s20098_s16 }
 0x2b4   : > { %18318 = vmatmul.mubr.msk.bf16.vlgmr.msra.gmra.mrb[52].mxu1 %vm1278_vm7, %v20414_v3 }
 0x2b5   : > { %4672 = vrot.lane.b32.xlu1 %v20442_v23, %s20098_s16  ;;  %18328 = vmatpush3.bf16.msra.mxu1 %v1972_v10  ;;  %v20857_v10 = vld [vmem:[%s23962_s3 + $0x4] sm:$0xf] }
 0x2b6   : > { %18329 = vmatprep.mubr.msk.bf16.mxu1 %vm20090_vm0, %v20091_v1  ;;  %18339 = vmatprep.subr.bf16.mxu1 %v20091_v1 }
 0x2b7   : > { %18348 = vmatmul.mubr.msk.bf16.vlgmr.msra.gmra.mrb[64].mxu0 %vm1278_vm7, %v20414_v3  ;;  %4725 = vrot.lane.b32.xlu0 %v20456_v27, %s20098_s16 }
 0x2b8   : > { %18358 = vmatpush3.bf16.msra.mxu0 %v2187_v58  ;;  %18359 = vmatprep.mubr.msk.bf16.mxu0 %vm20090_vm0, %v20091_v1 }
 0x2b9   : > { %4778 = vrot.lane.b32.xlu1 %v20475_v29, %s20098_s16  ;;  %18369 = vmatprep.subr.bf16.mxu0 %v20091_v1 }
 0x2bb   : > { %4831 = vrot.lane.b32.xlu0 %v20488_v42, %s20098_s16 }
 0x2bc   : > { %18330 = vmatmul.mubr.msk.bf16.vlgmr.msra.gmra.mrb[56].mxu1 %vm1278_vm7, %v20414_v3 }
 0x2bd   : > { %4884 = vrot.lane.b32.xlu1 %v20499_v51, %s20098_s16  ;;  %18340 = vmatpush3.bf16.msra.mxu1 %v2058_v13 }
 0x2be   : > { %18341 = vmatprep.mubr.msk.bf16.mxu1 %vm20090_vm0, %v20091_v1  ;;  %18351 = vmatprep.subr.bf16.mxu1 %v20091_v1 }
 0x2bf   : > { %18360 = vmatmul.mubr.msk.bf16.vlgmr.msra.gmra.mrb[68].mxu0 %vm1278_vm7, %v20414_v3  ;;  %4937 = vrot.lane.b32.xlu0 %v20513_v59, %s20098_s16 }
 0x2c0   : > { %18370 = vmatpush3.bf16.msra.mxu0 %v2273_v14  ;;  %18371 = vmatprep.mubr.msk.bf16.mxu0 %vm20090_vm0, %v20091_v1 }
 0x2c1   : > { %4990 = vrot.lane.b32.xlu1 %v20531_v9, %s20098_s16  ;;  %18381 = vmatprep.subr.bf16.mxu0 %v20091_v1 }
 0x2c3   : > { %5043 = vrot.lane.b32.xlu0 %v20541_v36, %s20098_s16 }
 0x2c4   : > { %18342 = vmatmul.mubr.msk.bf16.vlgmr.msra.gmra.mrb[60].mxu1 %vm1278_vm7, %v20414_v3 }
 0x2c5   : > { %5096 = vrot.lane.b32.xlu1 %v20548_v15, %s20098_s16  ;;  %18352 = vmatpush3.bf16.msra.mxu1 %v2144_v22 }
 0x2c6   : > { %18353 = vmatprep.mubr.msk.bf16.mxu1 %vm20090_vm0, %v20091_v1  ;;  %18363 = vmatprep.subr.bf16.mxu1 %v20091_v1 }
 0x2c7   : > { %18372 = vmatmul.mubr.msk.bf16.vlgmr.msra.gmra.mrb[72].mxu0 %vm1278_vm7, %v20414_v3  ;;  %5149 = vrot.lane.b32.xlu0 %v20557_v20, %s20098_s16 }
 0x2c8   : > { %18382 = vmatpush3.bf16.msra.mxu0 %v2359_v21  ;;  %18383 = vmatprep.mubr.msk.bf16.mxu0 %vm20090_vm0, %v20091_v1 }
 0x2c9   : > { %5202 = vrot.lane.b32.xlu1 %v20566_v24, %s20098_s16  ;;  %18393 = vmatprep.subr.bf16.mxu0 %v20091_v1 }
 0x2cb   : > { %5255 = vrot.lane.b32.xlu0 %v20573_v25, %s20098_s16 }
 0x2cc   : > { %18354 = vmatmul.mubr.msk.bf16.vlgmr.msra.gmra.mrb[64].mxu1 %vm1278_vm7, %v20414_v3 }
 0x2cd   : > { %5308 = vrot.lane.b32.xlu1 %v20578_v57, %s20098_s16  ;;  %18364 = vmatpush3.bf16.msra.mxu1 %v2230_v28 }
 0x2ce   : > { %18365 = vmatprep.mubr.msk.bf16.mxu1 %vm20090_vm0, %v20091_v1  ;;  %18375 = vmatprep.subr.bf16.mxu1 %v20091_v1 }
 0x2cf   : > { %5361 = vrot.lane.b32.xlu0 %v20585_v26, %s20098_s16  ;;  %18384 = vmatmul.mubr.msk.bf16.vlgmr.msra.gmra.mrb[76].mxu0 %vm1278_vm7, %v20414_v3 }
 0x2d0   : > { %18394 = vmatpush3.bf16.msra.mxu0 %v2445_v32  ;;  %18395 = vmatprep.mubr.msk.bf16.mxu0 %vm20090_vm0, %v20091_v1 }
 0x2d1   : > { %5414 = vrot.lane.b32.xlu1 %v20594_v30, %s20098_s16  ;;  %18405 = vmatprep.subr.bf16.mxu0 %v20091_v1 }
 0x2d3   : > { %5467 = vrot.lane.b32.xlu0 %v20601_v31, %s20098_s16 }
 0x2d4   : > { %18366 = vmatmul.mubr.msk.bf16.vlgmr.msra.gmra.mrb[68].mxu1 %vm1278_vm7, %v20414_v3 }
 0x2d5   : > { %5520 = vrot.lane.b32.xlu1 %v20606_v33, %s20098_s16  ;;  %18376 = vmatpush3.bf16.msra.mxu1 %v2316_v37  ;;  %v21080_v37 = vld.sshfl [vmem:[#allocation4 + $0x6] sm:$0x3 pattern:$0x76325410] }
 0x2d6   : > { %18377 = vmatprep.mubr.msk.bf16.mxu1 %vm20090_vm0, %v20091_v1  ;;  %18387 = vmatprep.subr.bf16.mxu1 %v20091_v1 }
 0x2d7   : > { %5573 = vrot.lane.b32.xlu0 %v20613_v35, %s20098_s16  ;;  %18396 = vmatmul.mubr.msk.bf16.vlgmr.msra.gmra.mrb[80].mxu0 %vm1278_vm7, %v20414_v3 }
 0x2d8   : > { %18406 = vmatpush3.bf16.msra.mxu0 %v2531_v40  ;;  %18407 = vmatprep.mubr.msk.bf16.mxu0 %vm20090_vm0, %v20091_v1 }
 0x2d9   : > { %5626 = vrot.lane.b32.xlu1 %v20622_v39, %s20098_s16  ;;  %18417 = vmatprep.subr.bf16.mxu0 %v20091_v1 }
 0x2db   : > { %5679 = vrot.lane.b32.xlu0 %v20629_v19, %s20098_s16 }
 0x2dc   : > { %18378 = vmatmul.mubr.msk.bf16.vlgmr.msra.gmra.mrb[72].mxu1 %vm1278_vm7, %v20414_v3 }
 0x2dd   : > { %5732 = vrot.lane.b32.xlu1 %v20634_v41, %s20098_s16  ;;  %18388 = vmatpush3.bf16.msra.mxu1 %v2402_v46 }
 0x2de   : > { %18389 = vmatprep.mubr.msk.bf16.mxu1 %vm20090_vm0, %v20091_v1  ;;  %18399 = vmatprep.subr.bf16.mxu1 %v20091_v1 }
 0x2df   : > { %5785 = vrot.lane.b32.xlu0 %v20641_v45, %s20098_s16  ;;  %18408 = vmatmul.mubr.msk.bf16.vlgmr.msra.gmra.mrb[84].mxu0 %vm1278_vm7, %v20414_v3 }
 0x2e0   : > { %18418 = vmatpush3.bf16.msra.mxu0 %v2617_v49  ;;  %18419 = vmatprep.mubr.msk.bf16.mxu0 %vm20090_vm0, %v20091_v1  ;;  %v21100_v49 = vld.sshfl [vmem:[#allocation4 + $0xa] sm:$0x3 pattern:$0x76325410] }
 0x2e1   : > { %5838 = vrot.lane.b32.xlu1 %v20650_v47, %s20098_s16  ;;  %18429 = vmatprep.subr.bf16.mxu0 %v20091_v1  ;;  %v2735_v53 = vpop.permute.xlu1 %2734 }
 0x2e2   : > { %v2740_v17 = vsel %vm1282_vm6, %v2735_v53, 0  ;;  %v21109_v53 = vld.sshfl [vmem:[#allocation4 + $0xc] sm:$0x3 pattern:$0x76325410] }
 0x2e3   : > { %5891 = vrot.lane.b32.xlu0 %v20657_v48, %s20098_s16 }
 0x2e4   : > { %v2791_v55 = vpop.permute.xlu0 %2790  ;;  %18390 = vmatmul.mubr.msk.bf16.vlgmr.msra.gmra.mrb[76].mxu1 %vm1278_vm7, %v20414_v3 }
 0x2e5   : > { %5944 = vrot.lane.b32.xlu1 %v20662_v50, %s20098_s16  ;;  %v2793_v4 = vsel %vm1282_vm6, %v2791_v55, 0  ;;  %18400 = vmatpush3.bf16.msra.mxu1 %v2488_v62  ;;  %v21116_v62 = vld.sshfl [vmem:[#allocation4 + $0xe] sm:$0x3 pattern:$0x76325410] }
 0x2e6   : > { %18401 = vmatprep.mubr.msk.bf16.mxu1 %vm20090_vm0, %v20091_v1  ;;  %v2844_v5 = vpop.permute.xlu1 %2843  ;;  %18411 = vmatprep.subr.bf16.mxu1 %v20091_v1 }
 0x2e7   : > { %5997 = vrot.lane.b32.xlu0 %v20669_v54, %s20098_s16  ;;  %18420 = vmatmul.mubr.msk.bf16.vlgmr.msra.gmra.mrb[88].mxu0 %vm1278_vm7, %v20414_v3 }
 0x2e8   : > { %18430 = vmatpush3.bf16.msra.mxu0 %v2793_v4  ;;  %18431 = vmatprep.mubr.msk.bf16.mxu0 %vm20090_vm0, %v20091_v1 }
 0x2e9   : > { %v2897_v7 = vpop.permute.xlu0 %2896  ;;  %6050 = vrot.lane.b32.xlu1 %v20678_v60, %s20098_s16  ;;  %18441 = vmatprep.subr.bf16.mxu0 %v20091_v1 }
 0x2ea   : > { %v2899_v12 = vsel %vm1282_vm6, %v2897_v7, 0 }
 0x2eb   : > { %v2950_v56 = vpop.permute.xlu1 %2949  ;;  %6103 = vrot.lane.b32.xlu0 %v20685_v61, %s20098_s16 }
 0x2ec   : > { %18402 = vmatmul.mubr.msk.bf16.vlgmr.msra.gmra.mrb[80].mxu1 %vm1278_vm7, %v20414_v3 }
 0x2ed   : > { %v3003_v58 = vpop.permute.xlu0 %3002  ;;  %6156 = vrot.lane.b32.xlu1 %v20690_v0, %s20098_s16  ;;  %18412 = vmatpush3.bf16.msra.mxu1 %v2574_v11  ;;  %v21146_v11 = vld.sshfl [vmem:[#allocation4 + $0x14] sm:$0x3 pattern:$0x76325410] }
 0x2ee   : > { %18413 = vmatprep.mubr.msk.bf16.mxu1 %vm20090_vm0, %v20091_v1  ;;  %18423 = vmatprep.subr.bf16.mxu1 %v20091_v1 }
 0x2ef   : > { %v3056_v13 = vpop.permute.xlu1 %3055  ;;  %6209 = vrot.lane.b32.xlu0 %v20697_v6, %s20098_s16  ;;  %18432 = vmatmul.mubr.msk.bf16.vlgmr.msra.gmra.mrb[92].mxu0 %vm1278_vm7, %v20857_v10 }
 0x2f0   : > { %18442 = vmatpush3.bf16.msra.mxu0 %v2899_v12  ;;  %18443 = vmatprep.mubr.msk.bf16.mxu0 %vm20090_vm0, %v20091_v1  ;;  %v21153_v12 = vld.sshfl [vmem:[#allocation4 + $0x16] sm:$0x3 pattern:$0x76325410] }
 0x2f1   : > { %v3109_v14 = vpop.permute.xlu0 %3108  ;;  %7902 = vrot.lane.b32.xlu1 %v20422_v8, %s20097_s13  ;;  %18453 = vmatprep.subr.bf16.mxu0 %v20091_v1  ;;  %v3005_v8 = vsel %vm1282_vm6, %v3003_v58, 0 }
 0x2f3   : > { %v20877_v16 = vpop.permute.xlu1 %3161  ;;  %7958 = vrot.lane.b32.xlu0 %v20442_v23, %s20097_s13 }
 0x2f4   : > { %18414 = vmatmul.mubr.msk.bf16.vlgmr.msra.gmra.mrb[84].mxu1 %vm1278_vm7, %v20414_v3  ;;  %v2846_v3 = vsel %vm1282_vm6, %v2844_v5, 0  ;;  %v21124_v5 = vld.sshfl [vmem:[#allocation4 + $0x10] sm:$0x3 pattern:$0x76325410] }
 0x2f5   : > { %v3215_v22 = vpop.permute.xlu0 %3214  ;;  %8011 = vrot.lane.b32.xlu1 %v20456_v27, %s20097_s13  ;;  %18424 = vmatpush3.bf16.msra.mxu1 %v2740_v17 }
 0x2f6   : > { %18425 = vmatprep.mubr.msk.bf16.mxu1 %vm20090_vm0, %v20091_v1  ;;  %18435 = vmatprep.subr.bf16.mxu1 %v20091_v1 }
 0x2f7   : > { %v20889_v21 = vpop.permute.xlu1 %3267  ;;  %8064 = vrot.lane.b32.xlu0 %v20475_v29, %s20097_s13  ;;  %18444 = vmatmul.mubr.msk.bf16.vlgmr.msra.gmra.mrb[96].mxu0 %vm1278_vm7, %v20857_v10  ;;  %v3111_v29 = vsel %vm1282_vm6, %v3109_v14, 0 }
 0x2f8   : > { %18454 = vmatpush3.bf16.msra.mxu0 %v3005_v8  ;;  %18455 = vmatprep.mubr.msk.bf16.mxu0 %vm20090_vm0, %v20091_v1  ;;  %v21175_v8 = vld.sshfl [vmem:[#allocation4 + $0x1a] sm:$0x3 pattern:$0x76325410] }
 0x2f9   : > { %v3321_v23 = vpop.permute.xlu0 %3320  ;;  %8117 = vrot.lane.b32.xlu1 %v20488_v42, %s20097_s13  ;;  %18465 = vmatprep.subr.bf16.mxu0 %v20091_v1 }
 0x2fb   : > { %8170 = vrot.lane.b32.xlu0 %v20499_v51, %s20097_s13  ;;  %v20904_v27 = vpop.permute.xlu1 %3373 }
 0x2fc   : > { %18426 = vmatmul.mubr.msk.bf16.vlgmr.msra.gmra.mrb[88].mxu1 %vm1278_vm7, %v20857_v10 }
 0x2fd   : > { %8223 = vrot.lane.b32.xlu1 %v20513_v59, %s20097_s13  ;;  %18436 = vmatpush3.bf16.msra.mxu1 %v2846_v3  ;;  %v3427_v42 = vpop.permute.xlu0 %3426  ;;  %v2952_v59 = vsel %vm1282_vm6, %v2950_v56, 0  ;;  %v21136_v56 = vld.sshfl [vmem:[#allocation4 + $0x12] sm:$0x3 pattern:$0x76325410] }
 0x2fe   : > { %18437 = vmatprep.mubr.msk.bf16.mxu1 %vm20090_vm0, %v20091_v1  ;;  %18447 = vmatprep.subr.bf16.mxu1 %v20091_v1  ;;  %v21186_v3 = vld.sshfl [vmem:[#allocation4 + $0x1c] sm:$0x3 pattern:$0x76325410] }
 0x2ff   : > { %8276 = vrot.lane.b32.xlu0 %v20531_v9, %s20097_s13  ;;  %18456 = vmatmul.mubr.msk.bf16.vlgmr.msra.gmra.mrb[100].mxu0 %vm1278_vm7, %v20857_v10  ;;  %v20923_v51 = vpop.permute.xlu1 %3479 }
 0x300   : > { %18466 = vmatpush3.bf16.msra.mxu0 %v3111_v29  ;;  %18467 = vmatprep.mubr.msk.bf16.mxu0 %vm20090_vm0, %v20091_v1 }
 0x301   : > { %8329 = vrot.lane.b32.xlu1 %v20541_v36, %s20097_s13  ;;  %18477 = vmatprep.subr.bf16.mxu0 %v20091_v1  ;;  %v3533_v9 = vpop.permute.xlu0 %3532  ;;  %v3217_v36 = vsel %vm1282_vm6, %v3215_v22, 0 }
 0x303   : > { %8382 = vrot.lane.b32.xlu0 %v20548_v15, %s20097_s13  ;;  %v20940_v15 = vpop.permute.xlu1 %3585 }
 0x304   : > { %18438 = vmatmul.mubr.msk.bf16.vlgmr.msra.gmra.mrb[92].mxu1 %vm1278_vm7, %v20857_v10  ;;  %v3588_v40 = vsel %vm1282_vm6, %v20940_v15, 0 }
 0x305   : > { %8435 = vrot.lane.b32.xlu1 %v20557_v20, %s20097_s13  ;;  %18448 = vmatpush3.bf16.msra.mxu1 %v2952_v59  ;;  %v3639_v20 = vpop.permute.xlu0 %3638  ;;  %v21195_v59 = vld.sshfl [vmem:[#allocation4 + $0x1e] sm:$0x3 pattern:$0x76325410] }
 0x306   : > { %18449 = vmatprep.mubr.msk.bf16.mxu1 %vm20090_vm0, %v20091_v1  ;;  %18459 = vmatprep.subr.bf16.mxu1 %v20091_v1 }
 0x307   : > { %8488 = vrot.lane.b32.xlu0 %v20566_v24, %s20097_s13  ;;  %18468 = vmatmul.mubr.msk.bf16.vlgmr.msra.gmra.mrb[104].mxu0 %vm1278_vm7, %v20857_v10  ;;  %v3058_v24 = vsel %vm1282_vm6, %v3056_v13, 0  ;;  %v20957_v2 = vpop.permute.xlu1 %3691 }
 0x308   : > { %18478 = vmatpush3.bf16.msra.mxu0 %v3217_v36  ;;  %18479 = vmatprep.mubr.msk.bf16.mxu0 %vm20090_vm0, %v20091_v1  ;;  %v3694_v4 = vsel %vm1282_vm6, %v20957_v2, 0 }
 0x309   : > { %8541 = vrot.lane.b32.xlu1 %v20573_v25, %s20097_s13  ;;  %18489 = vmatprep.subr.bf16.mxu0 %v20091_v1  ;;  %v3323_v25 = vsel %vm1282_vm6, %v3321_v23, 0 }
 0x30b   : > { %8594 = vrot.lane.b32.xlu0 %v20578_v57, %s20097_s13  ;;  %v3745_v57 = vpop.permute.xlu0 %3744 }
 0x30c   : > { %18450 = vmatmul.mubr.msk.bf16.vlgmr.msra.gmra.mrb[96].mxu1 %vm1278_vm7, %v20857_v10  ;;  %v3747_v32 = vsel %vm1282_vm6, %v3745_v57, 0  ;;  %v21215_v57 = vld.sshfl [vmem:[#allocation4 + $0x22] sm:$0x3 pattern:$0x76325410] }
 0x30d   : > { %8647 = vrot.lane.b32.xlu1 %v20585_v26, %s20097_s13  ;;  %18460 = vmatpush3.bf16.msra.mxu1 %v3058_v24  ;;  %v3164_v26 = vsel %vm1282_vm6, %v20877_v16, 0  ;;  %v21163_v16 = vld.sshfl [vmem:[#allocation4 + $0x18] sm:$0x3 pattern:$0x76325410] }
 0x30e   : > { %18461 = vmatprep.mubr.msk.bf16.mxu1 %vm20090_vm0, %v20091_v1  ;;  %18471 = vmatprep.subr.bf16.mxu1 %v20091_v1  ;;  %v21205_v24 = vld.sshfl [vmem:[#allocation4 + $0x20] sm:$0x3 pattern:$0x76325410] }
 0x30f   : > { %8700 = vrot.lane.b32.xlu0 %v20594_v30, %s20097_s13  ;;  %18480 = vmatmul.mubr.msk.bf16.vlgmr.msra.gmra.mrb[108].mxu0 %vm1278_vm7, %v20857_v10  ;;  %v20973_v30 = vpop.permute.xlu1 %3797  ;;  %v20982_v18 = vpop.permute.xlu0 %3850 }
 0x310   : > { %18490 = vmatpush3.bf16.msra.mxu0 %v3323_v25  ;;  %18491 = vmatprep.mubr.msk.bf16.mxu0 %vm20090_vm0, %v20091_v1  ;;  %v3853_v46 = vsel %vm1282_vm6, %v20982_v18, 0  ;;  %v3800_v13 = vsel %vm1282_vm6, %v20973_v30, 0  ;;  %v21226_v18 = vld.sshfl [vmem:[#allocation4 + $0x24] sm:$0x3 pattern:$0x76325410] }
 0x311   : > { %8753 = vrot.lane.b32.xlu1 %v20601_v31, %s20097_s13  ;;  %18501 = vmatprep.subr.bf16.mxu0 %v20091_v1  ;;  %v3429_v31 = vsel %vm1282_vm6, %v3427_v42, 0 }
 0x313   : > { %8806 = vrot.lane.b32.xlu0 %v20606_v33, %s20097_s13  ;;  %v20994_v33 = vpop.permute.xlu1 %3903 }
 0x314   : > { %18462 = vmatmul.mubr.msk.bf16.vlgmr.msra.gmra.mrb[100].mxu1 %vm1278_vm7, %v20857_v10  ;;  %v3906_v36 = vsel %vm1282_vm6, %v20994_v33, 0 }
 0x315   : > { %8859 = vrot.lane.b32.xlu1 %v20613_v35, %s20097_s13  ;;  %18472 = vmatpush3.bf16.msra.mxu1 %v3164_v26  ;;  %v3270_v35 = vsel %vm1282_vm6, %v20889_v21, 0 }
 0x316   : > { %18473 = vmatprep.mubr.msk.bf16.mxu1 %vm20090_vm0, %v20091_v1  ;;  %18483 = vmatprep.subr.bf16.mxu1 %v20091_v1 }
 0x317   : > { %8912 = vrot.lane.b32.xlu0 %v20622_v39, %s20097_s13  ;;  %18492 = vmatmul.mubr.msk.bf16.vlgmr.msra.gmra.mrb[112].mxu0 %vm1278_vm7, %v20857_v10  ;;  %v21000_v39 = vpop.permute.xlu0 %3956 }
 0x318   : > { %18502 = vmatpush3.bf16.msra.mxu0 %v3429_v31  ;;  %18503 = vmatprep.mubr.msk.bf16.mxu0 %vm20090_vm0, %v20091_v1  ;;  %v3959_v7 = vsel %vm1282_vm6, %v21000_v39, 0 }
 0x319   : > { %8965 = vrot.lane.b32.xlu1 %v20629_v19, %s20097_s13  ;;  %18513 = vmatprep.subr.bf16.mxu0 %v20091_v1  ;;  %v3535_v19 = vsel %vm1282_vm6, %v3533_v9, 0 }
 0x31b   : > { %9018 = vrot.lane.b32.xlu0 %v20634_v41, %s20097_s13  ;;  %v21014_v41 = vpop.permute.xlu1 %4009 }
 0x31c   : > { %18474 = vmatmul.mubr.msk.bf16.vlgmr.msra.gmra.mrb[104].mxu1 %vm1278_vm7, %v20857_v10 }
 0x31d   : > { %9071 = vrot.lane.b32.xlu1 %v20641_v45, %s20097_s13  ;;  %18484 = vmatpush3.bf16.msra.mxu1 %v3270_v35  ;;  %v21021_v45 = vpop.permute.xlu0 %4062 }
 0x31e   : > { %18485 = vmatprep.mubr.msk.bf16.mxu1 %vm20090_vm0, %v20091_v1  ;;  %18495 = vmatprep.subr.bf16.mxu1 %v20091_v1  ;;  %v4065_v17 = vsel %vm1282_vm6, %v21021_v45, 0  ;;  %v21235_v45 = vld.sshfl [vmem:[#allocation4 + $0x26] sm:$0x3 pattern:$0x76325410] }
 0x31f   : > { %9124 = vrot.lane.b32.xlu0 %v20650_v47, %s20097_s13  ;;  %18504 = vmatmul.mubr.msk.bf16.vlgmr.msra.gmra.mrb[116].mxu0 %vm1278_vm7, %v20857_v10  ;;  %v3376_v47 = vsel %vm1282_vm6, %v20904_v27, 0  ;;  %v21034_v28 = vpop.permute.xlu1 %4115 }
 0x320   : > { %18514 = vmatpush3.bf16.msra.mxu0 %v3535_v19  ;;  %18515 = vmatprep.mubr.msk.bf16.mxu0 %vm20090_vm0, %v20091_v1 }
 0x321   : > { %9177 = vrot.lane.b32.xlu1 %v20657_v48, %s20097_s13  ;;  %18525 = vmatprep.subr.bf16.mxu0 %v20091_v1  ;;  %v3641_v48 = vsel %vm1282_vm6, %v3639_v20, 0 }
 0x323   : > { %9230 = vrot.lane.b32.xlu0 %v20662_v50, %s20097_s13  ;;  %v21041_v50 = vpop.permute.xlu0 %4168 }
 0x324   : > { %18486 = vmatmul.mubr.msk.bf16.vlgmr.msra.gmra.mrb[108].mxu1 %vm1278_vm7, %v20857_v10  ;;  %v4171_v2 = vsel %vm1282_vm6, %v21041_v50, 0 }
 0x325   : > { %9283 = vrot.lane.b32.xlu1 %v20669_v54, %s20097_s13  ;;  %18496 = vmatpush3.bf16.msra.mxu1 %v3376_v47  ;;  %v3482_v54 = vsel %vm1282_vm6, %v20923_v51, 0 }
 0x326   : > { %18497 = vmatprep.mubr.msk.bf16.mxu1 %vm20090_vm0, %v20091_v1  ;;  %18507 = vmatprep.subr.bf16.mxu1 %v20091_v1 }
 0x327   : > { %9336 = vrot.lane.b32.xlu0 %v20678_v60, %s20097_s13  ;;  %18516 = vmatmul.mubr.msk.bf16.vlgmr.msra.gmra.mrb[120].mxu0 %vm1278_vm7, %v20857_v10  ;;  %v21052_v60 = vpop.permute.xlu1 %4221 }
 0x328   : > { %18526 = vmatpush3.bf16.msra.mxu0 %v3641_v48  ;;  %18527 = vmatprep.mubr.msk.bf16.mxu0 %vm20090_vm0, %v20091_v1  ;;  %v4012_v48 = vsel %vm1282_vm6, %v21014_v41, 0  ;;  %v21255_v41 = vld.sshfl [vmem:[#allocation4 + $0x2a] sm:$0x3 pattern:$0x76325410] }
 0x329   : > { %9389 = vrot.lane.b32.xlu1 %v20685_v61, %s20097_s13  ;;  %18537 = vmatprep.subr.bf16.mxu0 %v20091_v1  ;;  %v21058_v61 = vld.sshfl [vmem:[#allocation4 + $0x40] sm:$0x3 pattern:$0x76325410] }
 0x32b   : > { %9442 = vrot.lane.b32.xlu0 %v20690_v0, %s20097_s13  ;;  %v21063_v0 = vpop.permute.xlu0 %4274  ;;  %v21076_v63 = vpop.permute.xlu1 %4327 }
 0x32c   : > { %18498 = vmatmul.mubr.msk.bf16.vlgmr.msra.gmra.mrb[112].mxu1 %vm1278_vm7, %v20857_v10 }
 0x32d   : > { %9495 = vrot.lane.b32.xlu1 %v20697_v6, %s20097_s13  ;;  %18508 = vmatpush3.bf16.msra.mxu1 %v3482_v54  ;;  %v21073_v6 = vld.sshfl [vmem:[#allocation4 + $0x4] sm:$0x3 pattern:$0x76325410] }
 0x32e   : > { %18509 = vmatprep.mubr.msk.bf16.mxu1 %vm20090_vm0, %v20091_v1  ;;  %18519 = vmatprep.subr.bf16.mxu1 %v20091_v1  ;;  %v21243_v54 = vld.sshfl [vmem:[#allocation4 + $0x28] sm:$0x3 pattern:$0x76325410] }
 0x32f   : > { %18528 = vmatmul.mubr.msk.bf16.vlgmr.msra.gmra.mrb[124].mxu0 %vm1278_vm7, %v20857_v10  ;;  %9548 = vrot.lane.b32.xlu0 %v21058_v61, %s20097_s13  ;;  %v21084_v43 = vpop.permute.xlu0 %4380  ;;  %v21103_v52 = vpop.permute.xlu1 %4563 }
 0x330   : > { %18538 = vmatpush3.bf16.msra.mxu0 %v3747_v32  ;;  %18539 = vmatprep.mubr.msk.bf16.mxu0 %vm20090_vm0, %v20091_v1 }
 0x331   : > { %9731 = vrot.lane.b32.xlu1 %v17287_v34, %s20098_s16  ;;  %18549 = vmatprep.subr.bf16.mxu0 %v20091_v1  ;;  %v4277_v34 = vsel %vm1282_vm6, %v21063_v0, 0 }
 0x333   : > { %9787 = vrot.lane.b32.xlu0 %v21073_v6, %s20098_s16  ;;  %v21112_v55 = vpop.permute.xlu0 %4619  ;;  %v21130_v38 = vpop.permute.xlu1 %4672 }
 0x334   : > { %18510 = vmatmul.mubr.msk.bf16.vlgmr.msra.gmra.mrb[116].mxu1 %vm1278_vm7, %v20857_v10 }
 0x335   : > { %9840 = vrot.lane.b32.xlu1 %v21080_v37, %s20098_s16  ;;  %18520 = vmatpush3.bf16.msra.mxu1 %v3588_v40 }
 0x336   : > { %18521 = vmatprep.mubr.msk.bf16.mxu1 %vm20090_vm0, %v20091_v1  ;;  %18531 = vmatprep.subr.bf16.mxu1 %v20091_v1 }
 0x337   : > { %18540 = vmatmul.mubr.msk.bf16.vlgmr.msra.gmra.mrb[128].mxu0 %vm1278_vm7, %v20857_v10  ;;  %9893 = vrot.lane.b32.xlu0 %v21090_v44, %s20098_s16  ;;  %v21140_v58 = vpop.permute.xlu0 %4725  ;;  %v21157_v14 = vpop.permute.xlu1 %4778 }
 0x338   : > { %18550 = vmatpush3.bf16.msra.mxu0 %v3853_v46  ;;  %18551 = vmatprep.mubr.msk.bf16.mxu0 %vm20090_vm0, %v20091_v1 }
 0x339   : > { %9946 = vrot.lane.b32.xlu1 %v21100_v49, %s20098_s16  ;;  %18561 = vmatprep.subr.bf16.mxu0 %v20091_v1 }
 0x33b   : > { %9999 = vrot.lane.b32.xlu0 %v21109_v53, %s20098_s16  ;;  %v21169_v22 = vpop.permute.xlu0 %4831  ;;  %v21189_v42 = vpop.permute.xlu1 %4884 }
 0x33c   : > { %18522 = vmatmul.mubr.msk.bf16.vlgmr.msra.gmra.mrb[120].mxu1 %vm1278_vm7, %v20857_v10 }
 0x33d   : > { %10052 = vrot.lane.b32.xlu1 %v21116_v62, %s20098_s16  ;;  %18532 = vmatpush3.bf16.msra.mxu1 %v3694_v4 }
 0x33e   : > { %18533 = vmatprep.mubr.msk.bf16.mxu1 %vm20090_vm0, %v20091_v1  ;;  %18543 = vmatprep.subr.bf16.mxu1 %v20091_v1 }
 0x33f   : > { %18552 = vmatmul.mubr.msk.bf16.vlgmr.msra.gmra.mrb[132].mxu0 %vm1278_vm7, %v20857_v10  ;;  %10105 = vrot.lane.b32.xlu0 %v21124_v5, %s20098_s16  ;;  %v21199_v15 = vpop.permute.xlu0 %4937  ;;  %v21218_v30 = vpop.permute.xlu1 %4990 }
 0x340   : > { %18562 = vmatpush3.bf16.msra.mxu0 %v3959_v7  ;;  %18563 = vmatprep.mubr.msk.bf16.mxu0 %vm20090_vm0, %v20091_v1  ;;  %v21266_v7 = vld.sshfl [vmem:[#allocation4 + $0x2c] sm:$0x3 pattern:$0x76325410] }
 0x341   : > { %10158 = vrot.lane.b32.xlu1 %v21136_v56, %s20098_s16  ;;  %18573 = vmatprep.subr.bf16.mxu0 %v20091_v1 }
 0x343   : > { %10211 = vrot.lane.b32.xlu0 %v21146_v11, %s20098_s16  ;;  %v21229_v39 = vpop.permute.xlu0 %5043  ;;  %v21249_v40 = vpop.permute.xlu1 %5096 }
 0x344   : > { %18534 = vmatmul.mubr.msk.bf16.vlgmr.msra.gmra.mrb[124].mxu1 %vm1278_vm7, %v20857_v10 }
 0x345   : > { %10264 = vrot.lane.b32.xlu1 %v21153_v12, %s20098_s16  ;;  %18544 = vmatpush3.bf16.msra.mxu1 %v3800_v13 }
 0x346   : > { %18545 = vmatprep.mubr.msk.bf16.mxu1 %vm20090_vm0, %v20091_v1  ;;  %18555 = vmatprep.subr.bf16.mxu1 %v20091_v1 }
 0x347   : > { %18564 = vmatmul.mubr.msk.bf16.vlgmr.msra.gmra.mrb[136].mxu0 %vm1278_vm7, %v20857_v10  ;;  %10317 = vrot.lane.b32.xlu0 %v21163_v16, %s20098_s16  ;;  %v1320_v21 = vpop.f32.mrb[20].mxu1  ;;  %v21258_v4 = vpop.permute.xlu0 %5149 }
 0x348   : > { %18574 = vmatpush3.bf16.msra.mxu0 %v4065_v17  ;;  %18575 = vmatprep.mubr.msk.bf16.mxu0 %vm20090_vm0, %v20091_v1  ;;  %2660 = vst.msk [vmem:[%s21182_s7] sm:$0xff] %vm2659_vm8, %v1320_v21  ;;  %v18235_v23 = vpop.f32.mrb[21].mxu1 }
 0x349   : > { %10370 = vrot.lane.b32.xlu1 %v21175_v8, %s20098_s16  ;;  %18585 = vmatprep.subr.bf16.mxu0 %v20091_v1  ;;  %v1323_v27 = vpop.f32.mrb[22].mxu1  ;;  %v1449_v29 = vpop.f32.mrb[32].mxu0  ;;  %v21273_v23 = vld.sshfl [vmem:[#allocation4 + $0x2e] sm:$0x3 pattern:$0x76325410] }
 0x34a   : > { %v18236_v51 = vpop.f32.mrb[23].mxu1  ;;  %2663 = vst.msk [vmem:[%s21182_s7 + $0x18] sm:$0xff] %vm2659_vm8, %v1449_v29  ;;  %v18253_v9 = vpop.f32.mrb[33].mxu0  ;;  %v4118_v29 = vsel %vm1282_vm6, %v21034_v28, 0  ;;  %v4383_v28 = vsel %vm1282_vm6, %v21084_v43, 0 }
 0x34b   : > { %10423 = vrot.lane.b32.xlu0 %v21186_v3, %s20098_s16  ;;  %v1452_v20 = vpop.f32.mrb[34].mxu0  ;;  %v21277_v51 = vpop.permute.xlu1 %5202 }
 0x34c   : > { %18546 = vmatmul.mubr.msk.bf16.vlgmr.msra.gmra.mrb[128].mxu1 %vm1278_vm7, %v20857_v10  ;;  %v18254_v25 = vpop.f32.mrb[35].mxu0 }
 0x34d   : > { %10476 = vrot.lane.b32.xlu1 %v21195_v59, %s20098_s16  ;;  %18556 = vmatpush3.bf16.msra.mxu1 %v3906_v36  ;;  %v21283_v36 = vld.sshfl [vmem:[#allocation4 + $0x30] sm:$0x3 pattern:$0x76325410]  ;;  %v21289_v25 = vpop.permute.xlu0 %5255 }
 0x34e   : > { %18557 = vmatprep.mubr.msk.bf16.mxu1 %vm20090_vm0, %v20091_v1  ;;  %18567 = vmatprep.subr.bf16.mxu1 %v20091_v1 }
 0x34f   : > { %18576 = vmatmul.mubr.msk.bf16.vlgmr.msra.gmra.mrb[140].mxu0 %vm1278_vm7, %v20857_v10  ;;  %10529 = vrot.lane.b32.xlu0 %v21205_v24, %s20098_s16  ;;  %v1363_v26 = vpop.f32.mrb[24].mxu1 }
 0x350   : > { %18586 = vmatpush3.bf16.msra.mxu0 %v4171_v2  ;;  %18587 = vmatprep.mubr.msk.bf16.mxu0 %vm20090_vm0, %v20091_v1  ;;  %2661 = vst.msk [vmem:[%s21182_s7 + $0x8] sm:$0xff] %vm2659_vm8, %v1363_v26  ;;  %v18241_v31 = vpop.f32.mrb[25].mxu1  ;;  %v21295_v2 = vld.sshfl [vmem:[#allocation4 + $0x32] sm:$0x3 pattern:$0x76325410] }
 0x351   : > { %10582 = vrot.lane.b32.xlu1 %v21215_v57, %s20098_s16  ;;  %18597 = vmatprep.subr.bf16.mxu0 %v20091_v1  ;;  %v1366_v33 = vpop.f32.mrb[26].mxu1  ;;  %v21304_v31 = vld.sshfl [vmem:[#allocation4 + $0x34] sm:$0x3 pattern:$0x76325410] }
 0x352   : > { %v1535_v35 = vpop.f32.mrb[36].mxu0  ;;  %v18242_v19 = vpop.f32.mrb[27].mxu1 }
 0x353   : > { %10635 = vrot.lane.b32.xlu0 %v21226_v18, %s20098_s16  ;;  %2665 = vst.msk [vmem:[%s21182_s7 + $0x28] sm:$0xff] %vm2659_vm8, %v1535_v35  ;;  %v18265_v47 = vpop.f32.mrb[37].mxu0  ;;  %v21307_v19 = vpop.permute.xlu1 %5308 }
 0x354   : > { %18558 = vmatmul.mubr.msk.bf16.vlgmr.msra.gmra.mrb[132].mxu1 %vm1278_vm7, %v20857_v10  ;;  %v1538_v50 = vpop.f32.mrb[38].mxu0 }
 0x355   : > { %10688 = vrot.lane.b32.xlu1 %v21235_v45, %s20098_s16  ;;  %18568 = vmatpush3.bf16.msra.mxu1 %v4012_v48  ;;  %v18266_v32 = vpop.f32.mrb[39].mxu0  ;;  %v21313_v48 = vld.sshfl [vmem:[#allocation4 + $0x36] sm:$0x3 pattern:$0x76325410] }
 0x356   : > { %18569 = vmatprep.mubr.msk.bf16.mxu1 %vm20090_vm0, %v20091_v1  ;;  %18579 = vmatprep.subr.bf16.mxu1 %v20091_v1  ;;  %v4224_v32 = vsel %vm1282_vm6, %v21052_v60, 0  ;;  %v4622_v60 = vsel %vm1282_vm6, %v21112_v55, 0 }
 0x357   : > { %18588 = vmatmul.mubr.msk.bf16.vlgmr.msra.gmra.mrb[144].mxu0 %vm1278_vm7, %v20857_v10  ;;  %10741 = vrot.lane.b32.xlu0 %v21243_v54, %s20098_s16  ;;  %v1406_v46 = vpop.f32.mrb[28].mxu1 }
 0x358   : > { %18598 = vmatpush3.bf16.msra.mxu0 %v4277_v34  ;;  %18599 = vmatprep.mubr.msk.bf16.mxu0 %vm20090_vm0, %v20091_v1  ;;  %2662 = vst.msk [vmem:[%s21182_s7 + $0x10] sm:$0xff] %vm2659_vm8, %v1406_v46  ;;  %v18247_v0 = vpop.f32.mrb[29].mxu1  ;;  %v21317_v34 = vpop.permute.xlu0 %5361 }
 0x359   : > { %10794 = vrot.lane.b32.xlu1 %v21255_v41, %s20098_s16  ;;  %18609 = vmatprep.subr.bf16.mxu0 %v20091_v1  ;;  %v1409_v13 = vpop.f32.mrb[30].mxu1  ;;  %v21323_v0 = vld.sshfl [vmem:[#allocation4 + $0x38] sm:$0x3 pattern:$0x76325410] }
 0x35a   : > { %v1621_v17 = vpop.f32.mrb[40].mxu0  ;;  %v18248_v21 = vpop.f32.mrb[31].mxu1 }
 0x35b   : > { %10847 = vrot.lane.b32.xlu0 %v21266_v7, %s20098_s16  ;;  %2667 = vst.msk [vmem:[%s21182_s7 + $0x38] sm:$0xff] %vm2659_vm8, %v1621_v17  ;;  %v18277_v27 = vpop.f32.mrb[41].mxu0  ;;  %v21333_v17 = vld.sshfl [vmem:[#allocation4 + $0x3a] sm:$0x3 pattern:$0x76325410] }
 0x35c   : > { %18570 = vmatmul.mubr.msk.bf16.vlgmr.msra.gmra.mrb[136].mxu1 %vm1278_vm7, %v20857_v10  ;;  %v1624_v9 = vpop.f32.mrb[42].mxu0  ;;  %v21336_v27 = vpop.permute.xlu1 %5414 }
 0x35d   : > { %10900 = vrot.lane.b32.xlu1 %v21273_v23, %s20098_s16  ;;  %18580 = vmatpush3.bf16.msra.mxu1 %v4118_v29  ;;  %v18278_v20 = vpop.f32.mrb[43].mxu0  ;;  %v21344_v29 = vld.sshfl [vmem:[#allocation4 + $0x3c] sm:$0x3 pattern:$0x76325410] }
 0x35e   : > { %18581 = vmatprep.mubr.msk.bf16.mxu1 %vm20090_vm0, %v20091_v1  ;;  %18591 = vmatprep.subr.bf16.mxu1 %v20091_v1 }
 0x35f   : > { %18600 = vmatmul.mubr.msk.bf16.vlgmr.msra.gmra.mrb[148].mxu0 %vm1278_vm7, %v20857_v10  ;;  %10953 = vrot.lane.b32.xlu0 %v21283_v36, %s20098_s16  ;;  %v1492_v26 = vpop.f32.mrb[32].mxu1 }
 0x360   : > { %18610 = vmatpush3.bf16.msra.mxu0 %v4383_v28  ;;  %18611 = vmatprep.mubr.msk.bf16.mxu0 %vm20090_vm0, %v20091_v1  ;;  %2664 = vst.msk [vmem:[%s21182_s7 + $0x20] sm:$0xff] %vm2659_vm8, %v1492_v26  ;;  %v18259_v43 = vpop.f32.mrb[33].mxu1  ;;  %v21347_v28 = vpop.permute.xlu0 %5467  ;;  %v21351_v26 = vld.sshfl [vmem:[#allocation4 + $0x3e] sm:$0x3 pattern:$0x76325410] }
 0x361   : > { %11006 = vrot.lane.b32.xlu1 %v21295_v2, %s20098_s16  ;;  %18621 = vmatprep.subr.bf16.mxu0 %v20091_v1  ;;  %v1495_v33 = vpop.f32.mrb[34].mxu1 }
 0x362   : > { %v1707_v35 = vpop.f32.mrb[44].mxu0  ;;  %v18260_v47 = vpop.f32.mrb[35].mxu1  ;;  %v21358_v33 = vld [vmem:[%s23962_s3 + $0x8] sm:$0xf] }
 0x363   : > { %11059 = vrot.lane.b32.xlu0 %v21304_v31, %s20098_s16  ;;  %2669 = vst.msk [vmem:[%s21182_s7 + $0x48] sm:$0xff] %vm2659_vm8, %v1707_v35  ;;  %v18289_v50 = vpop.f32.mrb[45].mxu0  ;;  %v4330_v47 = vsel %vm1282_vm6, %v21076_v63, 0 }
 0x364   : > { %18582 = vmatmul.mubr.msk.bf16.vlgmr.msra.gmra.mrb[140].mxu1 %vm1278_vm7, %v20857_v10  ;;  %v1710_v46 = vpop.f32.mrb[46].mxu0 }
 0x365   : > { %11112 = vrot.lane.b32.xlu1 %v21313_v48, %s20098_s16  ;;  %18592 = vmatpush3.bf16.msra.mxu1 %v4224_v32  ;;  %v18290_v13 = vpop.f32.mrb[47].mxu0  ;;  %v4728_v46 = vsel %vm1282_vm6, %v21140_v58, 0 }
 0x366   : > { %18593 = vmatprep.mubr.msk.bf16.mxu1 %vm20090_vm0, %v20091_v1  ;;  %18603 = vmatprep.subr.bf16.mxu1 %v20091_v1  ;;  %v21370_v13 = vpop.permute.xlu1 %5520 }
 0x367   : > { %18612 = vmatmul.mubr.msk.bf16.vlgmr.msra.gmra.mrb[152].mxu0 %vm1278_vm7, %v20857_v10  ;;  %11165 = vrot.lane.b32.xlu0 %v21323_v0, %s20098_s16  ;;  %v1578_v21 = vpop.f32.mrb[36].mxu1 }
 0x368   : > { %18622 = vmatpush3.bf16.msra.mxu0 %v4622_v60  ;;  %18623 = vmatprep.mubr.msk.bf16.mxu0 %vm20090_vm0, %v20091_v1  ;;  %2666 = vst.msk [vmem:[%s21182_s7 + $0x30] sm:$0xff] %vm2659_vm8, %v1578_v21  ;;  %v18271_v55 = vpop.f32.mrb[37].mxu1  ;;  %v21377_v60 = vpop.permute.xlu0 %5573 }
 0x369   : > { %11218 = vrot.lane.b32.xlu1 %v21333_v17, %s20098_s16  ;;  %18633 = vmatprep.subr.bf16.mxu0 %v20091_v1  ;;  %v1581_v9 = vpop.f32.mrb[38].mxu1 }
 0x36a   : > { %v1793_v20 = vpop.f32.mrb[48].mxu0  ;;  %v18272_v43 = vpop.f32.mrb[39].mxu1 }
 0x36b   : > { %11271 = vrot.lane.b32.xlu0 %v21344_v29, %s20098_s16  ;;  %2671 = vst.msk [vmem:[%s21182_s7 + $0x58] sm:$0xff] %vm2659_vm8, %v1793_v20  ;;  %v18301_v35 = vpop.f32.mrb[49].mxu0  ;;  %v4569_v43 = vsel %vm1282_vm6, %v21103_v52, 0 }
 0x36c   : > { %18594 = vmatmul.mubr.msk.bf16.vlgmr.msra.gmra.mrb[144].mxu1 %vm1278_vm7, %v20857_v10  ;;  %v1796_v50 = vpop.f32.mrb[50].mxu0  ;;  %v21392_v35 = vpop.permute.xlu1 %5626 }
 0x36d   : > { %11324 = vrot.lane.b32.xlu1 %v21351_v26, %s20098_s16  ;;  %18604 = vmatpush3.bf16.msra.mxu1 %v4330_v47  ;;  %v18302_v32 = vpop.f32.mrb[51].mxu0 }
 0x36e   : > { %18605 = vmatprep.mubr.msk.bf16.mxu1 %vm20090_vm0, %v20091_v1  ;;  %18615 = vmatprep.subr.bf16.mxu1 %v20091_v1  ;;  %v4834_v32 = vsel %vm1282_vm6, %v21169_v22, 0 }
 0x36f   : > { %18624 = vmatmul.mubr.msk.bf16.vlgmr.msra.gmra.mrb[156].mxu0 %vm1278_vm7, %v21358_v33  ;;  %11377 = vrot.lane.b32.xlu0 %v21058_v61, %s20098_s16  ;;  %v1664_v63 = vpop.f32.mrb[40].mxu1 }
 0x370   : > { %18634 = vmatpush3.bf16.msra.mxu0 %v4728_v46  ;;  %18635 = vmatprep.mubr.msk.bf16.mxu0 %vm20090_vm0, %v20091_v1  ;;  %2668 = vst.msk [vmem:[%s21182_s7 + $0x40] sm:$0xff] %vm2659_vm8, %v1664_v63  ;;  %v18283_v58 = vpop.f32.mrb[41].mxu1  ;;  %v21402_v46 = vpop.permute.xlu0 %5679 }
 0x371   : > { %13070 = vrot.lane.b32.xlu1 %v21073_v6, %s20097_s13  ;;  %18645 = vmatprep.subr.bf16.mxu0 %v20091_v1  ;;  %v1667_v21 = vpop.f32.mrb[42].mxu1  ;;  %v21416_v58 = vpop.permute.xlu1 %5732 }
 0x372   : > { %v1879_v55 = vpop.f32.mrb[52].mxu0  ;;  %v18284_v9 = vpop.f32.mrb[43].mxu1 }
 0x373   : > { %13126 = vrot.lane.b32.xlu0 %v21080_v37, %s20097_s13  ;;  %2673 = vst.msk [vmem:[%s21182_s7 + $0x68] sm:$0xff] %vm2659_vm8, %v1879_v55  ;;  %v18313_v20 = vpop.f32.mrb[53].mxu0 }
 0x374   : > { %18606 = vmatmul.mubr.msk.bf16.vlgmr.msra.gmra.mrb[148].mxu1 %vm1278_vm7, %v20857_v10  ;;  %v1882_v47 = vpop.f32.mrb[54].mxu0  ;;  %v21424_v55 = vpop.permute.xlu0 %5785  ;;  %v4940_v20 = vsel %vm1282_vm6, %v21199_v15, 0 }
 0x375   : > { %13179 = vrot.lane.b32.xlu1 %v21090_v44, %s20097_s13  ;;  %18616 = vmatpush3.bf16.msra.mxu1 %v4569_v43  ;;  %v18314_v50 = vpop.f32.mrb[55].mxu0 }
 0x376   : > { %18617 = vmatprep.mubr.msk.bf16.mxu1 %vm20090_vm0, %v20091_v1  ;;  %18627 = vmatprep.subr.bf16.mxu1 %v20091_v1 }
 0x377   : > { %18636 = vmatmul.mubr.msk.bf16.vlgmr.msra.gmra.mrb[160].mxu0 %vm1278_vm7, %v21358_v33  ;;  %13232 = vrot.lane.b32.xlu0 %v21100_v49, %s20097_s13  ;;  %v1750_v10 = vpop.f32.mrb[44].mxu1 }
 0x378   : > { %18646 = vmatpush3.bf16.msra.mxu0 %v4834_v32  ;;  %18647 = vmatprep.mubr.msk.bf16.mxu0 %vm20090_vm0, %v20091_v1  ;;  %2670 = vst.msk [vmem:[%s21182_s7 + $0x50] sm:$0xff] %vm2659_vm8, %v1750_v10  ;;  %v18295_v52 = vpop.f32.mrb[45].mxu1 }
 0x379   : > { %13285 = vrot.lane.b32.xlu1 %v21109_v53, %s20097_s13  ;;  %18657 = vmatprep.subr.bf16.mxu0 %v20091_v1  ;;  %v1753_v22 = vpop.f32.mrb[46].mxu1  ;;  %v4675_v53 = vsel %vm1282_vm6, %v21130_v38, 0  ;;  %v21439_v38 = vpop.permute.xlu1 %5838  ;;  %v5046_v52 = vsel %vm1282_vm6, %v21229_v39, 0 }
 0x37a   : > { %v1965_v63 = vpop.f32.mrb[56].mxu0  ;;  %v18296_v49 = vpop.f32.mrb[47].mxu1 }
 0x37b   : > { %13338 = vrot.lane.b32.xlu0 %v21116_v62, %s20097_s13  ;;  %2675 = vst.msk [vmem:[%s21182_s7 + $0x78] sm:$0xff] %vm2659_vm8, %v1965_v63  ;;  %v18325_v21 = vpop.f32.mrb[57].mxu0 }
 0x37c   : > { %18618 = vmatmul.mubr.msk.bf16.vlgmr.msra.gmra.mrb[152].mxu1 %vm1278_vm7, %v21358_v33  ;;  %v1968_v9 = vpop.f32.mrb[58].mxu0 }
 0x37d   : > { %13391 = vrot.lane.b32.xlu1 %v21124_v5, %s20097_s13  ;;  %18628 = vmatpush3.bf16.msra.mxu1 %v4675_v53  ;;  %v18326_v62 = vpop.f32.mrb[59].mxu0  ;;  %v21464_v22 = vpop.permute.xlu1 %5944 }
 0x37e   : > { %18629 = vmatprep.mubr.msk.bf16.mxu1 %vm20090_vm0, %v20091_v1  ;;  %18639 = vmatprep.subr.bf16.mxu1 %v20091_v1  ;;  %v5152_v62 = vsel %vm1282_vm6, %v21258_v4, 0 }
 0x37f   : > { %18648 = vmatmul.mubr.msk.bf16.vlgmr.msra.gmra.mrb[164].mxu0 %vm1278_vm7, %v21358_v33  ;;  %13444 = vrot.lane.b32.xlu0 %v21136_v56, %s20097_s13  ;;  %v1836_v5 = vpop.f32.mrb[48].mxu1  ;;  %v21448_v56 = vpop.permute.xlu0 %5891 }
 0x380   : > { %18658 = vmatpush3.bf16.msra.mxu0 %v4940_v20  ;;  %18659 = vmatprep.mubr.msk.bf16.mxu0 %vm20090_vm0, %v20091_v1  ;;  %2672 = vst.msk [vmem:[%s21182_s7 + $0x60] sm:$0xff] %vm2659_vm8, %v1836_v5  ;;  %v18307_v15 = vpop.f32.mrb[49].mxu1 }
 0x381   : > { %13497 = vrot.lane.b32.xlu1 %v21146_v11, %s20097_s13  ;;  %18669 = vmatprep.subr.bf16.mxu0 %v20091_v1  ;;  %v1839_v43 = vpop.f32.mrb[50].mxu1  ;;  %v4781_v11 = vsel %vm1282_vm6, %v21157_v14, 0  ;;  %v21486_v53 = vpop.permute.xlu1 %6050 }
 0x382   : > { %v2051_v47 = vpop.f32.mrb[60].mxu0  ;;  %v18308_v50 = vpop.f32.mrb[51].mxu1 }
 0x383   : > { %13550 = vrot.lane.b32.xlu0 %v21153_v12, %s20097_s13  ;;  %2677 = vst.msk [vmem:[%s21182_s7 + $0x88] sm:$0xff] %vm2659_vm8, %v2051_v47  ;;  %v18337_v32 = vpop.f32.mrb[61].mxu0 }
 0x384   : > { %18630 = vmatmul.mubr.msk.bf16.vlgmr.msra.gmra.mrb[156].mxu1 %vm1278_vm7, %v21358_v33  ;;  %v2054_v10 = vpop.f32.mrb[62].mxu0  ;;  %v5258_v32 = vsel %vm1282_vm6, %v21289_v25, 0 }
 0x385   : > { %13603 = vrot.lane.b32.xlu1 %v21163_v16, %s20097_s13  ;;  %18640 = vmatpush3.bf16.msra.mxu1 %v4781_v11  ;;  %v18338_v12 = vpop.f32.mrb[63].mxu0  ;;  %v21471_v16 = vpop.permute.xlu0 %5997 }
 0x386   : > { %18641 = vmatprep.mubr.msk.bf16.mxu1 %vm20090_vm0, %v20091_v1  ;;  %18651 = vmatprep.subr.bf16.mxu1 %v20091_v1  ;;  %v21510_v15 = vpop.permute.xlu1 %6156 }
 0x387   : > { %18660 = vmatmul.mubr.msk.bf16.vlgmr.msra.gmra.mrb[168].mxu0 %vm1278_vm7, %v21358_v33  ;;  %13656 = vrot.lane.b32.xlu0 %v21175_v8, %s20097_s13  ;;  %v1922_v14 = vpop.f32.mrb[52].mxu1 }
 0x388   : > { %18670 = vmatpush3.bf16.msra.mxu0 %v5046_v52  ;;  %18671 = vmatprep.mubr.msk.bf16.mxu0 %vm20090_vm0, %v20091_v1  ;;  %2674 = vst.msk [vmem:[%s21182_s7 + $0x70] sm:$0xff] %vm2659_vm8, %v1922_v14  ;;  %v18319_v39 = vpop.f32.mrb[53].mxu1 }
 0x389   : > { %13709 = vrot.lane.b32.xlu1 %v21186_v3, %s20097_s13  ;;  %18681 = vmatprep.subr.bf16.mxu0 %v20091_v1  ;;  %v1925_v63 = vpop.f32.mrb[54].mxu1  ;;  %v4887_v3 = vsel %vm1282_vm6, %v21189_v42, 0  ;;  %v21496_v20 = vpop.permute.xlu0 %6103  ;;  %v5364_v39 = vsel %vm1282_vm6, %v21317_v34, 0 }
 0x38a   : > { %v2137_v49 = vpop.f32.mrb[64].mxu0  ;;  %v18320_v8 = vpop.f32.mrb[55].mxu1 }
 0x38b   : > { %13762 = vrot.lane.b32.xlu0 %v21195_v59, %s20097_s13  ;;  %2679 = vst.msk [vmem:[%s21182_s7 + $0x98] sm:$0xff] %vm2659_vm8, %v2137_v49  ;;  %v18349_v21 = vpop.f32.mrb[65].mxu0 }
 0x38c   : > { %18642 = vmatmul.mubr.msk.bf16.vlgmr.msra.gmra.mrb[160].mxu1 %vm1278_vm7, %v21358_v33  ;;  %v2140_v9 = vpop.f32.mrb[66].mxu0 }
 0x38d   : > { %13815 = vrot.lane.b32.xlu1 %v21205_v24, %s20097_s13  ;;  %18652 = vmatpush3.bf16.msra.mxu1 %v4887_v3  ;;  %v18350_v59 = vpop.f32.mrb[67].mxu0  ;;  %v21518_v47 = vpop.permute.xlu0 %6209 }
 0x38e   : > { %18653 = vmatprep.mubr.msk.bf16.mxu1 %vm20090_vm0, %v20091_v1  ;;  %18663 = vmatprep.subr.bf16.mxu1 %v20091_v1  ;;  %v5470_v59 = vsel %vm1282_vm6, %v21347_v28, 0 }
 0x38f   : > { %18672 = vmatmul.mubr.msk.bf16.vlgmr.msra.gmra.mrb[172].mxu0 %vm1278_vm7, %v21358_v33  ;;  %13868 = vrot.lane.b32.xlu0 %v21215_v57, %s20097_s13  ;;  %v2008_v42 = vpop.f32.mrb[56].mxu1 }
 0x390   : > { %18682 = vmatpush3.bf16.msra.mxu0 %v5152_v62  ;;  %18683 = vmatprep.mubr.msk.bf16.mxu0 %vm20090_vm0, %v20091_v1  ;;  %2676 = vst.msk [vmem:[%s21182_s7 + $0x80] sm:$0xff] %vm2659_vm8, %v2008_v42  ;;  %v18331_v24 = vpop.f32.mrb[57].mxu1 }
 0x391   : > { %13921 = vrot.lane.b32.xlu1 %v21226_v18, %s20097_s13  ;;  %18693 = vmatprep.subr.bf16.mxu0 %v20091_v1  ;;  %v2011_v4 = vpop.f32.mrb[58].mxu1  ;;  %v4993_v18 = vsel %vm1282_vm6, %v21218_v30, 0 }
 0x392   : > { %v2223_v5 = vpop.f32.mrb[68].mxu0  ;;  %v18332_v57 = vpop.f32.mrb[59].mxu1 }
 0x393   : > { %13974 = vrot.lane.b32.xlu0 %v21235_v45, %s20097_s13  ;;  %2681 = vst.msk [vmem:[%s21182_s7 + $0xa8] sm:$0xff] %vm2659_vm8, %v2223_v5  ;;  %v18361_v43 = vpop.f32.mrb[69].mxu0  ;;  %v5311_v5 = vsel %vm1282_vm6, %v21307_v19, 0 }
 0x394   : > { %18654 = vmatmul.mubr.msk.bf16.vlgmr.msra.gmra.mrb[164].mxu1 %vm1278_vm7, %v21358_v33  ;;  %v2226_v50 = vpop.f32.mrb[70].mxu0 }
 0x395   : > { %14027 = vrot.lane.b32.xlu1 %v21243_v54, %s20097_s13  ;;  %18664 = vmatpush3.bf16.msra.mxu1 %v4993_v18  ;;  %v18362_v45 = vpop.f32.mrb[71].mxu0  ;;  %v21533_v54 = vpop.permute.xlu1 %7902  ;;  %v5576_v18 = vsel %vm1282_vm6, %v21377_v60, 0 }
 0x396   : > { %18665 = vmatprep.mubr.msk.bf16.mxu1 %vm20090_vm0, %v20091_v1  ;;  %18675 = vmatprep.subr.bf16.mxu1 %v20091_v1 }
 0x397   : > { %18684 = vmatmul.mubr.msk.bf16.vlgmr.msra.gmra.mrb[176].mxu0 %vm1278_vm7, %v21358_v33  ;;  %14080 = vrot.lane.b32.xlu0 %v21255_v41, %s20097_s13  ;;  %v2094_v30 = vpop.f32.mrb[60].mxu1  ;;  %v21542_v41 = vpop.permute.xlu0 %7958 }
 0x398   : > { %18694 = vmatpush3.bf16.msra.mxu0 %v5258_v32  ;;  %18695 = vmatprep.mubr.msk.bf16.mxu0 %vm20090_vm0, %v20091_v1  ;;  %2678 = vst.msk [vmem:[%s21182_s7 + $0x90] sm:$0xff] %vm2659_vm8, %v2094_v30  ;;  %v18343_v25 = vpop.f32.mrb[61].mxu1 }
 0x399   : > { %14133 = vrot.lane.b32.xlu1 %v21266_v7, %s20097_s13  ;;  %18705 = vmatprep.subr.bf16.mxu0 %v20091_v1  ;;  %v2097_v11 = vpop.f32.mrb[62].mxu1  ;;  %v5099_v7 = vsel %vm1282_vm6, %v21249_v40, 0  ;;  %v21558_v63 = vpop.permute.xlu1 %8011 }
 0x39a   : > { %v2309_v10 = vpop.f32.mrb[72].mxu0  ;;  %v18344_v12 = vpop.f32.mrb[63].mxu1  ;;  %v5417_v11 = vsel %vm1282_vm6, %v21336_v27, 0 }
 0x39b   : > { %14186 = vrot.lane.b32.xlu0 %v21273_v23, %s20097_s13  ;;  %2683 = vst.msk [vmem:[%s21182_s7 + $0xb8] sm:$0xff] %vm2659_vm8, %v2309_v10  ;;  %v18373_v52 = vpop.f32.mrb[73].mxu0  ;;  %v17456_v12 = vld.sshfl [vmem:[#allocation4 + $0xa] sm:$0x3 pattern:$0x76325410] }
 0x39c   : > { %18666 = vmatmul.mubr.msk.bf16.vlgmr.msra.gmra.mrb[168].mxu1 %vm1278_vm7, %v21358_v33  ;;  %v2312_v14 = vpop.f32.mrb[74].mxu0 }
 0x39d   : > { %14239 = vrot.lane.b32.xlu1 %v21283_v36, %s20097_s13  ;;  %18676 = vmatpush3.bf16.msra.mxu1 %v5099_v7  ;;  %v18374_v23 = vpop.f32.mrb[75].mxu0  ;;  %v21565_v36 = vpop.permute.xlu0 %8064  ;;  %v17460_v14 = vld.sshfl [vmem:[#allocation4 + $0xe] sm:$0x3 pattern:$0x76325410] }
 0x39e   : > { %18677 = vmatprep.mubr.msk.bf16.mxu1 %vm20090_vm0, %v20091_v1  ;;  %18687 = vmatprep.subr.bf16.mxu1 %v20091_v1  ;;  %v21580_v3 = vpop.permute.xlu1 %8117 }
 0x39f   : > { %18696 = vmatmul.mubr.msk.bf16.vlgmr.msra.gmra.mrb[180].mxu0 %vm1278_vm7, %v21358_v33  ;;  %14292 = vrot.lane.b32.xlu0 %v21295_v2, %s20097_s13  ;;  %v2180_v40 = vpop.f32.mrb[64].mxu1 }
 0x3a0   : > { %18706 = vmatpush3.bf16.msra.mxu0 %v5364_v39  ;;  %18707 = vmatprep.mubr.msk.bf16.mxu0 %vm20090_vm0, %v20091_v1  ;;  %2680 = vst.msk [vmem:[%s21182_s7 + $0xa0] sm:$0xff] %vm2659_vm8, %v2180_v40  ;;  %v18355_v34 = vpop.f32.mrb[65].mxu1 }
 0x3a1   : > { %14345 = vrot.lane.b32.xlu1 %v21304_v31, %s20097_s13  ;;  %18717 = vmatprep.subr.bf16.mxu0 %v20091_v1  ;;  %v2183_v49 = vpop.f32.mrb[66].mxu1  ;;  %v5205_v31 = vsel %vm1282_vm6, %v21277_v51, 0  ;;  %v21590_v51 = vpop.permute.xlu0 %8170  ;;  %v17462_v34 = vld.sshfl [vmem:[#allocation4 + $0x10] sm:$0x3 pattern:$0x76325410] }
 0x3a2   : > { %v2395_v8 = vpop.f32.mrb[76].mxu0  ;;  %v18356_v2 = vpop.f32.mrb[67].mxu1 }
 0x3a3   : > { %14398 = vrot.lane.b32.xlu0 %v21313_v48, %s20097_s13  ;;  %2685 = vst.msk [vmem:[%s21182_s7 + $0xc8] sm:$0xff] %vm2659_vm8, %v2395_v8  ;;  %v18385_v21 = vpop.f32.mrb[77].mxu0  ;;  %v21604_v24 = vpop.permute.xlu1 %8223  ;;  %v5523_v2 = vsel %vm1282_vm6, %v21370_v13, 0 }
 0x3a4   : > { %18678 = vmatmul.mubr.msk.bf16.vlgmr.msra.gmra.mrb[172].mxu1 %vm1278_vm7, %v21358_v33  ;;  %v2398_v9 = vpop.f32.mrb[78].mxu0  ;;  %v17466_v13 = vld.sshfl [vmem:[#allocation4 + $0x14] sm:$0x3 pattern:$0x76325410] }
 0x3a5   : > { %14451 = vrot.lane.b32.xlu1 %v21323_v0, %s20097_s13  ;;  %18688 = vmatpush3.bf16.msra.mxu1 %v5205_v31  ;;  %v18386_v48 = vpop.f32.mrb[79].mxu0  ;;  %v21612_v57 = vpop.permute.xlu0 %8276  ;;  %v17464_v9 = vld.sshfl [vmem:[#allocation4 + $0x12] sm:$0x3 pattern:$0x76325410] }
 0x3a6   : > { %18689 = vmatprep.mubr.msk.bf16.mxu1 %vm20090_vm0, %v20091_v1  ;;  %18699 = vmatprep.subr.bf16.mxu1 %v20091_v1  ;;  %v5788_v48 = vsel %vm1282_vm6, %v21424_v55, 0 }
 0x3a7   : > { %18708 = vmatmul.mubr.msk.bf16.vlgmr.msra.gmra.mrb[184].mxu0 %vm1278_vm7, %v21358_v33  ;;  %14504 = vrot.lane.b32.xlu0 %v21333_v17, %s20097_s13  ;;  %v2266_v0 = vpop.f32.mrb[68].mxu1  ;;  %v21629_v19 = vpop.permute.xlu1 %8329 }
 0x3a8   : > { %18718 = vmatpush3.bf16.msra.mxu0 %v5470_v59  ;;  %18719 = vmatprep.mubr.msk.bf16.mxu0 %vm20090_vm0, %v20091_v1  ;;  %2682 = vst.msk [vmem:[%s21182_s7 + $0xb0] sm:$0xff] %vm2659_vm8, %v2266_v0  ;;  %v18367_v28 = vpop.f32.mrb[69].mxu1 }
 0x3a9   : > { %14557 = vrot.lane.b32.xlu1 %v21344_v29, %s20097_s13  ;;  %18729 = vmatprep.subr.bf16.mxu0 %v20091_v1  ;;  %v2269_v42 = vpop.f32.mrb[70].mxu1  ;;  %v21638_v32 = vpop.permute.xlu0 %8382  ;;  %v17468_v28 = vld.sshfl [vmem:[#allocation4 + $0x16] sm:$0x3 pattern:$0x76325410] }
 0x3aa   : > { %v2481_v62 = vpop.f32.mrb[80].mxu0  ;;  %v18368_v29 = vpop.f32.mrb[71].mxu1  ;;  %v4426_v42 = vld [vmem:[%s21182_s7 + $0x8] sm:$0xff] }
 0x3ab   : > { %14610 = vrot.lane.b32.xlu0 %v21351_v26, %s20097_s13  ;;  %2687 = vst.msk [vmem:[%s21182_s7 + $0xd8] sm:$0xff] %vm2659_vm8, %v2481_v62  ;;  %v18397_v17 = vpop.f32.mrb[81].mxu0  ;;  %v21618_v26 = vld.sshfl [vmem:[#allocation4 + $0x42] sm:$0x3 pattern:$0x76325410]  ;;  %v21654_v52 = vpop.permute.xlu1 %8435 }
 0x3ac   : > { %v2484_v4 = vpop.f32.mrb[82].mxu0  ;;  %18690 = vmatmul.mubr.msk.bf16.vlgmr.msra.gmra.mrb[176].mxu1 %vm1278_vm7, %v21358_v33 }
 0x3ad   : > { %14663 = vrot.lane.b32.xlu1 %v21058_v61, %s20097_s13  ;;  %v18398_v43 = vpop.f32.mrb[83].mxu0  ;;  %18700 = vmatpush3.bf16.msra.mxu1 %v5311_v5  ;;  %v21660_v7 = vpop.permute.xlu0 %8488 }
 0x3ae   : > { %18701 = vmatprep.mubr.msk.bf16.mxu1 %vm20090_vm0, %v20091_v1  ;;  %18711 = vmatprep.subr.bf16.mxu1 %v20091_v1  ;;  %v17470_v43 = vld.sshfl [vmem:[#allocation4 + $0x18] sm:$0x3 pattern:$0x76325410] }
 0x3af   : > { %18720 = vmatmul.mubr.msk.bf16.vlgmr.msra.gmra.mrb[188].mxu0 %vm1278_vm7, %v21358_v33  ;;  %14716 = vrot.lane.b32.xlu0 %v21618_v26, %s20097_s13  ;;  %v2352_v61 = vpop.f32.mrb[72].mxu1  ;;  %v21673_v21 = vpop.permute.xlu1 %8541  ;;  %s23906_s13 = scalar_lea.hbm %s23963_s4, %s17520_s10 }
 0x3b0   : > { %18730 = vmatpush3.bf16.msra.mxu0 %v5576_v18  ;;  %18731 = vmatprep.mubr.msk.bf16.mxu0 %vm20090_vm0, %v20091_v1  ;;  %2684 = vst.msk [vmem:[%s21182_s7 + $0xc0] sm:$0xff] %vm2659_vm8, %v2352_v61  ;;  %v18379_v60 = vpop.f32.mrb[73].mxu1 }
 0x3b1   : > { %14899 = vrot.lane.b32.xlu1 %v21073_v6, %s20098_s16  ;;  %18741 = vmatprep.subr.bf16.mxu0 %v20091_v1  ;;  %v2355_v45 = vpop.f32.mrb[74].mxu1  ;;  %v21682_v59 = vpop.permute.xlu0 %8594  ;;  %v5629_v60 = vsel %vm1282_vm6, %v21392_v35, 0  ;;  %v5894_v35 = vsel %vm1282_vm6, %v21448_v56, 0 }
 0x3b2   : > { %v2567_v50 = vpop.f32.mrb[84].mxu0  ;;  %v18380_v6 = vpop.f32.mrb[75].mxu1 }
 0x3b3   : > { %14955 = vrot.lane.b32.xlu0 %v21080_v37, %s20098_s16  ;;  %2689 = vst.msk [vmem:[%s21182_s7 + $0xe8] sm:$0xff] %vm2659_vm8, %v2567_v50  ;;  %v18409_v30 = vpop.f32.mrb[85].mxu0  ;;  %v5682_v37 = vsel %vm1282_vm6, %v21402_v46, 0  ;;  %v21695_v4 = vpop.permute.xlu1 %8647 }
 0x3b4   : > { %v2570_v25 = vpop.f32.mrb[86].mxu0  ;;  %18702 = vmatmul.mubr.msk.bf16.vlgmr.msra.gmra.mrb[180].mxu1 %vm1278_vm7, %v21358_v33  ;;  %v17472_v30 = vld.sshfl [vmem:[#allocation4 + $0x1a] sm:$0x3 pattern:$0x76325410] }
 0x3b5   : > { %15008 = vrot.lane.b32.xlu1 %v21090_v44, %s20098_s16  ;;  %v18410_v10 = vpop.f32.mrb[87].mxu0  ;;  %18712 = vmatpush3.bf16.msra.mxu1 %v5417_v11  ;;  %v17458_v44 = vld.sshfl [vmem:[#allocation4 + $0xc] sm:$0x3 pattern:$0x76325410]  ;;  %v21700_v50 = vpop.permute.xlu0 %8700 }
 0x3b6   : > { %18713 = vmatprep.mubr.msk.bf16.mxu1 %vm20090_vm0, %v20091_v1  ;;  %18723 = vmatprep.subr.bf16.mxu1 %v20091_v1  ;;  %v17474_v25 = vld.sshfl [vmem:[#allocation4 + $0x1c] sm:$0x3 pattern:$0x76325410] }
 0x3b7   : > { %18732 = vmatmul.mubr.msk.bf16.vlgmr.msra.gmra.mrb[192].mxu0 %vm1278_vm7, %v21358_v33  ;;  %15061 = vrot.lane.b32.xlu0 %v17456_v12, %s20098_s16  ;;  %v2438_v27 = vpop.f32.mrb[76].mxu1  ;;  %v21715_v11 = vpop.permute.xlu1 %8753  ;;  %v17476_v10 = vld.sshfl [vmem:[#allocation4 + $0x1e] sm:$0x3 pattern:$0x76325410] }
 0x3b8   : > { %18742 = vmatpush3.bf16.msra.mxu0 %v5682_v37  ;;  %18743 = vmatprep.mubr.msk.bf16.mxu0 %vm20090_vm0, %v20091_v1  ;;  %2686 = vst.msk [vmem:[%s21182_s7 + $0xd0] sm:$0xff] %vm2659_vm8, %v2438_v27  ;;  %v18391_v46 = vpop.f32.mrb[77].mxu1  ;;  %v4428_v37 = vld [vmem:[%s21182_s7 + $0x18] sm:$0xff] }
 0x3b9   : > { %15114 = vrot.lane.b32.xlu1 %v17458_v44, %s20098_s16  ;;  %18753 = vmatprep.subr.bf16.mxu0 %v20091_v1  ;;  %v2441_v39 = vpop.f32.mrb[78].mxu1  ;;  %v21724_v27 = vpop.permute.xlu0 %8806 }
 0x3ba   : > { %v2653_v23 = vpop.f32.mrb[88].mxu0  ;;  %v18392_v8 = vpop.f32.mrb[79].mxu1 }
 0x3bb   : > { %15167 = vrot.lane.b32.xlu0 %v17460_v14, %s20098_s16  ;;  %2691 = vst.msk [vmem:[%s21182_s7 + $0xf8] sm:$0xff] %vm2659_vm8, %v2653_v23  ;;  %v18421_v40 = vpop.f32.mrb[89].mxu0  ;;  %v17478_v23 = vld.sshfl [vmem:[#allocation4 + $0x20] sm:$0x3 pattern:$0x76325410] }
 0x3bc   : > { %v2656_v49 = vpop.f32.mrb[90].mxu0  ;;  %18714 = vmatmul.mubr.msk.bf16.vlgmr.msra.gmra.mrb[184].mxu1 %vm1278_vm7, %v21358_v33  ;;  %v5735_v40 = vsel %vm1282_vm6, %v21416_v58, 0 }
 0x3bd   : > { %15220 = vrot.lane.b32.xlu1 %v17462_v34, %s20098_s16  ;;  %v18422_v31 = vpop.f32.mrb[91].mxu0  ;;  %18724 = vmatpush3.bf16.msra.mxu1 %v5523_v2  ;;  %v17480_v49 = vld.sshfl [vmem:[#allocation4 + $0x22] sm:$0x3 pattern:$0x76325410]  ;;  %v6000_v2 = vsel %vm1282_vm6, %v21471_v16, 0 }
 0x3be   : > { %18725 = vmatprep.mubr.msk.bf16.mxu1 %vm20090_vm0, %v20091_v1  ;;  %18735 = vmatprep.subr.bf16.mxu1 %v20091_v1  ;;  %v21738_v31 = vpop.permute.xlu1 %8859  ;;  %v17484_v16 = vld.sshfl [vmem:[#allocation4 + $0x26] sm:$0x3 pattern:$0x76325410] }
 0x3bf   : > { %18744 = vmatmul.mubr.msk.bf16.vlgmr.msra.gmra.mrb[196].mxu0 %vm1278_vm7, %v21358_v33  ;;  %15273 = vrot.lane.b32.xlu0 %v17464_v9, %s20098_s16  ;;  %v2524_v0 = vpop.f32.mrb[80].mxu1  ;;  %v4425_v9 = vld [vmem:[%s21182_s7] sm:$0xff] }
 0x3c0   : > { %18754 = vmatpush3.bf16.msra.mxu0 %v5788_v48  ;;  %18755 = vmatprep.mubr.msk.bf16.mxu0 %vm20090_vm0, %v20091_v1  ;;  %2688 = vst.msk [vmem:[%s21182_s7 + $0xe0] sm:$0xff] %vm2659_vm8, %v2524_v0  ;;  %v18403_v55 = vpop.f32.mrb[81].mxu1  ;;  %v17482_v48 = vld.sshfl [vmem:[#allocation4 + $0x24] sm:$0x3 pattern:$0x76325410] }
 0x3c1   : > { %15326 = vrot.lane.b32.xlu1 %v17466_v13, %s20098_s16  ;;  %18765 = vmatprep.subr.bf16.mxu0 %v20091_v1  ;;  %v2527_v17 = vpop.f32.mrb[82].mxu1  ;;  %v21745_v13 = vpop.permute.xlu0 %8912 }
 0x3c2   : > { %v2829_v62 = vpop.f32.mrb[92].mxu0  ;;  %v18404_v61 = vpop.f32.mrb[83].mxu1 }
 0x3c3   : > { %v4458_v29 = vadd.f32 %v4426_v42, %v2829_v62  ;;  %15379 = vrot.lane.b32.xlu0 %v17468_v28, %s20098_s16  ;;  %v18433_v5 = vpop.f32.mrb[93].mxu0  ;;  %v4430_v62 = vld [vmem:[%s21182_s7 + $0x28] sm:$0xff]  ;;  %v21757_v61 = vpop.permute.xlu1 %8965 }
 0x3c4   : > { %v2832_v18 = vpop.f32.mrb[94].mxu0  ;;  %18726 = vmatmul.mubr.msk.bf16.vlgmr.msra.gmra.mrb[188].mxu1 %vm1278_vm7, %v21358_v33  ;;  %v17486_v5 = vld.sshfl [vmem:[#allocation4 + $0x28] sm:$0x3 pattern:$0x76325410] }
 0x3c5   : > { %4490 = vst.msk [vmem:[%s21182_s7 + $0x8] sm:$0xff] %vm2659_vm8, %v4458_v29  ;;  %15432 = vrot.lane.b32.xlu1 %v17470_v43, %s20098_s16  ;;  %v18434_v45 = vpop.f32.mrb[95].mxu0  ;;  %18736 = vmatpush3.bf16.msra.mxu1 %v5629_v60  ;;  %v5841_v18 = vsel %vm1282_vm6, %v21439_v38, 0  ;;  %v6106_v38 = vsel %vm1282_vm6, %v21496_v20, 0 }
 0x3c6   : > { %18737 = vmatprep.mubr.msk.bf16.mxu1 %vm20090_vm0, %v20091_v1  ;;  %18747 = vmatprep.subr.bf16.mxu1 %v20091_v1  ;;  %v17488_v45 = vld.sshfl [vmem:[#allocation4 + $0x2a] sm:$0x3 pattern:$0x76325410] }
 0x3c7   : > { %18756 = vmatmul.mubr.msk.bf16.vlgmr.msra.gmra.mrb[200].mxu0 %vm1278_vm7, %v21358_v33  ;;  %15485 = vrot.lane.b32.xlu0 %v17472_v30, %s20098_s16  ;;  %v2610_v6 = vpop.f32.mrb[84].mxu1 }
 0x3c8   : > { %18766 = vmatpush3.bf16.msra.mxu0 %v5894_v35  ;;  %2690 = vst.msk [vmem:[%s21182_s7 + $0xf0] sm:$0xff] %vm2659_vm8, %v2610_v6  ;;  %v18415_v12 = vpop.f32.mrb[85].mxu1  ;;  %18767 = vmatprep.mubr.msk.bf16.mxu0 %vm20090_vm0, %v20091_v1  ;;  %v21768_v35 = vpop.permute.xlu0 %9018  ;;  %v4427_v6 = vld [vmem:[%s21182_s7 + $0x10] sm:$0xff] }
 0x3c9   : > { %15538 = vrot.lane.b32.xlu1 %v17474_v25, %s20098_s16  ;;  %v2613_v44 = vpop.f32.mrb[86].mxu1  ;;  %18777 = vmatprep.subr.bf16.mxu0 %v20091_v1 }
 0x3ca   : > { %v2935_v56 = vpop.f32.mrb[96].mxu0  ;;  %v18416_v14 = vpop.f32.mrb[87].mxu1  ;;  %v4432_v44 = vld [vmem:[%s21182_s7 + $0x38] sm:$0xff] }
 0x3cb   : > { %v4460_v46 = vadd.f32 %v4428_v37, %v2935_v56  ;;  %15591 = vrot.lane.b32.xlu0 %v17476_v10, %s20098_s16  ;;  %v18445_v39 = vpop.f32.mrb[97].mxu0  ;;  %v17490_v10 = vld.sshfl [vmem:[#allocation4 + $0x2c] sm:$0x3 pattern:$0x76325410]  ;;  %v21780_v14 = vpop.permute.xlu1 %9071 }
 0x3cc   : > { %18738 = vmatmul.mubr.msk.bf16.vlgmr.msra.gmra.mrb[192].mxu1 %vm1278_vm7, %v21358_v33  ;;  %v2938_v34 = vpop.f32.mrb[98].mxu0  ;;  %v17492_v56 = vld.sshfl [vmem:[#allocation4 + $0x2e] sm:$0x3 pattern:$0x76325410] }
 0x3cd   : > { %4492 = vst.msk [vmem:[%s21182_s7 + $0x18] sm:$0xff] %vm2659_vm8, %v4460_v46  ;;  %15644 = vrot.lane.b32.xlu1 %v17478_v23, %s20098_s16  ;;  %18748 = vmatpush3.bf16.msra.mxu1 %v5735_v40  ;;  %v18446_v8 = vpop.f32.mrb[99].mxu0  ;;  %v17494_v40 = vld.sshfl [vmem:[#allocation4 + $0x30] sm:$0x3 pattern:$0x76325410] }
 0x3ce   : > { %18749 = vmatprep.mubr.msk.bf16.mxu1 %vm20090_vm0, %v20091_v1  ;;  %18759 = vmatprep.subr.bf16.mxu1 %v20091_v1  ;;  %v21787_v8 = vpop.permute.xlu0 %9124 }
 0x3cf   : > { %18768 = vmatmul.mubr.msk.bf16.vlgmr.msra.gmra.mrb[204].mxu0 %vm1278_vm7, %v21358_v33  ;;  %15697 = vrot.lane.b32.xlu0 %v17480_v49, %s20098_s16  ;;  %v2776_v58 = vpop.f32.mrb[88].mxu1  ;;  %v5947_v49 = vsel %vm1282_vm6, %v21464_v22, 0  ;;  %v6212_v22 = vsel %vm1282_vm6, %v21518_v47, 0 }
 0x3d0   : > { %18778 = vmatpush3.bf16.msra.mxu0 %v6000_v2  ;;  %v4457_v0 = vadd.f32 %v4425_v9, %v2776_v58  ;;  %v18427_v28 = vpop.f32.mrb[89].mxu1  ;;  %18779 = vmatprep.mubr.msk.bf16.mxu0 %vm20090_vm0, %v20091_v1  ;;  %v17496_v58 = vld.sshfl [vmem:[#allocation4 + $0x32] sm:$0x3 pattern:$0x76325410] }
 0x3d1   : > { %15750 = vrot.lane.b32.xlu1 %v17482_v48, %s20098_s16  ;;  %v2779_v42 = vpop.f32.mrb[90].mxu1  ;;  %18789 = vmatprep.subr.bf16.mxu0 %v20091_v1  ;;  %v21803_v28 = vpop.permute.xlu1 %9177 }
 0x3d2   : > { %v3041_v55 = vpop.f32.mrb[100].mxu0  ;;  %4489 = vst.msk [vmem:[%s21182_s7] sm:$0xff] %vm2659_vm8, %v4457_v0  ;;  %v18428_v29 = vpop.f32.mrb[91].mxu1  ;;  %v4429_v0 = vld [vmem:[%s21182_s7 + $0x20] sm:$0xff] }
 0x3d3   : > { %v4462_v17 = vadd.f32 %v4430_v62, %v3041_v55  ;;  %15803 = vrot.lane.b32.xlu0 %v17484_v16, %s20098_s16  ;;  %v18457_v43 = vpop.f32.mrb[101].mxu0  ;;  %v17498_v16 = vld.sshfl [vmem:[#allocation4 + $0x34] sm:$0x3 pattern:$0x76325410] }
 0x3d4   : > { %18750 = vmatmul.mubr.msk.bf16.vlgmr.msra.gmra.mrb[196].mxu1 %vm1278_vm7, %v21358_v33  ;;  %v3044_v60 = vpop.f32.mrb[102].mxu0  ;;  %v17500_v62 = vld.sshfl [vmem:[#allocation4 + $0x36] sm:$0x3 pattern:$0x76325410] }
 0x3d5   : > { %4494 = vst.msk [vmem:[%s21182_s7 + $0x28] sm:$0xff] %vm2659_vm8, %v4462_v17  ;;  %15856 = vrot.lane.b32.xlu1 %v17486_v5, %s20098_s16  ;;  %18760 = vmatpush3.bf16.msra.mxu1 %v5841_v18  ;;  %v18458_v30 = vpop.f32.mrb[103].mxu0  ;;  %v4434_v17 = vld [vmem:[%s21182_s7 + $0x48] sm:$0xff]  ;;  %v21810_v5 = vpop.permute.xlu0 %9230  ;;  %v6352_v60 = vld [vmem:[#allocation4 + $0x4] sm:$0x3] }
 0x3d6   : > { %18761 = vmatprep.mubr.msk.bf16.mxu1 %vm20090_vm0, %v20091_v1  ;;  %18771 = vmatprep.subr.bf16.mxu1 %v20091_v1 }
 0x3d7   : > { %18780 = vmatmul.mubr.msk.bf16.vlgmr.msra.gmra.mrb[208].mxu0 %vm1278_vm7, %v21358_v33  ;;  %15909 = vrot.lane.b32.xlu0 %v17488_v45, %s20098_s16  ;;  %v2882_v25 = vpop.f32.mrb[92].mxu1  ;;  %v17502_v45 = vld.sshfl [vmem:[#allocation4 + $0x38] sm:$0x3 pattern:$0x76325410] }
 0x3d8   : > { %18790 = vmatpush3.bf16.msra.mxu0 %v6106_v38  ;;  %v4459_v12 = vadd.f32 %v4427_v6, %v2882_v25  ;;  %v18439_v20 = vpop.f32.mrb[93].mxu1  ;;  %18791 = vmatprep.mubr.msk.bf16.mxu0 %vm20090_vm0, %v20091_v1  ;;  %v6053_v38 = vsel %vm1282_vm6, %v21486_v53, 0  ;;  %v17504_v6 = vld.sshfl [vmem:[#allocation4 + $0x3a] sm:$0x3 pattern:$0x76325410] }
 0x3d9   : > { %15962 = vrot.lane.b32.xlu1 %v17490_v10, %s20098_s16  ;;  %v2885_v46 = vpop.f32.mrb[94].mxu1  ;;  %18801 = vmatprep.subr.bf16.mxu0 %v20091_v1  ;;  %v6432_v53 = vsel %vm1282_vm6, %v6352_v60, 0  ;;  %v4431_v20 = vld [vmem:[%s21182_s7 + $0x30] sm:$0xff] }
 0x3da   : > { %v3147_v37 = vpop.f32.mrb[104].mxu0  ;;  %4491 = vst.msk [vmem:[%s21182_s7 + $0x10] sm:$0xff] %vm2659_vm8, %v4459_v12  ;;  %v18440_v39 = vpop.f32.mrb[95].mxu1 }
 0x3db   : > { %v4464_v23 = vadd.f32 %v4432_v44, %v3147_v37  ;;  %16015 = vrot.lane.b32.xlu0 %v17492_v56, %s20098_s16  ;;  %v18469_v34 = vpop.f32.mrb[105].mxu0  ;;  %v21824_v12 = vpop.permute.xlu1 %9283  ;;  %v17506_v37 = vld.sshfl [vmem:[#allocation4 + $0x3c] sm:$0x3 pattern:$0x76325410] }
 0x3dc   : > { %18762 = vmatmul.mubr.msk.bf16.vlgmr.msra.gmra.mrb[200].mxu1 %vm1278_vm7, %v21358_v33  ;;  %v3150_v2 = vpop.f32.mrb[106].mxu0  ;;  %v21832_v44 = vpop.permute.xlu0 %9336  ;;  %v4436_v34 = vld [vmem:[%s21182_s7 + $0x58] sm:$0xff] }
 0x3dd   : > { %4496 = vst.msk [vmem:[%s21182_s7 + $0x38] sm:$0xff] %vm2659_vm8, %v4464_v23  ;;  %16068 = vrot.lane.b32.xlu1 %v17494_v40, %s20098_s16  ;;  %18772 = vmatpush3.bf16.msra.mxu1 %v5947_v49  ;;  %v18470_v9 = vpop.f32.mrb[107].mxu0  ;;  %v17508_v23 = vld.sshfl [vmem:[#allocation4 + $0x3e] sm:$0x3 pattern:$0x76325410] }
 0x3de   : > { %18773 = vmatprep.mubr.msk.bf16.mxu1 %vm20090_vm0, %v20091_v1  ;;  %18783 = vmatprep.subr.bf16.mxu1 %v20091_v1 }
 0x3df   : > { %18792 = vmatmul.mubr.msk.bf16.vlgmr.msra.gmra.mrb[212].mxu0 %vm1278_vm7, %v21358_v33  ;;  %16121 = vrot.lane.b32.xlu0 %v17496_v58, %s20098_s16  ;;  %v2988_v48 = vpop.f32.mrb[96].mxu1  ;;  %v17510_v58 = vld.sshfl [vmem:[#allocation4 + $0x40] sm:$0x3 pattern:$0x76325410] }
 0x3e0   : > { %18802 = vmatpush3.bf16.msra.mxu0 %v6212_v22  ;;  %v4461_v55 = vadd.f32 %v4429_v0, %v2988_v48  ;;  %v18451_v47 = vpop.f32.mrb[97].mxu1  ;;  %18803 = vmatprep.mubr.msk.bf16.mxu0 %vm20090_vm0, %v20091_v1  ;;  %v21845_v22 = vld [vmem:[%s23962_s3 + $0xc] sm:$0xf]  ;;  %v6354_v48 = vld [vmem:[#allocation4 + $0x8] sm:$0x3] }
 0x3e1   : > { %16174 = vrot.lane.b32.xlu1 %v17498_v16, %s20098_s16  ;;  %v2991_v29 = vpop.f32.mrb[98].mxu1  ;;  %18813 = vmatprep.subr.bf16.mxu0 %v20091_v1  ;;  %v6159_v16 = vsel %vm1282_vm6, %v21510_v15, 0  ;;  %v6518_v15 = vsel %vm1282_vm6, %v6354_v48, 0 }
 0x3e2   : > { %v3253_v42 = vpop.f32.mrb[108].mxu0  ;;  %4493 = vst.msk [vmem:[%s21182_s7 + $0x20] sm:$0xff] %vm2659_vm8, %v4461_v55  ;;  %v18452_v18 = vpop.f32.mrb[99].mxu1  ;;  %v4433_v29 = vld [vmem:[%s21182_s7 + $0x40] sm:$0xff] }
 0x3e3   : > { %v4466_v43 = vadd.f32 %v4434_v17, %v3253_v42  ;;  %16227 = vrot.lane.b32.xlu0 %v17500_v62, %s20098_s16  ;;  %v18481_v30 = vpop.f32.mrb[109].mxu0  ;;  %v21849_v55 = vpop.permute.xlu1 %9389 }
 0x3e4   : > { %18774 = vmatmul.mubr.msk.bf16.vlgmr.msra.gmra.mrb[204].mxu1 %vm1278_vm7, %v21358_v33  ;;  %v3256_v25 = vpop.f32.mrb[110].mxu0  ;;  %v21858_v42 = vpop.permute.xlu0 %9442  ;;  %v6351_v30 = vld [vmem:[#allocation4 + $0x2] sm:$0x3] }
 0x3e5   : > { %4498 = vst.msk [vmem:[%s21182_s7 + $0x48] sm:$0xff] %vm2659_vm8, %v4466_v43  ;;  %16280 = vrot.lane.b32.xlu1 %v17502_v45, %s20098_s16  ;;  %18784 = vmatpush3.bf16.msra.mxu1 %v6053_v38  ;;  %v18482_v10 = vpop.f32.mrb[111].mxu0  ;;  %v4438_v45 = vld [vmem:[%s21182_s7 + $0x68] sm:$0xff] }
 0x3e6   : > { %18785 = vmatprep.mubr.msk.bf16.mxu1 %vm20090_vm0, %v20091_v1  ;;  %18795 = vmatprep.subr.bf16.mxu1 %v20091_v1  ;;  %v6356_v10 = vld [vmem:[#allocation4 + $0xc] sm:$0x3] }
 0x3e7   : > { %18804 = vmatmul.mubr.msk.bf16.vlgmr.msra.gmra.mrb[216].mxu0 %vm1278_vm7, %v21358_v33  ;;  %16333 = vrot.lane.b32.xlu0 %v17504_v6, %s20098_s16  ;;  %v3094_v56 = vpop.f32.mrb[100].mxu1 }
 0x3e8   : > { %18814 = vmatpush3.bf16.msra.mxu0 %v6432_v53  ;;  %v4463_v46 = vadd.f32 %v4431_v20, %v3094_v56  ;;  %v18463_v39 = vpop.f32.mrb[101].mxu1  ;;  %18815 = vmatprep.mubr.msk.bf16.mxu0 %vm20090_vm0, %v20091_v1  ;;  %v6389_v53 = vsel %vm1282_vm6, %v6351_v30, 0  ;;  %v6355_v30 = vld [vmem:[#allocation4 + $0xa] sm:$0x3] }
 0x3e9   : > { %16386 = vrot.lane.b32.xlu1 %v17506_v37, %s20098_s16  ;;  %v3097_v49 = vpop.f32.mrb[102].mxu1  ;;  %18825 = vmatprep.subr.bf16.mxu0 %v20091_v1  ;;  %v6604_v37 = vsel %vm1282_vm6, %v6356_v10, 0  ;;  %v6360_v10 = vld [vmem:[#allocation4 + $0x14] sm:$0x3] }
 0x3ea   : > { %v3359_v40 = vpop.f32.mrb[112].mxu0  ;;  %4495 = vst.msk [vmem:[%s21182_s7 + $0x30] sm:$0xff] %vm2659_vm8, %v4463_v46  ;;  %v18464_v9 = vpop.f32.mrb[103].mxu1  ;;  %v4435_v46 = vld [vmem:[%s21182_s7 + $0x50] sm:$0xff]  ;;  %v6353_v49 = vld [vmem:[#allocation4 + $0x6] sm:$0x3] }
 0x3eb   : > { %v4468_v2 = vadd.f32 %v4436_v34, %v3359_v40  ;;  %16439 = vrot.lane.b32.xlu0 %v17508_v23, %s20098_s16  ;;  %v18493_v0 = vpop.f32.mrb[113].mxu0  ;;  %v4440_v34 = vld [vmem:[%s21182_s7 + $0x78] sm:$0xff] }
 0x3ec   : > { %18786 = vmatmul.mubr.msk.bf16.vlgmr.msra.gmra.mrb[208].mxu1 %vm1278_vm7, %v21358_v33  ;;  %v3362_v62 = vpop.f32.mrb[114].mxu0  ;;  %v6358_v0 = vld [vmem:[#allocation4 + $0x10] sm:$0x3] }
 0x3ed   : > { %4500 = vst.msk [vmem:[%s21182_s7 + $0x58] sm:$0xff] %vm2659_vm8, %v4468_v2  ;;  %16492 = vrot.lane.b32.xlu1 %v17510_v58, %s20098_s16  ;;  %18796 = vmatpush3.bf16.msra.mxu1 %v6159_v16  ;;  %v18494_v47 = vpop.f32.mrb[115].mxu0  ;;  %v6475_v16 = vsel %vm1282_vm6, %v6353_v49, 0  ;;  %v6357_v49 = vld [vmem:[#allocation4 + $0xe] sm:$0x3] }
 0x3ee   : > { %18797 = vmatprep.mubr.msk.bf16.mxu1 %vm20090_vm0, %v20091_v1  ;;  %18807 = vmatprep.subr.bf16.mxu1 %v20091_v1 }
 0x3ef   : > { %18816 = vmatmul.mubr.msk.bf16.vlgmr.msra.gmra.mrb[220].mxu0 %vm1278_vm7, %v21845_v22  ;;  %16545 = vrot.lane.b32.xlu0 %v21618_v26, %s20098_s16  ;;  %v3200_v17 = vpop.f32.mrb[104].mxu1  ;;  %s20025_s16 = scalar_lea.vmem %s23909_s14, 4096 }
 0x3f0   : > { %18826 = vmatpush3.bf16.msra.mxu0 %v6518_v15  ;;  %v4465_v43 = vadd.f32 %v4433_v29, %v3200_v17  ;;  %v18475_v18 = vpop.f32.mrb[105].mxu1  ;;  %18827 = vmatprep.mubr.msk.bf16.mxu0 %vm20090_vm0, %v20091_v1  ;;  %v6690_v15 = vsel %vm1282_vm6, %v6358_v0, 0  ;;  %v4437_v29 = vld [vmem:[%s21182_s7 + $0x60] sm:$0xff]  ;;  %v6362_v0 = vld [vmem:[#allocation4 + $0x18] sm:$0x3]  ;;  %p20026_p11 = scmp.ne.s32.totalorder %s23909_s14, %s20025_s16  ;;  %p20033_p1 = scmp.lt.s32.totalorder %s20031_s23, %s20025_s16 }
 0x3f1   : > { %18837 = vmatprep.subr.bf16.mxu0 %v20091_v1  ;;  %v3203_v38 = vpop.f32.mrb[106].mxu1 }
 0x3f2   : > { %v3465_v60 = vpop.f32.mrb[116].mxu0  ;;  %4497 = vst.msk [vmem:[%s21182_s7 + $0x40] sm:$0xff] %vm2659_vm8, %v4465_v43  ;;  %v18476_v25 = vpop.f32.mrb[107].mxu1  ;;  %p20027_p12 = pnand %p20026_p11, %p20170_p5  ;;  %p20034_p2 = por %p20033_p1, %p20032_p0 }
 0x3f3   : > { %v4470_v26 = vadd.f32 %v4438_v45, %v3465_v60  ;;  %v18505_v6 = vpop.f32.mrb[117].mxu0  ;;  %v4442_v45 = vld [vmem:[%s21182_s7 + $0x88] sm:$0xff] }
 0x3f4   : > { %18798 = vmatmul.mubr.msk.bf16.vlgmr.msra.gmra.mrb[212].mxu1 %vm1278_vm7, %v21358_v33  ;;  %v3468_v56 = vpop.f32.mrb[118].mxu0  ;;  %p20028_p13 = pneg %p20027_p12 }
 0x3f5   : > { %4502 = vst.msk [vmem:[%s21182_s7 + $0x68] sm:$0xff] %vm2659_vm8, %v4470_v26  ;;  %18808 = vmatpush3.bf16.msra.mxu1 %v6389_v53  ;;  %v18506_v20 = vpop.f32.mrb[119].mxu0  ;;  %18809 = vmatprep.mubr.msk.bf16.mxu1 %vm20090_vm0, %v20091_v1  ;;  %v6561_v53 = vsel %vm1282_vm6, %v6355_v30, 0  ;;  %v6359_v30 = vld [vmem:[#allocation4 + $0x12] sm:$0x3] }
 0x3f6   : > { %18819 = vmatprep.subr.bf16.mxu1 %v20091_v1  ;;  %p20035_p3 = pnand %p20034_p2, %p20028_p13 }
 0x3f7   : > { %18828 = vmatmul.mubr.msk.bf16.vlgmr.msra.gmra.mrb[224].mxu0 %vm1278_vm7, %v21845_v22  ;;  %v3306_v33 = vpop.f32.mrb[108].mxu1 }
 0x3f8   : > { %18838 = vmatpush3.bf16.msra.mxu0 %v6604_v37  ;;  %18839 = vmatprep.mubr.msk.bf16.mxu0 %vm20090_vm0, %v20091_v1  ;;  %v4467_v23 = vadd.f32 %v4435_v46, %v3306_v33  ;;  %v18487_v39 = vpop.f32.mrb[109].mxu1  ;;  %v6776_v37 = vsel %vm1282_vm6, %v6360_v10, 0  ;;  %v4439_v46 = vld [vmem:[%s21182_s7 + $0x70] sm:$0xff]  ;;  %v6364_v10 = vld [vmem:[#allocation4 + $0x1c] sm:$0x3] }
 0x3f9   : > { %18849 = vmatprep.subr.bf16.mxu0 %v20091_v1  ;;  %v3309_v2 = vpop.f32.mrb[110].mxu1 }
 0x3fa   : > { %v3571_v40 = vpop.f32.mrb[120].mxu0  ;;  %4499 = vst.msk [vmem:[%s21182_s7 + $0x50] sm:$0xff] %vm2659_vm8, %v4467_v23  ;;  %v18488_v9 = vpop.f32.mrb[111].mxu1 }
 0x3fb   : > { %v4472_v58 = vadd.f32 %v4440_v34, %v3571_v40  ;;  %v18517_v48 = vpop.f32.mrb[121].mxu0  ;;  %v4444_v34 = vld [vmem:[%s21182_s7 + $0x98] sm:$0xff] }
 0x3fc   : > { %18810 = vmatmul.mubr.msk.bf16.vlgmr.msra.gmra.mrb[216].mxu1 %vm1278_vm7, %v21845_v22  ;;  %v3574_v62 = vpop.f32.mrb[122].mxu0 }
 0x3fd   : > { %4504 = vst.msk [vmem:[%s21182_s7 + $0x78] sm:$0xff] %vm2659_vm8, %v4472_v58  ;;  %18820 = vmatpush3.bf16.msra.mxu1 %v6475_v16  ;;  %v18518_v47 = vpop.f32.mrb[123].mxu0  ;;  %18821 = vmatprep.mubr.msk.bf16.mxu1 %vm20090_vm0, %v20091_v1  ;;  %v6647_v16 = vsel %vm1282_vm6, %v6357_v49, 0  ;;  %v6361_v49 = vld [vmem:[#allocation4 + $0x16] sm:$0x3] }
 0x3fe   : > { %18831 = vmatprep.subr.bf16.mxu1 %v20091_v1 }
 0x3ff   : > { %18840 = vmatmul.mubr.msk.bf16.vlgmr.msra.gmra.mrb[228].mxu0 %vm1278_vm7, %v21845_v22  ;;  %v3412_v17 = vpop.f32.mrb[112].mxu1 }
 0x400   : > { %18850 = vmatpush3.bf16.msra.mxu0 %v6690_v15  ;;  %18851 = vmatprep.mubr.msk.bf16.mxu0 %vm20090_vm0, %v20091_v1  ;;  %v4469_v43 = vadd.f32 %v4437_v29, %v3412_v17  ;;  %v18499_v18 = vpop.f32.mrb[113].mxu1  ;;  %v6862_v15 = vsel %vm1282_vm6, %v6362_v0, 0  ;;  %v4441_v29 = vld [vmem:[%s21182_s7 + $0x80] sm:$0xff] }
 0x401   : > { %18861 = vmatprep.subr.bf16.mxu0 %v20091_v1  ;;  %v3415_v38 = vpop.f32.mrb[114].mxu1 }
 0x402   : > { %v3677_v60 = vpop.f32.mrb[124].mxu0  ;;  %4501 = vst.msk [vmem:[%s21182_s7 + $0x60] sm:$0xff] %vm2659_vm8, %v4469_v43  ;;  %v18500_v25 = vpop.f32.mrb[115].mxu1 }
 0x403   : > { %v4474_v26 = vadd.f32 %v4442_v45, %v3677_v60  ;;  %v18529_v6 = vpop.f32.mrb[125].mxu0  ;;  %v4446_v45 = vld [vmem:[%s21182_s7 + $0xa8] sm:$0xff] }
 0x404   : > { %18822 = vmatmul.mubr.msk.bf16.vlgmr.msra.gmra.mrb[220].mxu1 %vm1278_vm7, %v21845_v22  ;;  %v3680_v56 = vpop.f32.mrb[126].mxu0 }
 0x405   : > { %4506 = vst.msk [vmem:[%s21182_s7 + $0x88] sm:$0xff] %vm2659_vm8, %v4474_v26  ;;  %18832 = vmatpush3.bf16.msra.mxu1 %v6561_v53  ;;  %v18530_v20 = vpop.f32.mrb[127].mxu0  ;;  %18833 = vmatprep.mubr.msk.bf16.mxu1 %vm20090_vm0, %v20091_v1  ;;  %v6733_v53 = vsel %vm1282_vm6, %v6359_v30, 0  ;;  %v6363_v30 = vld [vmem:[#allocation4 + $0x1a] sm:$0x3] }
 0x406   : > { %18843 = vmatprep.subr.bf16.mxu1 %v20091_v1 }
 0x407   : > { %18852 = vmatmul.mubr.msk.bf16.vlgmr.msra.gmra.mrb[232].mxu0 %vm1278_vm7, %v21845_v22  ;;  %v3518_v33 = vpop.f32.mrb[116].mxu1 }
 0x408   : > { %18862 = vmatpush3.bf16.msra.mxu0 %v6776_v37  ;;  %18863 = vmatprep.mubr.msk.bf16.mxu0 %vm20090_vm0, %v20091_v1  ;;  %v4471_v23 = vadd.f32 %v4439_v46, %v3518_v33  ;;  %v18511_v39 = vpop.f32.mrb[117].mxu1  ;;  %v6948_v37 = vsel %vm1282_vm6, %v6364_v10, 0  ;;  %v4443_v46 = vld [vmem:[%s21182_s7 + $0x90] sm:$0xff] }
 0x409   : > { %18873 = vmatprep.subr.bf16.mxu0 %v20091_v1  ;;  %v3521_v2 = vpop.f32.mrb[118].mxu1 }
 0x40a   : > { %v3783_v40 = vpop.f32.mrb[128].mxu0  ;;  %4503 = vst.msk [vmem:[%s21182_s7 + $0x70] sm:$0xff] %vm2659_vm8, %v4471_v23  ;;  %v18512_v9 = vpop.f32.mrb[119].mxu1 }
 0x40b   : > { %v4476_v58 = vadd.f32 %v4444_v34, %v3783_v40  ;;  %v18541_v48 = vpop.f32.mrb[129].mxu0  ;;  %v4448_v34 = vld [vmem:[%s21182_s7 + $0xb8] sm:$0xff] }
 0x40c   : > { %18834 = vmatmul.mubr.msk.bf16.vlgmr.msra.gmra.mrb[224].mxu1 %vm1278_vm7, %v21845_v22  ;;  %v3786_v62 = vpop.f32.mrb[130].mxu0  ;;  %v6366_v48 = vld [vmem:[#allocation4 + $0x20] sm:$0x3] }
 0x40d   : > { %4508 = vst.msk [vmem:[%s21182_s7 + $0x98] sm:$0xff] %vm2659_vm8, %v4476_v58  ;;  %18844 = vmatpush3.bf16.msra.mxu1 %v6647_v16  ;;  %v18542_v47 = vpop.f32.mrb[131].mxu0  ;;  %18845 = vmatprep.mubr.msk.bf16.mxu1 %vm20090_vm0, %v20091_v1  ;;  %v6819_v16 = vsel %vm1282_vm6, %v6361_v49, 0  ;;  %v6365_v49 = vld [vmem:[#allocation4 + $0x1e] sm:$0x3] }
 0x40e   : > { %18855 = vmatprep.subr.bf16.mxu1 %v20091_v1 }
 0x40f   : > { %18864 = vmatmul.mubr.msk.bf16.vlgmr.msra.gmra.mrb[236].mxu0 %vm1278_vm7, %v21845_v22  ;;  %v3624_v17 = vpop.f32.mrb[120].mxu1 }
 0x410   : > { %18874 = vmatpush3.bf16.msra.mxu0 %v6862_v15  ;;  %18875 = vmatprep.mubr.msk.bf16.mxu0 %vm20090_vm0, %v20091_v1  ;;  %v4473_v43 = vadd.f32 %v4441_v29, %v3624_v17  ;;  %v18523_v18 = vpop.f32.mrb[121].mxu1  ;;  %v7034_v15 = vsel %vm1282_vm6, %v6366_v48, 0  ;;  %v4445_v29 = vld [vmem:[%s21182_s7 + $0xa0] sm:$0xff] }
 0x411   : > { %18885 = vmatprep.subr.bf16.mxu0 %v20091_v1  ;;  %v3627_v38 = vpop.f32.mrb[122].mxu1  ;;  %v6370_v48 = vld [vmem:[#allocation4 + $0x28] sm:$0x3] }
 0x412   : > { %v3889_v60 = vpop.f32.mrb[132].mxu0  ;;  %4505 = vst.msk [vmem:[%s21182_s7 + $0x80] sm:$0xff] %vm2659_vm8, %v4473_v43  ;;  %v18524_v25 = vpop.f32.mrb[123].mxu1 }
 0x413   : > { %v4478_v26 = vadd.f32 %v4446_v45, %v3889_v60  ;;  %v18553_v6 = vpop.f32.mrb[133].mxu0  ;;  %v4450_v45 = vld [vmem:[%s21182_s7 + $0xc8] sm:$0xff] }
 0x414   : > { %18846 = vmatmul.mubr.msk.bf16.vlgmr.msra.gmra.mrb[228].mxu1 %vm1278_vm7, %v21845_v22  ;;  %v3892_v56 = vpop.f32.mrb[134].mxu0  ;;  %v6368_v6 = vld [vmem:[#allocation4 + $0x24] sm:$0x3] }
 0x415   : > { %4510 = vst.msk [vmem:[%s21182_s7 + $0xa8] sm:$0xff] %vm2659_vm8, %v4478_v26  ;;  %18856 = vmatpush3.bf16.msra.mxu1 %v6733_v53  ;;  %v18554_v20 = vpop.f32.mrb[135].mxu0  ;;  %18857 = vmatprep.mubr.msk.bf16.mxu1 %vm20090_vm0, %v20091_v1  ;;  %v6905_v53 = vsel %vm1282_vm6, %v6363_v30, 0  ;;  %v6367_v30 = vld [vmem:[#allocation4 + $0x22] sm:$0x3] }
 0x416   : > { %18867 = vmatprep.subr.bf16.mxu1 %v20091_v1 }
 0x417   : > { %18876 = vmatmul.mubr.msk.bf16.vlgmr.msra.gmra.mrb[240].mxu0 %vm1278_vm7, %v21845_v22  ;;  %v3730_v33 = vpop.f32.mrb[124].mxu1 }
 0x418   : > { %18886 = vmatpush3.bf16.msra.mxu0 %v6948_v37  ;;  %18887 = vmatprep.mubr.msk.bf16.mxu0 %vm20090_vm0, %v20091_v1  ;;  %v4475_v23 = vadd.f32 %v4443_v46, %v3730_v33  ;;  %v18535_v39 = vpop.f32.mrb[125].mxu1  ;;  %v7120_v37 = vsel %vm1282_vm6, %v6368_v6, 0  ;;  %v4447_v46 = vld [vmem:[%s21182_s7 + $0xb0] sm:$0xff]  ;;  %v6372_v6 = vld [vmem:[#allocation4 + $0x2c] sm:$0x3] }
 0x419   : > { %18897 = vmatprep.subr.bf16.mxu0 %v20091_v1  ;;  %v3733_v2 = vpop.f32.mrb[126].mxu1 }
 0x41a   : > { %v3995_v40 = vpop.f32.mrb[136].mxu0  ;;  %4507 = vst.msk [vmem:[%s21182_s7 + $0x90] sm:$0xff] %vm2659_vm8, %v4475_v23  ;;  %v18536_v9 = vpop.f32.mrb[127].mxu1 }
 0x41b   : > { %v4480_v58 = vadd.f32 %v4448_v34, %v3995_v40  ;;  %v18565_v0 = vpop.f32.mrb[137].mxu0  ;;  %v4452_v34 = vld [vmem:[%s21182_s7 + $0xd8] sm:$0xff] }
 0x41c   : > { %18858 = vmatmul.mubr.msk.bf16.vlgmr.msra.gmra.mrb[232].mxu1 %vm1278_vm7, %v21845_v22  ;;  %v3998_v62 = vpop.f32.mrb[138].mxu0 }
 0x41d   : > { %4512 = vst.msk [vmem:[%s21182_s7 + $0xb8] sm:$0xff] %vm2659_vm8, %v4480_v58  ;;  %18868 = vmatpush3.bf16.msra.mxu1 %v6819_v16  ;;  %v18566_v47 = vpop.f32.mrb[139].mxu0  ;;  %18869 = vmatprep.mubr.msk.bf16.mxu1 %vm20090_vm0, %v20091_v1  ;;  %v6991_v16 = vsel %vm1282_vm6, %v6365_v49, 0  ;;  %v6369_v49 = vld [vmem:[#allocation4 + $0x26] sm:$0x3] }
 0x41e   : > { %18879 = vmatprep.subr.bf16.mxu1 %v20091_v1 }
 0x41f   : > { %18888 = vmatmul.mubr.msk.bf16.vlgmr.msra.gmra.mrb[244].mxu0 %vm1278_vm7, %v21845_v22  ;;  %v3836_v17 = vpop.f32.mrb[128].mxu1 }
 0x420   : > { %18898 = vmatpush3.bf16.msra.mxu0 %v7034_v15  ;;  %18899 = vmatprep.mubr.msk.bf16.mxu0 %vm20090_vm0, %v20091_v1  ;;  %v4477_v43 = vadd.f32 %v4445_v29, %v3836_v17  ;;  %v18547_v18 = vpop.f32.mrb[129].mxu1  ;;  %v7206_v15 = vsel %vm1282_vm6, %v6370_v48, 0  ;;  %v4449_v29 = vld [vmem:[%s21182_s7 + $0xc0] sm:$0xff]  ;;  %v6374_v48 = vld [vmem:[#allocation4 + $0x30] sm:$0x3] }
 0x421   : > { %18909 = vmatprep.subr.bf16.mxu0 %v20091_v1  ;;  %v3839_v38 = vpop.f32.mrb[130].mxu1 }
 0x422   : > { %v4101_v60 = vpop.f32.mrb[140].mxu0  ;;  %4509 = vst.msk [vmem:[%s21182_s7 + $0xa0] sm:$0xff] %vm2659_vm8, %v4477_v43  ;;  %v18548_v25 = vpop.f32.mrb[131].mxu1 }
 0x423   : > { %v4482_v26 = vadd.f32 %v4450_v45, %v4101_v60  ;;  %v18577_v10 = vpop.f32.mrb[141].mxu0  ;;  %v4454_v45 = vld [vmem:[%s21182_s7 + $0xe8] sm:$0xff] }
 0x424   : > { %18870 = vmatmul.mubr.msk.bf16.vlgmr.msra.gmra.mrb[236].mxu1 %vm1278_vm7, %v21845_v22  ;;  %v4104_v56 = vpop.f32.mrb[142].mxu0 }
 0x425   : > { %4514 = vst.msk [vmem:[%s21182_s7 + $0xc8] sm:$0xff] %vm2659_vm8, %v4482_v26  ;;  %18880 = vmatpush3.bf16.msra.mxu1 %v6905_v53  ;;  %v18578_v20 = vpop.f32.mrb[143].mxu0  ;;  %18881 = vmatprep.mubr.msk.bf16.mxu1 %vm20090_vm0, %v20091_v1  ;;  %v7077_v53 = vsel %vm1282_vm6, %v6367_v30, 0  ;;  %v6371_v30 = vld [vmem:[#allocation4 + $0x2a] sm:$0x3] }
 0x426   : > { %18891 = vmatprep.subr.bf16.mxu1 %v20091_v1 }
 0x427   : > { %18900 = vmatmul.mubr.msk.bf16.vlgmr.msra.gmra.mrb[248].mxu0 %vm1278_vm7, %v21845_v22  ;;  %v3942_v33 = vpop.f32.mrb[132].mxu1 }
 0x428   : > { %18910 = vmatpush3.bf16.msra.mxu0 %v7120_v37  ;;  %18911 = vmatprep.mubr.msk.bf16.mxu0 %vm20090_vm0, %v20091_v1  ;;  %v4479_v23 = vadd.f32 %v4447_v46, %v3942_v33  ;;  %v18559_v39 = vpop.f32.mrb[133].mxu1  ;;  %v7292_v37 = vsel %vm1282_vm6, %v6372_v6, 0  ;;  %v4451_v46 = vld [vmem:[%s21182_s7 + $0xd0] sm:$0xff] }
 0x429   : > { %18921 = vmatprep.subr.bf16.mxu0 %v20091_v1  ;;  %v3945_v2 = vpop.f32.mrb[134].mxu1  ;;  %v6376_v6 = vld [vmem:[#allocation4 + $0x34] sm:$0x3] }
 0x42a   : > { %v4207_v40 = vpop.f32.mrb[144].mxu0  ;;  %4511 = vst.msk [vmem:[%s21182_s7 + $0xb0] sm:$0xff] %vm2659_vm8, %v4479_v23  ;;  %v18560_v9 = vpop.f32.mrb[135].mxu1 }
 0x42b   : > { %v4484_v58 = vadd.f32 %v4452_v34, %v4207_v40  ;;  %v18589_v0 = vpop.f32.mrb[145].mxu0  ;;  %v4456_v34 = vld [vmem:[%s21182_s7 + $0xf8] sm:$0xff] }
 0x42c   : > { %18882 = vmatmul.mubr.msk.bf16.vlgmr.msra.gmra.mrb[240].mxu1 %vm1278_vm7, %v21845_v22  ;;  %v4210_v62 = vpop.f32.mrb[146].mxu0 }
 0x42d   : > { %4516 = vst.msk [vmem:[%s21182_s7 + $0xd8] sm:$0xff] %vm2659_vm8, %v4484_v58  ;;  %18892 = vmatpush3.bf16.msra.mxu1 %v6991_v16  ;;  %v18590_v47 = vpop.f32.mrb[147].mxu0  ;;  %18893 = vmatprep.mubr.msk.bf16.mxu1 %vm20090_vm0, %v20091_v1  ;;  %v7163_v16 = vsel %vm1282_vm6, %v6369_v49, 0  ;;  %v6373_v49 = vld [vmem:[#allocation4 + $0x2e] sm:$0x3] }
 0x42e   : > { %18903 = vmatprep.subr.bf16.mxu1 %v20091_v1 }
 0x42f   : > { %18912 = vmatmul.mubr.msk.bf16.vlgmr.msra.gmra.mrb[252].mxu0 %vm1278_vm7, %v21845_v22  ;;  %v4048_v17 = vpop.f32.mrb[136].mxu1 }
 0x430   : > { %18922 = vmatpush3.bf16.msra.mxu0 %v7206_v15  ;;  %18923 = vmatprep.mubr.msk.bf16.mxu0 %vm20090_vm0, %v20091_v1  ;;  %v4481_v43 = vadd.f32 %v4449_v29, %v4048_v17  ;;  %v18571_v18 = vpop.f32.mrb[137].mxu1  ;;  %v7378_v15 = vsel %vm1282_vm6, %v6374_v48, 0  ;;  %v4453_v29 = vld [vmem:[%s21182_s7 + $0xe0] sm:$0xff]  ;;  %v6378_v48 = vld [vmem:[#allocation4 + $0x38] sm:$0x3] }
 0x431   : > { %18933 = vmatprep.subr.bf16.mxu0 %v20091_v1  ;;  %v4051_v38 = vpop.f32.mrb[138].mxu1 }
 0x432   : > { %v4313_v60 = vpop.f32.mrb[148].mxu0  ;;  %4513 = vst.msk [vmem:[%s21182_s7 + $0xc0] sm:$0xff] %vm2659_vm8, %v4481_v43  ;;  %v18572_v25 = vpop.f32.mrb[139].mxu1 }
 0x433   : > { %v4486_v26 = vadd.f32 %v4454_v45, %v4313_v60  ;;  %v18601_v10 = vpop.f32.mrb[149].mxu0  ;;  %v6255_v45 = vld [vmem:[%s21182_s7 + $0x8] sm:$0xff] }
 0x434   : > { %18894 = vmatmul.mubr.msk.bf16.vlgmr.msra.gmra.mrb[244].mxu1 %vm1278_vm7, %v21845_v22  ;;  %v4316_v56 = vpop.f32.mrb[150].mxu0 }
 0x435   : > { %4518 = vst.msk [vmem:[%s21182_s7 + $0xe8] sm:$0xff] %vm2659_vm8, %v4486_v26  ;;  %18904 = vmatpush3.bf16.msra.mxu1 %v7077_v53  ;;  %v18602_v20 = vpop.f32.mrb[151].mxu0  ;;  %18905 = vmatprep.mubr.msk.bf16.mxu1 %vm20090_vm0, %v20091_v1  ;;  %v7249_v53 = vsel %vm1282_vm6, %v6371_v30, 0  ;;  %v6375_v30 = vld [vmem:[#allocation4 + $0x32] sm:$0x3] }
 0x436   : > { %18915 = vmatprep.subr.bf16.mxu1 %v20091_v1 }
 0x437   : > { %18924 = vmatmul.mubr.msk.bf16.vlgmr.msra.gmra.mrb[0].mxu0 %vm1278_vm7, %v21845_v22  ;;  %v4154_v33 = vpop.f32.mrb[140].mxu1 }
 0x438   : > { %18934 = vmatpush3.bf16.msra.mxu0 %v7292_v37  ;;  %18935 = vmatprep.mubr.msk.bf16.mxu0 %vm20090_vm0, %v20091_v1  ;;  %v4483_v23 = vadd.f32 %v4451_v46, %v4154_v33  ;;  %v18583_v39 = vpop.f32.mrb[141].mxu1  ;;  %v7464_v37 = vsel %vm1282_vm6, %v6376_v6, 0  ;;  %v4455_v46 = vld [vmem:[%s21182_s7 + $0xf0] sm:$0xff]  ;;  %v6380_v6 = vld [vmem:[#allocation4 + $0x3c] sm:$0x3] }
 0x439   : > { %18945 = vmatprep.subr.bf16.mxu0 %v20091_v1  ;;  %v4157_v2 = vpop.f32.mrb[142].mxu1 }
 0x43a   : > { %v4419_v40 = vpop.f32.mrb[152].mxu0  ;;  %4515 = vst.msk [vmem:[%s21182_s7 + $0xd0] sm:$0xff] %vm2659_vm8, %v4483_v23  ;;  %v18584_v9 = vpop.f32.mrb[143].mxu1 }
 0x43b   : > { %v4488_v58 = vadd.f32 %v4456_v34, %v4419_v40  ;;  %v18613_v0 = vpop.f32.mrb[153].mxu0  ;;  %v6257_v34 = vld [vmem:[%s21182_s7 + $0x18] sm:$0xff] }
 0x43c   : > { %18906 = vmatmul.mubr.msk.bf16.vlgmr.msra.gmra.mrb[248].mxu1 %vm1278_vm7, %v21845_v22  ;;  %v4422_v62 = vpop.f32.mrb[154].mxu0 }
 0x43d   : > { %4520 = vst.msk [vmem:[%s21182_s7 + $0xf8] sm:$0xff] %vm2659_vm8, %v4488_v58  ;;  %18916 = vmatpush3.bf16.msra.mxu1 %v7163_v16  ;;  %v18614_v47 = vpop.f32.mrb[155].mxu0  ;;  %18917 = vmatprep.mubr.msk.bf16.mxu1 %vm20090_vm0, %v20091_v1  ;;  %v7335_v16 = vsel %vm1282_vm6, %v6373_v49, 0  ;;  %v6377_v49 = vld [vmem:[#allocation4 + $0x36] sm:$0x3] }
 0x43e   : > { %18927 = vmatprep.subr.bf16.mxu1 %v20091_v1 }
 0x43f   : > { %18936 = vmatmul.mubr.msk.bf16.vlgmr.msra.gmra.mrb[4].mxu0 %vm1278_vm7, %v21845_v22  ;;  %v4260_v17 = vpop.f32.mrb[144].mxu1 }
 0x440   : > { %18946 = vmatpush3.bf16.msra.mxu0 %v7378_v15  ;;  %18947 = vmatprep.mubr.msk.bf16.mxu0 %vm20090_vm0, %v20091_v1  ;;  %v4485_v43 = vadd.f32 %v4453_v29, %v4260_v17  ;;  %v18595_v18 = vpop.f32.mrb[145].mxu1  ;;  %v7550_v15 = vsel %vm1282_vm6, %v6378_v48, 0  ;;  %v6254_v29 = vld [vmem:[%s21182_s7] sm:$0xff] }
 0x441   : > { %18957 = vmatprep.subr.bf16.mxu0 %v20091_v1  ;;  %v4263_v38 = vpop.f32.mrb[146].mxu1 }
 0x442   : > { %v4658_v60 = vpop.f32.mrb[156].mxu0  ;;  %4517 = vst.msk [vmem:[%s21182_s7 + $0xe0] sm:$0xff] %vm2659_vm8, %v4485_v43  ;;  %v18596_v25 = vpop.f32.mrb[147].mxu1 }
 0x443   : > { %v6287_v26 = vadd.f32 %v6255_v45, %v4658_v60  ;;  %v18625_v10 = vpop.f32.mrb[157].mxu0  ;;  %v6259_v45 = vld [vmem:[%s21182_s7 + $0x28] sm:$0xff] }
 0x444   : > { %18918 = vmatmul.mubr.msk.bf16.vlgmr.msra.gmra.mrb[252].mxu1 %vm1278_vm7, %v21845_v22  ;;  %v4661_v56 = vpop.f32.mrb[158].mxu0 }
 0x445   : > { %6319 = vst.msk [vmem:[%s21182_s7 + $0x8] sm:$0xff] %vm2659_vm8, %v6287_v26  ;;  %18928 = vmatpush3.bf16.msra.mxu1 %v7249_v53  ;;  %v18626_v20 = vpop.f32.mrb[159].mxu0  ;;  %18929 = vmatprep.mubr.msk.bf16.mxu1 %vm20090_vm0, %v20091_v1  ;;  %v7421_v53 = vsel %vm1282_vm6, %v6375_v30, 0  ;;  %v6379_v30 = vld [vmem:[#allocation4 + $0x3a] sm:$0x3] }
 0x446   : > { %18939 = vmatprep.subr.bf16.mxu1 %v20091_v1 }
 0x447   : > { %18948 = vmatmul.mubr.msk.bf16.vlgmr.msra.gmra.mrb[8].mxu0 %vm1278_vm7, %v21845_v22  ;;  %v4366_v33 = vpop.f32.mrb[148].mxu1 }
 0x448   : > { %18958 = vmatpush3.bf16.msra.mxu0 %v7464_v37  ;;  %18959 = vmatprep.mubr.msk.bf16.mxu0 %vm20090_vm0, %v20091_v1  ;;  %v4487_v23 = vadd.f32 %v4455_v46, %v4366_v33  ;;  %v18607_v39 = vpop.f32.mrb[149].mxu1  ;;  %v7636_v37 = vsel %vm1282_vm6, %v6380_v6, 0  ;;  %v6256_v46 = vld [vmem:[%s21182_s7 + $0x10] sm:$0xff] }
 0x449   : > { %18969 = vmatprep.subr.bf16.mxu0 %v20091_v1  ;;  %v4369_v2 = vpop.f32.mrb[150].mxu1 }
 0x44a   : > { %v4764_v40 = vpop.f32.mrb[160].mxu0  ;;  %4519 = vst.msk [vmem:[%s21182_s7 + $0xf0] sm:$0xff] %vm2659_vm8, %v4487_v23  ;;  %v18608_v9 = vpop.f32.mrb[151].mxu1 }
 0x44b   : > { %v6289_v58 = vadd.f32 %v6257_v34, %v4764_v40  ;;  %v18637_v0 = vpop.f32.mrb[161].mxu0  ;;  %v6261_v34 = vld [vmem:[%s21182_s7 + $0x38] sm:$0xff] }
 0x44c   : > { %18930 = vmatmul.mubr.msk.bf16.vlgmr.msra.gmra.mrb[0].mxu1 %vm1278_vm7, %v21845_v22  ;;  %v4767_v62 = vpop.f32.mrb[162].mxu0  ;;  %v6382_v0 = vld [vmem:[#allocation4 + $0x40] sm:$0x3] }
 0x44d   : > { %6321 = vst.msk [vmem:[%s21182_s7 + $0x18] sm:$0xff] %vm2659_vm8, %v6289_v58  ;;  %18940 = vmatpush3.bf16.msra.mxu1 %v7335_v16  ;;  %v18638_v47 = vpop.f32.mrb[163].mxu0  ;;  %18941 = vmatprep.mubr.msk.bf16.mxu1 %vm20090_vm0, %v20091_v1  ;;  %v7507_v16 = vsel %vm1282_vm6, %v6377_v49, 0 }
 0x44e   : > { %18951 = vmatprep.subr.bf16.mxu1 %v20091_v1 }
 0x44f   : > { %18960 = vmatmul.mubr.msk.bf16.vlgmr.msra.gmra.mrb[12].mxu0 %vm1278_vm7, %v21845_v22  ;;  %v4605_v17 = vpop.f32.mrb[152].mxu1 }
 0x450   : > { %18970 = vmatpush3.bf16.msra.mxu0 %v7550_v15  ;;  %18971 = vmatprep.mubr.msk.bf16.mxu0 %vm20090_vm0, %v20091_v1  ;;  %v6286_v43 = vadd.f32 %v6254_v29, %v4605_v17  ;;  %v18619_v18 = vpop.f32.mrb[153].mxu1  ;;  %v7722_v15 = vsel %vm1282_vm6, %v6382_v0, 0  ;;  %v6258_v29 = vld [vmem:[%s21182_s7 + $0x20] sm:$0xff] }
 0x451   : > { %18981 = vmatprep.subr.bf16.mxu0 %v20091_v1  ;;  %v4608_v38 = vpop.f32.mrb[154].mxu1 }
 0x452   : > { %v4870_v60 = vpop.f32.mrb[164].mxu0  ;;  %6318 = vst.msk [vmem:[%s21182_s7] sm:$0xff] %vm2659_vm8, %v6286_v43  ;;  %v18620_v25 = vpop.f32.mrb[155].mxu1 }
 0x453   : > { %v6291_v26 = vadd.f32 %v6259_v45, %v4870_v60  ;;  %v18649_v10 = vpop.f32.mrb[165].mxu0  ;;  %v6263_v45 = vld [vmem:[%s21182_s7 + $0x48] sm:$0xff] }
 0x454   : > { %18942 = vmatmul.mubr.msk.bf16.vlgmr.msra.gmra.mrb[4].mxu1 %vm1278_vm7, %v21845_v22  ;;  %v4873_v56 = vpop.f32.mrb[166].mxu0 }
 0x455   : > { %6323 = vst.msk [vmem:[%s21182_s7 + $0x28] sm:$0xff] %vm2659_vm8, %v6291_v26  ;;  %18952 = vmatpush3.bf16.msra.mxu1 %v7421_v53  ;;  %v18650_v20 = vpop.f32.mrb[167].mxu0  ;;  %18953 = vmatprep.mubr.msk.bf16.mxu1 %vm20090_vm0, %v20091_v1  ;;  %v7593_v53 = vsel %vm1282_vm6, %v6379_v30, 0 }
 0x456   : > { %18963 = vmatprep.subr.bf16.mxu1 %v20091_v1  ;;  %v7961_v20 = vsel %vm1282_vm6, %v21542_v41, 0 }
 0x457   : > { %18972 = vmatmul.mubr.msk.bf16.vlgmr.msra.gmra.mrb[16].mxu0 %vm1278_vm7, %v21845_v22  ;;  %v4711_v33 = vpop.f32.mrb[156].mxu1 }
 0x458   : > { %18982 = vmatpush3.bf16.msra.mxu0 %v7636_v37  ;;  %18983 = vmatprep.mubr.msk.bf16.mxu0 %vm20090_vm0, %v20091_v1  ;;  %v6288_v23 = vadd.f32 %v6256_v46, %v4711_v33  ;;  %v18631_v39 = vpop.f32.mrb[157].mxu1  ;;  %v6260_v33 = vld [vmem:[%s21182_s7 + $0x30] sm:$0xff] }
 0x459   : > { %18993 = vmatprep.subr.bf16.mxu0 %v20091_v1  ;;  %v4714_v2 = vpop.f32.mrb[158].mxu1 }
 0x45a   : > { %v4976_v40 = vpop.f32.mrb[168].mxu0  ;;  %6320 = vst.msk [vmem:[%s21182_s7 + $0x10] sm:$0xff] %vm2659_vm8, %v6288_v23  ;;  %v18632_v9 = vpop.f32.mrb[159].mxu1 }
 0x45b   : > { %v6293_v58 = vadd.f32 %v6261_v34, %v4976_v40  ;;  %v18661_v48 = vpop.f32.mrb[169].mxu0  ;;  %v6265_v40 = vld [vmem:[%s21182_s7 + $0x58] sm:$0xff]  ;;  %v22147_v9 = vld [vmem:[%s23962_s3 + $0x10] sm:$0xf] }
 0x45c   : > { %18954 = vmatmul.mubr.msk.bf16.vlgmr.msra.gmra.mrb[8].mxu1 %vm1278_vm7, %v21845_v22  ;;  %v4979_v62 = vpop.f32.mrb[170].mxu0  ;;  %v6381_v34 = vld [vmem:[#allocation4 + $0x3e] sm:$0x3] }
 0x45d   : > { %6325 = vst.msk [vmem:[%s21182_s7 + $0x38] sm:$0xff] %vm2659_vm8, %v6293_v58  ;;  %18964 = vmatpush3.bf16.msra.mxu1 %v7507_v16  ;;  %v18662_v47 = vpop.f32.mrb[171].mxu0  ;;  %18965 = vmatprep.mubr.msk.bf16.mxu1 %vm20090_vm0, %v20091_v1  ;;  %v7679_v0 = vsel %vm1282_vm6, %v6381_v34, 0  ;;  %v8067_v62 = vsel %vm1282_vm6, %v21565_v36, 0  ;;  %v8279_v34 = vsel %vm1282_vm6, %v21612_v57, 0 }
 0x45e   : > { %18975 = vmatprep.subr.bf16.mxu1 %v20091_v1 }
 0x45f   : > { %18984 = vmatmul.mubr.msk.bf16.vlgmr.msra.gmra.mrb[20].mxu0 %vm1278_vm7, %v21845_v22  ;;  %v4817_v17 = vpop.f32.mrb[160].mxu1 }
 0x460   : > { %18994 = vmatpush3.bf16.msra.mxu0 %v7722_v15  ;;  %18995 = vmatprep.mubr.msk.bf16.mxu0 %vm20090_vm0, %v20091_v1  ;;  %v6290_v43 = vadd.f32 %v6258_v29, %v4817_v17  ;;  %v18643_v18 = vpop.f32.mrb[161].mxu1  ;;  %v6262_v15 = vld [vmem:[%s21182_s7 + $0x40] sm:$0xff] }
 0x461   : > { %19005 = vmatprep.subr.bf16.mxu0 %v20091_v1  ;;  %v4820_v38 = vpop.f32.mrb[162].mxu1  ;;  %v6267_v18 = vld [vmem:[%s21182_s7 + $0x68] sm:$0xff] }
 0x462   : > { %v5082_v60 = vpop.f32.mrb[172].mxu0  ;;  %6322 = vst.msk [vmem:[%s21182_s7 + $0x20] sm:$0xff] %vm2659_vm8, %v6290_v43  ;;  %v18644_v25 = vpop.f32.mrb[163].mxu1 }
 0x463   : > { %v6295_v26 = vadd.f32 %v6263_v45, %v5082_v60  ;;  %v18673_v6 = vpop.f32.mrb[173].mxu0 }
 0x464   : > { %v5085_v10 = vpop.f32.mrb[174].mxu0  ;;  %18966 = vmatmul.mubr.msk.bf16.vlgmr.msra.gmra.mrb[12].mxu1 %vm1278_vm7, %v21845_v22  ;;  %v8173_v6 = vsel %vm1282_vm6, %v21590_v51, 0 }
 0x465   : > { %6327 = vst.msk [vmem:[%s21182_s7 + $0x48] sm:$0xff] %vm2659_vm8, %v6295_v26  ;;  %v18674_v56 = vpop.f32.mrb[175].mxu0  ;;  %18976 = vmatpush3.bf16.msra.mxu1 %v7593_v53  ;;  %18977 = vmatprep.mubr.msk.bf16.mxu1 %vm20090_vm0, %v20091_v1  ;;  %v7908_v26 = vsel %vm1282_vm6, %v21533_v54, 0  ;;  %v6264_v10 = vld [vmem:[%s21182_s7 + $0x50] sm:$0xff] }
 0x466   : > { %18987 = vmatprep.subr.bf16.mxu1 %v20091_v1 }
 0x467   : > { %18996 = vmatmul.mubr.msk.bf16.vlgmr.msra.gmra.mrb[24].mxu0 %vm1278_vm7, %v21845_v22  ;;  %v4923_v37 = vpop.f32.mrb[164].mxu1 }
 0x468   : > { %19006 = vmatpush3.bf16.msra.mxu0 %v7961_v20  ;;  %19007 = vmatprep.mubr.msk.bf16.mxu0 %vm20090_vm0, %v20091_v1  ;;  %v6292_v46 = vadd.f32 %v6260_v33, %v4923_v37  ;;  %v18655_v23 = vpop.f32.mrb[165].mxu1  ;;  %v6269_v20 = vld [vmem:[%s21182_s7 + $0x78] sm:$0xff] }
 0x469   : > { %19017 = vmatprep.subr.bf16.mxu0 %v20091_v1  ;;  %v4926_v41 = vpop.f32.mrb[166].mxu1 }
 0x46a   : > { %v5188_v39 = vpop.f32.mrb[176].mxu0  ;;  %6324 = vst.msk [vmem:[%s21182_s7 + $0x30] sm:$0xff] %vm2659_vm8, %v6292_v46  ;;  %v18656_v2 = vpop.f32.mrb[167].mxu1  ;;  %v6266_v41 = vld [vmem:[%s21182_s7 + $0x60] sm:$0xff] }
 0x46b   : > { %v6297_v49 = vadd.f32 %v6265_v40, %v5188_v39  ;;  %v18685_v58 = vpop.f32.mrb[177].mxu0  ;;  %v8014_v39 = vsel %vm1282_vm6, %v21558_v63, 0 }
 0x46c   : > { %v5191_v48 = vpop.f32.mrb[178].mxu0  ;;  %18978 = vmatmul.mubr.msk.bf16.vlgmr.msra.gmra.mrb[16].mxu1 %vm1278_vm7, %v21845_v22 }
 0x46d   : > { %6329 = vst.msk [vmem:[%s21182_s7 + $0x58] sm:$0xff] %vm2659_vm8, %v6297_v49  ;;  %v18686_v16 = vpop.f32.mrb[179].mxu0  ;;  %18988 = vmatpush3.bf16.msra.mxu1 %v7679_v0  ;;  %18989 = vmatprep.mubr.msk.bf16.mxu1 %vm20090_vm0, %v20091_v1  ;;  %v6271_v48 = vld [vmem:[%s21182_s7 + $0x88] sm:$0xff] }
 0x46e   : > { %18999 = vmatprep.subr.bf16.mxu1 %v20091_v1 }
 0x46f   : > { %19008 = vmatmul.mubr.msk.bf16.vlgmr.msra.gmra.mrb[28].mxu0 %vm1278_vm7, %v22147_v9  ;;  %v5029_v47 = vpop.f32.mrb[168].mxu1 }
 0x470   : > { %19018 = vmatpush3.bf16.msra.mxu0 %v8067_v62  ;;  %19019 = vmatprep.mubr.msk.bf16.mxu0 %vm20090_vm0, %v20091_v1  ;;  %v6294_v17 = vadd.f32 %v6262_v15, %v5029_v47  ;;  %v18667_v29 = vpop.f32.mrb[169].mxu1  ;;  %v8120_v15 = vsel %vm1282_vm6, %v21580_v3, 0 }
 0x471   : > { %19029 = vmatprep.subr.bf16.mxu0 %v20091_v1  ;;  %v5032_v60 = vpop.f32.mrb[170].mxu1  ;;  %v8385_v29 = vsel %vm1282_vm6, %v21638_v32, 0 }
 0x472   : > { %v5294_v43 = vpop.f32.mrb[180].mxu0  ;;  %6326 = vst.msk [vmem:[%s21182_s7 + $0x40] sm:$0xff] %vm2659_vm8, %v6294_v17  ;;  %v18668_v45 = vpop.f32.mrb[171].mxu1 }
 0x473   : > { %v6299_v36 = vadd.f32 %v6267_v18, %v5294_v43  ;;  %v18697_v30 = vpop.f32.mrb[181].mxu0  ;;  %v6268_v43 = vld [vmem:[%s21182_s7 + $0x70] sm:$0xff]  ;;  %v6273_v45 = vld [vmem:[%s21182_s7 + $0x98] sm:$0xff] }
 0x474   : > { %v5297_v38 = vpop.f32.mrb[182].mxu0  ;;  %18990 = vmatmul.mubr.msk.bf16.vlgmr.msra.gmra.mrb[20].mxu1 %vm1278_vm7, %v21845_v22 }
 0x475   : > { %6331 = vst.msk [vmem:[%s21182_s7 + $0x68] sm:$0xff] %vm2659_vm8, %v6299_v36  ;;  %v18698_v25 = vpop.f32.mrb[183].mxu0  ;;  %19000 = vmatpush3.bf16.msra.mxu1 %v7908_v26  ;;  %19001 = vmatprep.mubr.msk.bf16.mxu1 %vm20090_vm0, %v20091_v1 }
 0x476   : > { %19011 = vmatprep.subr.bf16.mxu1 %v20091_v1 }
 0x477   : > { %19020 = vmatmul.mubr.msk.bf16.vlgmr.msra.gmra.mrb[32].mxu0 %vm1278_vm7, %v22147_v9  ;;  %v5135_v54 = vpop.f32.mrb[172].mxu1 }
 0x478   : > { %19030 = vmatpush3.bf16.msra.mxu0 %v8173_v6  ;;  %19031 = vmatprep.mubr.msk.bf16.mxu0 %vm20090_vm0, %v20091_v1  ;;  %v6296_v22 = vadd.f32 %v6264_v10, %v5135_v54  ;;  %v18679_v53 = vpop.f32.mrb[173].mxu1  ;;  %v8226_v6 = vsel %vm1282_vm6, %v21604_v24, 0  ;;  %v8491_v10 = vsel %vm1282_vm6, %v21660_v7, 0 }
 0x479   : > { %19041 = vmatprep.subr.bf16.mxu0 %v20091_v1  ;;  %v5138_v37 = vpop.f32.mrb[174].mxu1 }
 0x47a   : > { %v5400_v56 = vpop.f32.mrb[184].mxu0  ;;  %6328 = vst.msk [vmem:[%s21182_s7 + $0x50] sm:$0xff] %vm2659_vm8, %v6296_v22  ;;  %v18680_v33 = vpop.f32.mrb[175].mxu1  ;;  %v6270_v22 = vld [vmem:[%s21182_s7 + $0x80] sm:$0xff]  ;;  %v6275_v37 = vld [vmem:[%s21182_s7 + $0xa8] sm:$0xff] }
 0x47b   : > { %v6301_v51 = vadd.f32 %v6269_v20, %v5400_v56  ;;  %v18709_v46 = vpop.f32.mrb[185].mxu0 }
 0x47c   : > { %v5403_v23 = vpop.f32.mrb[186].mxu0  ;;  %19002 = vmatmul.mubr.msk.bf16.vlgmr.msra.gmra.mrb[24].mxu1 %vm1278_vm7, %v22147_v9 }
 0x47d   : > { %6333 = vst.msk [vmem:[%s21182_s7 + $0x78] sm:$0xff] %vm2659_vm8, %v6301_v51  ;;  %v18710_v40 = vpop.f32.mrb[187].mxu0  ;;  %19012 = vmatpush3.bf16.msra.mxu1 %v8014_v39  ;;  %19013 = vmatprep.mubr.msk.bf16.mxu1 %vm20090_vm0, %v20091_v1  ;;  %v8332_v39 = vsel %vm1282_vm6, %v21629_v19, 0 }
 0x47e   : > { %19023 = vmatprep.subr.bf16.mxu1 %v20091_v1 }
 0x47f   : > { %19032 = vmatmul.mubr.msk.bf16.vlgmr.msra.gmra.mrb[36].mxu0 %vm1278_vm7, %v22147_v9  ;;  %v5241_v63 = vpop.f32.mrb[176].mxu1 }
 0x480   : > { %19042 = vmatpush3.bf16.msra.mxu0 %v8279_v34  ;;  %19043 = vmatprep.mubr.msk.bf16.mxu0 %vm20090_vm0, %v20091_v1  ;;  %v6298_v49 = vadd.f32 %v6266_v41, %v5241_v63  ;;  %v18691_v2 = vpop.f32.mrb[177].mxu1  ;;  %v8597_v34 = vsel %vm1282_vm6, %v21682_v59, 0  ;;  %v6272_v63 = vld [vmem:[%s21182_s7 + $0x90] sm:$0xff] }
 0x481   : > { %19053 = vmatprep.subr.bf16.mxu0 %v20091_v1  ;;  %v5244_v0 = vpop.f32.mrb[178].mxu1 }
 0x482   : > { %v5506_v58 = vpop.f32.mrb[188].mxu0  ;;  %6330 = vst.msk [vmem:[%s21182_s7 + $0x60] sm:$0xff] %vm2659_vm8, %v6298_v49  ;;  %v18692_v16 = vpop.f32.mrb[179].mxu1 }
 0x483   : > { %v6303_v57 = vadd.f32 %v6271_v48, %v5506_v58  ;;  %v18721_v62 = vpop.f32.mrb[189].mxu0  ;;  %v6277_v58 = vld [vmem:[%s21182_s7 + $0xb8] sm:$0xff] }
 0x484   : > { %v5509_v47 = vpop.f32.mrb[190].mxu0  ;;  %19014 = vmatmul.mubr.msk.bf16.vlgmr.msra.gmra.mrb[28].mxu1 %vm1278_vm7, %v22147_v9  ;;  %v8438_v62 = vsel %vm1282_vm6, %v21654_v52, 0 }
 0x485   : > { %6335 = vst.msk [vmem:[%s21182_s7 + $0x88] sm:$0xff] %vm2659_vm8, %v6303_v57  ;;  %v18722_v17 = vpop.f32.mrb[191].mxu0  ;;  %19024 = vmatpush3.bf16.msra.mxu1 %v8120_v15  ;;  %19025 = vmatprep.mubr.msk.bf16.mxu1 %vm20090_vm0, %v20091_v1  ;;  %v8703_v15 = vsel %vm1282_vm6, %v21700_v50, 0 }
 0x486   : > { %19035 = vmatprep.subr.bf16.mxu1 %v20091_v1  ;;  %v6274_v17 = vld [vmem:[%s21182_s7 + $0xa0] sm:$0xff] }
 0x487   : > { %19044 = vmatmul.mubr.msk.bf16.vlgmr.msra.gmra.mrb[40].mxu0 %vm1278_vm7, %v22147_v9  ;;  %v5347_v3 = vpop.f32.mrb[180].mxu1 }
 0x488   : > { %19054 = vmatpush3.bf16.msra.mxu0 %v8385_v29  ;;  %19055 = vmatprep.mubr.msk.bf16.mxu0 %vm20090_vm0, %v20091_v1  ;;  %v6300_v18 = vadd.f32 %v6268_v43, %v5347_v3  ;;  %v18703_v60 = vpop.f32.mrb[181].mxu1 }
 0x489   : > { %19065 = vmatprep.subr.bf16.mxu0 %v20091_v1  ;;  %v5350_v30 = vpop.f32.mrb[182].mxu1 }
 0x48a   : > { %v5612_v36 = vpop.f32.mrb[192].mxu0  ;;  %6332 = vst.msk [vmem:[%s21182_s7 + $0x70] sm:$0xff] %vm2659_vm8, %v6300_v18  ;;  %v18704_v38 = vpop.f32.mrb[183].mxu1  ;;  %v6279_v18 = vld [vmem:[%s21182_s7 + $0xc8] sm:$0xff] }
 0x48b   : > { %v6305_v32 = vadd.f32 %v6273_v45, %v5612_v36  ;;  %v18733_v26 = vpop.f32.mrb[193].mxu0 }
 0x48c   : > { %v5615_v25 = vpop.f32.mrb[194].mxu0  ;;  %19026 = vmatmul.mubr.msk.bf16.vlgmr.msra.gmra.mrb[32].mxu1 %vm1278_vm7, %v22147_v9  ;;  %v8809_v26 = vsel %vm1282_vm6, %v21724_v27, 0 }
 0x48d   : > { %6337 = vst.msk [vmem:[%s21182_s7 + $0x98] sm:$0xff] %vm2659_vm8, %v6305_v32  ;;  %v18734_v54 = vpop.f32.mrb[195].mxu0  ;;  %19036 = vmatpush3.bf16.msra.mxu1 %v8226_v6  ;;  %19037 = vmatprep.mubr.msk.bf16.mxu1 %vm20090_vm0, %v20091_v1  ;;  %v8544_v32 = vsel %vm1282_vm6, %v21673_v21, 0  ;;  %v6276_v25 = vld [vmem:[%s21182_s7 + $0xb0] sm:$0xff] }
 0x48e   : > { %19047 = vmatprep.subr.bf16.mxu1 %v20091_v1 }
 0x48f   : > { %19056 = vmatmul.mubr.msk.bf16.vlgmr.msra.gmra.mrb[44].mxu0 %vm1278_vm7, %v22147_v9  ;;  %v5453_v24 = vpop.f32.mrb[184].mxu1 }
 0x490   : > { %19066 = vmatpush3.bf16.msra.mxu0 %v8491_v10  ;;  %19067 = vmatprep.mubr.msk.bf16.mxu0 %vm20090_vm0, %v20091_v1  ;;  %v6302_v53 = vadd.f32 %v6270_v22, %v5453_v24  ;;  %v18715_v56 = vpop.f32.mrb[185].mxu1  ;;  %v6281_v24 = vld [vmem:[%s21182_s7 + $0xd8] sm:$0xff] }
 0x491   : > { %19077 = vmatprep.subr.bf16.mxu0 %v20091_v1  ;;  %v5456_v51 = vpop.f32.mrb[186].mxu1 }
 0x492   : > { %v5718_v20 = vpop.f32.mrb[196].mxu0  ;;  %6334 = vst.msk [vmem:[%s21182_s7 + $0x80] sm:$0xff] %vm2659_vm8, %v6302_v53  ;;  %v18716_v33 = vpop.f32.mrb[187].mxu1 }
 0x493   : > { %v6307_v7 = vadd.f32 %v6275_v37, %v5718_v20  ;;  %v18745_v46 = vpop.f32.mrb[197].mxu0  ;;  %v8650_v37 = vsel %vm1282_vm6, %v21695_v4, 0  ;;  %v6278_v33 = vld [vmem:[%s21182_s7 + $0xc0] sm:$0xff] }
 0x494   : > { %v5721_v23 = vpop.f32.mrb[198].mxu0  ;;  %19038 = vmatmul.mubr.msk.bf16.vlgmr.msra.gmra.mrb[36].mxu1 %vm1278_vm7, %v22147_v9 }
 0x495   : > { %6339 = vst.msk [vmem:[%s21182_s7 + $0xa8] sm:$0xff] %vm2659_vm8, %v6307_v7  ;;  %v18746_v40 = vpop.f32.mrb[199].mxu0  ;;  %19048 = vmatpush3.bf16.msra.mxu1 %v8332_v39  ;;  %19049 = vmatprep.mubr.msk.bf16.mxu1 %vm20090_vm0, %v20091_v1  ;;  %v8915_v7 = vsel %vm1282_vm6, %v21745_v13, 0 }
 0x496   : > { %19059 = vmatprep.subr.bf16.mxu1 %v20091_v1  ;;  %v6283_v40 = vld [vmem:[%s21182_s7 + $0xe8] sm:$0xff] }
 0x497   : > { %19068 = vmatmul.mubr.msk.bf16.vlgmr.msra.gmra.mrb[48].mxu0 %vm1278_vm7, %v22147_v9  ;;  %v5559_v19 = vpop.f32.mrb[188].mxu1 }
 0x498   : > { %19078 = vmatpush3.bf16.msra.mxu0 %v8597_v34  ;;  %19079 = vmatprep.mubr.msk.bf16.mxu0 %vm20090_vm0, %v20091_v1  ;;  %v6304_v41 = vadd.f32 %v6272_v63, %v5559_v19  ;;  %v18727_v49 = vpop.f32.mrb[189].mxu1 }
 0x499   : > { %19089 = vmatprep.subr.bf16.mxu0 %v20091_v1  ;;  %v5562_v48 = vpop.f32.mrb[190].mxu1  ;;  %v8756_v49 = vsel %vm1282_vm6, %v21715_v11, 0 }
 0x49a   : > { %v5824_v2 = vpop.f32.mrb[200].mxu0  ;;  %6336 = vst.msk [vmem:[%s21182_s7 + $0x90] sm:$0xff] %vm2659_vm8, %v6304_v41  ;;  %v18728_v0 = vpop.f32.mrb[191].mxu1  ;;  %v6280_v48 = vld [vmem:[%s21182_s7 + $0xd0] sm:$0xff] }
 0x49b   : > { %v6309_v59 = vadd.f32 %v6277_v58, %v5824_v2  ;;  %v18757_v57 = vpop.f32.mrb[201].mxu0  ;;  %v9021_v58 = vsel %vm1282_vm6, %v21768_v35, 0 }
 0x49c   : > { %v5827_v16 = vpop.f32.mrb[202].mxu0  ;;  %19050 = vmatmul.mubr.msk.bf16.vlgmr.msra.gmra.mrb[40].mxu1 %vm1278_vm7, %v22147_v9 }
 0x49d   : > { %6341 = vst.msk [vmem:[%s21182_s7 + $0xb8] sm:$0xff] %vm2659_vm8, %v6309_v59  ;;  %v18758_v47 = vpop.f32.mrb[203].mxu0  ;;  %19060 = vmatpush3.bf16.msra.mxu1 %v8438_v62  ;;  %19061 = vmatprep.mubr.msk.bf16.mxu1 %vm20090_vm0, %v20091_v1  ;;  %v6285_v16 = vld [vmem:[%s21182_s7 + $0xf8] sm:$0xff] }
 0x49e   : > { %19071 = vmatprep.subr.bf16.mxu1 %v20091_v1 }
 0x49f   : > { %19080 = vmatmul.mubr.msk.bf16.vlgmr.msra.gmra.mrb[52].mxu0 %vm1278_vm7, %v22147_v9  ;;  %v5665_v52 = vpop.f32.mrb[192].mxu1 }
 0x4a0   : > { %19090 = vmatpush3.bf16.msra.mxu0 %v8703_v15  ;;  %19091 = vmatprep.mubr.msk.bf16.mxu0 %vm20090_vm0, %v20091_v1  ;;  %v6306_v29 = vadd.f32 %v6274_v17, %v5665_v52  ;;  %v18739_v3 = vpop.f32.mrb[193].mxu1  ;;  %v8862_v17 = vsel %vm1282_vm6, %v21738_v31, 0 }
 0x4a1   : > { %19101 = vmatprep.subr.bf16.mxu0 %v20091_v1  ;;  %v5668_v60 = vpop.f32.mrb[194].mxu1  ;;  %v9127_v3 = vsel %vm1282_vm6, %v21787_v8, 0 }
 0x4a2   : > { %v5930_v43 = vpop.f32.mrb[204].mxu0  ;;  %6338 = vst.msk [vmem:[%s21182_s7 + $0xa0] sm:$0xff] %vm2659_vm8, %v6306_v29  ;;  %v18740_v36 = vpop.f32.mrb[195].mxu1 }
 0x4a3   : > { %v6311_v50 = vadd.f32 %v6279_v18, %v5930_v43  ;;  %v18769_v45 = vpop.f32.mrb[205].mxu0  ;;  %v6282_v43 = vld [vmem:[%s21182_s7 + $0xe0] sm:$0xff]  ;;  %v7765_v36 = vld [vmem:[%s21182_s7 + $0x8] sm:$0xff] }
 0x4a4   : > { %v5933_v30 = vpop.f32.mrb[206].mxu0  ;;  %19062 = vmatmul.mubr.msk.bf16.vlgmr.msra.gmra.mrb[44].mxu1 %vm1278_vm7, %v22147_v9 }
 0x4a5   : > { %6343 = vst.msk [vmem:[%s21182_s7 + $0xc8] sm:$0xff] %vm2659_vm8, %v6311_v50  ;;  %v18770_v38 = vpop.f32.mrb[207].mxu0  ;;  %19072 = vmatpush3.bf16.msra.mxu1 %v8544_v32  ;;  %19073 = vmatprep.mubr.msk.bf16.mxu1 %vm20090_vm0, %v20091_v1 }
 0x4a6   : > { %19083 = vmatprep.subr.bf16.mxu1 %v20091_v1 }
 0x4a7   : > { %19092 = vmatmul.mubr.msk.bf16.vlgmr.msra.gmra.mrb[56].mxu0 %vm1278_vm7, %v22147_v9  ;;  %v5771_v21 = vpop.f32.mrb[196].mxu1 }
 0x4a8   : > { %19102 = vmatpush3.bf16.msra.mxu0 %v8809_v26  ;;  %19103 = vmatprep.mubr.msk.bf16.mxu0 %vm20090_vm0, %v20091_v1  ;;  %v6308_v6 = vadd.f32 %v6276_v25, %v5771_v21  ;;  %v18751_v54 = vpop.f32.mrb[197].mxu1  ;;  %v8968_v26 = vsel %vm1282_vm6, %v21757_v61, 0  ;;  %v9233_v25 = vsel %vm1282_vm6, %v21810_v5, 0 }
 0x4a9   : > { %19113 = vmatprep.subr.bf16.mxu0 %v20091_v1  ;;  %v5774_v22 = vpop.f32.mrb[198].mxu1 }
 0x4aa   : > { %v6036_v10 = vpop.f32.mrb[208].mxu0  ;;  %6340 = vst.msk [vmem:[%s21182_s7 + $0xb0] sm:$0xff] %vm2659_vm8, %v6308_v6  ;;  %v18752_v53 = vpop.f32.mrb[199].mxu1  ;;  %v6284_v6 = vld [vmem:[%s21182_s7 + $0xf0] sm:$0xff]  ;;  %v7767_v22 = vld [vmem:[%s21182_s7 + $0x18] sm:$0xff] }
 0x4ab   : > { %v6313_v27 = vadd.f32 %v6281_v24, %v6036_v10  ;;  %v18781_v56 = vpop.f32.mrb[209].mxu0 }
 0x4ac   : > { %v6039_v20 = vpop.f32.mrb[210].mxu0  ;;  %19074 = vmatmul.mubr.msk.bf16.vlgmr.msra.gmra.mrb[48].mxu1 %vm1278_vm7, %v22147_v9 }
 0x4ad   : > { %6345 = vst.msk [vmem:[%s21182_s7 + $0xd8] sm:$0xff] %vm2659_vm8, %v6313_v27  ;;  %v18782_v51 = vpop.f32.mrb[211].mxu0  ;;  %19084 = vmatpush3.bf16.msra.mxu1 %v8650_v37  ;;  %19085 = vmatprep.mubr.msk.bf16.mxu1 %vm20090_vm0, %v20091_v1  ;;  %v9074_v37 = vsel %vm1282_vm6, %v21780_v14, 0 }
 0x4ae   : > { %19095 = vmatprep.subr.bf16.mxu1 %v20091_v1 }
 0x4af   : > { %19104 = vmatmul.mubr.msk.bf16.vlgmr.msra.gmra.mrb[60].mxu0 %vm1278_vm7, %v22147_v9  ;;  %v5877_v4 = vpop.f32.mrb[200].mxu1 }
 0x4b0   : > { %19114 = vmatpush3.bf16.msra.mxu0 %v8915_v7  ;;  %19115 = vmatprep.mubr.msk.bf16.mxu0 %vm20090_vm0, %v20091_v1  ;;  %v6310_v46 = vadd.f32 %v6278_v33, %v5877_v4  ;;  %v18763_v23 = vpop.f32.mrb[201].mxu1  ;;  %v9339_v7 = vsel %vm1282_vm6, %v21832_v44, 0  ;;  %v7764_v4 = vld [vmem:[%s21182_s7] sm:$0xff] }
 0x4b1   : > { %19125 = vmatprep.subr.bf16.mxu0 %v20091_v1  ;;  %v5880_v34 = vpop.f32.mrb[202].mxu1 }
 0x4b2   : > { %v6142_v39 = vpop.f32.mrb[212].mxu0  ;;  %6342 = vst.msk [vmem:[%s21182_s7 + $0xc0] sm:$0xff] %vm2659_vm8, %v6310_v46  ;;  %v18764_v19 = vpop.f32.mrb[203].mxu1 }
 0x4b3   : > { %v6315_v13 = vadd.f32 %v6283_v40, %v6142_v39  ;;  %v18793_v63 = vpop.f32.mrb[213].mxu0  ;;  %v7769_v39 = vld [vmem:[%s21182_s7 + $0x28] sm:$0xff] }
 0x4b4   : > { %v6145_v41 = vpop.f32.mrb[214].mxu0  ;;  %19086 = vmatmul.mubr.msk.bf16.vlgmr.msra.gmra.mrb[52].mxu1 %vm1278_vm7, %v22147_v9  ;;  %v9180_v63 = vsel %vm1282_vm6, %v21803_v28, 0 }
 0x4b5   : > { %6347 = vst.msk [vmem:[%s21182_s7 + $0xe8] sm:$0xff] %vm2659_vm8, %v6315_v13  ;;  %v18794_v2 = vpop.f32.mrb[215].mxu0  ;;  %19096 = vmatpush3.bf16.msra.mxu1 %v8756_v49  ;;  %19097 = vmatprep.mubr.msk.bf16.mxu1 %vm20090_vm0, %v20091_v1  ;;  %v9445_v49 = vsel %vm1282_vm6, %v21858_v42, 0 }
 0x4b6   : > { %19107 = vmatprep.subr.bf16.mxu1 %v20091_v1  ;;  %v7766_v2 = vld [vmem:[%s21182_s7 + $0x10] sm:$0xff] }
 0x4b7   : > { %19116 = vmatmul.mubr.msk.bf16.vlgmr.msra.gmra.mrb[64].mxu0 %vm1278_vm7, %v22147_v9  ;;  %v5983_v11 = vpop.f32.mrb[204].mxu1 }
 0x4b8   : > { %19126 = vmatpush3.bf16.msra.mxu0 %v9021_v58  ;;  %19127 = vmatprep.mubr.msk.bf16.mxu0 %vm20090_vm0, %v20091_v1  ;;  %v6312_v59 = vadd.f32 %v6280_v48, %v5983_v11  ;;  %v18775_v0 = vpop.f32.mrb[205].mxu1 }
 0x4b9   : > { %19137 = vmatprep.subr.bf16.mxu0 %v20091_v1  ;;  %v5986_v62 = vpop.f32.mrb[206].mxu1 }
 0x4ba   : > { %v6248_v57 = vpop.f32.mrb[216].mxu0  ;;  %6344 = vst.msk [vmem:[%s21182_s7 + $0xd0] sm:$0xff] %vm2659_vm8, %v6312_v59  ;;  %v18776_v47 = vpop.f32.mrb[207].mxu1  ;;  %v7771_v59 = vld [vmem:[%s21182_s7 + $0x38] sm:$0xff] }
 0x4bb   : > { %v6317_v35 = vadd.f32 %v6285_v16, %v6248_v57  ;;  %v18805_v15 = vpop.f32.mrb[217].mxu0  ;;  %v9549_v62 = vpop.permute.xlu0 %9548  ;;  %v9286_v47 = vsel %vm1282_vm6, %v21824_v12, 0 }
 0x4bc   : > { %v6251_v52 = vpop.f32.mrb[218].mxu0  ;;  %19098 = vmatmul.mubr.msk.bf16.vlgmr.msra.gmra.mrb[56].mxu1 %vm1278_vm7, %v22147_v9 }
 0x4bd   : > { %6349 = vst.msk [vmem:[%s21182_s7 + $0xf8] sm:$0xff] %vm2659_vm8, %v6317_v35  ;;  %v18806_v29 = vpop.f32.mrb[219].mxu0  ;;  %19108 = vmatpush3.bf16.msra.mxu1 %v8862_v17  ;;  %19109 = vmatprep.mubr.msk.bf16.mxu1 %vm20090_vm0, %v20091_v1  ;;  %v9551_v52 = vsel %vm1282_vm6, %v9549_v62, 0  ;;  %v7768_v17 = vld [vmem:[%s21182_s7 + $0x20] sm:$0xff] }
 0x4be   : > { %19119 = vmatprep.subr.bf16.mxu1 %v20091_v1 }
 0x4bf   : > { %19128 = vmatmul.mubr.msk.bf16.vlgmr.msra.gmra.mrb[68].mxu0 %vm1278_vm7, %v22147_v9  ;;  %v6089_v31 = vpop.f32.mrb[208].mxu1 }
 0x4c0   : > { %19138 = vmatpush3.bf16.msra.mxu0 %v9127_v3  ;;  %19139 = vmatprep.mubr.msk.bf16.mxu0 %vm20090_vm0, %v20091_v1  ;;  %v6314_v18 = vadd.f32 %v6282_v43, %v6089_v31  ;;  %v18787_v60 = vpop.f32.mrb[209].mxu1  ;;  %v7773_v43 = vld [vmem:[%s21182_s7 + $0x48] sm:$0xff] }
 0x4c1   : > { %19149 = vmatprep.subr.bf16.mxu0 %v20091_v1  ;;  %v6092_v45 = vpop.f32.mrb[210].mxu1 }
 0x4c2   : > { %v6468_v50 = vpop.f32.mrb[220].mxu0  ;;  %6346 = vst.msk [vmem:[%s21182_s7 + $0xe0] sm:$0xff] %vm2659_vm8, %v6314_v18  ;;  %v18788_v30 = vpop.f32.mrb[211].mxu1 }
 0x4c3   : > { %v7797_v8 = vadd.f32 %v7765_v36, %v6468_v50  ;;  %v18817_v32 = vpop.f32.mrb[221].mxu0  ;;  %v9788_v45 = vpop.permute.xlu0 %9787  ;;  %v9392_v30 = vsel %vm1282_vm6, %v21849_v55, 0 }
 0x4c4   : > { %v6471_v38 = vpop.f32.mrb[222].mxu0  ;;  %19110 = vmatmul.mubr.msk.bf16.vlgmr.msra.gmra.mrb[60].mxu1 %vm1278_vm7, %v22147_v9 }
 0x4c5   : > { %7829 = vst.msk [vmem:[%s21182_s7 + $0x8] sm:$0xff] %vm2659_vm8, %v7797_v8  ;;  %v18818_v21 = vpop.f32.mrb[223].mxu0  ;;  %19120 = vmatpush3.bf16.msra.mxu1 %v8968_v26  ;;  %19121 = vmatprep.mubr.msk.bf16.mxu1 %vm20090_vm0, %v20091_v1  ;;  %v9790_v38 = vsel %vm1282_vm6, %v9788_v45, 0  ;;  %v7770_v26 = vld [vmem:[%s21182_s7 + $0x30] sm:$0xff] }
 0x4c6   : > { %19131 = vmatprep.subr.bf16.mxu1 %v20091_v1  ;;  %v9496_v21 = vpop.permute.xlu1 %9495 }
 0x4c7   : > { %19140 = vmatmul.mubr.msk.bf16.vlgmr.msra.gmra.mrb[72].mxu0 %vm1278_vm7, %v22147_v9  ;;  %v6195_v61 = vpop.f32.mrb[212].mxu1 }
 0x4c8   : > { %19150 = vmatpush3.bf16.msra.mxu0 %v9233_v25  ;;  %19151 = vmatprep.mubr.msk.bf16.mxu0 %vm20090_vm0, %v20091_v1  ;;  %v6316_v54 = vadd.f32 %v6284_v6, %v6195_v61  ;;  %v18799_v10 = vpop.f32.mrb[213].mxu1 }
 0x4c9   : > { %19161 = vmatprep.subr.bf16.mxu0 %v20091_v1  ;;  %v6198_v27 = vpop.f32.mrb[214].mxu1 }
 0x4ca   : > { %v6554_v24 = vpop.f32.mrb[224].mxu0  ;;  %6348 = vst.msk [vmem:[%s21182_s7 + $0xf0] sm:$0xff] %vm2659_vm8, %v6316_v54  ;;  %v18800_v53 = vpop.f32.mrb[215].mxu1  ;;  %v7775_v54 = vld [vmem:[%s21182_s7 + $0x58] sm:$0xff] }
 0x4cb   : > { %v7799_v5 = vadd.f32 %v7767_v22, %v6554_v24  ;;  %v18829_v56 = vpop.f32.mrb[225].mxu0  ;;  %v22469_v53 = vld [vmem:[%s23962_s3 + $0x14] sm:$0xf] }
 0x4cc   : > { %v6557_v20 = vpop.f32.mrb[226].mxu0  ;;  %19122 = vmatmul.mubr.msk.bf16.vlgmr.msra.gmra.mrb[64].mxu1 %vm1278_vm7, %v22147_v9 }
 0x4cd   : > { %7831 = vst.msk [vmem:[%s21182_s7 + $0x18] sm:$0xff] %vm2659_vm8, %v7799_v5  ;;  %v18830_v51 = vpop.f32.mrb[227].mxu0  ;;  %19132 = vmatpush3.bf16.msra.mxu1 %v9074_v37  ;;  %19133 = vmatprep.mubr.msk.bf16.mxu1 %vm20090_vm0, %v20091_v1  ;;  %v9894_v5 = vpop.permute.xlu0 %9893  ;;  %v9498_v20 = vsel %vm1282_vm6, %v9496_v21, 0 }
 0x4ce   : > { %19143 = vmatprep.subr.bf16.mxu1 %v20091_v1  ;;  %v9896_v51 = vsel %vm1282_vm6, %v9894_v5, 0 }
 0x4cf   : > { %19152 = vmatmul.mubr.msk.bf16.vlgmr.msra.gmra.mrb[76].mxu0 %vm1278_vm7, %v22147_v9  ;;  %v6425_v14 = vpop.f32.mrb[216].mxu1 }
 0x4d0   : > { %19162 = vmatpush3.bf16.msra.mxu0 %v9339_v7  ;;  %19163 = vmatprep.mubr.msk.bf16.mxu0 %vm20090_vm0, %v20091_v1  ;;  %v7796_v33 = vadd.f32 %v7764_v4, %v6425_v14  ;;  %v18811_v46 = vpop.f32.mrb[217].mxu1  ;;  %v7772_v14 = vld [vmem:[%s21182_s7 + $0x40] sm:$0xff]  ;;  %v9732_v4 = vpop.permute.xlu1 %9731 }
 0x4d1   : > { %19173 = vmatprep.subr.bf16.mxu0 %v20091_v1  ;;  %v6428_v40 = vpop.f32.mrb[218].mxu1 }
 0x4d2   : > { %v6640_v23 = vpop.f32.mrb[228].mxu0  ;;  %7828 = vst.msk [vmem:[%s21182_s7] sm:$0xff] %vm2659_vm8, %v7796_v33  ;;  %v18812_v34 = vpop.f32.mrb[219].mxu1 }
 0x4d3   : > { %v7801_v44 = vadd.f32 %v7769_v39, %v6640_v23  ;;  %v18841_v13 = vpop.f32.mrb[229].mxu0  ;;  %v7777_v39 = vld [vmem:[%s21182_s7 + $0x68] sm:$0xff] }
 0x4d4   : > { %v6643_v19 = vpop.f32.mrb[230].mxu0  ;;  %19134 = vmatmul.mubr.msk.bf16.vlgmr.msra.gmra.mrb[68].mxu1 %vm1278_vm7, %v22147_v9 }
 0x4d5   : > { %7833 = vst.msk [vmem:[%s21182_s7 + $0x28] sm:$0xff] %vm2659_vm8, %v7801_v44  ;;  %v18842_v41 = vpop.f32.mrb[231].mxu0  ;;  %19144 = vmatpush3.bf16.msra.mxu1 %v9180_v63  ;;  %19145 = vmatprep.mubr.msk.bf16.mxu1 %vm20090_vm0, %v20091_v1  ;;  %v10000_v19 = vpop.permute.xlu0 %9999 }
 0x4d6   : > { %19155 = vmatprep.subr.bf16.mxu1 %v20091_v1  ;;  %v9737_v41 = vsel %vm1282_vm6, %v9732_v4, 0 }
 0x4d7   : > { %19164 = vmatmul.mubr.msk.bf16.vlgmr.msra.gmra.mrb[80].mxu0 %vm1278_vm7, %v22147_v9  ;;  %v6511_v28 = vpop.f32.mrb[220].mxu1 }
 0x4d8   : > { %19174 = vmatpush3.bf16.msra.mxu0 %v9445_v49  ;;  %19175 = vmatprep.mubr.msk.bf16.mxu0 %vm20090_vm0, %v20091_v1  ;;  %v7798_v58 = vadd.f32 %v7766_v2, %v6511_v28  ;;  %v18823_v11 = vpop.f32.mrb[221].mxu1  ;;  %v10002_v28 = vsel %vm1282_vm6, %v10000_v19, 0 }
 0x4d9   : > { %19185 = vmatprep.subr.bf16.mxu0 %v20091_v1  ;;  %v6514_v0 = vpop.f32.mrb[222].mxu1 }
 0x4da   : > { %v6726_v48 = vpop.f32.mrb[232].mxu0  ;;  %7830 = vst.msk [vmem:[%s21182_s7 + $0x10] sm:$0xff] %vm2659_vm8, %v7798_v58  ;;  %v18824_v57 = vpop.f32.mrb[223].mxu1  ;;  %v7774_v58 = vld [vmem:[%s21182_s7 + $0x50] sm:$0xff]  ;;  %v7779_v0 = vld [vmem:[%s21182_s7 + $0x78] sm:$0xff] }
 0x4db   : > { %v7803_v42 = vadd.f32 %v7771_v59, %v6726_v48  ;;  %v18853_v16 = vpop.f32.mrb[233].mxu0 }
 0x4dc   : > { %v6729_v35 = vpop.f32.mrb[234].mxu0  ;;  %19146 = vmatmul.mubr.msk.bf16.vlgmr.msra.gmra.mrb[72].mxu1 %vm1278_vm7, %v22147_v9 }
 0x4dd   : > { %7835 = vst.msk [vmem:[%s21182_s7 + $0x38] sm:$0xff] %vm2659_vm8, %v7803_v42  ;;  %v18854_v15 = vpop.f32.mrb[235].mxu0  ;;  %19156 = vmatpush3.bf16.msra.mxu1 %v9286_v47  ;;  %19157 = vmatprep.mubr.msk.bf16.mxu1 %vm20090_vm0, %v20091_v1  ;;  %v10106_v35 = vpop.permute.xlu0 %10105 }
 0x4de   : > { %19167 = vmatprep.subr.bf16.mxu1 %v20091_v1 }
 0x4df   : > { %19176 = vmatmul.mubr.msk.bf16.vlgmr.msra.gmra.mrb[84].mxu0 %vm1278_vm7, %v22147_v9  ;;  %v6597_v12 = vpop.f32.mrb[224].mxu1 }
 0x4e0   : > { %19186 = vmatpush3.bf16.msra.mxu0 %v9551_v52  ;;  %19187 = vmatprep.mubr.msk.bf16.mxu0 %vm20090_vm0, %v20091_v1  ;;  %v7800_v29 = vadd.f32 %v7768_v17, %v6597_v12  ;;  %v18835_v3 = vpop.f32.mrb[225].mxu1  ;;  %v10108_v12 = vsel %vm1282_vm6, %v10106_v35, 0 }
 0x4e1   : > { %19197 = vmatprep.subr.bf16.mxu0 %v20091_v1  ;;  %v6600_v18 = vpop.f32.mrb[226].mxu1 }
 0x4e2   : > { %v6812_v31 = vpop.f32.mrb[236].mxu0  ;;  %7832 = vst.msk [vmem:[%s21182_s7 + $0x20] sm:$0xff] %vm2659_vm8, %v7800_v29  ;;  %v18836_v50 = vpop.f32.mrb[227].mxu1  ;;  %v7776_v29 = vld [vmem:[%s21182_s7 + $0x60] sm:$0xff] }
 0x4e3   : > { %v7805_v60 = vadd.f32 %v7773_v43, %v6812_v31  ;;  %v18865_v36 = vpop.f32.mrb[237].mxu0 }
 0x4e4   : > { %v6815_v8 = vpop.f32.mrb[238].mxu0  ;;  %19158 = vmatmul.mubr.msk.bf16.vlgmr.msra.gmra.mrb[76].mxu1 %vm1278_vm7, %v22147_v9 }
 0x4e5   : > { %7837 = vst.msk [vmem:[%s21182_s7 + $0x48] sm:$0xff] %vm2659_vm8, %v7805_v60  ;;  %v18866_v32 = vpop.f32.mrb[239].mxu0  ;;  %19168 = vmatpush3.bf16.msra.mxu1 %v9392_v30  ;;  %19169 = vmatprep.mubr.msk.bf16.mxu1 %vm20090_vm0, %v20091_v1  ;;  %v7781_v60 = vld [vmem:[%s21182_s7 + $0x88] sm:$0xff]  ;;  %v10212_v30 = vpop.permute.xlu0 %10211 }
 0x4e6   : > { %19179 = vmatprep.subr.bf16.mxu1 %v20091_v1 }
 0x4e7   : > { %19188 = vmatmul.mubr.msk.bf16.vlgmr.msra.gmra.mrb[88].mxu0 %vm1278_vm7, %v22147_v9  ;;  %v6683_v55 = vpop.f32.mrb[228].mxu1 }
 0x4e8   : > { %19198 = vmatpush3.bf16.msra.mxu0 %v9790_v38  ;;  %19199 = vmatprep.mubr.msk.bf16.mxu0 %vm20090_vm0, %v20091_v1  ;;  %v7802_v25 = vadd.f32 %v7770_v26, %v6683_v55  ;;  %v18847_v61 = vpop.f32.mrb[229].mxu1  ;;  %v10214_v26 = vsel %vm1282_vm6, %v10212_v30, 0 }
 0x4e9   : > { %19209 = vmatprep.subr.bf16.mxu0 %v20091_v1  ;;  %v6686_v10 = vpop.f32.mrb[230].mxu1 }
 0x4ea   : > { %v6898_v6 = vpop.f32.mrb[240].mxu0  ;;  %7834 = vst.msk [vmem:[%s21182_s7 + $0x30] sm:$0xff] %vm2659_vm8, %v7802_v25  ;;  %v18848_v22 = vpop.f32.mrb[231].mxu1  ;;  %v7778_v25 = vld [vmem:[%s21182_s7 + $0x70] sm:$0xff] }
 0x4eb   : > { %v7807_v24 = vadd.f32 %v7775_v54, %v6898_v6  ;;  %v18877_v27 = vpop.f32.mrb[241].mxu0 }
 0x4ec   : > { %v6901_v56 = vpop.f32.mrb[242].mxu0  ;;  %19170 = vmatmul.mubr.msk.bf16.vlgmr.msra.gmra.mrb[80].mxu1 %vm1278_vm7, %v22147_v9 }
 0x4ed   : > { %7839 = vst.msk [vmem:[%s21182_s7 + $0x58] sm:$0xff] %vm2659_vm8, %v7807_v24  ;;  %v18878_v37 = vpop.f32.mrb[243].mxu0  ;;  %19180 = vmatpush3.bf16.msra.mxu1 %v9498_v20  ;;  %19181 = vmatprep.mubr.msk.bf16.mxu1 %vm20090_vm0, %v20091_v1  ;;  %v7783_v24 = vld [vmem:[%s21182_s7 + $0x98] sm:$0xff]  ;;  %v10318_v20 = vpop.permute.xlu0 %10317 }
 0x4ee   : > { %19191 = vmatprep.subr.bf16.mxu1 %v20091_v1 }
 0x4ef   : > { %19200 = vmatmul.mubr.msk.bf16.vlgmr.msra.gmra.mrb[92].mxu0 %vm1278_vm7, %v22469_v53  ;;  %v6769_v7 = vpop.f32.mrb[232].mxu1 }
 0x4f0   : > { %19210 = vmatpush3.bf16.msra.mxu0 %v9896_v51  ;;  %19211 = vmatprep.mubr.msk.bf16.mxu0 %vm20090_vm0, %v20091_v1  ;;  %v7804_v33 = vadd.f32 %v7772_v14, %v6769_v7  ;;  %v18859_v46 = vpop.f32.mrb[233].mxu1  ;;  %v10320_v14 = vsel %vm1282_vm6, %v10318_v20, 0 }
 0x4f1   : > { %19221 = vmatprep.subr.bf16.mxu0 %v20091_v1  ;;  %v6772_v40 = vpop.f32.mrb[234].mxu1 }
 0x4f2   : > { %v6984_v23 = vpop.f32.mrb[244].mxu0  ;;  %7836 = vst.msk [vmem:[%s21182_s7 + $0x40] sm:$0xff] %vm2659_vm8, %v7804_v33  ;;  %v18860_v34 = vpop.f32.mrb[235].mxu1  ;;  %v7780_v33 = vld [vmem:[%s21182_s7 + $0x80] sm:$0xff] }
 0x4f3   : > { %v7809_v44 = vadd.f32 %v7777_v39, %v6984_v23  ;;  %v18889_v13 = vpop.f32.mrb[245].mxu0 }
 0x4f4   : > { %v6987_v63 = vpop.f32.mrb[246].mxu0  ;;  %19182 = vmatmul.mubr.msk.bf16.vlgmr.msra.gmra.mrb[84].mxu1 %vm1278_vm7, %v22147_v9  ;;  %v9841_v9 = vpop.permute.xlu1 %9840 }
 0x4f5   : > { %7841 = vst.msk [vmem:[%s21182_s7 + $0x68] sm:$0xff] %vm2659_vm8, %v7809_v44  ;;  %v18890_v49 = vpop.f32.mrb[247].mxu0  ;;  %19192 = vmatpush3.bf16.msra.mxu1 %v9737_v41  ;;  %19193 = vmatprep.mubr.msk.bf16.mxu1 %vm20090_vm0, %v20091_v1  ;;  %v9843_v15 = vsel %vm1282_vm6, %v9841_v9, 0  ;;  %v7785_v44 = vld [vmem:[%s21182_s7 + $0xa8] sm:$0xff]  ;;  %v10424_v41 = vpop.permute.xlu0 %10423 }
 0x4f6   : > { %19203 = vmatprep.subr.bf16.mxu1 %v20091_v1 }
 0x4f7   : > { %19212 = vmatmul.mubr.msk.bf16.vlgmr.msra.gmra.mrb[96].mxu0 %vm1278_vm7, %v22469_v53  ;;  %v6855_v2 = vpop.f32.mrb[236].mxu1 }
 0x4f8   : > { %19222 = vmatpush3.bf16.msra.mxu0 %v10002_v28  ;;  %19223 = vmatprep.mubr.msk.bf16.mxu0 %vm20090_vm0, %v20091_v1  ;;  %v7806_v11 = vadd.f32 %v7774_v58, %v6855_v2  ;;  %v18871_v48 = vpop.f32.mrb[237].mxu1  ;;  %v9947_v3 = vpop.permute.xlu1 %9946  ;;  %v10426_v58 = vsel %vm1282_vm6, %v10424_v41, 0 }
 0x4f9   : > { %19233 = vmatprep.subr.bf16.mxu0 %v20091_v1  ;;  %v6858_v42 = vpop.f32.mrb[238].mxu1  ;;  %v9949_v38 = vsel %vm1282_vm6, %v9947_v3, 0 }
 0x4fa   : > { %v7070_v59 = vpop.f32.mrb[248].mxu0  ;;  %7838 = vst.msk [vmem:[%s21182_s7 + $0x50] sm:$0xff] %vm2659_vm8, %v7806_v11  ;;  %v18872_v16 = vpop.f32.mrb[239].mxu1  ;;  %v7782_v11 = vld [vmem:[%s21182_s7 + $0x90] sm:$0xff] }
 0x4fb   : > { %v7811_v57 = vadd.f32 %v7779_v0, %v7070_v59  ;;  %v18901_v62 = vpop.f32.mrb[249].mxu0 }
 0x4fc   : > { %v7073_v47 = vpop.f32.mrb[250].mxu0  ;;  %19194 = vmatmul.mubr.msk.bf16.vlgmr.msra.gmra.mrb[88].mxu1 %vm1278_vm7, %v22469_v53  ;;  %v10053_v61 = vpop.permute.xlu1 %10052 }
 0x4fd   : > { %7843 = vst.msk [vmem:[%s21182_s7 + $0x78] sm:$0xff] %vm2659_vm8, %v7811_v57  ;;  %v18902_v52 = vpop.f32.mrb[251].mxu0  ;;  %19204 = vmatpush3.bf16.msra.mxu1 %v9843_v15  ;;  %19205 = vmatprep.mubr.msk.bf16.mxu1 %vm20090_vm0, %v20091_v1  ;;  %v10055_v51 = vsel %vm1282_vm6, %v10053_v61, 0  ;;  %v7787_v57 = vld [vmem:[%s21182_s7 + $0xb8] sm:$0xff]  ;;  %v10530_v15 = vpop.permute.xlu0 %10529 }
 0x4fe   : > { %19215 = vmatprep.subr.bf16.mxu1 %v20091_v1 }
 0x4ff   : > { %19224 = vmatmul.mubr.msk.bf16.vlgmr.msra.gmra.mrb[100].mxu0 %vm1278_vm7, %v22469_v53  ;;  %v6941_v17 = vpop.f32.mrb[240].mxu1 }
 0x500   : > { %19234 = vmatpush3.bf16.msra.mxu0 %v10108_v12  ;;  %19235 = vmatprep.mubr.msk.bf16.mxu0 %vm20090_vm0, %v20091_v1  ;;  %v7808_v31 = vadd.f32 %v7776_v29, %v6941_v17  ;;  %v18883_v43 = vpop.f32.mrb[241].mxu1  ;;  %v10159_v46 = vpop.permute.xlu1 %10158  ;;  %v10532_v29 = vsel %vm1282_vm6, %v10530_v15, 0 }
 0x501   : > { %19245 = vmatprep.subr.bf16.mxu0 %v20091_v1  ;;  %v6944_v50 = vpop.f32.mrb[242].mxu1  ;;  %v10161_v28 = vsel %vm1282_vm6, %v10159_v46, 0 }
 0x502   : > { %v7156_v18 = vpop.f32.mrb[252].mxu0  ;;  %7840 = vst.msk [vmem:[%s21182_s7 + $0x60] sm:$0xff] %vm2659_vm8, %v7808_v31  ;;  %v18884_v45 = vpop.f32.mrb[243].mxu1  ;;  %v7784_v31 = vld [vmem:[%s21182_s7 + $0xa0] sm:$0xff] }
 0x503   : > { %v7813_v36 = vadd.f32 %v7781_v60, %v7156_v18  ;;  %v18913_v8 = vpop.f32.mrb[253].mxu0 }
 0x504   : > { %v7159_v32 = vpop.f32.mrb[254].mxu0  ;;  %19206 = vmatmul.mubr.msk.bf16.vlgmr.msra.gmra.mrb[92].mxu1 %vm1278_vm7, %v22469_v53  ;;  %v10265_v48 = vpop.permute.xlu1 %10264 }
 0x505   : > { %7845 = vst.msk [vmem:[%s21182_s7 + $0x88] sm:$0xff] %vm2659_vm8, %v7813_v36  ;;  %v18914_v55 = vpop.f32.mrb[255].mxu0  ;;  %19216 = vmatpush3.bf16.msra.mxu1 %v9949_v38  ;;  %19217 = vmatprep.mubr.msk.bf16.mxu1 %vm20090_vm0, %v20091_v1  ;;  %v10267_v12 = vsel %vm1282_vm6, %v10265_v48, 0  ;;  %v7789_v36 = vld [vmem:[%s21182_s7 + $0xc8] sm:$0xff]  ;;  %v10636_v38 = vpop.permute.xlu0 %10635 }
 0x506   : > { %19227 = vmatprep.subr.bf16.mxu1 %v20091_v1 }
 0x507   : > { %19236 = vmatmul.mubr.msk.bf16.vlgmr.msra.gmra.mrb[104].mxu0 %vm1278_vm7, %v22469_v53  ;;  %v7027_v21 = vpop.f32.mrb[244].mxu1 }
 0x508   : > { %19246 = vmatpush3.bf16.msra.mxu0 %v10214_v26  ;;  %19247 = vmatprep.mubr.msk.bf16.mxu0 %vm20090_vm0, %v20091_v1  ;;  %v7810_v6 = vadd.f32 %v7778_v25, %v7027_v21  ;;  %v18895_v54 = vpop.f32.mrb[245].mxu1  ;;  %v10371_v43 = vpop.permute.xlu1 %10370  ;;  %v10638_v25 = vsel %vm1282_vm6, %v10636_v38, 0 }
 0x509   : > { %19257 = vmatprep.subr.bf16.mxu0 %v20091_v1  ;;  %v7030_v22 = vpop.f32.mrb[246].mxu1  ;;  %v10373_v26 = vsel %vm1282_vm6, %v10371_v43, 0 }
 0x50a   : > { %v7242_v10 = vpop.f32.mrb[0].mxu0  ;;  %7842 = vst.msk [vmem:[%s21182_s7 + $0x70] sm:$0xff] %vm2659_vm8, %v7810_v6  ;;  %v18896_v5 = vpop.f32.mrb[247].mxu1  ;;  %v7786_v6 = vld [vmem:[%s21182_s7 + $0xb0] sm:$0xff] }
 0x50b   : > { %v7815_v27 = vadd.f32 %v7783_v24, %v7242_v10  ;;  %v18925_v56 = vpop.f32.mrb[1].mxu0 }
 0x50c   : > { %v7245_v37 = vpop.f32.mrb[2].mxu0  ;;  %19218 = vmatmul.mubr.msk.bf16.vlgmr.msra.gmra.mrb[96].mxu1 %vm1278_vm7, %v22469_v53  ;;  %v10477_v54 = vpop.permute.xlu1 %10476 }
 0x50d   : > { %7847 = vst.msk [vmem:[%s21182_s7 + $0x98] sm:$0xff] %vm2659_vm8, %v7815_v27  ;;  %v18926_v7 = vpop.f32.mrb[3].mxu0  ;;  %19228 = vmatpush3.bf16.msra.mxu1 %v10055_v51  ;;  %19229 = vmatprep.mubr.msk.bf16.mxu1 %vm20090_vm0, %v20091_v1  ;;  %v7791_v27 = vld [vmem:[%s21182_s7 + $0xd8] sm:$0xff]  ;;  %v10742_v51 = vpop.permute.xlu0 %10741 }
 0x50e   : > { %19239 = vmatprep.subr.bf16.mxu1 %v20091_v1 }
 0x50f   : > { %19248 = vmatmul.mubr.msk.bf16.vlgmr.msra.gmra.mrb[108].mxu0 %vm1278_vm7, %v22469_v53  ;;  %v7113_v4 = vpop.f32.mrb[248].mxu1 }
 0x510   : > { %19258 = vmatpush3.bf16.msra.mxu0 %v10320_v14  ;;  %19259 = vmatprep.mubr.msk.bf16.mxu0 %vm20090_vm0, %v20091_v1  ;;  %v7812_v23 = vadd.f32 %v7780_v33, %v7113_v4  ;;  %v18907_v39 = vpop.f32.mrb[249].mxu1  ;;  %v10479_v14 = vsel %vm1282_vm6, %v10477_v54, 0  ;;  %v10744_v33 = vsel %vm1282_vm6, %v10742_v51, 0 }
 0x511   : > { %19269 = vmatprep.subr.bf16.mxu0 %v20091_v1  ;;  %v7116_v34 = vpop.f32.mrb[250].mxu1  ;;  %v10583_v39 = vpop.permute.xlu1 %10582 }
 0x512   : > { %v7328_v40 = vpop.f32.mrb[4].mxu0  ;;  %7844 = vst.msk [vmem:[%s21182_s7 + $0x80] sm:$0xff] %vm2659_vm8, %v7812_v23  ;;  %v18908_v19 = vpop.f32.mrb[251].mxu1  ;;  %v7788_v23 = vld [vmem:[%s21182_s7 + $0xc0] sm:$0xff] }
 0x513   : > { %v7817_v13 = vadd.f32 %v7785_v44, %v7328_v40  ;;  %v18937_v63 = vpop.f32.mrb[5].mxu0 }
 0x514   : > { %v7331_v49 = vpop.f32.mrb[6].mxu0  ;;  %19230 = vmatmul.mubr.msk.bf16.vlgmr.msra.gmra.mrb[100].mxu1 %vm1278_vm7, %v22469_v53 }
 0x515   : > { %7849 = vst.msk [vmem:[%s21182_s7 + $0xa8] sm:$0xff] %vm2659_vm8, %v7817_v13  ;;  %v18938_v2 = vpop.f32.mrb[7].mxu0  ;;  %19240 = vmatpush3.bf16.msra.mxu1 %v10161_v28  ;;  %19241 = vmatprep.mubr.msk.bf16.mxu1 %vm20090_vm0, %v20091_v1  ;;  %v7793_v13 = vld [vmem:[%s21182_s7 + $0xe8] sm:$0xff]  ;;  %v10848_v28 = vpop.permute.xlu0 %10847 }
 0x516   : > { %19251 = vmatprep.subr.bf16.mxu1 %v20091_v1 }
 0x517   : > { %19260 = vmatmul.mubr.msk.bf16.vlgmr.msra.gmra.mrb[112].mxu0 %vm1278_vm7, %v22469_v53  ;;  %v7199_v9 = vpop.f32.mrb[252].mxu1 }
 0x518   : > { %19270 = vmatpush3.bf16.msra.mxu0 %v10426_v58  ;;  %19271 = vmatprep.mubr.msk.bf16.mxu0 %vm20090_vm0, %v20091_v1  ;;  %v7814_v59 = vadd.f32 %v7782_v11, %v7199_v9  ;;  %v18919_v0 = vpop.f32.mrb[253].mxu1  ;;  %v10585_v58 = vsel %vm1282_vm6, %v10583_v39, 0  ;;  %v10850_v11 = vsel %vm1282_vm6, %v10848_v28, 0 }
 0x519   : > { %19281 = vmatprep.subr.bf16.mxu0 %v20091_v1  ;;  %v7202_v16 = vpop.f32.mrb[254].mxu1  ;;  %v10689_v0 = vpop.permute.xlu1 %10688 }
 0x51a   : > { %v7414_v42 = vpop.f32.mrb[8].mxu0  ;;  %7846 = vst.msk [vmem:[%s21182_s7 + $0x90] sm:$0xff] %vm2659_vm8, %v7814_v59  ;;  %v18920_v35 = vpop.f32.mrb[255].mxu1  ;;  %v7790_v59 = vld [vmem:[%s21182_s7 + $0xd0] sm:$0xff] }
 0x51b   : > { %v7819_v62 = vadd.f32 %v7787_v57, %v7414_v42  ;;  %v18949_v47 = vpop.f32.mrb[9].mxu0 }
 0x51c   : > { %v7417_v52 = vpop.f32.mrb[10].mxu0  ;;  %19242 = vmatmul.mubr.msk.bf16.vlgmr.msra.gmra.mrb[104].mxu1 %vm1278_vm7, %v22469_v53 }
 0x51d   : > { %7851 = vst.msk [vmem:[%s21182_s7 + $0xb8] sm:$0xff] %vm2659_vm8, %v7819_v62  ;;  %v18950_v17 = vpop.f32.mrb[11].mxu0  ;;  %19252 = vmatpush3.bf16.msra.mxu1 %v10267_v12  ;;  %19253 = vmatprep.mubr.msk.bf16.mxu1 %vm20090_vm0, %v20091_v1  ;;  %v7795_v62 = vld [vmem:[%s21182_s7 + $0xf8] sm:$0xff]  ;;  %v10954_v12 = vpop.permute.xlu0 %10953 }
 0x51e   : > { %19263 = vmatprep.subr.bf16.mxu1 %v20091_v1 }
 0x51f   : > { %19272 = vmatmul.mubr.msk.bf16.vlgmr.msra.gmra.mrb[116].mxu0 %vm1278_vm7, %v22469_v53  ;;  %v7285_v3 = vpop.f32.mrb[0].mxu1 }
 0x520   : > { %19282 = vmatpush3.bf16.msra.mxu0 %v10532_v29  ;;  %19283 = vmatprep.mubr.msk.bf16.mxu0 %vm20090_vm0, %v20091_v1  ;;  %v7816_v18 = vadd.f32 %v7784_v31, %v7285_v3  ;;  %v18931_v60 = vpop.f32.mrb[1].mxu1  ;;  %v10691_v29 = vsel %vm1282_vm6, %v10689_v0, 0  ;;  %v10956_v31 = vsel %vm1282_vm6, %v10954_v12, 0 }
 0x521   : > { %19293 = vmatprep.subr.bf16.mxu0 %v20091_v1  ;;  %v7288_v45 = vpop.f32.mrb[2].mxu1  ;;  %v10795_v60 = vpop.permute.xlu1 %10794 }
 0x522   : > { %v7500_v50 = vpop.f32.mrb[12].mxu0  ;;  %7848 = vst.msk [vmem:[%s21182_s7 + $0xa0] sm:$0xff] %vm2659_vm8, %v7816_v18  ;;  %v18932_v30 = vpop.f32.mrb[3].mxu1  ;;  %v7792_v18 = vld [vmem:[%s21182_s7 + $0xe0] sm:$0xff] }
 0x523   : > { %v7821_v8 = vadd.f32 %v7789_v36, %v7500_v50  ;;  %v18961_v32 = vpop.f32.mrb[13].mxu0 }
 0x524   : > { %v7503_v55 = vpop.f32.mrb[14].mxu0  ;;  %19254 = vmatmul.mubr.msk.bf16.vlgmr.msra.gmra.mrb[108].mxu1 %vm1278_vm7, %v22469_v53 }
 0x525   : > { %7853 = vst.msk [vmem:[%s21182_s7 + $0xc8] sm:$0xff] %vm2659_vm8, %v7821_v8  ;;  %v18962_v21 = vpop.f32.mrb[15].mxu0  ;;  %19264 = vmatpush3.bf16.msra.mxu1 %v10373_v26  ;;  %19265 = vmatprep.mubr.msk.bf16.mxu1 %vm20090_vm0, %v20091_v1  ;;  %v9594_v8 = vld [vmem:[%s21182_s7 + $0x8] sm:$0xff]  ;;  %v11060_v26 = vpop.permute.xlu0 %11059 }
 0x526   : > { %19275 = vmatprep.subr.bf16.mxu1 %v20091_v1 }
 0x527   : > { %19284 = vmatmul.mubr.msk.bf16.vlgmr.msra.gmra.mrb[120].mxu0 %vm1278_vm7, %v22469_v53  ;;  %v7371_v61 = vpop.f32.mrb[4].mxu1 }
 0x528   : > { %19294 = vmatpush3.bf16.msra.mxu0 %v10638_v25  ;;  %19295 = vmatprep.mubr.msk.bf16.mxu0 %vm20090_vm0, %v20091_v1  ;;  %v7818_v10 = vadd.f32 %v7786_v6, %v7371_v61  ;;  %v18943_v24 = vpop.f32.mrb[5].mxu1  ;;  %v10797_v25 = vsel %vm1282_vm6, %v10795_v60, 0  ;;  %v11062_v6 = vsel %vm1282_vm6, %v11060_v26, 0 }
 0x529   : > { %19305 = vmatprep.subr.bf16.mxu0 %v20091_v1  ;;  %v7374_v5 = vpop.f32.mrb[6].mxu1  ;;  %v10901_v24 = vpop.permute.xlu1 %10900 }
 0x52a   : > { %v7586_v22 = vpop.f32.mrb[16].mxu0  ;;  %7850 = vst.msk [vmem:[%s21182_s7 + $0xb0] sm:$0xff] %vm2659_vm8, %v7818_v10  ;;  %v18944_v20 = vpop.f32.mrb[7].mxu1  ;;  %v7794_v10 = vld [vmem:[%s21182_s7 + $0xf0] sm:$0xff] }
 0x52b   : > { %v7823_v56 = vadd.f32 %v7791_v27, %v7586_v22  ;;  %v18973_v37 = vpop.f32.mrb[17].mxu0 }
 0x52c   : > { %v7589_v7 = vpop.f32.mrb[18].mxu0  ;;  %19266 = vmatmul.mubr.msk.bf16.vlgmr.msra.gmra.mrb[112].mxu1 %vm1278_vm7, %v22469_v53 }
 0x52d   : > { %7855 = vst.msk [vmem:[%s21182_s7 + $0xd8] sm:$0xff] %vm2659_vm8, %v7823_v56  ;;  %v18974_v4 = vpop.f32.mrb[19].mxu0  ;;  %19276 = vmatpush3.bf16.msra.mxu1 %v10479_v14  ;;  %19277 = vmatprep.mubr.msk.bf16.mxu1 %vm20090_vm0, %v20091_v1  ;;  %v9596_v56 = vld [vmem:[%s21182_s7 + $0x18] sm:$0xff]  ;;  %v11166_v14 = vpop.permute.xlu0 %11165 }
 0x52e   : > { %19287 = vmatprep.subr.bf16.mxu1 %v20091_v1 }
 0x52f   : > { %19296 = vmatmul.mubr.msk.bf16.vlgmr.msra.gmra.mrb[124].mxu0 %vm1278_vm7, %v22469_v53  ;;  %v7457_v46 = vpop.f32.mrb[8].mxu1 }
 0x530   : > { %19306 = vmatpush3.bf16.msra.mxu0 %v10744_v33  ;;  %19307 = vmatprep.mubr.msk.bf16.mxu0 %vm20090_vm0, %v20091_v1  ;;  %v7820_v40 = vadd.f32 %v7788_v23, %v7457_v46  ;;  %v18955_v44 = vpop.f32.mrb[9].mxu1  ;;  %v10903_v33 = vsel %vm1282_vm6, %v10901_v24, 0  ;;  %v11168_v23 = vsel %vm1282_vm6, %v11166_v14, 0 }
 0x531   : > { %19317 = vmatprep.subr.bf16.mxu0 %v20091_v1  ;;  %v7460_v19 = vpop.f32.mrb[10].mxu1  ;;  %v11007_v44 = vpop.permute.xlu1 %11006 }
 0x532   : > { %v7672_v34 = vpop.f32.mrb[20].mxu0  ;;  %7852 = vst.msk [vmem:[%s21182_s7 + $0xc0] sm:$0xff] %vm2659_vm8, %v7820_v40  ;;  %v18956_v41 = vpop.f32.mrb[11].mxu1  ;;  %v9593_v40 = vld [vmem:[%s21182_s7] sm:$0xff] }
 0x533   : > { %v7825_v63 = vadd.f32 %v7793_v13, %v7672_v34  ;;  %v18985_v49 = vpop.f32.mrb[21].mxu0 }
 0x534   : > { %v7675_v2 = vpop.f32.mrb[22].mxu0  ;;  %19278 = vmatmul.mubr.msk.bf16.vlgmr.msra.gmra.mrb[116].mxu1 %vm1278_vm7, %v22469_v53 }
 0x535   : > { %7857 = vst.msk [vmem:[%s21182_s7 + $0xe8] sm:$0xff] %vm2659_vm8, %v7825_v63  ;;  %v18986_v9 = vpop.f32.mrb[23].mxu0  ;;  %19288 = vmatpush3.bf16.msra.mxu1 %v10585_v58  ;;  %19289 = vmatprep.mubr.msk.bf16.mxu1 %vm20090_vm0, %v20091_v1  ;;  %v9598_v63 = vld [vmem:[%s21182_s7 + $0x28] sm:$0xff]  ;;  %v11272_v58 = vpop.permute.xlu0 %11271 }
 0x536   : > { %19299 = vmatprep.subr.bf16.mxu1 %v20091_v1 }
 0x537   : > { %19308 = vmatmul.mubr.msk.bf16.vlgmr.msra.gmra.mrb[128].mxu0 %vm1278_vm7, %v22469_v53  ;;  %v7543_v48 = vpop.f32.mrb[12].mxu1 }
 0x538   : > { %19318 = vmatpush3.bf16.msra.mxu0 %v10850_v11  ;;  %19319 = vmatprep.mubr.msk.bf16.mxu0 %vm20090_vm0, %v20091_v1  ;;  %v7822_v42 = vadd.f32 %v7790_v59, %v7543_v48  ;;  %v18967_v57 = vpop.f32.mrb[13].mxu1  ;;  %v11009_v11 = vsel %vm1282_vm6, %v11007_v44, 0  ;;  %v11274_v59 = vsel %vm1282_vm6, %v11272_v58, 0 }
 0x539   : > { %19329 = vmatprep.subr.bf16.mxu0 %v20091_v1  ;;  %v7546_v35 = vpop.f32.mrb[14].mxu1  ;;  %v11113_v57 = vpop.permute.xlu1 %11112 }
 0x53a   : > { %v7758_v16 = vpop.f32.mrb[24].mxu0  ;;  %7854 = vst.msk [vmem:[%s21182_s7 + $0xd0] sm:$0xff] %vm2659_vm8, %v7822_v42  ;;  %v18968_v15 = vpop.f32.mrb[15].mxu1  ;;  %v9595_v42 = vld [vmem:[%s21182_s7 + $0x10] sm:$0xff] }
 0x53b   : > { %v7827_v47 = vadd.f32 %v7795_v62, %v7758_v16  ;;  %v18997_v52 = vpop.f32.mrb[25].mxu0 }
 0x53c   : > { %v7761_v17 = vpop.f32.mrb[26].mxu0  ;;  %19290 = vmatmul.mubr.msk.bf16.vlgmr.msra.gmra.mrb[120].mxu1 %vm1278_vm7, %v22469_v53 }
 0x53d   : > { %7859 = vst.msk [vmem:[%s21182_s7 + $0xf8] sm:$0xff] %vm2659_vm8, %v7827_v47  ;;  %v18998_v3 = vpop.f32.mrb[27].mxu0  ;;  %19300 = vmatpush3.bf16.msra.mxu1 %v10691_v29  ;;  %19301 = vmatprep.mubr.msk.bf16.mxu1 %vm20090_vm0, %v20091_v1  ;;  %v9600_v47 = vld [vmem:[%s21182_s7 + $0x38] sm:$0xff]  ;;  %v11378_v29 = vpop.permute.xlu0 %11377 }
 0x53e   : > { %19311 = vmatprep.subr.bf16.mxu1 %v20091_v1 }
 0x53f   : > { %19320 = vmatmul.mubr.msk.bf16.vlgmr.msra.gmra.mrb[132].mxu0 %vm1278_vm7, %v22469_v53  ;;  %v7629_v43 = vpop.f32.mrb[16].mxu1 }
 0x540   : > { %19330 = vmatpush3.bf16.msra.mxu0 %v10956_v31  ;;  %19331 = vmatprep.mubr.msk.bf16.mxu0 %vm20090_vm0, %v20091_v1  ;;  %v7824_v50 = vadd.f32 %v7792_v18, %v7629_v43  ;;  %v18979_v36 = vpop.f32.mrb[17].mxu1  ;;  %v11115_v31 = vsel %vm1282_vm6, %v11113_v57, 0  ;;  %v11380_v18 = vsel %vm1282_vm6, %v11378_v29, 0 }
 0x541   : > { %19341 = vmatprep.subr.bf16.mxu0 %v20091_v1  ;;  %v7632_v30 = vpop.f32.mrb[18].mxu1  ;;  %v11219_v36 = vpop.permute.xlu1 %11218 }
 0x542   : > { %v7997_v45 = vpop.f32.mrb[28].mxu0  ;;  %7856 = vst.msk [vmem:[%s21182_s7 + $0xe0] sm:$0xff] %vm2659_vm8, %v7824_v50  ;;  %v18980_v38 = vpop.f32.mrb[19].mxu1  ;;  %v9597_v50 = vld [vmem:[%s21182_s7 + $0x20] sm:$0xff] }
 0x543   : > { %v9626_v32 = vadd.f32 %v9594_v8, %v7997_v45  ;;  %v19009_v55 = vpop.f32.mrb[29].mxu0 }
 0x544   : > { %v8000_v21 = vpop.f32.mrb[30].mxu0  ;;  %19302 = vmatmul.mubr.msk.bf16.vlgmr.msra.gmra.mrb[124].mxu1 %vm1278_vm7, %v22469_v53 }
 0x545   : > { %9658 = vst.msk [vmem:[%s21182_s7 + $0x8] sm:$0xff] %vm2659_vm8, %v9626_v32  ;;  %v19010_v61 = vpop.f32.mrb[31].mxu0  ;;  %19312 = vmatpush3.bf16.msra.mxu1 %v10797_v25  ;;  %19313 = vmatprep.mubr.msk.bf16.mxu1 %vm20090_vm0, %v20091_v1  ;;  %v9602_v32 = vld [vmem:[%s21182_s7 + $0x48] sm:$0xff]  ;;  %v11520_v25 = vld [vmem:[#allocation4 + $0x6] sm:$0x3] }
 0x546   : > { %19323 = vmatprep.subr.bf16.mxu1 %v20091_v1 }
 0x547   : > { %19332 = vmatmul.mubr.msk.bf16.vlgmr.msra.gmra.mrb[136].mxu0 %vm1278_vm7, %v22469_v53  ;;  %v7715_v54 = vpop.f32.mrb[20].mxu1 }
 0x548   : > { %19342 = vmatpush3.bf16.msra.mxu0 %v11062_v6  ;;  %19343 = vmatprep.mubr.msk.bf16.mxu0 %vm20090_vm0, %v20091_v1  ;;  %v7826_v22 = vadd.f32 %v7794_v10, %v7715_v54  ;;  %v18991_v27 = vpop.f32.mrb[21].mxu1  ;;  %v11221_v6 = vsel %vm1282_vm6, %v11219_v36, 0  ;;  %v11600_v10 = vsel %vm1282_vm6, %v11520_v25, 0 }
 0x549   : > { %19353 = vmatprep.subr.bf16.mxu0 %v20091_v1  ;;  %v7718_v20 = vpop.f32.mrb[22].mxu1  ;;  %v11325_v27 = vpop.permute.xlu1 %11324 }
 0x54a   : > { %v8103_v5 = vpop.f32.mrb[32].mxu0  ;;  %7858 = vst.msk [vmem:[%s21182_s7 + $0xf0] sm:$0xff] %vm2659_vm8, %v7826_v22  ;;  %v18992_v51 = vpop.f32.mrb[23].mxu1  ;;  %v9599_v22 = vld [vmem:[%s21182_s7 + $0x30] sm:$0xff] }
 0x54b   : > { %v9628_v37 = vadd.f32 %v9596_v56, %v8103_v5  ;;  %v19021_v7 = vpop.f32.mrb[33].mxu0 }
 0x54c   : > { %v8106_v4 = vpop.f32.mrb[34].mxu0  ;;  %19314 = vmatmul.mubr.msk.bf16.vlgmr.msra.gmra.mrb[128].mxu1 %vm1278_vm7, %v22469_v53 }
 0x54d   : > { %9660 = vst.msk [vmem:[%s21182_s7 + $0x18] sm:$0xff] %vm2659_vm8, %v9628_v37  ;;  %v19022_v46 = vpop.f32.mrb[35].mxu0  ;;  %19324 = vmatpush3.bf16.msra.mxu1 %v10903_v33  ;;  %19325 = vmatprep.mubr.msk.bf16.mxu1 %vm20090_vm0, %v20091_v1  ;;  %v9604_v37 = vld [vmem:[%s21182_s7 + $0x58] sm:$0xff]  ;;  %v22762_v33 = vld [vmem:[%s23962_s3 + $0x18] sm:$0xf] }
 0x54e   : > { %19335 = vmatprep.subr.bf16.mxu1 %v20091_v1  ;;  %v11522_v46 = vld [vmem:[#allocation4 + $0xa] sm:$0x3] }
 0x54f   : > { %19344 = vmatmul.mubr.msk.bf16.vlgmr.msra.gmra.mrb[140].mxu0 %vm1278_vm7, %v22469_v53  ;;  %v7944_v39 = vpop.f32.mrb[24].mxu1  ;;  %v11686_v44 = vsel %vm1282_vm6, %v11522_v46, 0 }
 0x550   : > { %19354 = vmatpush3.bf16.msra.mxu0 %v11168_v23  ;;  %19355 = vmatprep.mubr.msk.bf16.mxu0 %vm20090_vm0, %v20091_v1  ;;  %v9625_v34 = vadd.f32 %v9593_v40, %v7944_v39  ;;  %v19003_v13 = vpop.f32.mrb[25].mxu1  ;;  %v11327_v39 = vsel %vm1282_vm6, %v11325_v27, 0 }
 0x551   : > { %19365 = vmatprep.subr.bf16.mxu0 %v20091_v1  ;;  %v7947_v41 = vpop.f32.mrb[26].mxu1  ;;  %v9601_v13 = vld [vmem:[%s21182_s7 + $0x40] sm:$0xff] }
 0x552   : > { %v8209_v19 = vpop.f32.mrb[36].mxu0  ;;  %9657 = vst.msk [vmem:[%s21182_s7] sm:$0xff] %vm2659_vm8, %v9625_v34  ;;  %v19004_v28 = vpop.f32.mrb[27].mxu1 }
 0x553   : > { %v9630_v49 = vadd.f32 %v9598_v63, %v8209_v19  ;;  %v19033_v2 = vpop.f32.mrb[37].mxu0  ;;  %v11519_v28 = vld [vmem:[#allocation4 + $0x4] sm:$0x3] }
 0x554   : > { %v8212_v9 = vpop.f32.mrb[38].mxu0  ;;  %19326 = vmatmul.mubr.msk.bf16.vlgmr.msra.gmra.mrb[132].mxu1 %vm1278_vm7, %v22469_v53 }
 0x555   : > { %9662 = vst.msk [vmem:[%s21182_s7 + $0x28] sm:$0xff] %vm2659_vm8, %v9630_v49  ;;  %v19034_v48 = vpop.f32.mrb[39].mxu0  ;;  %19336 = vmatpush3.bf16.msra.mxu1 %v11009_v11  ;;  %19337 = vmatprep.mubr.msk.bf16.mxu1 %vm20090_vm0, %v20091_v1  ;;  %v9606_v49 = vld [vmem:[%s21182_s7 + $0x68] sm:$0xff] }
 0x556   : > { %19347 = vmatprep.subr.bf16.mxu1 %v20091_v1  ;;  %v11524_v48 = vld [vmem:[#allocation4 + $0xe] sm:$0x3] }
 0x557   : > { %19356 = vmatmul.mubr.msk.bf16.vlgmr.msra.gmra.mrb[144].mxu0 %vm1278_vm7, %v22469_v53  ;;  %v8050_v0 = vpop.f32.mrb[28].mxu1  ;;  %v11772_v57 = vsel %vm1282_vm6, %v11524_v48, 0 }
 0x558   : > { %19366 = vmatpush3.bf16.msra.mxu0 %v11274_v59  ;;  %19367 = vmatprep.mubr.msk.bf16.mxu0 %vm20090_vm0, %v20091_v1  ;;  %v9627_v16 = vadd.f32 %v9595_v42, %v8050_v0  ;;  %v19015_v62 = vpop.f32.mrb[29].mxu1  ;;  %v11557_v0 = vsel %vm1282_vm6, %v11519_v28, 0 }
 0x559   : > { %19377 = vmatprep.subr.bf16.mxu0 %v20091_v1  ;;  %v8053_v15 = vpop.f32.mrb[30].mxu1 }
 0x55a   : > { %v8315_v35 = vpop.f32.mrb[40].mxu0  ;;  %9659 = vst.msk [vmem:[%s21182_s7 + $0x10] sm:$0xff] %vm2659_vm8, %v9627_v16  ;;  %v19016_v12 = vpop.f32.mrb[31].mxu1  ;;  %v9608_v15 = vld [vmem:[%s21182_s7 + $0x78] sm:$0xff] }
 0x55b   : > { %v9632_v52 = vadd.f32 %v9600_v47, %v8315_v35  ;;  %v19045_v17 = vpop.f32.mrb[41].mxu0 }
 0x55c   : > { %v8318_v3 = vpop.f32.mrb[42].mxu0  ;;  %19338 = vmatmul.mubr.msk.bf16.vlgmr.msra.gmra.mrb[136].mxu1 %vm1278_vm7, %v22469_v53 }
 0x55d   : > { %9664 = vst.msk [vmem:[%s21182_s7 + $0x38] sm:$0xff] %vm2659_vm8, %v9632_v52  ;;  %v19046_v43 = vpop.f32.mrb[43].mxu0  ;;  %19348 = vmatpush3.bf16.msra.mxu1 %v11115_v31  ;;  %19349 = vmatprep.mubr.msk.bf16.mxu1 %vm20090_vm0, %v20091_v1  ;;  %v11521_v52 = vld [vmem:[#allocation4 + $0x8] sm:$0x3]  ;;  %v11526_v31 = vld [vmem:[#allocation4 + $0x12] sm:$0x3] }
 0x55e   : > { %19359 = vmatprep.subr.bf16.mxu1 %v20091_v1 }
 0x55f   : > { %19368 = vmatmul.mubr.msk.bf16.vlgmr.msra.gmra.mrb[148].mxu0 %vm1278_vm7, %v22469_v53  ;;  %v8156_v60 = vpop.f32.mrb[32].mxu1 }
 0x560   : > { %19378 = vmatpush3.bf16.msra.mxu0 %v11380_v18  ;;  %19379 = vmatprep.mubr.msk.bf16.mxu0 %vm20090_vm0, %v20091_v1  ;;  %v9629_v45 = vadd.f32 %v9597_v50, %v8156_v60  ;;  %v19027_v8 = vpop.f32.mrb[33].mxu1  ;;  %v11643_v18 = vsel %vm1282_vm6, %v11521_v52, 0  ;;  %v11858_v50 = vsel %vm1282_vm6, %v11526_v31, 0 }
 0x561   : > { %19389 = vmatprep.subr.bf16.mxu0 %v20091_v1  ;;  %v8159_v38 = vpop.f32.mrb[34].mxu1 }
 0x562   : > { %v8421_v30 = vpop.f32.mrb[44].mxu0  ;;  %9661 = vst.msk [vmem:[%s21182_s7 + $0x20] sm:$0xff] %vm2659_vm8, %v9629_v45  ;;  %v19028_v26 = vpop.f32.mrb[35].mxu1  ;;  %v9605_v45 = vld [vmem:[%s21182_s7 + $0x60] sm:$0xff]  ;;  %v9610_v38 = vld [vmem:[%s21182_s7 + $0x88] sm:$0xff] }
 0x563   : > { %v9634_v55 = vadd.f32 %v9602_v32, %v8421_v30  ;;  %v19057_v21 = vpop.f32.mrb[45].mxu0 }
 0x564   : > { %v8424_v61 = vpop.f32.mrb[46].mxu0  ;;  %19350 = vmatmul.mubr.msk.bf16.vlgmr.msra.gmra.mrb[140].mxu1 %vm1278_vm7, %v22469_v53 }
 0x565   : > { %9666 = vst.msk [vmem:[%s21182_s7 + $0x48] sm:$0xff] %vm2659_vm8, %v9634_v55  ;;  %v19058_v54 = vpop.f32.mrb[47].mxu0  ;;  %19360 = vmatpush3.bf16.msra.mxu1 %v11221_v6  ;;  %19361 = vmatprep.mubr.msk.bf16.mxu1 %vm20090_vm0, %v20091_v1  ;;  %v11523_v55 = vld [vmem:[#allocation4 + $0xc] sm:$0x3]  ;;  %v11528_v6 = vld [vmem:[#allocation4 + $0x16] sm:$0x3] }
 0x566   : > { %19371 = vmatprep.subr.bf16.mxu1 %v20091_v1 }
 0x567   : > { %19380 = vmatmul.mubr.msk.bf16.vlgmr.msra.gmra.mrb[152].mxu0 %vm1278_vm7, %v22469_v53  ;;  %v8262_v24 = vpop.f32.mrb[36].mxu1 }
 0x568   : > { %19390 = vmatpush3.bf16.msra.mxu0 %v11600_v10  ;;  %19391 = vmatprep.mubr.msk.bf16.mxu0 %vm20090_vm0, %v20091_v1  ;;  %v9631_v5 = vadd.f32 %v9599_v22, %v8262_v24  ;;  %v19039_v56 = vpop.f32.mrb[37].mxu1  ;;  %v11729_v10 = vsel %vm1282_vm6, %v11523_v55, 0  ;;  %v11944_v22 = vsel %vm1282_vm6, %v11528_v6, 0 }
 0x569   : > { %19401 = vmatprep.subr.bf16.mxu0 %v20091_v1  ;;  %v8265_v51 = vpop.f32.mrb[38].mxu1 }
 0x56a   : > { %v8527_v20 = vpop.f32.mrb[48].mxu0  ;;  %9663 = vst.msk [vmem:[%s21182_s7 + $0x30] sm:$0xff] %vm2659_vm8, %v9631_v5  ;;  %v19040_v14 = vpop.f32.mrb[39].mxu1  ;;  %v9607_v5 = vld [vmem:[%s21182_s7 + $0x70] sm:$0xff]  ;;  %v9612_v51 = vld [vmem:[%s21182_s7 + $0x98] sm:$0xff] }
 0x56b   : > { %v9636_v7 = vadd.f32 %v9604_v37, %v8527_v20  ;;  %v19069_v4 = vpop.f32.mrb[49].mxu0 }
 0x56c   : > { %v8530_v23 = vpop.f32.mrb[50].mxu0  ;;  %19362 = vmatmul.mubr.msk.bf16.vlgmr.msra.gmra.mrb[144].mxu1 %vm1278_vm7, %v22469_v53 }
 0x56d   : > { %9668 = vst.msk [vmem:[%s21182_s7 + $0x58] sm:$0xff] %vm2659_vm8, %v9636_v7  ;;  %v19070_v40 = vpop.f32.mrb[51].mxu0  ;;  %19372 = vmatpush3.bf16.msra.mxu1 %v11327_v39  ;;  %19373 = vmatprep.mubr.msk.bf16.mxu1 %vm20090_vm0, %v20091_v1  ;;  %v11525_v7 = vld [vmem:[#allocation4 + $0x10] sm:$0x3]  ;;  %v11530_v39 = vld [vmem:[#allocation4 + $0x1a] sm:$0x3] }
 0x56e   : > { %19383 = vmatprep.subr.bf16.mxu1 %v20091_v1 }
 0x56f   : > { %19392 = vmatmul.mubr.msk.bf16.vlgmr.msra.gmra.mrb[156].mxu0 %vm1278_vm7, %v22762_v33  ;;  %v8368_v34 = vpop.f32.mrb[40].mxu1 }
 0x570   : > { %19402 = vmatpush3.bf16.msra.mxu0 %v11686_v44  ;;  %19403 = vmatprep.mubr.msk.bf16.mxu0 %vm20090_vm0, %v20091_v1  ;;  %v9633_v19 = vadd.f32 %v9601_v13, %v8368_v34  ;;  %v19051_v63 = vpop.f32.mrb[41].mxu1  ;;  %v11815_v44 = vsel %vm1282_vm6, %v11525_v7, 0  ;;  %v12030_v13 = vsel %vm1282_vm6, %v11530_v39, 0 }
 0x571   : > { %19413 = vmatprep.subr.bf16.mxu0 %v20091_v1  ;;  %v8371_v2 = vpop.f32.mrb[42].mxu1  ;;  %v9609_v63 = vld [vmem:[%s21182_s7 + $0x80] sm:$0xff] }
 0x572   : > { %v8633_v41 = vpop.f32.mrb[52].mxu0  ;;  %9665 = vst.msk [vmem:[%s21182_s7 + $0x40] sm:$0xff] %vm2659_vm8, %v9633_v19  ;;  %v19052_v9 = vpop.f32.mrb[43].mxu1  ;;  %v9614_v2 = vld [vmem:[%s21182_s7 + $0xa8] sm:$0xff] }
 0x573   : > { %v9638_v58 = vadd.f32 %v9606_v49, %v8633_v41  ;;  %v19081_v11 = vpop.f32.mrb[53].mxu0 }
 0x574   : > { %v8636_v59 = vpop.f32.mrb[54].mxu0  ;;  %19374 = vmatmul.mubr.msk.bf16.vlgmr.msra.gmra.mrb[148].mxu1 %vm1278_vm7, %v22469_v53  ;;  %v9603_v53 = vld [vmem:[%s21182_s7 + $0x50] sm:$0xff] }
 0x575   : > { %9670 = vst.msk [vmem:[%s21182_s7 + $0x68] sm:$0xff] %vm2659_vm8, %v9638_v58  ;;  %v19082_v42 = vpop.f32.mrb[55].mxu0  ;;  %19384 = vmatpush3.bf16.msra.mxu1 %v11557_v0  ;;  %19385 = vmatprep.mubr.msk.bf16.mxu1 %vm20090_vm0, %v20091_v1  ;;  %v11527_v58 = vld [vmem:[#allocation4 + $0x14] sm:$0x3]  ;;  %v11532_v0 = vld [vmem:[#allocation4 + $0x1e] sm:$0x3] }
 0x576   : > { %19395 = vmatprep.subr.bf16.mxu1 %v20091_v1 }
 0x577   : > { %19404 = vmatmul.mubr.msk.bf16.vlgmr.msra.gmra.mrb[160].mxu0 %vm1278_vm7, %v22762_v33  ;;  %v8474_v16 = vpop.f32.mrb[44].mxu1 }
 0x578   : > { %19414 = vmatpush3.bf16.msra.mxu0 %v11772_v57  ;;  %19415 = vmatprep.mubr.msk.bf16.mxu0 %vm20090_vm0, %v20091_v1  ;;  %v9635_v62 = vadd.f32 %v9603_v53, %v8474_v16  ;;  %v19063_v35 = vpop.f32.mrb[45].mxu1  ;;  %v11901_v57 = vsel %vm1282_vm6, %v11527_v58, 0  ;;  %v12116_v53 = vsel %vm1282_vm6, %v11532_v0, 0 }
 0x579   : > { %19425 = vmatprep.subr.bf16.mxu0 %v20091_v1  ;;  %v8477_v12 = vpop.f32.mrb[46].mxu1  ;;  %v9611_v35 = vld [vmem:[%s21182_s7 + $0x90] sm:$0xff] }
 0x57a   : > { %v8739_v47 = vpop.f32.mrb[56].mxu0  ;;  %9667 = vst.msk [vmem:[%s21182_s7 + $0x50] sm:$0xff] %vm2659_vm8, %v9635_v62  ;;  %v19064_v29 = vpop.f32.mrb[47].mxu1  ;;  %v9616_v12 = vld [vmem:[%s21182_s7 + $0xb8] sm:$0xff] }
 0x57b   : > { %v9640_v17 = vadd.f32 %v9608_v15, %v8739_v47  ;;  %v19093_v3 = vpop.f32.mrb[57].mxu0 }
 0x57c   : > { %v8742_v43 = vpop.f32.mrb[58].mxu0  ;;  %19386 = vmatmul.mubr.msk.bf16.vlgmr.msra.gmra.mrb[152].mxu1 %vm1278_vm7, %v22762_v33 }
 0x57d   : > { %9672 = vst.msk [vmem:[%s21182_s7 + $0x78] sm:$0xff] %vm2659_vm8, %v9640_v17  ;;  %v19094_v60 = vpop.f32.mrb[59].mxu0  ;;  %19396 = vmatpush3.bf16.msra.mxu1 %v11643_v18  ;;  %19397 = vmatprep.mubr.msk.bf16.mxu1 %vm20090_vm0, %v20091_v1  ;;  %v11529_v17 = vld [vmem:[#allocation4 + $0x18] sm:$0x3]  ;;  %v11534_v18 = vld [vmem:[#allocation4 + $0x22] sm:$0x3] }
 0x57e   : > { %19407 = vmatprep.subr.bf16.mxu1 %v20091_v1 }
 0x57f   : > { %19416 = vmatmul.mubr.msk.bf16.vlgmr.msra.gmra.mrb[164].mxu0 %vm1278_vm7, %v22762_v33  ;;  %v8580_v36 = vpop.f32.mrb[48].mxu1 }
 0x580   : > { %19426 = vmatpush3.bf16.msra.mxu0 %v11858_v50  ;;  %19427 = vmatprep.mubr.msk.bf16.mxu0 %vm20090_vm0, %v20091_v1  ;;  %v9637_v8 = vadd.f32 %v9605_v45, %v8580_v36  ;;  %v19075_v30 = vpop.f32.mrb[49].mxu1  ;;  %v11987_v50 = vsel %vm1282_vm6, %v11529_v17, 0  ;;  %v12202_v45 = vsel %vm1282_vm6, %v11534_v18, 0 }
 0x581   : > { %19437 = vmatprep.subr.bf16.mxu0 %v20091_v1  ;;  %v8583_v26 = vpop.f32.mrb[50].mxu1  ;;  %v9613_v30 = vld [vmem:[%s21182_s7 + $0xa0] sm:$0xff] }
 0x582   : > { %v8845_v32 = vpop.f32.mrb[60].mxu0  ;;  %9669 = vst.msk [vmem:[%s21182_s7 + $0x60] sm:$0xff] %vm2659_vm8, %v9637_v8  ;;  %v19076_v25 = vpop.f32.mrb[51].mxu1  ;;  %v9618_v26 = vld [vmem:[%s21182_s7 + $0xc8] sm:$0xff] }
 0x583   : > { %v9642_v21 = vadd.f32 %v9610_v38, %v8845_v32  ;;  %v19105_v61 = vpop.f32.mrb[61].mxu0 }
 0x584   : > { %v8848_v54 = vpop.f32.mrb[62].mxu0  ;;  %19398 = vmatmul.mubr.msk.bf16.vlgmr.msra.gmra.mrb[156].mxu1 %vm1278_vm7, %v22762_v33 }
 0x585   : > { %9674 = vst.msk [vmem:[%s21182_s7 + $0x88] sm:$0xff] %vm2659_vm8, %v9642_v21  ;;  %v19106_v24 = vpop.f32.mrb[63].mxu0  ;;  %19408 = vmatpush3.bf16.msra.mxu1 %v11729_v10  ;;  %19409 = vmatprep.mubr.msk.bf16.mxu1 %vm20090_vm0, %v20091_v1  ;;  %v11531_v21 = vld [vmem:[#allocation4 + $0x1c] sm:$0x3]  ;;  %v11536_v10 = vld [vmem:[#allocation4 + $0x26] sm:$0x3] }
 0x586   : > { %19419 = vmatprep.subr.bf16.mxu1 %v20091_v1 }
 0x587   : > { %19428 = vmatmul.mubr.msk.bf16.vlgmr.msra.gmra.mrb[168].mxu0 %vm1278_vm7, %v22762_v33  ;;  %v8686_v27 = vpop.f32.mrb[52].mxu1 }
 0x588   : > { %19438 = vmatpush3.bf16.msra.mxu0 %v11944_v22  ;;  %19439 = vmatprep.mubr.msk.bf16.mxu0 %vm20090_vm0, %v20091_v1  ;;  %v9639_v56 = vadd.f32 %v9607_v5, %v8686_v27  ;;  %v19087_v20 = vpop.f32.mrb[53].mxu1  ;;  %v12073_v22 = vsel %vm1282_vm6, %v11531_v21, 0  ;;  %v12288_v5 = vsel %vm1282_vm6, %v11536_v10, 0 }
 0x589   : > { %19449 = vmatprep.subr.bf16.mxu0 %v20091_v1  ;;  %v8689_v14 = vpop.f32.mrb[54].mxu1  ;;  %v9615_v20 = vld [vmem:[%s21182_s7 + $0xb0] sm:$0xff] }
 0x58a   : > { %v8951_v37 = vpop.f32.mrb[64].mxu0  ;;  %9671 = vst.msk [vmem:[%s21182_s7 + $0x70] sm:$0xff] %vm2659_vm8, %v9639_v56  ;;  %v19088_v46 = vpop.f32.mrb[55].mxu1  ;;  %v9620_v14 = vld [vmem:[%s21182_s7 + $0xd8] sm:$0xff] }
 0x58b   : > { %v9644_v4 = vadd.f32 %v9612_v51, %v8951_v37  ;;  %v19117_v23 = vpop.f32.mrb[65].mxu0 }
 0x58c   : > { %v8954_v40 = vpop.f32.mrb[66].mxu0  ;;  %19410 = vmatmul.mubr.msk.bf16.vlgmr.msra.gmra.mrb[160].mxu1 %vm1278_vm7, %v22762_v33 }
 0x58d   : > { %9676 = vst.msk [vmem:[%s21182_s7 + $0x98] sm:$0xff] %vm2659_vm8, %v9644_v4  ;;  %v19118_v34 = vpop.f32.mrb[67].mxu0  ;;  %19420 = vmatpush3.bf16.msra.mxu1 %v11815_v44  ;;  %19421 = vmatprep.mubr.msk.bf16.mxu1 %vm20090_vm0, %v20091_v1  ;;  %v11533_v4 = vld [vmem:[#allocation4 + $0x20] sm:$0x3]  ;;  %v11538_v44 = vld [vmem:[#allocation4 + $0x2a] sm:$0x3] }
 0x58e   : > { %19431 = vmatprep.subr.bf16.mxu1 %v20091_v1 }
 0x58f   : > { %19440 = vmatmul.mubr.msk.bf16.vlgmr.msra.gmra.mrb[172].mxu0 %vm1278_vm7, %v22762_v33  ;;  %v8792_v19 = vpop.f32.mrb[56].mxu1 }
 0x590   : > { %19450 = vmatpush3.bf16.msra.mxu0 %v12030_v13  ;;  %19451 = vmatprep.mubr.msk.bf16.mxu0 %vm20090_vm0, %v20091_v1  ;;  %v9641_v41 = vadd.f32 %v9609_v63, %v8792_v19  ;;  %v19099_v49 = vpop.f32.mrb[57].mxu1  ;;  %v12159_v13 = vsel %vm1282_vm6, %v11533_v4, 0  ;;  %v12374_v63 = vsel %vm1282_vm6, %v11538_v44, 0 }
 0x591   : > { %19461 = vmatprep.subr.bf16.mxu0 %v20091_v1  ;;  %v8795_v9 = vpop.f32.mrb[58].mxu1  ;;  %v9617_v49 = vld [vmem:[%s21182_s7 + $0xc0] sm:$0xff] }
 0x592   : > { %v9057_v28 = vpop.f32.mrb[68].mxu0  ;;  %9673 = vst.msk [vmem:[%s21182_s7 + $0x80] sm:$0xff] %vm2659_vm8, %v9641_v41  ;;  %v19100_v48 = vpop.f32.mrb[59].mxu1  ;;  %v9622_v9 = vld [vmem:[%s21182_s7 + $0xe8] sm:$0xff] }
 0x593   : > { %v9646_v11 = vadd.f32 %v9614_v2, %v9057_v28  ;;  %v19129_v59 = vpop.f32.mrb[69].mxu0 }
 0x594   : > { %v9060_v42 = vpop.f32.mrb[70].mxu0  ;;  %19422 = vmatmul.mubr.msk.bf16.vlgmr.msra.gmra.mrb[164].mxu1 %vm1278_vm7, %v22762_v33 }
 0x595   : > { %9678 = vst.msk [vmem:[%s21182_s7 + $0xa8] sm:$0xff] %vm2659_vm8, %v9646_v11  ;;  %v19130_v16 = vpop.f32.mrb[71].mxu0  ;;  %19432 = vmatpush3.bf16.msra.mxu1 %v11901_v57  ;;  %19433 = vmatprep.mubr.msk.bf16.mxu1 %vm20090_vm0, %v20091_v1  ;;  %v11535_v11 = vld [vmem:[#allocation4 + $0x24] sm:$0x3]  ;;  %v11540_v57 = vld [vmem:[#allocation4 + $0x2e] sm:$0x3] }
 0x596   : > { %19443 = vmatprep.subr.bf16.mxu1 %v20091_v1 }
 0x597   : > { %19452 = vmatmul.mubr.msk.bf16.vlgmr.msra.gmra.mrb[176].mxu0 %vm1278_vm7, %v22762_v33  ;;  %v8898_v62 = vpop.f32.mrb[60].mxu1 }
 0x598   : > { %19462 = vmatpush3.bf16.msra.mxu0 %v12116_v53  ;;  %19463 = vmatprep.mubr.msk.bf16.mxu0 %vm20090_vm0, %v20091_v1  ;;  %v9643_v47 = vadd.f32 %v9611_v35, %v8898_v62  ;;  %v19111_v15 = vpop.f32.mrb[61].mxu1  ;;  %v12245_v53 = vsel %vm1282_vm6, %v11535_v11, 0  ;;  %v12460_v35 = vsel %vm1282_vm6, %v11540_v57, 0 }
 0x599   : > { %19473 = vmatprep.subr.bf16.mxu0 %v20091_v1  ;;  %v8901_v29 = vpop.f32.mrb[62].mxu1  ;;  %v9619_v15 = vld [vmem:[%s21182_s7 + $0xd0] sm:$0xff] }
 0x59a   : > { %v9163_v52 = vpop.f32.mrb[72].mxu0  ;;  %9675 = vst.msk [vmem:[%s21182_s7 + $0x90] sm:$0xff] %vm2659_vm8, %v9643_v47  ;;  %v19112_v31 = vpop.f32.mrb[63].mxu1  ;;  %v9624_v29 = vld [vmem:[%s21182_s7 + $0xf8] sm:$0xff] }
 0x59b   : > { %v9648_v3 = vadd.f32 %v9616_v12, %v9163_v52  ;;  %v19141_v43 = vpop.f32.mrb[73].mxu0 }
 0x59c   : > { %v9166_v60 = vpop.f32.mrb[74].mxu0  ;;  %19434 = vmatmul.mubr.msk.bf16.vlgmr.msra.gmra.mrb[168].mxu1 %vm1278_vm7, %v22762_v33 }
 0x59d   : > { %9680 = vst.msk [vmem:[%s21182_s7 + $0xb8] sm:$0xff] %vm2659_vm8, %v9648_v3  ;;  %v19142_v36 = vpop.f32.mrb[75].mxu0  ;;  %19444 = vmatpush3.bf16.msra.mxu1 %v11987_v50  ;;  %19445 = vmatprep.mubr.msk.bf16.mxu1 %vm20090_vm0, %v20091_v1  ;;  %v11537_v3 = vld [vmem:[#allocation4 + $0x28] sm:$0x3]  ;;  %v11542_v50 = vld [vmem:[#allocation4 + $0x32] sm:$0x3] }
 0x59e   : > { %19455 = vmatprep.subr.bf16.mxu1 %v20091_v1 }
 0x59f   : > { %19464 = vmatmul.mubr.msk.bf16.vlgmr.msra.gmra.mrb[180].mxu0 %vm1278_vm7, %v22762_v33  ;;  %v9004_v8 = vpop.f32.mrb[64].mxu1 }
 0x5a0   : > { %19474 = vmatpush3.bf16.msra.mxu0 %v12202_v45  ;;  %19475 = vmatprep.mubr.msk.bf16.mxu0 %vm20090_vm0, %v20091_v1  ;;  %v9645_v32 = vadd.f32 %v9613_v30, %v9004_v8  ;;  %v19123_v38 = vpop.f32.mrb[65].mxu1  ;;  %v12331_v45 = vsel %vm1282_vm6, %v11537_v3, 0  ;;  %v12546_v30 = vsel %vm1282_vm6, %v11542_v50, 0 }
 0x5a1   : > { %19485 = vmatprep.subr.bf16.mxu0 %v20091_v1  ;;  %v9007_v25 = vpop.f32.mrb[66].mxu1  ;;  %v9621_v38 = vld [vmem:[%s21182_s7 + $0xe0] sm:$0xff] }
 0x5a2   : > { %v9269_v55 = vpop.f32.mrb[76].mxu0  ;;  %9677 = vst.msk [vmem:[%s21182_s7 + $0xa0] sm:$0xff] %vm2659_vm8, %v9645_v32  ;;  %v19124_v6 = vpop.f32.mrb[67].mxu1  ;;  %v11423_v25 = vld [vmem:[%s21182_s7 + $0x8] sm:$0xff] }
 0x5a3   : > { %v9650_v61 = vadd.f32 %v9618_v26, %v9269_v55  ;;  %v19153_v54 = vpop.f32.mrb[77].mxu0 }
 0x5a4   : > { %v9272_v24 = vpop.f32.mrb[78].mxu0  ;;  %19446 = vmatmul.mubr.msk.bf16.vlgmr.msra.gmra.mrb[172].mxu1 %vm1278_vm7, %v22762_v33 }
 0x5a5   : > { %9682 = vst.msk [vmem:[%s21182_s7 + $0xc8] sm:$0xff] %vm2659_vm8, %v9650_v61  ;;  %v19154_v27 = vpop.f32.mrb[79].mxu0  ;;  %19456 = vmatpush3.bf16.msra.mxu1 %v12073_v22  ;;  %19457 = vmatprep.mubr.msk.bf16.mxu1 %vm20090_vm0, %v20091_v1  ;;  %v11539_v61 = vld [vmem:[#allocation4 + $0x2c] sm:$0x3]  ;;  %v11544_v22 = vld [vmem:[#allocation4 + $0x36] sm:$0x3] }
 0x5a6   : > { %19467 = vmatprep.subr.bf16.mxu1 %v20091_v1 }
 0x5a7   : > { %19476 = vmatmul.mubr.msk.bf16.vlgmr.msra.gmra.mrb[184].mxu0 %vm1278_vm7, %v22762_v33  ;;  %v9110_v56 = vpop.f32.mrb[68].mxu1 }
 0x5a8   : > { %19486 = vmatpush3.bf16.msra.mxu0 %v12288_v5  ;;  %19487 = vmatprep.mubr.msk.bf16.mxu0 %vm20090_vm0, %v20091_v1  ;;  %v9647_v37 = vadd.f32 %v9615_v20, %v9110_v56  ;;  %v19135_v51 = vpop.f32.mrb[69].mxu1  ;;  %v12417_v5 = vsel %vm1282_vm6, %v11539_v61, 0  ;;  %v12632_v20 = vsel %vm1282_vm6, %v11544_v22, 0 }
 0x5a9   : > { %19497 = vmatprep.subr.bf16.mxu0 %v20091_v1  ;;  %v9113_v46 = vpop.f32.mrb[70].mxu1  ;;  %v9623_v51 = vld [vmem:[%s21182_s7 + $0xf0] sm:$0xff] }
 0x5aa   : > { %v9375_v7 = vpop.f32.mrb[80].mxu0  ;;  %9679 = vst.msk [vmem:[%s21182_s7 + $0xb0] sm:$0xff] %vm2659_vm8, %v9647_v37  ;;  %v19136_v39 = vpop.f32.mrb[71].mxu1  ;;  %v11425_v46 = vld [vmem:[%s21182_s7 + $0x18] sm:$0xff] }
 0x5ab   : > { %v9652_v23 = vadd.f32 %v9620_v14, %v9375_v7  ;;  %v19165_v40 = vpop.f32.mrb[81].mxu0 }
 0x5ac   : > { %v9378_v34 = vpop.f32.mrb[82].mxu0  ;;  %19458 = vmatmul.mubr.msk.bf16.vlgmr.msra.gmra.mrb[176].mxu1 %vm1278_vm7, %v22762_v33 }
 0x5ad   : > { %9684 = vst.msk [vmem:[%s21182_s7 + $0xd8] sm:$0xff] %vm2659_vm8, %v9652_v23  ;;  %v19166_v19 = vpop.f32.mrb[83].mxu0  ;;  %19468 = vmatpush3.bf16.msra.mxu1 %v12159_v13  ;;  %19469 = vmatprep.mubr.msk.bf16.mxu1 %vm20090_vm0, %v20091_v1  ;;  %v11541_v23 = vld [vmem:[#allocation4 + $0x30] sm:$0x3]  ;;  %v11546_v13 = vld [vmem:[#allocation4 + $0x3a] sm:$0x3] }
 0x5ae   : > { %19479 = vmatprep.subr.bf16.mxu1 %v20091_v1 }
 0x5af   : > { %19488 = vmatmul.mubr.msk.bf16.vlgmr.msra.gmra.mrb[188].mxu0 %vm1278_vm7, %v22762_v33  ;;  %v9216_v41 = vpop.f32.mrb[72].mxu1 }
 0x5b0   : > { %19498 = vmatpush3.bf16.msra.mxu0 %v12374_v63  ;;  %19499 = vmatprep.mubr.msk.bf16.mxu0 %vm20090_vm0, %v20091_v1  ;;  %v9649_v28 = vadd.f32 %v9617_v49, %v9216_v41  ;;  %v19147_v2 = vpop.f32.mrb[73].mxu1  ;;  %v12503_v63 = vsel %vm1282_vm6, %v11541_v23, 0  ;;  %v12718_v49 = vsel %vm1282_vm6, %v11546_v13, 0 }
 0x5b1   : > { %19509 = vmatprep.subr.bf16.mxu0 %v20091_v1  ;;  %v9219_v48 = vpop.f32.mrb[74].mxu1  ;;  %v11422_v2 = vld [vmem:[%s21182_s7] sm:$0xff] }
 0x5b2   : > { %v9481_v58 = vpop.f32.mrb[84].mxu0  ;;  %9681 = vst.msk [vmem:[%s21182_s7 + $0xc0] sm:$0xff] %vm2659_vm8, %v9649_v28  ;;  %v19148_v0 = vpop.f32.mrb[75].mxu1  ;;  %v11427_v48 = vld [vmem:[%s21182_s7 + $0x28] sm:$0xff] }
 0x5b3   : > { %v9654_v59 = vadd.f32 %v9622_v9, %v9481_v58  ;;  %v19177_v42 = vpop.f32.mrb[85].mxu0 }
 0x5b4   : > { %v9484_v16 = vpop.f32.mrb[86].mxu0  ;;  %19470 = vmatmul.mubr.msk.bf16.vlgmr.msra.gmra.mrb[180].mxu1 %vm1278_vm7, %v22762_v33 }
 0x5b5   : > { %9686 = vst.msk [vmem:[%s21182_s7 + $0xe8] sm:$0xff] %vm2659_vm8, %v9654_v59  ;;  %v19178_v62 = vpop.f32.mrb[87].mxu0  ;;  %19480 = vmatpush3.bf16.msra.mxu1 %v12245_v53  ;;  %19481 = vmatprep.mubr.msk.bf16.mxu1 %vm20090_vm0, %v20091_v1  ;;  %v11543_v59 = vld [vmem:[#allocation4 + $0x34] sm:$0x3]  ;;  %v11548_v53 = vld [vmem:[#allocation4 + $0x3e] sm:$0x3] }
 0x5b6   : > { %19491 = vmatprep.subr.bf16.mxu1 %v20091_v1 }
 0x5b7   : > { %19500 = vmatmul.mubr.msk.bf16.vlgmr.msra.gmra.mrb[192].mxu0 %vm1278_vm7, %v22762_v33  ;;  %v9322_v47 = vpop.f32.mrb[76].mxu1 }
 0x5b8   : > { %19510 = vmatpush3.bf16.msra.mxu0 %v12460_v35  ;;  %19511 = vmatprep.mubr.msk.bf16.mxu0 %vm20090_vm0, %v20091_v1  ;;  %v9651_v52 = vadd.f32 %v9619_v15, %v9322_v47  ;;  %v19159_v12 = vpop.f32.mrb[77].mxu1  ;;  %v12589_v35 = vsel %vm1282_vm6, %v11543_v59, 0  ;;  %v12804_v15 = vsel %vm1282_vm6, %v11548_v53, 0 }
 0x5b9   : > { %19521 = vmatprep.subr.bf16.mxu0 %v20091_v1  ;;  %v9325_v31 = vpop.f32.mrb[78].mxu1  ;;  %v11424_v12 = vld [vmem:[%s21182_s7 + $0x10] sm:$0xff] }
 0x5ba   : > { %v9587_v17 = vpop.f32.mrb[88].mxu0  ;;  %9683 = vst.msk [vmem:[%s21182_s7 + $0xd0] sm:$0xff] %vm2659_vm8, %v9651_v52  ;;  %v19160_v18 = vpop.f32.mrb[79].mxu1  ;;  %v11429_v31 = vld [vmem:[%s21182_s7 + $0x38] sm:$0xff] }
 0x5bb   : > { %v9656_v43 = vadd.f32 %v9624_v29, %v9587_v17  ;;  %v19189_v60 = vpop.f32.mrb[89].mxu0 }
 0x5bc   : > { %v9590_v36 = vpop.f32.mrb[90].mxu0  ;;  %19482 = vmatmul.mubr.msk.bf16.vlgmr.msra.gmra.mrb[184].mxu1 %vm1278_vm7, %v22762_v33 }
 0x5bd   : > { %9688 = vst.msk [vmem:[%s21182_s7 + $0xf8] sm:$0xff] %vm2659_vm8, %v9656_v43  ;;  %v19190_v8 = vpop.f32.mrb[91].mxu0  ;;  %19492 = vmatpush3.bf16.msra.mxu1 %v12331_v45  ;;  %19493 = vmatprep.mubr.msk.bf16.mxu1 %vm20090_vm0, %v20091_v1  ;;  %v11545_v43 = vld [vmem:[#allocation4 + $0x38] sm:$0x3]  ;;  %v11550_v45 = vld [vmem:[#allocation4 + $0x42] sm:$0x3] }
 0x5be   : > { %19503 = vmatprep.subr.bf16.mxu1 %v20091_v1 }
 0x5bf   : > { %19512 = vmatmul.mubr.msk.bf16.vlgmr.msra.gmra.mrb[196].mxu0 %vm1278_vm7, %v22762_v33  ;;  %v9428_v32 = vpop.f32.mrb[80].mxu1 }
 0x5c0   : > { %19522 = vmatpush3.bf16.msra.mxu0 %v12546_v30  ;;  %19523 = vmatprep.mubr.msk.bf16.mxu0 %vm20090_vm0, %v20091_v1  ;;  %v9653_v55 = vadd.f32 %v9621_v38, %v9428_v32  ;;  %v19171_v26 = vpop.f32.mrb[81].mxu1  ;;  %v12675_v30 = vsel %vm1282_vm6, %v11545_v43, 0  ;;  %v12890_v38 = vsel %vm1282_vm6, %v11550_v45, 0 }
 0x5c1   : > { %19533 = vmatprep.subr.bf16.mxu0 %v20091_v1  ;;  %v9431_v6 = vpop.f32.mrb[82].mxu1  ;;  %v11426_v26 = vld [vmem:[%s21182_s7 + $0x20] sm:$0xff] }
 0x5c2   : > { %v9826_v21 = vpop.f32.mrb[92].mxu0  ;;  %9685 = vst.msk [vmem:[%s21182_s7 + $0xe0] sm:$0xff] %vm2659_vm8, %v9653_v55  ;;  %v19172_v10 = vpop.f32.mrb[83].mxu1  ;;  %v11431_v6 = vld [vmem:[%s21182_s7 + $0x48] sm:$0xff] }
 0x5c3   : > { %v11455_v54 = vadd.f32 %v11423_v25, %v9826_v21  ;;  %v19201_v24 = vpop.f32.mrb[93].mxu0 }
 0x5c4   : > { %v9829_v27 = vpop.f32.mrb[94].mxu0  ;;  %19494 = vmatmul.mubr.msk.bf16.vlgmr.msra.gmra.mrb[188].mxu1 %vm1278_vm7, %v22762_v33 }
 0x5c5   : > { %11487 = vst.msk [vmem:[%s21182_s7 + $0x8] sm:$0xff] %vm2659_vm8, %v11455_v54  ;;  %v19202_v56 = vpop.f32.mrb[95].mxu0  ;;  %19504 = vmatpush3.bf16.msra.mxu1 %v12417_v5  ;;  %19505 = vmatprep.mubr.msk.bf16.mxu1 %vm20090_vm0, %v20091_v1  ;;  %v11547_v54 = vld [vmem:[#allocation4 + $0x3c] sm:$0x3]  ;;  %v13127_v5 = vpop.permute.xlu0 %13126 }
 0x5c6   : > { %19515 = vmatprep.subr.bf16.mxu1 %v20091_v1 }
 0x5c7   : > { %19524 = vmatmul.mubr.msk.bf16.vlgmr.msra.gmra.mrb[200].mxu0 %vm1278_vm7, %v22762_v33  ;;  %v9534_v37 = vpop.f32.mrb[84].mxu1 }
 0x5c8   : > { %19534 = vmatpush3.bf16.msra.mxu0 %v12632_v20  ;;  %19535 = vmatprep.mubr.msk.bf16.mxu0 %vm20090_vm0, %v20091_v1  ;;  %v9655_v7 = vadd.f32 %v9623_v51, %v9534_v37  ;;  %v19183_v14 = vpop.f32.mrb[85].mxu1  ;;  %v12761_v20 = vsel %vm1282_vm6, %v11547_v54, 0  ;;  %v13129_v51 = vsel %vm1282_vm6, %v13127_v5, 0 }
 0x5c9   : > { %19545 = vmatprep.subr.bf16.mxu0 %v20091_v1  ;;  %v9537_v39 = vpop.f32.mrb[86].mxu1  ;;  %v11428_v14 = vld [vmem:[%s21182_s7 + $0x30] sm:$0xff] }
 0x5ca   : > { %v9932_v4 = vpop.f32.mrb[96].mxu0  ;;  %9687 = vst.msk [vmem:[%s21182_s7 + $0xf0] sm:$0xff] %vm2659_vm8, %v9655_v7  ;;  %v19184_v44 = vpop.f32.mrb[87].mxu1  ;;  %v11433_v39 = vld [vmem:[%s21182_s7 + $0x58] sm:$0xff] }
 0x5cb   : > { %v11457_v40 = vadd.f32 %v11425_v46, %v9932_v4  ;;  %v19213_v34 = vpop.f32.mrb[97].mxu0 }
 0x5cc   : > { %v9935_v19 = vpop.f32.mrb[98].mxu0  ;;  %19506 = vmatmul.mubr.msk.bf16.vlgmr.msra.gmra.mrb[192].mxu1 %vm1278_vm7, %v22762_v33 }
 0x5cd   : > { %11489 = vst.msk [vmem:[%s21182_s7 + $0x18] sm:$0xff] %vm2659_vm8, %v11457_v40  ;;  %v19214_v41 = vpop.f32.mrb[99].mxu0  ;;  %19516 = vmatpush3.bf16.msra.mxu1 %v12503_v63  ;;  %19517 = vmatprep.mubr.msk.bf16.mxu1 %vm20090_vm0, %v20091_v1  ;;  %v11549_v40 = vld [vmem:[#allocation4 + $0x40] sm:$0x3]  ;;  %v13233_v63 = vpop.permute.xlu0 %13232 }
 0x5ce   : > { %19527 = vmatprep.subr.bf16.mxu1 %v20091_v1  ;;  %v23055_v41 = vld [vmem:[%s23962_s3 + $0x1c] sm:$0xf] }
 0x5cf   : > { %19536 = vmatmul.mubr.msk.bf16.vlgmr.msra.gmra.mrb[204].mxu0 %vm1278_vm7, %v22762_v33  ;;  %v9773_v28 = vpop.f32.mrb[88].mxu1 }
 0x5d0   : > { %19546 = vmatpush3.bf16.msra.mxu0 %v12718_v49  ;;  %19547 = vmatprep.mubr.msk.bf16.mxu0 %vm20090_vm0, %v20091_v1  ;;  %v11454_v58 = vadd.f32 %v11422_v2, %v9773_v28  ;;  %v19195_v9 = vpop.f32.mrb[89].mxu1  ;;  %v12847_v28 = vsel %vm1282_vm6, %v11549_v40, 0 }
 0x5d1   : > { %19557 = vmatprep.subr.bf16.mxu0 %v20091_v1  ;;  %v9776_v0 = vpop.f32.mrb[90].mxu1 }
 0x5d2   : > { %v10038_v11 = vpop.f32.mrb[100].mxu0  ;;  %11486 = vst.msk [vmem:[%s21182_s7] sm:$0xff] %vm2659_vm8, %v11454_v58  ;;  %v19196_v57 = vpop.f32.mrb[91].mxu1  ;;  %v13235_v58 = vsel %vm1282_vm6, %v13233_v63, 0 }
 0x5d3   : > { %v11459_v42 = vadd.f32 %v11427_v48, %v10038_v11  ;;  %v19225_v16 = vpop.f32.mrb[101].mxu0  ;;  %v11430_v11 = vld [vmem:[%s21182_s7 + $0x40] sm:$0xff]  ;;  %v13071_v48 = vpop.permute.xlu1 %13070  ;;  %v11435_v57 = vld [vmem:[%s21182_s7 + $0x68] sm:$0xff] }
 0x5d4   : > { %v10041_v62 = vpop.f32.mrb[102].mxu0  ;;  %19518 = vmatmul.mubr.msk.bf16.vlgmr.msra.gmra.mrb[196].mxu1 %vm1278_vm7, %v22762_v33 }
 0x5d5   : > { %11491 = vst.msk [vmem:[%s21182_s7 + $0x28] sm:$0xff] %vm2659_vm8, %v11459_v42  ;;  %v19226_v47 = vpop.f32.mrb[103].mxu0  ;;  %19528 = vmatpush3.bf16.msra.mxu1 %v12589_v35  ;;  %19529 = vmatprep.mubr.msk.bf16.mxu1 %vm20090_vm0, %v20091_v1 }
 0x5d6   : > { %19539 = vmatprep.subr.bf16.mxu1 %v20091_v1  ;;  %v13339_v47 = vpop.permute.xlu0 %13338 }
 0x5d7   : > { %19548 = vmatmul.mubr.msk.bf16.vlgmr.msra.gmra.mrb[208].mxu0 %vm1278_vm7, %v22762_v33  ;;  %v9879_v52 = vpop.f32.mrb[92].mxu1 }
 0x5d8   : > { %19558 = vmatpush3.bf16.msra.mxu0 %v12804_v15  ;;  %19559 = vmatprep.mubr.msk.bf16.mxu0 %vm20090_vm0, %v20091_v1  ;;  %v11456_v17 = vadd.f32 %v11424_v12, %v9879_v52  ;;  %v19207_v29 = vpop.f32.mrb[93].mxu1  ;;  %v13076_v52 = vsel %vm1282_vm6, %v13071_v48, 0 }
 0x5d9   : > { %19569 = vmatprep.subr.bf16.mxu0 %v20091_v1  ;;  %v9882_v18 = vpop.f32.mrb[94].mxu1 }
 0x5da   : > { %v10144_v3 = vpop.f32.mrb[104].mxu0  ;;  %11488 = vst.msk [vmem:[%s21182_s7 + $0x10] sm:$0xff] %vm2659_vm8, %v11456_v17  ;;  %v19208_v50 = vpop.f32.mrb[95].mxu1  ;;  %v13341_v17 = vsel %vm1282_vm6, %v13339_v47, 0 }
 0x5db   : > { %v11461_v60 = vadd.f32 %v11429_v31, %v10144_v3  ;;  %v19237_v36 = vpop.f32.mrb[105].mxu0  ;;  %v11432_v3 = vld [vmem:[%s21182_s7 + $0x50] sm:$0xff] }
 0x5dc   : > { %v10147_v8 = vpop.f32.mrb[106].mxu0  ;;  %19530 = vmatmul.mubr.msk.bf16.vlgmr.msra.gmra.mrb[200].mxu1 %vm1278_vm7, %v22762_v33 }
 0x5dd   : > { %11493 = vst.msk [vmem:[%s21182_s7 + $0x38] sm:$0xff] %vm2659_vm8, %v11461_v60  ;;  %v19238_v32 = vpop.f32.mrb[107].mxu0  ;;  %19540 = vmatpush3.bf16.msra.mxu1 %v12675_v30  ;;  %19541 = vmatprep.mubr.msk.bf16.mxu1 %vm20090_vm0, %v20091_v1  ;;  %v11437_v60 = vld [vmem:[%s21182_s7 + $0x78] sm:$0xff]  ;;  %v13445_v30 = vpop.permute.xlu0 %13444 }
 0x5de   : > { %19551 = vmatprep.subr.bf16.mxu1 %v20091_v1 }
 0x5df   : > { %19560 = vmatmul.mubr.msk.bf16.vlgmr.msra.gmra.mrb[212].mxu0 %vm1278_vm7, %v22762_v33  ;;  %v9985_v55 = vpop.f32.mrb[96].mxu1 }
 0x5e0   : > { %19570 = vmatpush3.bf16.msra.mxu0 %v12890_v38  ;;  %19571 = vmatprep.mubr.msk.bf16.mxu0 %vm20090_vm0, %v20091_v1  ;;  %v11458_v21 = vadd.f32 %v11426_v26, %v9985_v55  ;;  %v19219_v25 = vpop.f32.mrb[97].mxu1  ;;  %v13447_v26 = vsel %vm1282_vm6, %v13445_v30, 0 }
 0x5e1   : > { %19581 = vmatprep.subr.bf16.mxu0 %v20091_v1  ;;  %v9988_v10 = vpop.f32.mrb[98].mxu1  ;;  %v11434_v25 = vld [vmem:[%s21182_s7 + $0x60] sm:$0xff] }
 0x5e2   : > { %v10250_v61 = vpop.f32.mrb[108].mxu0  ;;  %11490 = vst.msk [vmem:[%s21182_s7 + $0x20] sm:$0xff] %vm2659_vm8, %v11458_v21  ;;  %v19220_v22 = vpop.f32.mrb[99].mxu1 }
 0x5e3   : > { %v11463_v24 = vadd.f32 %v11431_v6, %v10250_v61  ;;  %v19249_v27 = vpop.f32.mrb[109].mxu0 }
 0x5e4   : > { %v10253_v56 = vpop.f32.mrb[110].mxu0  ;;  %19542 = vmatmul.mubr.msk.bf16.vlgmr.msra.gmra.mrb[204].mxu1 %vm1278_vm7, %v22762_v33 }
 0x5e5   : > { %11495 = vst.msk [vmem:[%s21182_s7 + $0x48] sm:$0xff] %vm2659_vm8, %v11463_v24  ;;  %v19250_v37 = vpop.f32.mrb[111].mxu0  ;;  %19552 = vmatpush3.bf16.msra.mxu1 %v12761_v20  ;;  %19553 = vmatprep.mubr.msk.bf16.mxu1 %vm20090_vm0, %v20091_v1  ;;  %v11439_v24 = vld [vmem:[%s21182_s7 + $0x88] sm:$0xff]  ;;  %v13551_v20 = vpop.permute.xlu0 %13550 }
 0x5e6   : > { %19563 = vmatprep.subr.bf16.mxu1 %v20091_v1 }
 0x5e7   : > { %19572 = vmatmul.mubr.msk.bf16.vlgmr.msra.gmra.mrb[216].mxu0 %vm1278_vm7, %v22762_v33  ;;  %v10091_v7 = vpop.f32.mrb[100].mxu1 }
 0x5e8   : > { %19582 = vmatpush3.bf16.msra.mxu0 %v13129_v51  ;;  %19583 = vmatprep.mubr.msk.bf16.mxu0 %vm20090_vm0, %v20091_v1  ;;  %v11460_v4 = vadd.f32 %v11428_v14, %v10091_v7  ;;  %v19231_v46 = vpop.f32.mrb[101].mxu1  ;;  %v13553_v14 = vsel %vm1282_vm6, %v13551_v20, 0 }
 0x5e9   : > { %19593 = vmatprep.subr.bf16.mxu0 %v20091_v1  ;;  %v10094_v44 = vpop.f32.mrb[102].mxu1  ;;  %v11436_v46 = vld [vmem:[%s21182_s7 + $0x70] sm:$0xff] }
 0x5ea   : > { %v10356_v23 = vpop.f32.mrb[112].mxu0  ;;  %11492 = vst.msk [vmem:[%s21182_s7 + $0x30] sm:$0xff] %vm2659_vm8, %v11460_v4  ;;  %v19232_v13 = vpop.f32.mrb[103].mxu1 }
 0x5eb   : > { %v11465_v34 = vadd.f32 %v11433_v39, %v10356_v23  ;;  %v19261_v19 = vpop.f32.mrb[113].mxu0 }
 0x5ec   : > { %v10359_v49 = vpop.f32.mrb[114].mxu0  ;;  %19554 = vmatmul.mubr.msk.bf16.vlgmr.msra.gmra.mrb[208].mxu1 %vm1278_vm7, %v22762_v33 }
 0x5ed   : > { %11497 = vst.msk [vmem:[%s21182_s7 + $0x58] sm:$0xff] %vm2659_vm8, %v11465_v34  ;;  %v19262_v2 = vpop.f32.mrb[115].mxu0  ;;  %19564 = vmatpush3.bf16.msra.mxu1 %v12847_v28  ;;  %19565 = vmatprep.mubr.msk.bf16.mxu1 %vm20090_vm0, %v20091_v1  ;;  %v11441_v34 = vld [vmem:[%s21182_s7 + $0x98] sm:$0xff]  ;;  %v13657_v28 = vpop.permute.xlu0 %13656 }
 0x5ee   : > { %19575 = vmatprep.subr.bf16.mxu1 %v20091_v1 }
 0x5ef   : > { %19584 = vmatmul.mubr.msk.bf16.vlgmr.msra.gmra.mrb[220].mxu0 %vm1278_vm7, %v23055_v41  ;;  %v10197_v9 = vpop.f32.mrb[104].mxu1 }
 0x5f0   : > { %19594 = vmatpush3.bf16.msra.mxu0 %v13235_v58  ;;  %19595 = vmatprep.mubr.msk.bf16.mxu0 %vm20090_vm0, %v20091_v1  ;;  %v11462_v59 = vadd.f32 %v11430_v11, %v10197_v9  ;;  %v19243_v0 = vpop.f32.mrb[105].mxu1  ;;  %v13659_v11 = vsel %vm1282_vm6, %v13657_v28, 0 }
 0x5f1   : > { %19605 = vmatprep.subr.bf16.mxu0 %v20091_v1  ;;  %v10200_v16 = vpop.f32.mrb[106].mxu1 }
 0x5f2   : > { %v10462_v42 = vpop.f32.mrb[116].mxu0  ;;  %11494 = vst.msk [vmem:[%s21182_s7 + $0x40] sm:$0xff] %vm2659_vm8, %v11462_v59  ;;  %v19244_v62 = vpop.f32.mrb[107].mxu1  ;;  %v11438_v59 = vld [vmem:[%s21182_s7 + $0x80] sm:$0xff] }
 0x5f3   : > { %v11467_v53 = vadd.f32 %v11435_v57, %v10462_v42  ;;  %v19273_v35 = vpop.f32.mrb[117].mxu0 }
 0x5f4   : > { %v10465_v15 = vpop.f32.mrb[118].mxu0  ;;  %19566 = vmatmul.mubr.msk.bf16.vlgmr.msra.gmra.mrb[212].mxu1 %vm1278_vm7, %v22762_v33  ;;  %v13180_v33 = vpop.permute.xlu1 %13179 }
 0x5f5   : > { %11499 = vst.msk [vmem:[%s21182_s7 + $0x68] sm:$0xff] %vm2659_vm8, %v11467_v53  ;;  %v19274_v12 = vpop.f32.mrb[119].mxu0  ;;  %19576 = vmatpush3.bf16.msra.mxu1 %v13076_v52  ;;  %19577 = vmatprep.mubr.msk.bf16.mxu1 %vm20090_vm0, %v20091_v1  ;;  %v13182_v38 = vsel %vm1282_vm6, %v13180_v33, 0  ;;  %v11443_v53 = vld [vmem:[%s21182_s7 + $0xa8] sm:$0xff]  ;;  %v13763_v52 = vpop.permute.xlu0 %13762 }
 0x5f6   : > { %19587 = vmatprep.subr.bf16.mxu1 %v20091_v1 }
 0x5f7   : > { %19596 = vmatmul.mubr.msk.bf16.vlgmr.msra.gmra.mrb[224].mxu0 %vm1278_vm7, %v23055_v41  ;;  %v10303_v29 = vpop.f32.mrb[108].mxu1 }
 0x5f8   : > { %19606 = vmatpush3.bf16.msra.mxu0 %v13341_v17  ;;  %19607 = vmatprep.mubr.msk.bf16.mxu0 %vm20090_vm0, %v20091_v1  ;;  %v11464_v31 = vadd.f32 %v11432_v3, %v10303_v29  ;;  %v19255_v43 = vpop.f32.mrb[109].mxu1  ;;  %v13286_v61 = vpop.permute.xlu1 %13285  ;;  %v13765_v3 = vsel %vm1282_vm6, %v13763_v52, 0 }
 0x5f9   : > { %19617 = vmatprep.subr.bf16.mxu0 %v20091_v1  ;;  %v10306_v50 = vpop.f32.mrb[110].mxu1  ;;  %v13288_v51 = vsel %vm1282_vm6, %v13286_v61, 0 }
 0x5fa   : > { %v10568_v18 = vpop.f32.mrb[120].mxu0  ;;  %11496 = vst.msk [vmem:[%s21182_s7 + $0x50] sm:$0xff] %vm2659_vm8, %v11464_v31  ;;  %v19256_v45 = vpop.f32.mrb[111].mxu1  ;;  %v11440_v31 = vld [vmem:[%s21182_s7 + $0x90] sm:$0xff] }
 0x5fb   : > { %v11469_v36 = vadd.f32 %v11437_v60, %v10568_v18  ;;  %v19285_v8 = vpop.f32.mrb[121].mxu0 }
 0x5fc   : > { %v10571_v32 = vpop.f32.mrb[122].mxu0  ;;  %19578 = vmatmul.mubr.msk.bf16.vlgmr.msra.gmra.mrb[216].mxu1 %vm1278_vm7, %v23055_v41  ;;  %v13392_v23 = vpop.permute.xlu1 %13391 }
 0x5fd   : > { %11501 = vst.msk [vmem:[%s21182_s7 + $0x78] sm:$0xff] %vm2659_vm8, %v11469_v36  ;;  %v19286_v55 = vpop.f32.mrb[123].mxu0  ;;  %19588 = vmatpush3.bf16.msra.mxu1 %v13182_v38  ;;  %19589 = vmatprep.mubr.msk.bf16.mxu1 %vm20090_vm0, %v20091_v1  ;;  %v13394_v58 = vsel %vm1282_vm6, %v13392_v23, 0  ;;  %v11445_v36 = vld [vmem:[%s21182_s7 + $0xb8] sm:$0xff]  ;;  %v13869_v38 = vpop.permute.xlu0 %13868 }
 0x5fe   : > { %19599 = vmatprep.subr.bf16.mxu1 %v20091_v1 }
 0x5ff   : > { %19608 = vmatmul.mubr.msk.bf16.vlgmr.msra.gmra.mrb[228].mxu0 %vm1278_vm7, %v23055_v41  ;;  %v10409_v21 = vpop.f32.mrb[112].mxu1 }
 0x600   : > { %19618 = vmatpush3.bf16.msra.mxu0 %v13447_v26  ;;  %19619 = vmatprep.mubr.msk.bf16.mxu0 %vm20090_vm0, %v20091_v1  ;;  %v11466_v6 = vadd.f32 %v11434_v25, %v10409_v21  ;;  %v19267_v54 = vpop.f32.mrb[113].mxu1  ;;  %v13498_v0 = vpop.permute.xlu1 %13497  ;;  %v13871_v25 = vsel %vm1282_vm6, %v13869_v38, 0 }
 0x601   : > { %19629 = vmatprep.subr.bf16.mxu0 %v20091_v1  ;;  %v10412_v22 = vpop.f32.mrb[114].mxu1  ;;  %v13500_v17 = vsel %vm1282_vm6, %v13498_v0, 0 }
 0x602   : > { %v10674_v10 = vpop.f32.mrb[124].mxu0  ;;  %11498 = vst.msk [vmem:[%s21182_s7 + $0x60] sm:$0xff] %vm2659_vm8, %v11466_v6  ;;  %v19268_v5 = vpop.f32.mrb[115].mxu1  ;;  %v11442_v6 = vld [vmem:[%s21182_s7 + $0xa0] sm:$0xff] }
 0x603   : > { %v11471_v27 = vadd.f32 %v11439_v24, %v10674_v10  ;;  %v19297_v56 = vpop.f32.mrb[125].mxu0 }
 0x604   : > { %v10677_v37 = vpop.f32.mrb[126].mxu0  ;;  %19590 = vmatmul.mubr.msk.bf16.vlgmr.msra.gmra.mrb[220].mxu1 %vm1278_vm7, %v23055_v41  ;;  %v13604_v43 = vpop.permute.xlu1 %13603 }
 0x605   : > { %11503 = vst.msk [vmem:[%s21182_s7 + $0x88] sm:$0xff] %vm2659_vm8, %v11471_v27  ;;  %v19298_v7 = vpop.f32.mrb[127].mxu0  ;;  %19600 = vmatpush3.bf16.msra.mxu1 %v13288_v51  ;;  %19601 = vmatprep.mubr.msk.bf16.mxu1 %vm20090_vm0, %v20091_v1  ;;  %v13606_v26 = vsel %vm1282_vm6, %v13604_v43, 0  ;;  %v11447_v27 = vld [vmem:[%s21182_s7 + $0xc8] sm:$0xff]  ;;  %v13975_v51 = vpop.permute.xlu0 %13974 }
 0x606   : > { %19611 = vmatprep.subr.bf16.mxu1 %v20091_v1 }
 0x607   : > { %19620 = vmatmul.mubr.msk.bf16.vlgmr.msra.gmra.mrb[232].mxu0 %vm1278_vm7, %v23055_v41  ;;  %v10515_v4 = vpop.f32.mrb[116].mxu1 }
 0x608   : > { %19630 = vmatpush3.bf16.msra.mxu0 %v13553_v14  ;;  %19631 = vmatprep.mubr.msk.bf16.mxu0 %vm20090_vm0, %v20091_v1  ;;  %v11468_v39 = vadd.f32 %v11436_v46, %v10515_v4  ;;  %v19279_v40 = vpop.f32.mrb[117].mxu1  ;;  %v13710_v54 = vpop.permute.xlu1 %13709  ;;  %v13977_v46 = vsel %vm1282_vm6, %v13975_v51, 0 }
 0x609   : > { %19641 = vmatprep.subr.bf16.mxu0 %v20091_v1  ;;  %v10518_v13 = vpop.f32.mrb[118].mxu1  ;;  %v13712_v14 = vsel %vm1282_vm6, %v13710_v54, 0 }
 0x60a   : > { %v10780_v44 = vpop.f32.mrb[128].mxu0  ;;  %11500 = vst.msk [vmem:[%s21182_s7 + $0x70] sm:$0xff] %vm2659_vm8, %v11468_v39  ;;  %v19280_v63 = vpop.f32.mrb[119].mxu1  ;;  %v11444_v39 = vld [vmem:[%s21182_s7 + $0xb0] sm:$0xff] }
 0x60b   : > { %v11473_v19 = vadd.f32 %v11441_v34, %v10780_v44  ;;  %v19309_v49 = vpop.f32.mrb[129].mxu0 }
 0x60c   : > { %v10783_v2 = vpop.f32.mrb[130].mxu0  ;;  %19602 = vmatmul.mubr.msk.bf16.vlgmr.msra.gmra.mrb[224].mxu1 %vm1278_vm7, %v23055_v41  ;;  %v13816_v40 = vpop.permute.xlu1 %13815 }
 0x60d   : > { %11505 = vst.msk [vmem:[%s21182_s7 + $0x98] sm:$0xff] %vm2659_vm8, %v11473_v19  ;;  %v19310_v9 = vpop.f32.mrb[131].mxu0  ;;  %19612 = vmatpush3.bf16.msra.mxu1 %v13394_v58  ;;  %19613 = vmatprep.mubr.msk.bf16.mxu1 %vm20090_vm0, %v20091_v1  ;;  %v11449_v19 = vld [vmem:[%s21182_s7 + $0xd8] sm:$0xff]  ;;  %v14081_v58 = vpop.permute.xlu0 %14080 }
 0x60e   : > { %19623 = vmatprep.subr.bf16.mxu1 %v20091_v1 }
 0x60f   : > { %19632 = vmatmul.mubr.msk.bf16.vlgmr.msra.gmra.mrb[236].mxu0 %vm1278_vm7, %v23055_v41  ;;  %v10621_v48 = vpop.f32.mrb[120].mxu1 }
 0x610   : > { %19642 = vmatpush3.bf16.msra.mxu0 %v13659_v11  ;;  %19643 = vmatprep.mubr.msk.bf16.mxu0 %vm20090_vm0, %v20091_v1  ;;  %v11470_v42 = vadd.f32 %v11438_v59, %v10621_v48  ;;  %v19291_v57 = vpop.f32.mrb[121].mxu1  ;;  %v13818_v11 = vsel %vm1282_vm6, %v13816_v40, 0  ;;  %v14083_v59 = vsel %vm1282_vm6, %v14081_v58, 0 }
 0x611   : > { %19653 = vmatprep.subr.bf16.mxu0 %v20091_v1  ;;  %v10624_v62 = vpop.f32.mrb[122].mxu1  ;;  %v13922_v57 = vpop.permute.xlu1 %13921 }
 0x612   : > { %v10886_v16 = vpop.f32.mrb[132].mxu0  ;;  %11502 = vst.msk [vmem:[%s21182_s7 + $0x80] sm:$0xff] %vm2659_vm8, %v11470_v42  ;;  %v19292_v47 = vpop.f32.mrb[123].mxu1  ;;  %v11446_v42 = vld [vmem:[%s21182_s7 + $0xc0] sm:$0xff] }
 0x613   : > { %v11475_v35 = vadd.f32 %v11443_v53, %v10886_v16  ;;  %v19321_v15 = vpop.f32.mrb[133].mxu0 }
 0x614   : > { %v10889_v12 = vpop.f32.mrb[134].mxu0  ;;  %19614 = vmatmul.mubr.msk.bf16.vlgmr.msra.gmra.mrb[228].mxu1 %vm1278_vm7, %v23055_v41 }
 0x615   : > { %11507 = vst.msk [vmem:[%s21182_s7 + $0xa8] sm:$0xff] %vm2659_vm8, %v11475_v35  ;;  %v19322_v29 = vpop.f32.mrb[135].mxu0  ;;  %19624 = vmatpush3.bf16.msra.mxu1 %v13500_v17  ;;  %19625 = vmatprep.mubr.msk.bf16.mxu1 %vm20090_vm0, %v20091_v1  ;;  %v11451_v35 = vld [vmem:[%s21182_s7 + $0xe8] sm:$0xff]  ;;  %v14187_v17 = vpop.permute.xlu0 %14186 }
 0x616   : > { %19635 = vmatprep.subr.bf16.mxu1 %v20091_v1 }
 0x617   : > { %19644 = vmatmul.mubr.msk.bf16.vlgmr.msra.gmra.mrb[240].mxu0 %vm1278_vm7, %v23055_v41  ;;  %v10727_v33 = vpop.f32.mrb[124].mxu1 }
 0x618   : > { %19654 = vmatpush3.bf16.msra.mxu0 %v13765_v3  ;;  %19655 = vmatprep.mubr.msk.bf16.mxu0 %vm20090_vm0, %v20091_v1  ;;  %v11472_v18 = vadd.f32 %v11440_v31, %v10727_v33  ;;  %v19303_v60 = vpop.f32.mrb[125].mxu1  ;;  %v13924_v3 = vsel %vm1282_vm6, %v13922_v57, 0  ;;  %v14189_v31 = vsel %vm1282_vm6, %v14187_v17, 0 }
 0x619   : > { %19665 = vmatprep.subr.bf16.mxu0 %v20091_v1  ;;  %v10730_v45 = vpop.f32.mrb[126].mxu1  ;;  %v14028_v60 = vpop.permute.xlu1 %14027 }
 0x61a   : > { %v10992_v50 = vpop.f32.mrb[136].mxu0  ;;  %11504 = vst.msk [vmem:[%s21182_s7 + $0x90] sm:$0xff] %vm2659_vm8, %v11472_v18  ;;  %v19304_v30 = vpop.f32.mrb[127].mxu1  ;;  %v11448_v18 = vld [vmem:[%s21182_s7 + $0xd0] sm:$0xff] }
 0x61b   : > { %v11477_v8 = vadd.f32 %v11445_v36, %v10992_v50  ;;  %v19333_v32 = vpop.f32.mrb[137].mxu0 }
 0x61c   : > { %v10995_v55 = vpop.f32.mrb[138].mxu0  ;;  %19626 = vmatmul.mubr.msk.bf16.vlgmr.msra.gmra.mrb[232].mxu1 %vm1278_vm7, %v23055_v41 }
 0x61d   : > { %11509 = vst.msk [vmem:[%s21182_s7 + $0xb8] sm:$0xff] %vm2659_vm8, %v11477_v8  ;;  %v19334_v21 = vpop.f32.mrb[139].mxu0  ;;  %19636 = vmatpush3.bf16.msra.mxu1 %v13606_v26  ;;  %19637 = vmatprep.mubr.msk.bf16.mxu1 %vm20090_vm0, %v20091_v1  ;;  %v11453_v8 = vld [vmem:[%s21182_s7 + $0xf8] sm:$0xff]  ;;  %v14293_v26 = vpop.permute.xlu0 %14292 }
 0x61e   : > { %19647 = vmatprep.subr.bf16.mxu1 %v20091_v1 }
 0x61f   : > { %19656 = vmatmul.mubr.msk.bf16.vlgmr.msra.gmra.mrb[244].mxu0 %vm1278_vm7, %v23055_v41  ;;  %v10833_v61 = vpop.f32.mrb[128].mxu1 }
 0x620   : > { %19666 = vmatpush3.bf16.msra.mxu0 %v13871_v25  ;;  %19667 = vmatprep.mubr.msk.bf16.mxu0 %vm20090_vm0, %v20091_v1  ;;  %v11474_v10 = vadd.f32 %v11442_v6, %v10833_v61  ;;  %v19315_v24 = vpop.f32.mrb[129].mxu1  ;;  %v14030_v25 = vsel %vm1282_vm6, %v14028_v60, 0  ;;  %v14295_v6 = vsel %vm1282_vm6, %v14293_v26, 0 }
 0x621   : > { %19677 = vmatprep.subr.bf16.mxu0 %v20091_v1  ;;  %v10836_v5 = vpop.f32.mrb[130].mxu1  ;;  %v14134_v24 = vpop.permute.xlu1 %14133 }
 0x622   : > { %v11098_v22 = vpop.f32.mrb[140].mxu0  ;;  %11506 = vst.msk [vmem:[%s21182_s7 + $0xa0] sm:$0xff] %vm2659_vm8, %v11474_v10  ;;  %v19316_v20 = vpop.f32.mrb[131].mxu1  ;;  %v11450_v10 = vld [vmem:[%s21182_s7 + $0xe0] sm:$0xff] }
 0x623   : > { %v11479_v56 = vadd.f32 %v11447_v27, %v11098_v22  ;;  %v19345_v37 = vpop.f32.mrb[141].mxu0 }
 0x624   : > { %v11101_v7 = vpop.f32.mrb[142].mxu0  ;;  %19638 = vmatmul.mubr.msk.bf16.vlgmr.msra.gmra.mrb[236].mxu1 %vm1278_vm7, %v23055_v41 }
 0x625   : > { %11511 = vst.msk [vmem:[%s21182_s7 + $0xc8] sm:$0xff] %vm2659_vm8, %v11479_v56  ;;  %v19346_v4 = vpop.f32.mrb[143].mxu0  ;;  %19648 = vmatpush3.bf16.msra.mxu1 %v13712_v14  ;;  %19649 = vmatprep.mubr.msk.bf16.mxu1 %vm20090_vm0, %v20091_v1  ;;  %v12933_v56 = vld [vmem:[%s21182_s7 + $0x8] sm:$0xff]  ;;  %v14399_v14 = vpop.permute.xlu0 %14398 }
 0x626   : > { %19659 = vmatprep.subr.bf16.mxu1 %v20091_v1 }
 0x627   : > { %19668 = vmatmul.mubr.msk.bf16.vlgmr.msra.gmra.mrb[248].mxu0 %vm1278_vm7, %v23055_v41  ;;  %v10939_v23 = vpop.f32.mrb[132].mxu1 }
 0x628   : > { %19678 = vmatpush3.bf16.msra.mxu0 %v13977_v46  ;;  %19679 = vmatprep.mubr.msk.bf16.mxu0 %vm20090_vm0, %v20091_v1  ;;  %v11476_v44 = vadd.f32 %v11444_v39, %v10939_v23  ;;  %v19327_v34 = vpop.f32.mrb[133].mxu1  ;;  %v14136_v46 = vsel %vm1282_vm6, %v14134_v24, 0  ;;  %v14401_v39 = vsel %vm1282_vm6, %v14399_v14, 0 }
 0x629   : > { %19689 = vmatprep.subr.bf16.mxu0 %v20091_v1  ;;  %v10942_v63 = vpop.f32.mrb[134].mxu1  ;;  %v14240_v34 = vpop.permute.xlu1 %14239 }
 0x62a   : > { %v11204_v13 = vpop.f32.mrb[144].mxu0  ;;  %11508 = vst.msk [vmem:[%s21182_s7 + $0xb0] sm:$0xff] %vm2659_vm8, %v11476_v44  ;;  %v19328_v28 = vpop.f32.mrb[135].mxu1  ;;  %v11452_v44 = vld [vmem:[%s21182_s7 + $0xf0] sm:$0xff] }
 0x62b   : > { %v11481_v49 = vadd.f32 %v11449_v19, %v11204_v13  ;;  %v19357_v2 = vpop.f32.mrb[145].mxu0 }
 0x62c   : > { %v11207_v9 = vpop.f32.mrb[146].mxu0  ;;  %19650 = vmatmul.mubr.msk.bf16.vlgmr.msra.gmra.mrb[240].mxu1 %vm1278_vm7, %v23055_v41 }
 0x62d   : > { %11513 = vst.msk [vmem:[%s21182_s7 + $0xd8] sm:$0xff] %vm2659_vm8, %v11481_v49  ;;  %v19358_v48 = vpop.f32.mrb[147].mxu0  ;;  %19660 = vmatpush3.bf16.msra.mxu1 %v13818_v11  ;;  %19661 = vmatprep.mubr.msk.bf16.mxu1 %vm20090_vm0, %v20091_v1  ;;  %v12935_v49 = vld [vmem:[%s21182_s7 + $0x18] sm:$0xff]  ;;  %v14505_v11 = vpop.permute.xlu0 %14504 }
 0x62e   : > { %19671 = vmatprep.subr.bf16.mxu1 %v20091_v1 }
 0x62f   : > { %19680 = vmatmul.mubr.msk.bf16.vlgmr.msra.gmra.mrb[252].mxu0 %vm1278_vm7, %v23055_v41  ;;  %v11045_v0 = vpop.f32.mrb[136].mxu1 }
 0x630   : > { %19690 = vmatpush3.bf16.msra.mxu0 %v14083_v59  ;;  %19691 = vmatprep.mubr.msk.bf16.mxu0 %vm20090_vm0, %v20091_v1  ;;  %v11478_v16 = vadd.f32 %v11446_v42, %v11045_v0  ;;  %v19339_v53 = vpop.f32.mrb[137].mxu1  ;;  %v14242_v59 = vsel %vm1282_vm6, %v14240_v34, 0  ;;  %v14507_v42 = vsel %vm1282_vm6, %v14505_v11, 0 }
 0x631   : > { %19701 = vmatprep.subr.bf16.mxu0 %v20091_v1  ;;  %v11048_v47 = vpop.f32.mrb[138].mxu1  ;;  %v14346_v53 = vpop.permute.xlu1 %14345 }
 0x632   : > { %v11310_v62 = vpop.f32.mrb[148].mxu0  ;;  %11510 = vst.msk [vmem:[%s21182_s7 + $0xc0] sm:$0xff] %vm2659_vm8, %v11478_v16  ;;  %v19340_v52 = vpop.f32.mrb[139].mxu1  ;;  %v12932_v16 = vld [vmem:[%s21182_s7] sm:$0xff] }
 0x633   : > { %v11483_v15 = vadd.f32 %v11451_v35, %v11310_v62  ;;  %v19369_v12 = vpop.f32.mrb[149].mxu0 }
 0x634   : > { %v11313_v29 = vpop.f32.mrb[150].mxu0  ;;  %19662 = vmatmul.mubr.msk.bf16.vlgmr.msra.gmra.mrb[244].mxu1 %vm1278_vm7, %v23055_v41 }
 0x635   : > { %11515 = vst.msk [vmem:[%s21182_s7 + $0xe8] sm:$0xff] %vm2659_vm8, %v11483_v15  ;;  %v19370_v33 = vpop.f32.mrb[151].mxu0  ;;  %19672 = vmatpush3.bf16.msra.mxu1 %v13924_v3  ;;  %19673 = vmatprep.mubr.msk.bf16.mxu1 %vm20090_vm0, %v20091_v1  ;;  %v12937_v15 = vld [vmem:[%s21182_s7 + $0x28] sm:$0xff]  ;;  %v14611_v3 = vpop.permute.xlu0 %14610 }
 0x636   : > { %19683 = vmatprep.subr.bf16.mxu1 %v20091_v1 }
 0x637   : > { %19692 = vmatmul.mubr.msk.bf16.vlgmr.msra.gmra.mrb[0].mxu0 %vm1278_vm7, %v23055_v41  ;;  %v11151_v43 = vpop.f32.mrb[140].mxu1 }
 0x638   : > { %19702 = vmatpush3.bf16.msra.mxu0 %v14189_v31  ;;  %19703 = vmatprep.mubr.msk.bf16.mxu0 %vm20090_vm0, %v20091_v1  ;;  %v11480_v50 = vadd.f32 %v11448_v18, %v11151_v43  ;;  %v19351_v36 = vpop.f32.mrb[141].mxu1  ;;  %v14348_v31 = vsel %vm1282_vm6, %v14346_v53, 0  ;;  %v14613_v18 = vsel %vm1282_vm6, %v14611_v3, 0 }
 0x639   : > { %19713 = vmatprep.subr.bf16.mxu0 %v20091_v1  ;;  %v11154_v30 = vpop.f32.mrb[142].mxu1  ;;  %v14452_v36 = vpop.permute.xlu1 %14451 }
 0x63a   : > { %v11416_v45 = vpop.f32.mrb[152].mxu0  ;;  %11512 = vst.msk [vmem:[%s21182_s7 + $0xd0] sm:$0xff] %vm2659_vm8, %v11480_v50  ;;  %v19352_v38 = vpop.f32.mrb[143].mxu1  ;;  %v12934_v50 = vld [vmem:[%s21182_s7 + $0x10] sm:$0xff] }
 0x63b   : > { %v11485_v32 = vadd.f32 %v11453_v8, %v11416_v45  ;;  %v19381_v55 = vpop.f32.mrb[153].mxu0 }
 0x63c   : > { %v11419_v21 = vpop.f32.mrb[154].mxu0  ;;  %19674 = vmatmul.mubr.msk.bf16.vlgmr.msra.gmra.mrb[248].mxu1 %vm1278_vm7, %v23055_v41 }
 0x63d   : > { %11517 = vst.msk [vmem:[%s21182_s7 + $0xf8] sm:$0xff] %vm2659_vm8, %v11485_v32  ;;  %v19382_v61 = vpop.f32.mrb[155].mxu0  ;;  %19684 = vmatpush3.bf16.msra.mxu1 %v14030_v25  ;;  %19685 = vmatprep.mubr.msk.bf16.mxu1 %vm20090_vm0, %v20091_v1  ;;  %v12939_v32 = vld [vmem:[%s21182_s7 + $0x38] sm:$0xff]  ;;  %v14717_v25 = vpop.permute.xlu0 %14716 }
 0x63e   : > { %19695 = vmatprep.subr.bf16.mxu1 %v20091_v1 }
 0x63f   : > { %19704 = vmatmul.mubr.msk.bf16.vlgmr.msra.gmra.mrb[4].mxu0 %vm1278_vm7, %v23055_v41  ;;  %v11257_v54 = vpop.f32.mrb[144].mxu1 }
 0x640   : > { %19714 = vmatpush3.bf16.msra.mxu0 %v14295_v6  ;;  %19715 = vmatprep.mubr.msk.bf16.mxu0 %vm20090_vm0, %v20091_v1  ;;  %v11482_v22 = vadd.f32 %v11450_v10, %v11257_v54  ;;  %v19363_v27 = vpop.f32.mrb[145].mxu1  ;;  %v14454_v6 = vsel %vm1282_vm6, %v14452_v36, 0  ;;  %v14719_v10 = vsel %vm1282_vm6, %v14717_v25, 0 }
 0x641   : > { %19725 = vmatprep.subr.bf16.mxu0 %v20091_v1  ;;  %v11260_v20 = vpop.f32.mrb[146].mxu1  ;;  %v14558_v27 = vpop.permute.xlu1 %14557 }
 0x642   : > { %v11636_v5 = vpop.f32.mrb[156].mxu0  ;;  %11514 = vst.msk [vmem:[%s21182_s7 + $0xe0] sm:$0xff] %vm2659_vm8, %v11482_v22  ;;  %v19364_v51 = vpop.f32.mrb[147].mxu1  ;;  %v12936_v22 = vld [vmem:[%s21182_s7 + $0x20] sm:$0xff] }
 0x643   : > { %v12965_v37 = vadd.f32 %v12933_v56, %v11636_v5  ;;  %v19393_v7 = vpop.f32.mrb[157].mxu0 }
 0x644   : > { %v11639_v4 = vpop.f32.mrb[158].mxu0  ;;  %19686 = vmatmul.mubr.msk.bf16.vlgmr.msra.gmra.mrb[252].mxu1 %vm1278_vm7, %v23055_v41 }
 0x645   : > { %12997 = vst.msk [vmem:[%s21182_s7 + $0x8] sm:$0xff] %vm2659_vm8, %v12965_v37  ;;  %v19394_v23 = vpop.f32.mrb[159].mxu0  ;;  %19696 = vmatpush3.bf16.msra.mxu1 %v14136_v46  ;;  %19697 = vmatprep.mubr.msk.bf16.mxu1 %vm20090_vm0, %v20091_v1  ;;  %v12941_v37 = vld [vmem:[%s21182_s7 + $0x48] sm:$0xff]  ;;  %v14956_v46 = vpop.permute.xlu0 %14955 }
 0x646   : > { %19707 = vmatprep.subr.bf16.mxu1 %v20091_v1 }
 0x647   : > { %19716 = vmatmul.mubr.msk.bf16.vlgmr.msra.gmra.mrb[8].mxu0 %vm1278_vm7, %v23055_v41  ;;  %v11363_v40 = vpop.f32.mrb[148].mxu1 }
 0x648   : > { %19726 = vmatpush3.bf16.msra.mxu0 %v14401_v39  ;;  %19727 = vmatprep.mubr.msk.bf16.mxu0 %vm20090_vm0, %v20091_v1  ;;  %v11484_v13 = vadd.f32 %v11452_v44, %v11363_v40  ;;  %v19375_v19 = vpop.f32.mrb[149].mxu1  ;;  %v14560_v39 = vsel %vm1282_vm6, %v14558_v27, 0  ;;  %v14958_v44 = vsel %vm1282_vm6, %v14956_v46, 0 }
 0x649   : > { %19737 = vmatprep.subr.bf16.mxu0 %v20091_v1  ;;  %v11366_v28 = vpop.f32.mrb[150].mxu1  ;;  %v14664_v19 = vpop.permute.xlu1 %14663 }
 0x64a   : > { %v11722_v63 = vpop.f32.mrb[160].mxu0  ;;  %11516 = vst.msk [vmem:[%s21182_s7 + $0xf0] sm:$0xff] %vm2659_vm8, %v11484_v13  ;;  %v19376_v58 = vpop.f32.mrb[151].mxu1  ;;  %v12938_v13 = vld [vmem:[%s21182_s7 + $0x30] sm:$0xff] }
 0x64b   : > { %v12967_v2 = vadd.f32 %v12935_v49, %v11722_v63  ;;  %v19405_v9 = vpop.f32.mrb[161].mxu0 }
 0x64c   : > { %v11725_v48 = vpop.f32.mrb[162].mxu0  ;;  %19698 = vmatmul.mubr.msk.bf16.vlgmr.msra.gmra.mrb[0].mxu1 %vm1278_vm7, %v23055_v41 }
 0x64d   : > { %12999 = vst.msk [vmem:[%s21182_s7 + $0x18] sm:$0xff] %vm2659_vm8, %v12967_v2  ;;  %v19406_v0 = vpop.f32.mrb[163].mxu0  ;;  %19708 = vmatpush3.bf16.msra.mxu1 %v14242_v59  ;;  %19709 = vmatprep.mubr.msk.bf16.mxu1 %vm20090_vm0, %v20091_v1  ;;  %v12943_v2 = vld [vmem:[%s21182_s7 + $0x58] sm:$0xff]  ;;  %v15062_v59 = vpop.permute.xlu0 %15061 }
 0x64e   : > { %19719 = vmatprep.subr.bf16.mxu1 %v20091_v1  ;;  %v23348_v0 = vld [vmem:[%s23962_s3 + $0x20] sm:$0xf]  ;;  %v15064_v53 = vsel %vm1282_vm6, %v15062_v59, 0 }
 0x64f   : > { %19728 = vmatmul.mubr.msk.bf16.vlgmr.msra.gmra.mrb[12].mxu0 %vm1278_vm7, %v23055_v41  ;;  %v11593_v57 = vpop.f32.mrb[152].mxu1 }
 0x650   : > { %19738 = vmatpush3.bf16.msra.mxu0 %v14507_v42  ;;  %19739 = vmatprep.mubr.msk.bf16.mxu0 %vm20090_vm0, %v20091_v1  ;;  %v12964_v62 = vadd.f32 %v12932_v16, %v11593_v57  ;;  %v19387_v35 = vpop.f32.mrb[153].mxu1  ;;  %v14666_v57 = vsel %vm1282_vm6, %v14664_v19, 0 }
 0x651   : > { %19749 = vmatprep.subr.bf16.mxu0 %v20091_v1  ;;  %v11596_v52 = vpop.f32.mrb[154].mxu1  ;;  %v12940_v35 = vld [vmem:[%s21182_s7 + $0x40] sm:$0xff] }
 0x652   : > { %v11808_v47 = vpop.f32.mrb[164].mxu0  ;;  %12996 = vst.msk [vmem:[%s21182_s7] sm:$0xff] %vm2659_vm8, %v12964_v62  ;;  %v19388_v17 = vpop.f32.mrb[155].mxu1 }
 0x653   : > { %v12969_v12 = vadd.f32 %v12937_v15, %v11808_v47  ;;  %v19417_v29 = vpop.f32.mrb[165].mxu0  ;;  %v14900_v47 = vpop.permute.xlu1 %14899  ;;  %v12945_v17 = vld [vmem:[%s21182_s7 + $0x68] sm:$0xff] }
 0x654   : > { %v11811_v33 = vpop.f32.mrb[166].mxu0  ;;  %19710 = vmatmul.mubr.msk.bf16.vlgmr.msra.gmra.mrb[4].mxu1 %vm1278_vm7, %v23055_v41 }
 0x655   : > { %13001 = vst.msk [vmem:[%s21182_s7 + $0x28] sm:$0xff] %vm2659_vm8, %v12969_v12  ;;  %v19418_v43 = vpop.f32.mrb[167].mxu0  ;;  %19720 = vmatpush3.bf16.msra.mxu1 %v14348_v31  ;;  %19721 = vmatprep.mubr.msk.bf16.mxu1 %vm20090_vm0, %v20091_v1 }
 0x656   : > { %19731 = vmatprep.subr.bf16.mxu1 %v20091_v1  ;;  %v15168_v43 = vpop.permute.xlu0 %15167 }
 0x657   : > { %19740 = vmatmul.mubr.msk.bf16.vlgmr.msra.gmra.mrb[16].mxu0 %vm1278_vm7, %v23055_v41  ;;  %v11679_v60 = vpop.f32.mrb[156].mxu1  ;;  %v15170_v36 = vsel %vm1282_vm6, %v15168_v43, 0 }
 0x658   : > { %19750 = vmatpush3.bf16.msra.mxu0 %v14613_v18  ;;  %19751 = vmatprep.mubr.msk.bf16.mxu0 %vm20090_vm0, %v20091_v1  ;;  %v12966_v45 = vadd.f32 %v12934_v50, %v11679_v60  ;;  %v19399_v8 = vpop.f32.mrb[157].mxu1  ;;  %v14905_v60 = vsel %vm1282_vm6, %v14900_v47, 0 }
 0x659   : > { %19761 = vmatprep.subr.bf16.mxu0 %v20091_v1  ;;  %v11682_v38 = vpop.f32.mrb[158].mxu1  ;;  %v12942_v8 = vld [vmem:[%s21182_s7 + $0x50] sm:$0xff] }
 0x65a   : > { %v11894_v30 = vpop.f32.mrb[168].mxu0  ;;  %12998 = vst.msk [vmem:[%s21182_s7 + $0x10] sm:$0xff] %vm2659_vm8, %v12966_v45  ;;  %v19400_v26 = vpop.f32.mrb[159].mxu1 }
 0x65b   : > { %v12971_v55 = vadd.f32 %v12939_v32, %v11894_v30  ;;  %v19429_v21 = vpop.f32.mrb[169].mxu0 }
 0x65c   : > { %v11897_v61 = vpop.f32.mrb[170].mxu0  ;;  %19722 = vmatmul.mubr.msk.bf16.vlgmr.msra.gmra.mrb[8].mxu1 %vm1278_vm7, %v23055_v41 }
 0x65d   : > { %13003 = vst.msk [vmem:[%s21182_s7 + $0x38] sm:$0xff] %vm2659_vm8, %v12971_v55  ;;  %v19430_v54 = vpop.f32.mrb[171].mxu0  ;;  %19732 = vmatpush3.bf16.msra.mxu1 %v14454_v6  ;;  %19733 = vmatprep.mubr.msk.bf16.mxu1 %vm20090_vm0, %v20091_v1  ;;  %v12947_v55 = vld [vmem:[%s21182_s7 + $0x78] sm:$0xff]  ;;  %v15274_v6 = vpop.permute.xlu0 %15273 }
 0x65e   : > { %19743 = vmatprep.subr.bf16.mxu1 %v20091_v1 }
 0x65f   : > { %19752 = vmatmul.mubr.msk.bf16.vlgmr.msra.gmra.mrb[20].mxu0 %vm1278_vm7, %v23055_v41  ;;  %v11765_v24 = vpop.f32.mrb[160].mxu1 }
 0x660   : > { %19762 = vmatpush3.bf16.msra.mxu0 %v14719_v10  ;;  %19763 = vmatprep.mubr.msk.bf16.mxu0 %vm20090_vm0, %v20091_v1  ;;  %v12968_v5 = vadd.f32 %v12936_v22, %v11765_v24  ;;  %v19411_v56 = vpop.f32.mrb[161].mxu1  ;;  %v15276_v22 = vsel %vm1282_vm6, %v15274_v6, 0 }
 0x661   : > { %19773 = vmatprep.subr.bf16.mxu0 %v20091_v1  ;;  %v11768_v51 = vpop.f32.mrb[162].mxu1 }
 0x662   : > { %v11980_v20 = vpop.f32.mrb[172].mxu0  ;;  %13000 = vst.msk [vmem:[%s21182_s7 + $0x20] sm:$0xff] %vm2659_vm8, %v12968_v5  ;;  %v19412_v14 = vpop.f32.mrb[163].mxu1  ;;  %v12944_v5 = vld [vmem:[%s21182_s7 + $0x60] sm:$0xff] }
 0x663   : > { %v12973_v7 = vadd.f32 %v12941_v37, %v11980_v20  ;;  %v19441_v4 = vpop.f32.mrb[173].mxu0 }
 0x664   : > { %v11983_v23 = vpop.f32.mrb[174].mxu0  ;;  %19734 = vmatmul.mubr.msk.bf16.vlgmr.msra.gmra.mrb[12].mxu1 %vm1278_vm7, %v23055_v41 }
 0x665   : > { %13005 = vst.msk [vmem:[%s21182_s7 + $0x48] sm:$0xff] %vm2659_vm8, %v12973_v7  ;;  %v19442_v40 = vpop.f32.mrb[175].mxu0  ;;  %19744 = vmatpush3.bf16.msra.mxu1 %v14560_v39  ;;  %19745 = vmatprep.mubr.msk.bf16.mxu1 %vm20090_vm0, %v20091_v1  ;;  %v12949_v7 = vld [vmem:[%s21182_s7 + $0x88] sm:$0xff]  ;;  %v15380_v39 = vpop.permute.xlu0 %15379 }
 0x666   : > { %19755 = vmatprep.subr.bf16.mxu1 %v20091_v1 }
 0x667   : > { %19764 = vmatmul.mubr.msk.bf16.vlgmr.msra.gmra.mrb[24].mxu0 %vm1278_vm7, %v23055_v41  ;;  %v11851_v34 = vpop.f32.mrb[164].mxu1 }
 0x668   : > { %19774 = vmatpush3.bf16.msra.mxu0 %v14958_v44  ;;  %19775 = vmatprep.mubr.msk.bf16.mxu0 %vm20090_vm0, %v20091_v1  ;;  %v12970_v63 = vadd.f32 %v12938_v13, %v11851_v34  ;;  %v19423_v49 = vpop.f32.mrb[165].mxu1  ;;  %v15382_v13 = vsel %vm1282_vm6, %v15380_v39, 0 }
 0x669   : > { %19785 = vmatprep.subr.bf16.mxu0 %v20091_v1  ;;  %v11854_v58 = vpop.f32.mrb[166].mxu1 }
 0x66a   : > { %v12066_v28 = vpop.f32.mrb[176].mxu0  ;;  %13002 = vst.msk [vmem:[%s21182_s7 + $0x30] sm:$0xff] %vm2659_vm8, %v12970_v63  ;;  %v19424_v11 = vpop.f32.mrb[167].mxu1  ;;  %v12946_v63 = vld [vmem:[%s21182_s7 + $0x70] sm:$0xff] }
 0x66b   : > { %v12975_v9 = vadd.f32 %v12943_v2, %v12066_v28  ;;  %v19453_v48 = vpop.f32.mrb[177].mxu0 }
 0x66c   : > { %v12069_v42 = vpop.f32.mrb[178].mxu0  ;;  %19746 = vmatmul.mubr.msk.bf16.vlgmr.msra.gmra.mrb[16].mxu1 %vm1278_vm7, %v23055_v41 }
 0x66d   : > { %13007 = vst.msk [vmem:[%s21182_s7 + $0x58] sm:$0xff] %vm2659_vm8, %v12975_v9  ;;  %v19454_v16 = vpop.f32.mrb[179].mxu0  ;;  %19756 = vmatpush3.bf16.msra.mxu1 %v14666_v57  ;;  %19757 = vmatprep.mubr.msk.bf16.mxu1 %vm20090_vm0, %v20091_v1  ;;  %v12951_v9 = vld [vmem:[%s21182_s7 + $0x98] sm:$0xff]  ;;  %v15486_v57 = vpop.permute.xlu0 %15485 }
 0x66e   : > { %19767 = vmatprep.subr.bf16.mxu1 %v20091_v1 }
 0x66f   : > { %19776 = vmatmul.mubr.msk.bf16.vlgmr.msra.gmra.mrb[28].mxu0 %vm1278_vm7, %v23348_v0  ;;  %v11937_v62 = vpop.f32.mrb[168].mxu1 }
 0x670   : > { %19786 = vmatpush3.bf16.msra.mxu0 %v15064_v53  ;;  %19787 = vmatprep.mubr.msk.bf16.mxu0 %vm20090_vm0, %v20091_v1  ;;  %v12972_v15 = vadd.f32 %v12940_v35, %v11937_v62  ;;  %v19435_v52 = vpop.f32.mrb[169].mxu1  ;;  %v15488_v35 = vsel %vm1282_vm6, %v15486_v57, 0 }
 0x671   : > { %19797 = vmatprep.subr.bf16.mxu0 %v20091_v1  ;;  %v11940_v29 = vpop.f32.mrb[170].mxu1 }
 0x672   : > { %v12152_v12 = vpop.f32.mrb[180].mxu0  ;;  %13004 = vst.msk [vmem:[%s21182_s7 + $0x40] sm:$0xff] %vm2659_vm8, %v12972_v15  ;;  %v19436_v33 = vpop.f32.mrb[171].mxu1  ;;  %v12948_v15 = vld [vmem:[%s21182_s7 + $0x80] sm:$0xff] }
 0x673   : > { %v12977_v3 = vadd.f32 %v12945_v17, %v12152_v12  ;;  %v19465_v31 = vpop.f32.mrb[181].mxu0 }
 0x674   : > { %v12155_v18 = vpop.f32.mrb[182].mxu0  ;;  %19758 = vmatmul.mubr.msk.bf16.vlgmr.msra.gmra.mrb[20].mxu1 %vm1278_vm7, %v23055_v41  ;;  %v15009_v41 = vpop.permute.xlu1 %15008 }
 0x675   : > { %13009 = vst.msk [vmem:[%s21182_s7 + $0x68] sm:$0xff] %vm2659_vm8, %v12977_v3  ;;  %v19466_v50 = vpop.f32.mrb[183].mxu0  ;;  %19768 = vmatpush3.bf16.msra.mxu1 %v14905_v60  ;;  %19769 = vmatprep.mubr.msk.bf16.mxu1 %vm20090_vm0, %v20091_v1  ;;  %v15011_v10 = vsel %vm1282_vm6, %v15009_v41, 0  ;;  %v12953_v3 = vld [vmem:[%s21182_s7 + $0xa8] sm:$0xff]  ;;  %v15592_v60 = vpop.permute.xlu0 %15591 }
 0x676   : > { %19779 = vmatprep.subr.bf16.mxu1 %v20091_v1 }
 0x677   : > { %19788 = vmatmul.mubr.msk.bf16.vlgmr.msra.gmra.mrb[32].mxu0 %vm1278_vm7, %v23348_v0  ;;  %v12023_v45 = vpop.f32.mrb[172].mxu1 }
 0x678   : > { %19798 = vmatpush3.bf16.msra.mxu0 %v15170_v36  ;;  %19799 = vmatprep.mubr.msk.bf16.mxu0 %vm20090_vm0, %v20091_v1  ;;  %v12974_v30 = vadd.f32 %v12942_v8, %v12023_v45  ;;  %v19447_v32 = vpop.f32.mrb[173].mxu1  ;;  %v15115_v56 = vpop.permute.xlu1 %15114  ;;  %v15594_v8 = vsel %vm1282_vm6, %v15592_v60, 0 }
 0x679   : > { %19809 = vmatprep.subr.bf16.mxu0 %v20091_v1  ;;  %v12026_v26 = vpop.f32.mrb[174].mxu1  ;;  %v15117_v44 = vsel %vm1282_vm6, %v15115_v56, 0 }
 0x67a   : > { %v12238_v38 = vpop.f32.mrb[184].mxu0  ;;  %13006 = vst.msk [vmem:[%s21182_s7 + $0x50] sm:$0xff] %vm2659_vm8, %v12974_v30  ;;  %v19448_v25 = vpop.f32.mrb[175].mxu1  ;;  %v12950_v30 = vld [vmem:[%s21182_s7 + $0x90] sm:$0xff] }
 0x67b   : > { %v12979_v21 = vadd.f32 %v12947_v55, %v12238_v38  ;;  %v19477_v61 = vpop.f32.mrb[185].mxu0 }
 0x67c   : > { %v12241_v54 = vpop.f32.mrb[186].mxu0  ;;  %19770 = vmatmul.mubr.msk.bf16.vlgmr.msra.gmra.mrb[24].mxu1 %vm1278_vm7, %v23348_v0  ;;  %v15221_v49 = vpop.permute.xlu1 %15220 }
 0x67d   : > { %13011 = vst.msk [vmem:[%s21182_s7 + $0x78] sm:$0xff] %vm2659_vm8, %v12979_v21  ;;  %v19478_v24 = vpop.f32.mrb[187].mxu0  ;;  %19780 = vmatpush3.bf16.msra.mxu1 %v15011_v10  ;;  %19781 = vmatprep.mubr.msk.bf16.mxu1 %vm20090_vm0, %v20091_v1  ;;  %v15223_v53 = vsel %vm1282_vm6, %v15221_v49, 0  ;;  %v12955_v21 = vld [vmem:[%s21182_s7 + $0xb8] sm:$0xff]  ;;  %v15698_v10 = vpop.permute.xlu0 %15697 }
 0x67e   : > { %19791 = vmatprep.subr.bf16.mxu1 %v20091_v1 }
 0x67f   : > { %19800 = vmatmul.mubr.msk.bf16.vlgmr.msra.gmra.mrb[36].mxu0 %vm1278_vm7, %v23348_v0  ;;  %v12109_v27 = vpop.f32.mrb[176].mxu1 }
 0x680   : > { %19810 = vmatpush3.bf16.msra.mxu0 %v15276_v22  ;;  %19811 = vmatprep.mubr.msk.bf16.mxu0 %vm20090_vm0, %v20091_v1  ;;  %v12976_v20 = vadd.f32 %v12944_v5, %v12109_v27  ;;  %v19459_v37 = vpop.f32.mrb[177].mxu1  ;;  %v15327_v52 = vpop.permute.xlu1 %15326  ;;  %v15700_v5 = vsel %vm1282_vm6, %v15698_v10, 0 }
 0x681   : > { %19821 = vmatprep.subr.bf16.mxu0 %v20091_v1  ;;  %v12112_v14 = vpop.f32.mrb[178].mxu1  ;;  %v15329_v36 = vsel %vm1282_vm6, %v15327_v52, 0 }
 0x682   : > { %v12324_v51 = vpop.f32.mrb[188].mxu0  ;;  %13008 = vst.msk [vmem:[%s21182_s7 + $0x60] sm:$0xff] %vm2659_vm8, %v12976_v20  ;;  %v19460_v46 = vpop.f32.mrb[179].mxu1  ;;  %v12952_v20 = vld [vmem:[%s21182_s7 + $0xa0] sm:$0xff] }
 0x683   : > { %v12981_v4 = vadd.f32 %v12949_v7, %v12324_v51  ;;  %v19489_v23 = vpop.f32.mrb[189].mxu0 }
 0x684   : > { %v12327_v40 = vpop.f32.mrb[190].mxu0  ;;  %19782 = vmatmul.mubr.msk.bf16.vlgmr.msra.gmra.mrb[28].mxu1 %vm1278_vm7, %v23348_v0  ;;  %v15433_v32 = vpop.permute.xlu1 %15432 }
 0x685   : > { %13013 = vst.msk [vmem:[%s21182_s7 + $0x88] sm:$0xff] %vm2659_vm8, %v12981_v4  ;;  %v19490_v34 = vpop.f32.mrb[191].mxu0  ;;  %19792 = vmatpush3.bf16.msra.mxu1 %v15117_v44  ;;  %19793 = vmatprep.mubr.msk.bf16.mxu1 %vm20090_vm0, %v20091_v1  ;;  %v15435_v22 = vsel %vm1282_vm6, %v15433_v32, 0  ;;  %v12957_v4 = vld [vmem:[%s21182_s7 + $0xc8] sm:$0xff]  ;;  %v15804_v44 = vpop.permute.xlu0 %15803 }
 0x686   : > { %19803 = vmatprep.subr.bf16.mxu1 %v20091_v1 }
 0x687   : > { %19812 = vmatmul.mubr.msk.bf16.vlgmr.msra.gmra.mrb[40].mxu0 %vm1278_vm7, %v23348_v0  ;;  %v12195_v19 = vpop.f32.mrb[180].mxu1 }
 0x688   : > { %19822 = vmatpush3.bf16.msra.mxu0 %v15382_v13  ;;  %19823 = vmatprep.mubr.msk.bf16.mxu0 %vm20090_vm0, %v20091_v1  ;;  %v12978_v28 = vadd.f32 %v12946_v63, %v12195_v19  ;;  %v19471_v2 = vpop.f32.mrb[181].mxu1  ;;  %v15539_v37 = vpop.permute.xlu1 %15538  ;;  %v15806_v63 = vsel %vm1282_vm6, %v15804_v44, 0 }
 0x689   : > { %19833 = vmatprep.subr.bf16.mxu0 %v20091_v1  ;;  %v12198_v11 = vpop.f32.mrb[182].mxu1  ;;  %v15541_v13 = vsel %vm1282_vm6, %v15539_v37, 0 }
 0x68a   : > { %v12410_v58 = vpop.f32.mrb[192].mxu0  ;;  %13010 = vst.msk [vmem:[%s21182_s7 + $0x70] sm:$0xff] %vm2659_vm8, %v12978_v28  ;;  %v19472_v59 = vpop.f32.mrb[183].mxu1  ;;  %v12954_v28 = vld [vmem:[%s21182_s7 + $0xb0] sm:$0xff] }
 0x68b   : > { %v12983_v48 = vadd.f32 %v12951_v9, %v12410_v58  ;;  %v19501_v42 = vpop.f32.mrb[193].mxu0 }
 0x68c   : > { %v12413_v16 = vpop.f32.mrb[194].mxu0  ;;  %19794 = vmatmul.mubr.msk.bf16.vlgmr.msra.gmra.mrb[32].mxu1 %vm1278_vm7, %v23348_v0  ;;  %v15645_v2 = vpop.permute.xlu1 %15644 }
 0x68d   : > { %13015 = vst.msk [vmem:[%s21182_s7 + $0x98] sm:$0xff] %vm2659_vm8, %v12983_v48  ;;  %v19502_v62 = vpop.f32.mrb[195].mxu0  ;;  %19804 = vmatpush3.bf16.msra.mxu1 %v15223_v53  ;;  %19805 = vmatprep.mubr.msk.bf16.mxu1 %vm20090_vm0, %v20091_v1  ;;  %v12959_v48 = vld [vmem:[%s21182_s7 + $0xd8] sm:$0xff]  ;;  %v15910_v53 = vpop.permute.xlu0 %15909 }
 0x68e   : > { %19815 = vmatprep.subr.bf16.mxu1 %v20091_v1 }
 0x68f   : > { %19824 = vmatmul.mubr.msk.bf16.vlgmr.msra.gmra.mrb[44].mxu0 %vm1278_vm7, %v23348_v0  ;;  %v12281_v47 = vpop.f32.mrb[184].mxu1 }
 0x690   : > { %19834 = vmatpush3.bf16.msra.mxu0 %v15488_v35  ;;  %19835 = vmatprep.mubr.msk.bf16.mxu0 %vm20090_vm0, %v20091_v1  ;;  %v12980_v12 = vadd.f32 %v12948_v15, %v12281_v47  ;;  %v19483_v17 = vpop.f32.mrb[185].mxu1  ;;  %v15647_v35 = vsel %vm1282_vm6, %v15645_v2, 0  ;;  %v15912_v15 = vsel %vm1282_vm6, %v15910_v53, 0 }
 0x691   : > { %19845 = vmatprep.subr.bf16.mxu0 %v20091_v1  ;;  %v12284_v33 = vpop.f32.mrb[186].mxu1  ;;  %v15751_v17 = vpop.permute.xlu1 %15750 }
 0x692   : > { %v12496_v29 = vpop.f32.mrb[196].mxu0  ;;  %13012 = vst.msk [vmem:[%s21182_s7 + $0x80] sm:$0xff] %vm2659_vm8, %v12980_v12  ;;  %v19484_v43 = vpop.f32.mrb[187].mxu1  ;;  %v12956_v12 = vld [vmem:[%s21182_s7 + $0xc0] sm:$0xff] }
 0x693   : > { %v12985_v31 = vadd.f32 %v12953_v3, %v12496_v29  ;;  %v19513_v18 = vpop.f32.mrb[197].mxu0 }
 0x694   : > { %v12499_v50 = vpop.f32.mrb[198].mxu0  ;;  %19806 = vmatmul.mubr.msk.bf16.vlgmr.msra.gmra.mrb[36].mxu1 %vm1278_vm7, %v23348_v0 }
 0x695   : > { %13017 = vst.msk [vmem:[%s21182_s7 + $0xa8] sm:$0xff] %vm2659_vm8, %v12985_v31  ;;  %v19514_v45 = vpop.f32.mrb[199].mxu0  ;;  %19816 = vmatpush3.bf16.msra.mxu1 %v15329_v36  ;;  %19817 = vmatprep.mubr.msk.bf16.mxu1 %vm20090_vm0, %v20091_v1  ;;  %v12961_v31 = vld [vmem:[%s21182_s7 + $0xe8] sm:$0xff]  ;;  %v16016_v36 = vpop.permute.xlu0 %16015 }
 0x696   : > { %19827 = vmatprep.subr.bf16.mxu1 %v20091_v1 }
 0x697   : > { %19836 = vmatmul.mubr.msk.bf16.vlgmr.msra.gmra.mrb[48].mxu0 %vm1278_vm7, %v23348_v0  ;;  %v12367_v41 = vpop.f32.mrb[188].mxu1 }
 0x698   : > { %19846 = vmatpush3.bf16.msra.mxu0 %v15594_v8  ;;  %19847 = vmatprep.mubr.msk.bf16.mxu0 %vm20090_vm0, %v20091_v1  ;;  %v12982_v38 = vadd.f32 %v12950_v30, %v12367_v41  ;;  %v19495_v55 = vpop.f32.mrb[189].mxu1  ;;  %v15753_v8 = vsel %vm1282_vm6, %v15751_v17, 0  ;;  %v16018_v30 = vsel %vm1282_vm6, %v16016_v36, 0 }
 0x699   : > { %19857 = vmatprep.subr.bf16.mxu0 %v20091_v1  ;;  %v12370_v25 = vpop.f32.mrb[190].mxu1  ;;  %v15857_v55 = vpop.permute.xlu1 %15856 }
 0x69a   : > { %v12582_v26 = vpop.f32.mrb[200].mxu0  ;;  %13014 = vst.msk [vmem:[%s21182_s7 + $0x90] sm:$0xff] %vm2659_vm8, %v12982_v38  ;;  %v19496_v6 = vpop.f32.mrb[191].mxu1  ;;  %v12958_v38 = vld [vmem:[%s21182_s7 + $0xd0] sm:$0xff] }
 0x69b   : > { %v12987_v61 = vadd.f32 %v12955_v21, %v12582_v26  ;;  %v19525_v54 = vpop.f32.mrb[201].mxu0 }
 0x69c   : > { %v12585_v24 = vpop.f32.mrb[202].mxu0  ;;  %19818 = vmatmul.mubr.msk.bf16.vlgmr.msra.gmra.mrb[40].mxu1 %vm1278_vm7, %v23348_v0 }
 0x69d   : > { %13019 = vst.msk [vmem:[%s21182_s7 + $0xb8] sm:$0xff] %vm2659_vm8, %v12987_v61  ;;  %v19526_v27 = vpop.f32.mrb[203].mxu0  ;;  %19828 = vmatpush3.bf16.msra.mxu1 %v15435_v22  ;;  %19829 = vmatprep.mubr.msk.bf16.mxu1 %vm20090_vm0, %v20091_v1  ;;  %v12963_v61 = vld [vmem:[%s21182_s7 + $0xf8] sm:$0xff]  ;;  %v16122_v22 = vpop.permute.xlu0 %16121 }
 0x69e   : > { %19839 = vmatprep.subr.bf16.mxu1 %v20091_v1 }
 0x69f   : > { %19848 = vmatmul.mubr.msk.bf16.vlgmr.msra.gmra.mrb[52].mxu0 %vm1278_vm7, %v23348_v0  ;;  %v12453_v56 = vpop.f32.mrb[192].mxu1 }
 0x6a0   : > { %19858 = vmatpush3.bf16.msra.mxu0 %v15700_v5  ;;  %19859 = vmatprep.mubr.msk.bf16.mxu0 %vm20090_vm0, %v20091_v1  ;;  %v12984_v51 = vadd.f32 %v12952_v20, %v12453_v56  ;;  %v19507_v7 = vpop.f32.mrb[193].mxu1  ;;  %v15859_v5 = vsel %vm1282_vm6, %v15857_v55, 0  ;;  %v16124_v20 = vsel %vm1282_vm6, %v16122_v22, 0 }
 0x6a1   : > { %19869 = vmatprep.subr.bf16.mxu0 %v20091_v1  ;;  %v12456_v46 = vpop.f32.mrb[194].mxu1  ;;  %v15963_v7 = vpop.permute.xlu1 %15962 }
 0x6a2   : > { %v12668_v14 = vpop.f32.mrb[204].mxu0  ;;  %13016 = vst.msk [vmem:[%s21182_s7 + $0xa0] sm:$0xff] %vm2659_vm8, %v12984_v51  ;;  %v19508_v39 = vpop.f32.mrb[195].mxu1  ;;  %v12960_v51 = vld [vmem:[%s21182_s7 + $0xe0] sm:$0xff] }
 0x6a3   : > { %v12989_v23 = vadd.f32 %v12957_v4, %v12668_v14  ;;  %v19537_v40 = vpop.f32.mrb[205].mxu0 }
 0x6a4   : > { %v12671_v34 = vpop.f32.mrb[206].mxu0  ;;  %19830 = vmatmul.mubr.msk.bf16.vlgmr.msra.gmra.mrb[44].mxu1 %vm1278_vm7, %v23348_v0 }
 0x6a5   : > { %13021 = vst.msk [vmem:[%s21182_s7 + $0xc8] sm:$0xff] %vm2659_vm8, %v12989_v23  ;;  %v19538_v19 = vpop.f32.mrb[207].mxu0  ;;  %19840 = vmatpush3.bf16.msra.mxu1 %v15541_v13  ;;  %19841 = vmatprep.mubr.msk.bf16.mxu1 %vm20090_vm0, %v20091_v1  ;;  %v14762_v23 = vld [vmem:[%s21182_s7 + $0x8] sm:$0xff]  ;;  %v16228_v13 = vpop.permute.xlu0 %16227 }
 0x6a6   : > { %19851 = vmatprep.subr.bf16.mxu1 %v20091_v1 }
 0x6a7   : > { %19860 = vmatmul.mubr.msk.bf16.vlgmr.msra.gmra.mrb[56].mxu0 %vm1278_vm7, %v23348_v0  ;;  %v12539_v49 = vpop.f32.mrb[196].mxu1 }
 0x6a8   : > { %19870 = vmatpush3.bf16.msra.mxu0 %v15806_v63  ;;  %19871 = vmatprep.mubr.msk.bf16.mxu0 %vm20090_vm0, %v20091_v1  ;;  %v12986_v58 = vadd.f32 %v12954_v28, %v12539_v49  ;;  %v19519_v9 = vpop.f32.mrb[197].mxu1  ;;  %v15965_v63 = vsel %vm1282_vm6, %v15963_v7, 0  ;;  %v16230_v28 = vsel %vm1282_vm6, %v16228_v13, 0 }
 0x6a9   : > { %19881 = vmatprep.subr.bf16.mxu0 %v20091_v1  ;;  %v12542_v59 = vpop.f32.mrb[198].mxu1  ;;  %v16069_v9 = vpop.permute.xlu1 %16068 }
 0x6aa   : > { %v12754_v11 = vpop.f32.mrb[208].mxu0  ;;  %13018 = vst.msk [vmem:[%s21182_s7 + $0xb0] sm:$0xff] %vm2659_vm8, %v12986_v58  ;;  %v19520_v57 = vpop.f32.mrb[199].mxu1  ;;  %v12962_v58 = vld [vmem:[%s21182_s7 + $0xf0] sm:$0xff] }
 0x6ab   : > { %v12991_v42 = vadd.f32 %v12959_v48, %v12754_v11  ;;  %v19549_v16 = vpop.f32.mrb[209].mxu0 }
 0x6ac   : > { %v12757_v62 = vpop.f32.mrb[210].mxu0  ;;  %19842 = vmatmul.mubr.msk.bf16.vlgmr.msra.gmra.mrb[48].mxu1 %vm1278_vm7, %v23348_v0 }
 0x6ad   : > { %13023 = vst.msk [vmem:[%s21182_s7 + $0xd8] sm:$0xff] %vm2659_vm8, %v12991_v42  ;;  %v19550_v47 = vpop.f32.mrb[211].mxu0  ;;  %19852 = vmatpush3.bf16.msra.mxu1 %v15647_v35  ;;  %19853 = vmatprep.mubr.msk.bf16.mxu1 %vm20090_vm0, %v20091_v1  ;;  %v14764_v42 = vld [vmem:[%s21182_s7 + $0x18] sm:$0xff]  ;;  %v16334_v35 = vpop.permute.xlu0 %16333 }
 0x6ae   : > { %19863 = vmatprep.subr.bf16.mxu1 %v20091_v1 }
 0x6af   : > { %19872 = vmatmul.mubr.msk.bf16.vlgmr.msra.gmra.mrb[60].mxu0 %vm1278_vm7, %v23348_v0  ;;  %v12625_v52 = vpop.f32.mrb[200].mxu1 }
 0x6b0   : > { %19882 = vmatpush3.bf16.msra.mxu0 %v15912_v15  ;;  %19883 = vmatprep.mubr.msk.bf16.mxu0 %vm20090_vm0, %v20091_v1  ;;  %v12988_v29 = vadd.f32 %v12956_v12, %v12625_v52  ;;  %v19531_v3 = vpop.f32.mrb[201].mxu1  ;;  %v16071_v15 = vsel %vm1282_vm6, %v16069_v9, 0  ;;  %v16336_v12 = vsel %vm1282_vm6, %v16334_v35, 0 }
 0x6b1   : > { %19893 = vmatprep.subr.bf16.mxu0 %v20091_v1  ;;  %v12628_v43 = vpop.f32.mrb[202].mxu1  ;;  %v16175_v3 = vpop.permute.xlu1 %16174 }
 0x6b2   : > { %v12840_v33 = vpop.f32.mrb[212].mxu0  ;;  %13020 = vst.msk [vmem:[%s21182_s7 + $0xc0] sm:$0xff] %vm2659_vm8, %v12988_v29  ;;  %v19532_v60 = vpop.f32.mrb[203].mxu1  ;;  %v14761_v29 = vld [vmem:[%s21182_s7] sm:$0xff] }
 0x6b3   : > { %v12993_v18 = vadd.f32 %v12961_v31, %v12840_v33  ;;  %v19561_v50 = vpop.f32.mrb[213].mxu0 }
 0x6b4   : > { %v12843_v45 = vpop.f32.mrb[214].mxu0  ;;  %19854 = vmatmul.mubr.msk.bf16.vlgmr.msra.gmra.mrb[52].mxu1 %vm1278_vm7, %v23348_v0 }
 0x6b5   : > { %13025 = vst.msk [vmem:[%s21182_s7 + $0xe8] sm:$0xff] %vm2659_vm8, %v12993_v18  ;;  %v19562_v41 = vpop.f32.mrb[215].mxu0  ;;  %19864 = vmatpush3.bf16.msra.mxu1 %v15753_v8  ;;  %19865 = vmatprep.mubr.msk.bf16.mxu1 %vm20090_vm0, %v20091_v1  ;;  %v14766_v18 = vld [vmem:[%s21182_s7 + $0x28] sm:$0xff]  ;;  %v16440_v8 = vpop.permute.xlu0 %16439 }
 0x6b6   : > { %19875 = vmatprep.subr.bf16.mxu1 %v20091_v1 }
 0x6b7   : > { %19884 = vmatmul.mubr.msk.bf16.vlgmr.msra.gmra.mrb[64].mxu0 %vm1278_vm7, %v23348_v0  ;;  %v12711_v32 = vpop.f32.mrb[204].mxu1 }
 0x6b8   : > { %19894 = vmatpush3.bf16.msra.mxu0 %v16018_v30  ;;  %19895 = vmatprep.mubr.msk.bf16.mxu0 %vm20090_vm0, %v20091_v1  ;;  %v12990_v26 = vadd.f32 %v12958_v38, %v12711_v32  ;;  %v19543_v21 = vpop.f32.mrb[205].mxu1  ;;  %v16177_v30 = vsel %vm1282_vm6, %v16175_v3, 0  ;;  %v16442_v38 = vsel %vm1282_vm6, %v16440_v8, 0 }
 0x6b9   : > { %19905 = vmatprep.subr.bf16.mxu0 %v20091_v1  ;;  %v12714_v6 = vpop.f32.mrb[206].mxu1  ;;  %v16281_v21 = vpop.permute.xlu1 %16280 }
 0x6ba   : > { %v12926_v25 = vpop.f32.mrb[216].mxu0  ;;  %13022 = vst.msk [vmem:[%s21182_s7 + $0xd0] sm:$0xff] %vm2659_vm8, %v12990_v26  ;;  %v19544_v10 = vpop.f32.mrb[207].mxu1  ;;  %v14763_v26 = vld [vmem:[%s21182_s7 + $0x10] sm:$0xff] }
 0x6bb   : > { %v12995_v54 = vadd.f32 %v12963_v61, %v12926_v25  ;;  %v19573_v24 = vpop.f32.mrb[217].mxu0 }
 0x6bc   : > { %v12929_v27 = vpop.f32.mrb[218].mxu0  ;;  %19866 = vmatmul.mubr.msk.bf16.vlgmr.msra.gmra.mrb[56].mxu1 %vm1278_vm7, %v23348_v0 }
 0x6bd   : > { %13027 = vst.msk [vmem:[%s21182_s7 + $0xf8] sm:$0xff] %vm2659_vm8, %v12995_v54  ;;  %v19574_v56 = vpop.f32.mrb[219].mxu0  ;;  %19876 = vmatpush3.bf16.msra.mxu1 %v15859_v5  ;;  %19877 = vmatprep.mubr.msk.bf16.mxu1 %vm20090_vm0, %v20091_v1  ;;  %v14768_v54 = vld [vmem:[%s21182_s7 + $0x38] sm:$0xff]  ;;  %v16546_v5 = vpop.permute.xlu0 %16545 }
 0x6be   : > { %19887 = vmatprep.subr.bf16.mxu1 %v20091_v1 }
 0x6bf   : > { %19896 = vmatmul.mubr.msk.bf16.vlgmr.msra.gmra.mrb[68].mxu0 %vm1278_vm7, %v23348_v0  ;;  %v12797_v37 = vpop.f32.mrb[208].mxu1 }
 0x6c0   : > { %19906 = vmatpush3.bf16.msra.mxu0 %v16124_v20  ;;  %19907 = vmatprep.mubr.msk.bf16.mxu0 %vm20090_vm0, %v20091_v1  ;;  %v12992_v14 = vadd.f32 %v12960_v51, %v12797_v37  ;;  %v19555_v4 = vpop.f32.mrb[209].mxu1  ;;  %v16283_v20 = vsel %vm1282_vm6, %v16281_v21, 0  ;;  %v16548_v51 = vsel %vm1282_vm6, %v16546_v5, 0 }
 0x6c1   : > { %19917 = vmatprep.subr.bf16.mxu0 %v20091_v1  ;;  %v12800_v39 = vpop.f32.mrb[210].mxu1  ;;  %v16387_v4 = vpop.permute.xlu1 %16386 }
 0x6c2   : > { %v13165_v46 = vpop.f32.mrb[220].mxu0  ;;  %13024 = vst.msk [vmem:[%s21182_s7 + $0xe0] sm:$0xff] %vm2659_vm8, %v12992_v14  ;;  %v19556_v44 = vpop.f32.mrb[211].mxu1  ;;  %v14765_v14 = vld [vmem:[%s21182_s7 + $0x20] sm:$0xff] }
 0x6c3   : > { %v14794_v40 = vadd.f32 %v14762_v23, %v13165_v46  ;;  %v19585_v34 = vpop.f32.mrb[221].mxu0 }
 0x6c4   : > { %v13168_v19 = vpop.f32.mrb[222].mxu0  ;;  %19878 = vmatmul.mubr.msk.bf16.vlgmr.msra.gmra.mrb[60].mxu1 %vm1278_vm7, %v23348_v0 }
 0x6c5   : > { %14826 = vst.msk [vmem:[%s21182_s7 + $0x8] sm:$0xff] %vm2659_vm8, %v14794_v40  ;;  %v19586_v49 = vpop.f32.mrb[223].mxu0  ;;  %19888 = vmatpush3.bf16.msra.mxu1 %v15965_v63  ;;  %19889 = vmatprep.mubr.msk.bf16.mxu1 %vm20090_vm0, %v20091_v1  ;;  %v14770_v40 = vld [vmem:[%s21182_s7 + $0x48] sm:$0xff]  ;;  %v16493_v9 = vpop.permute.xlu1 %16492 }
 0x6c6   : > { %19899 = vmatprep.subr.bf16.mxu1 %v20091_v1  ;;  %v16389_v49 = vsel %vm1282_vm6, %v16387_v4, 0 }
 0x6c7   : > { %19908 = vmatmul.mubr.msk.bf16.vlgmr.msra.gmra.mrb[72].mxu0 %vm1278_vm7, %v23348_v0  ;;  %v12883_v2 = vpop.f32.mrb[212].mxu1 }
 0x6c8   : > { %19918 = vmatpush3.bf16.msra.mxu0 %v16230_v28  ;;  %19919 = vmatprep.mubr.msk.bf16.mxu0 %vm20090_vm0, %v20091_v1  ;;  %v12994_v11 = vadd.f32 %v12962_v58, %v12883_v2  ;;  %v19567_v48 = vpop.f32.mrb[213].mxu1  ;;  %v14767_v58 = vld [vmem:[%s21182_s7 + $0x30] sm:$0xff] }
 0x6c9   : > { %19929 = vmatprep.subr.bf16.mxu0 %v20091_v1  ;;  %v12886_v57 = vpop.f32.mrb[214].mxu1 }
 0x6ca   : > { %v13271_v59 = vpop.f32.mrb[224].mxu0  ;;  %13026 = vst.msk [vmem:[%s21182_s7 + $0xf0] sm:$0xff] %vm2659_vm8, %v12994_v11  ;;  %v19568_v53 = vpop.f32.mrb[215].mxu1 }
 0x6cb   : > { %v14796_v16 = vadd.f32 %v14764_v42, %v13271_v59  ;;  %v19597_v62 = vpop.f32.mrb[225].mxu0  ;;  %v14772_v42 = vld [vmem:[%s21182_s7 + $0x58] sm:$0xff] }
 0x6cc   : > { %v13274_v47 = vpop.f32.mrb[226].mxu0  ;;  %19890 = vmatmul.mubr.msk.bf16.vlgmr.msra.gmra.mrb[64].mxu1 %vm1278_vm7, %v23348_v0 }
 0x6cd   : > { %14828 = vst.msk [vmem:[%s21182_s7 + $0x18] sm:$0xff] %vm2659_vm8, %v14796_v16  ;;  %v19598_v52 = vpop.f32.mrb[227].mxu0  ;;  %19900 = vmatpush3.bf16.msra.mxu1 %v16071_v15  ;;  %19901 = vmatprep.mubr.msk.bf16.mxu1 %vm20090_vm0, %v20091_v1  ;;  %v16495_v47 = vsel %vm1282_vm6, %v16493_v9, 0 }
 0x6ce   : > { %19911 = vmatprep.subr.bf16.mxu1 %v20091_v1 }
 0x6cf   : > { %19920 = vmatmul.mubr.msk.bf16.vlgmr.msra.gmra.mrb[76].mxu0 %vm1278_vm7, %v23348_v0  ;;  %v13112_v17 = vpop.f32.mrb[216].mxu1 }
 0x6d0   : > { %19930 = vmatpush3.bf16.msra.mxu0 %v16336_v12  ;;  %19931 = vmatprep.mubr.msk.bf16.mxu0 %vm20090_vm0, %v20091_v1  ;;  %v14793_v33 = vadd.f32 %v14761_v29, %v13112_v17  ;;  %v19579_v31 = vpop.f32.mrb[217].mxu1  ;;  %v14769_v12 = vld [vmem:[%s21182_s7 + $0x40] sm:$0xff] }
 0x6d1   : > { %19941 = vmatprep.subr.bf16.mxu0 %v20091_v1  ;;  %v13115_v60 = vpop.f32.mrb[218].mxu1 }
 0x6d2   : > { %v13377_v43 = vpop.f32.mrb[228].mxu0  ;;  %14825 = vst.msk [vmem:[%s21182_s7] sm:$0xff] %vm2659_vm8, %v14793_v33  ;;  %v19580_v36 = vpop.f32.mrb[219].mxu1  ;;  %v14774_v33 = vld [vmem:[%s21182_s7 + $0x68] sm:$0xff] }
 0x6d3   : > { %v14798_v50 = vadd.f32 %v14766_v18, %v13377_v43  ;;  %v19609_v45 = vpop.f32.mrb[229].mxu0 }
 0x6d4   : > { %v13380_v41 = vpop.f32.mrb[230].mxu0  ;;  %19902 = vmatmul.mubr.msk.bf16.vlgmr.msra.gmra.mrb[68].mxu1 %vm1278_vm7, %v23348_v0  ;;  %v14771_v45 = vld [vmem:[%s21182_s7 + $0x50] sm:$0xff] }
 0x6d5   : > { %14830 = vst.msk [vmem:[%s21182_s7 + $0x28] sm:$0xff] %vm2659_vm8, %v14798_v50  ;;  %v19610_v32 = vpop.f32.mrb[231].mxu0  ;;  %19912 = vmatpush3.bf16.msra.mxu1 %v16177_v30  ;;  %19913 = vmatprep.mubr.msk.bf16.mxu1 %vm20090_vm0, %v20091_v1 }
 0x6d6   : > { %19923 = vmatprep.subr.bf16.mxu1 %v20091_v1  ;;  %v14776_v32 = vld [vmem:[%s21182_s7 + $0x78] sm:$0xff] }
 0x6d7   : > { %19932 = vmatmul.mubr.msk.bf16.vlgmr.msra.gmra.mrb[80].mxu0 %vm1278_vm7, %v23348_v0  ;;  %v13218_v55 = vpop.f32.mrb[220].mxu1 }
 0x6d8   : > { %19942 = vmatpush3.bf16.msra.mxu0 %v16442_v38  ;;  %19943 = vmatprep.mubr.msk.bf16.mxu0 %vm20090_vm0, %v20091_v1  ;;  %v14795_v25 = vadd.f32 %v14763_v26, %v13218_v55  ;;  %v19591_v61 = vpop.f32.mrb[221].mxu1 }
 0x6d9   : > { %19953 = vmatprep.subr.bf16.mxu0 %v20091_v1  ;;  %v13221_v10 = vpop.f32.mrb[222].mxu1 }
 0x6da   : > { %v13483_v6 = vpop.f32.mrb[232].mxu0  ;;  %14827 = vst.msk [vmem:[%s21182_s7 + $0x10] sm:$0xff] %vm2659_vm8, %v14795_v25  ;;  %v19592_v22 = vpop.f32.mrb[223].mxu1 }
 0x6db   : > { %v14800_v24 = vadd.f32 %v14768_v54, %v13483_v6  ;;  %v19621_v27 = vpop.f32.mrb[233].mxu0  ;;  %v14773_v6 = vld [vmem:[%s21182_s7 + $0x60] sm:$0xff]  ;;  %v14778_v22 = vld [vmem:[%s21182_s7 + $0x88] sm:$0xff] }
 0x6dc   : > { %v13486_v56 = vpop.f32.mrb[234].mxu0  ;;  %19914 = vmatmul.mubr.msk.bf16.vlgmr.msra.gmra.mrb[72].mxu1 %vm1278_vm7, %v23348_v0 }
 0x6dd   : > { %14832 = vst.msk [vmem:[%s21182_s7 + $0x38] sm:$0xff] %vm2659_vm8, %v14800_v24  ;;  %v19622_v37 = vpop.f32.mrb[235].mxu0  ;;  %19924 = vmatpush3.bf16.msra.mxu1 %v16283_v20  ;;  %19925 = vmatprep.mubr.msk.bf16.mxu1 %vm20090_vm0, %v20091_v1 }
 0x6de   : > { %19935 = vmatprep.subr.bf16.mxu1 %v20091_v1 }
 0x6df   : > { %19944 = vmatmul.mubr.msk.bf16.vlgmr.msra.gmra.mrb[84].mxu0 %vm1278_vm7, %v23348_v0  ;;  %v13324_v7 = vpop.f32.mrb[224].mxu1 }
 0x6e0   : > { %19954 = vmatpush3.bf16.msra.mxu0 %v16548_v51  ;;  %19955 = vmatprep.mubr.msk.bf16.mxu0 %vm20090_vm0, %v20091_v1  ;;  %v14797_v46 = vadd.f32 %v14765_v14, %v13324_v7  ;;  %v19603_v23 = vpop.f32.mrb[225].mxu1  ;;  %v14775_v14 = vld [vmem:[%s21182_s7 + $0x70] sm:$0xff] }
 0x6e1   : > { %v13327_v44 = vpop.f32.mrb[226].mxu1 }
 0x6e2   : > { %v13589_v39 = vpop.f32.mrb[236].mxu0  ;;  %14829 = vst.msk [vmem:[%s21182_s7 + $0x20] sm:$0xff] %vm2659_vm8, %v14797_v46  ;;  %v19604_v13 = vpop.f32.mrb[227].mxu1 }
 0x6e3   : > { %v14802_v34 = vadd.f32 %v14770_v40, %v13589_v39  ;;  %v19633_v19 = vpop.f32.mrb[237].mxu0  ;;  %v14780_v39 = vld [vmem:[%s21182_s7 + $0x98] sm:$0xff] }
 0x6e4   : > { %v13592_v63 = vpop.f32.mrb[238].mxu0  ;;  %19926 = vmatmul.mubr.msk.bf16.vlgmr.msra.gmra.mrb[76].mxu1 %vm1278_vm7, %v23348_v0 }
 0x6e5   : > { %14834 = vst.msk [vmem:[%s21182_s7 + $0x48] sm:$0xff] %vm2659_vm8, %v14802_v34  ;;  %v19634_v28 = vpop.f32.mrb[239].mxu0  ;;  %19936 = vmatpush3.bf16.msra.mxu1 %v16389_v49  ;;  %19937 = vmatprep.mubr.msk.bf16.mxu1 %vm20090_vm0, %v20091_v1 }
 0x6e6   : > { %19947 = vmatprep.subr.bf16.mxu1 %v20091_v1  ;;  %v14777_v28 = vld [vmem:[%s21182_s7 + $0x80] sm:$0xff] }
 0x6e7   : > { %19956 = vmatmul.mubr.msk.bf16.vlgmr.msra.gmra.mrb[88].mxu0 %vm1278_vm7, %v23348_v0  ;;  %v13430_v2 = vpop.f32.mrb[228].mxu1 }
 0x6e8   : > { %v14799_v11 = vadd.f32 %v14767_v58, %v13430_v2  ;;  %v19615_v48 = vpop.f32.mrb[229].mxu1 }
 0x6e9   : > { %v13433_v57 = vpop.f32.mrb[230].mxu1 }
 0x6ea   : > { %v13695_v59 = vpop.f32.mrb[240].mxu0  ;;  %14831 = vst.msk [vmem:[%s21182_s7 + $0x30] sm:$0xff] %vm2659_vm8, %v14799_v11  ;;  %v19616_v53 = vpop.f32.mrb[231].mxu1  ;;  %v14782_v11 = vld [vmem:[%s21182_s7 + $0xa8] sm:$0xff] }
 0x6eb   : > { %v14804_v16 = vadd.f32 %v14772_v42, %v13695_v59  ;;  %v19645_v62 = vpop.f32.mrb[241].mxu0 }
 0x6ec   : > { %v13698_v35 = vpop.f32.mrb[242].mxu0  ;;  %19938 = vmatmul.mubr.msk.bf16.vlgmr.msra.gmra.mrb[80].mxu1 %vm1278_vm7, %v23348_v0 }
 0x6ed   : > { %14836 = vst.msk [vmem:[%s21182_s7 + $0x58] sm:$0xff] %vm2659_vm8, %v14804_v16  ;;  %v19646_v15 = vpop.f32.mrb[243].mxu0  ;;  %19948 = vmatpush3.bf16.msra.mxu1 %v16495_v47  ;;  %19949 = vmatprep.mubr.msk.bf16.mxu1 %vm20090_vm0, %v20091_v1  ;;  %v14779_v35 = vld [vmem:[%s21182_s7 + $0x90] sm:$0xff] }
 0x6ef   : > { %v13536_v52 = vpop.f32.mrb[232].mxu1 }
 0x6f0   : > { %v14801_v17 = vadd.f32 %v14769_v12, %v13536_v52  ;;  %v19627_v29 = vpop.f32.mrb[233].mxu1  ;;  %v14784_v12 = vld [vmem:[%s21182_s7 + $0xb8] sm:$0xff] }
 0x6f1   : > { %v13539_v31 = vpop.f32.mrb[234].mxu1 }
 0x6f2   : > { %v13801_v3 = vpop.f32.mrb[244].mxu0  ;;  %14833 = vst.msk [vmem:[%s21182_s7 + $0x40] sm:$0xff] %vm2659_vm8, %v14801_v17  ;;  %v19628_v18 = vpop.f32.mrb[235].mxu1 }
 0x6f3   : > { %v14806_v43 = vadd.f32 %v14774_v33, %v13801_v3  ;;  %v19657_v60 = vpop.f32.mrb[245].mxu0 }
 0x6f4   : > { %v13804_v50 = vpop.f32.mrb[246].mxu0  ;;  %19950 = vmatmul.mubr.msk.bf16.vlgmr.msra.gmra.mrb[84].mxu1 %vm1278_vm7, %v23348_v0  ;;  %v14781_v60 = vld [vmem:[%s21182_s7 + $0xa0] sm:$0xff] }
 0x6f5   : > { %14838 = vst.msk [vmem:[%s21182_s7 + $0x68] sm:$0xff] %vm2659_vm8, %v14806_v43  ;;  %v19658_v1 = vpop.f32.mrb[247].mxu0 }
 0x6f7   : > { %v13642_v36 = vpop.f32.mrb[236].mxu1 }
 0x6f8   : > { %v14803_v8 = vadd.f32 %v14771_v45, %v13642_v36  ;;  %v19639_v41 = vpop.f32.mrb[237].mxu1  ;;  %v14786_v45 = vld [vmem:[%s21182_s7 + $0xc8] sm:$0xff] }
 0x6f9   : > { %v13645_v38 = vpop.f32.mrb[238].mxu1 }
 0x6fa   : > { %v13907_v30 = vpop.f32.mrb[248].mxu0  ;;  %14835 = vst.msk [vmem:[%s21182_s7 + $0x50] sm:$0xff] %vm2659_vm8, %v14803_v8  ;;  %v19640_v26 = vpop.f32.mrb[239].mxu1 }
 0x6fb   : > { %v14808_v55 = vadd.f32 %v14776_v32, %v13907_v30  ;;  %v19669_v21 = vpop.f32.mrb[249].mxu0 }
 0x6fc   : > { %v13910_v25 = vpop.f32.mrb[250].mxu0  ;;  %v14783_v21 = vld [vmem:[%s21182_s7 + $0xb0] sm:$0xff] }
 0x6fd   : > { %14840 = vst.msk [vmem:[%s21182_s7 + $0x78] sm:$0xff] %vm2659_vm8, %v14808_v55  ;;  %v19670_v0 = vpop.f32.mrb[251].mxu0 }
 0x6ff   : > { %v13748_v61 = vpop.f32.mrb[240].mxu1 }
 0x700   : > { %v14805_v54 = vadd.f32 %v14773_v6, %v13748_v61  ;;  %v19651_v10 = vpop.f32.mrb[241].mxu1  ;;  %v14788_v6 = vld [vmem:[%s21182_s7 + $0xd8] sm:$0xff] }
 0x701   : > { %v13751_v27 = vpop.f32.mrb[242].mxu1 }
 0x702   : > { %v14013_v24 = vpop.f32.mrb[252].mxu0  ;;  %14837 = vst.msk [vmem:[%s21182_s7 + $0x60] sm:$0xff] %vm2659_vm8, %v14805_v54  ;;  %v19652_v56 = vpop.f32.mrb[243].mxu1 }
 0x703   : > { %v14810_v5 = vadd.f32 %v14778_v22, %v14013_v24  ;;  %v19681_v20 = vpop.f32.mrb[253].mxu0 }
 0x704   : > { %v14016_v37 = vpop.f32.mrb[254].mxu0  ;;  %v14785_v20 = vld [vmem:[%s21182_s7 + $0xc0] sm:$0xff] }
 0x705   : > { %14842 = vst.msk [vmem:[%s21182_s7 + $0x88] sm:$0xff] %vm2659_vm8, %v14810_v5  ;;  %v19682_v51 = vpop.f32.mrb[255].mxu0 }
 0x707   : > { %v13854_v7 = vpop.f32.mrb[244].mxu1 }
 0x708   : > { %v14807_v4 = vadd.f32 %v14775_v14, %v13854_v7  ;;  %v19663_v46 = vpop.f32.mrb[245].mxu1  ;;  %v14790_v14 = vld [vmem:[%s21182_s7 + $0xe8] sm:$0xff] }
 0x709   : > { %v13857_v40 = vpop.f32.mrb[246].mxu1 }
 0x70a   : > { %v14119_v23 = vpop.f32.mrb[0].mxu0  ;;  %14839 = vst.msk [vmem:[%s21182_s7 + $0x70] sm:$0xff] %vm2659_vm8, %v14807_v4  ;;  %v19664_v34 = vpop.f32.mrb[247].mxu1 }
 0x70b   : > { %v14812_v44 = vadd.f32 %v14780_v39, %v14119_v23  ;;  %v19693_v13 = vpop.f32.mrb[1].mxu0 }
 0x70c   : > { %v14122_v19 = vpop.f32.mrb[2].mxu0  ;;  %v14787_v13 = vld [vmem:[%s21182_s7 + $0xd0] sm:$0xff] }
 0x70d   : > { %14844 = vst.msk [vmem:[%s21182_s7 + $0x98] sm:$0xff] %vm2659_vm8, %v14812_v44  ;;  %v19694_v63 = vpop.f32.mrb[3].mxu0 }
 0x70f   : > { %v13960_v49 = vpop.f32.mrb[248].mxu1 }
 0x710   : > { %v14809_v2 = vadd.f32 %v14777_v28, %v13960_v49  ;;  %v19675_v58 = vpop.f32.mrb[249].mxu1  ;;  %v14792_v28 = vld [vmem:[%s21182_s7 + $0xf8] sm:$0xff] }
 0x711   : > { %v13963_v48 = vpop.f32.mrb[250].mxu1 }
 0x712   : > { %v14225_v9 = vpop.f32.mrb[4].mxu0  ;;  %14841 = vst.msk [vmem:[%s21182_s7 + $0x80] sm:$0xff] %vm2659_vm8, %v14809_v2  ;;  %v19676_v42 = vpop.f32.mrb[251].mxu1 }
 0x713   : > { %v14814_v59 = vadd.f32 %v14782_v11, %v14225_v9  ;;  %v19705_v57 = vpop.f32.mrb[5].mxu0 }
 0x714   : > { %v14228_v16 = vpop.f32.mrb[6].mxu0  ;;  %v14789_v57 = vld [vmem:[%s21182_s7 + $0xe0] sm:$0xff] }
 0x715   : > { %14846 = vst.msk [vmem:[%s21182_s7 + $0xa8] sm:$0xff] %vm2659_vm8, %v14814_v59  ;;  %v19706_v53 = vpop.f32.mrb[7].mxu0 }
 0x717   : > { %v14066_v62 = vpop.f32.mrb[252].mxu1 }
 0x718   : > { %v14811_v47 = vadd.f32 %v14779_v35, %v14066_v62  ;;  %v19687_v15 = vpop.f32.mrb[253].mxu1  ;;  %v16591_v35 = vld [vmem:[%s21182_s7 + $0x8] sm:$0xff] }
 0x719   : > { %v14069_v17 = vpop.f32.mrb[254].mxu1 }
 0x71a   : > { %v14331_v52 = vpop.f32.mrb[8].mxu0  ;;  %14843 = vst.msk [vmem:[%s21182_s7 + $0x90] sm:$0xff] %vm2659_vm8, %v14811_v47  ;;  %v19688_v3 = vpop.f32.mrb[255].mxu1 }
 0x71b   : > { %v14816_v29 = vadd.f32 %v14784_v12, %v14331_v52  ;;  %v19717_v33 = vpop.f32.mrb[9].mxu0 }
 0x71c   : > { %v14334_v31 = vpop.f32.mrb[10].mxu0  ;;  %v14791_v33 = vld [vmem:[%s21182_s7 + $0xf0] sm:$0xff] }
 0x71d   : > { %14848 = vst.msk [vmem:[%s21182_s7 + $0xb8] sm:$0xff] %vm2659_vm8, %v14816_v29  ;;  %v19718_v43 = vpop.f32.mrb[11].mxu0 }
 0x71f   : > { %v14172_v18 = vpop.f32.mrb[0].mxu1 }
 0x720   : > { %v14813_v50 = vadd.f32 %v14781_v60, %v14172_v18  ;;  %v19699_v1 = vpop.f32.mrb[1].mxu1  ;;  %v16593_v60 = vld [vmem:[%s21182_s7 + $0x18] sm:$0xff] }
 0x721   : > { %v14175_v8 = vpop.f32.mrb[2].mxu1 }
 0x722   : > { %v14437_v36 = vpop.f32.mrb[12].mxu0  ;;  %14845 = vst.msk [vmem:[%s21182_s7 + $0xa0] sm:$0xff] %vm2659_vm8, %v14813_v50  ;;  %v19700_v30 = vpop.f32.mrb[3].mxu1 }
 0x723   : > { %v14818_v41 = vadd.f32 %v14786_v45, %v14437_v36  ;;  %v19729_v32 = vpop.f32.mrb[13].mxu0 }
 0x724   : > { %v14440_v38 = vpop.f32.mrb[14].mxu0  ;;  %v16590_v32 = vld [vmem:[%s21182_s7] sm:$0xff] }
 0x725   : > { %14850 = vst.msk [vmem:[%s21182_s7 + $0xc8] sm:$0xff] %vm2659_vm8, %v14818_v41  ;;  %v19730_v55 = vpop.f32.mrb[15].mxu0 }
 0x727   : > { %v14278_v26 = vpop.f32.mrb[4].mxu1 }
 0x728   : > { %v14815_v25 = vadd.f32 %v14783_v21, %v14278_v26  ;;  %v19711_v0 = vpop.f32.mrb[5].mxu1  ;;  %v16595_v21 = vld [vmem:[%s21182_s7 + $0x28] sm:$0xff] }
 0x729   : > { %v14281_v54 = vpop.f32.mrb[6].mxu1 }
 0x72a   : > { %v14543_v61 = vpop.f32.mrb[16].mxu0  ;;  %14847 = vst.msk [vmem:[%s21182_s7 + $0xb0] sm:$0xff] %vm2659_vm8, %v14815_v25  ;;  %v19712_v24 = vpop.f32.mrb[7].mxu1 }
 0x72b   : > { %v14820_v10 = vadd.f32 %v14788_v6, %v14543_v61  ;;  %v19741_v22 = vpop.f32.mrb[17].mxu0 }
 0x72c   : > { %v14546_v27 = vpop.f32.mrb[18].mxu0  ;;  %v16592_v22 = vld [vmem:[%s21182_s7 + $0x10] sm:$0xff] }
 0x72d   : > { %14852 = vst.msk [vmem:[%s21182_s7 + $0xd8] sm:$0xff] %vm2659_vm8, %v14820_v10  ;;  %v19742_v5 = vpop.f32.mrb[19].mxu0 }
 0x72f   : > { %v14384_v56 = vpop.f32.mrb[8].mxu1 }
 0x730   : > { %v14817_v37 = vadd.f32 %v14785_v20, %v14384_v56  ;;  %v19723_v51 = vpop.f32.mrb[9].mxu1  ;;  %v16597_v20 = vld [vmem:[%s21182_s7 + $0x38] sm:$0xff] }
 0x731   : > { %v14387_v4 = vpop.f32.mrb[10].mxu1 }
 0x732   : > { %v14649_v7 = vpop.f32.mrb[20].mxu0  ;;  %14849 = vst.msk [vmem:[%s21182_s7 + $0xc0] sm:$0xff] %vm2659_vm8, %v14817_v37  ;;  %v19724_v23 = vpop.f32.mrb[11].mxu1 }
 0x733   : > { %v14822_v46 = vadd.f32 %v14790_v14, %v14649_v7  ;;  %v19753_v39 = vpop.f32.mrb[21].mxu0 }
 0x734   : > { %v14652_v40 = vpop.f32.mrb[22].mxu0  ;;  %v16594_v39 = vld [vmem:[%s21182_s7 + $0x20] sm:$0xff] }
 0x735   : > { %14854 = vst.msk [vmem:[%s21182_s7 + $0xe8] sm:$0xff] %vm2659_vm8, %v14822_v46  ;;  %v19754_v44 = vpop.f32.mrb[23].mxu0 }
 0x737   : > { %v14490_v34 = vpop.f32.mrb[12].mxu1 }
 0x738   : > { %v14819_v19 = vadd.f32 %v14787_v13, %v14490_v34  ;;  %v19735_v63 = vpop.f32.mrb[13].mxu1  ;;  %v16599_v13 = vld [vmem:[%s21182_s7 + $0x48] sm:$0xff] }
 0x739   : > { %v14493_v2 = vpop.f32.mrb[14].mxu1 }
 0x73a   : > { %v14755_v49 = vpop.f32.mrb[24].mxu0  ;;  %14851 = vst.msk [vmem:[%s21182_s7 + $0xd0] sm:$0xff] %vm2659_vm8, %v14819_v19  ;;  %v19736_v9 = vpop.f32.mrb[15].mxu1 }
 0x73b   : > { %v14824_v58 = vadd.f32 %v14792_v28, %v14755_v49  ;;  %v19765_v11 = vpop.f32.mrb[25].mxu0 }
 0x73c   : > { %v14758_v48 = vpop.f32.mrb[26].mxu0  ;;  %v16596_v11 = vld [vmem:[%s21182_s7 + $0x30] sm:$0xff] }
 0x73d   : > { %14856 = vst.msk [vmem:[%s21182_s7 + $0xf8] sm:$0xff] %vm2659_vm8, %v14824_v58  ;;  %v19766_v59 = vpop.f32.mrb[27].mxu0 }
 0x73f   : > { %v14596_v42 = vpop.f32.mrb[16].mxu1 }
 0x740   : > { %v14821_v16 = vadd.f32 %v14789_v57, %v14596_v42  ;;  %v19747_v53 = vpop.f32.mrb[17].mxu1  ;;  %v16601_v57 = vld [vmem:[%s21182_s7 + $0x58] sm:$0xff] }
 0x741   : > { %v14599_v47 = vpop.f32.mrb[18].mxu1 }
 0x742   : > { %v14994_v62 = vpop.f32.mrb[28].mxu0  ;;  %14853 = vst.msk [vmem:[%s21182_s7 + $0xe0] sm:$0xff] %vm2659_vm8, %v14821_v16  ;;  %v19748_v52 = vpop.f32.mrb[19].mxu1 }
 0x743   : > { %v16623_v15 = vadd.f32 %v16591_v35, %v14994_v62  ;;  %v19777_v12 = vpop.f32.mrb[29].mxu0 }
 0x744   : > { %v14997_v17 = vpop.f32.mrb[30].mxu0  ;;  %v16598_v12 = vld [vmem:[%s21182_s7 + $0x40] sm:$0xff] }
 0x745   : > { %16655 = vst.msk [vmem:[%s21182_s7 + $0x8] sm:$0xff] %vm2659_vm8, %v16623_v15  ;;  %v19778_v29 = vpop.f32.mrb[31].mxu0 }
 0x747   : > { %v14702_v3 = vpop.f32.mrb[20].mxu1 }
 0x748   : > { %v14823_v31 = vadd.f32 %v14791_v33, %v14702_v3  ;;  %v19759_v43 = vpop.f32.mrb[21].mxu1  ;;  %v16603_v33 = vld [vmem:[%s21182_s7 + $0x68] sm:$0xff] }
 0x749   : > { %v14705_v50 = vpop.f32.mrb[22].mxu1 }
 0x74a   : > { %v15100_v18 = vpop.f32.mrb[32].mxu0  ;;  %14855 = vst.msk [vmem:[%s21182_s7 + $0xf0] sm:$0xff] %vm2659_vm8, %v14823_v31  ;;  %v19760_v36 = vpop.f32.mrb[23].mxu1 }
 0x74b   : > { %v16625_v1 = vadd.f32 %v16593_v60, %v15100_v18  ;;  %v19789_v45 = vpop.f32.mrb[33].mxu0 }
 0x74c   : > { %v15103_v8 = vpop.f32.mrb[34].mxu0  ;;  %v16687_v45 = vld [vmem:[%s21182_s7 + $0x8] sm:$0xff] }
 0x74d   : > { %16657 = vst.msk [vmem:[%s21182_s7 + $0x18] sm:$0xff] %vm2659_vm8, %v16625_v1  ;;  %v19790_v41 = vpop.f32.mrb[35].mxu0 }
 0x74f   : > { %v14941_v30 = vpop.f32.mrb[24].mxu1 }
 0x750   : > { %v16622_v38 = vadd.f32 %v16590_v32, %v14941_v30  ;;  %v19771_v55 = vpop.f32.mrb[25].mxu1  ;;  %v16600_v30 = vld [vmem:[%s21182_s7 + $0x50] sm:$0xff] }
 0x751   : > { %v14944_v25 = vpop.f32.mrb[26].mxu1 }
 0x752   : > { %v15206_v26 = vpop.f32.mrb[36].mxu0  ;;  %16654 = vst.msk [vmem:[%s21182_s7] sm:$0xff] %vm2659_vm8, %v16622_v38  ;;  %v19772_v61 = vpop.f32.mrb[27].mxu1 }
 0x753   : > { %v16627_v0 = vadd.f32 %v16595_v21, %v15206_v26  ;;  %v19801_v6 = vpop.f32.mrb[37].mxu0  ;;  %v16605_v21 = vld [vmem:[%s21182_s7 + $0x78] sm:$0xff] }
 0x754   : > { %v15209_v54 = vpop.f32.mrb[38].mxu0 }
 0x755   : > { %16659 = vst.msk [vmem:[%s21182_s7 + $0x28] sm:$0xff] %vm2659_vm8, %v16627_v0  ;;  %v19802_v10 = vpop.f32.mrb[39].mxu0  ;;  %v16785_v0 = vmul.f32 %v16687_v45, %v16687_v45 }
 0x757   : > { %v15047_v24 = vpop.f32.mrb[28].mxu1 }
 0x758   : > { %v16624_v27 = vadd.f32 %v16592_v22, %v15047_v24  ;;  %v19783_v5 = vpop.f32.mrb[29].mxu1 }
 0x759   : > { %v15050_v37 = vpop.f32.mrb[30].mxu1  ;;  %v16686_v36 = vld [vmem:[%s21182_s7] sm:$0xff] }
 0x75a   : > { %v15312_v56 = vpop.f32.mrb[40].mxu0  ;;  %16656 = vst.msk [vmem:[%s21182_s7 + $0x10] sm:$0xff] %vm2659_vm8, %v16624_v27  ;;  %v19784_v7 = vpop.f32.mrb[31].mxu1  ;;  %v16784_v32 = vmul.f32 %v16686_v36, %v16686_v36  ;;  %v16718_v61 = vsel %vm2659_vm8, %v16686_v36, 0.0  ;;  %v16719_v27 = vsel %vm2659_vm8, %v16687_v45, 0.0  ;;  %v16689_v37 = vld [vmem:[%s21182_s7 + $0x18] sm:$0xff] }
 0x75b   : > { %v16629_v51 = vadd.f32 %v16597_v20, %v15312_v56  ;;  %v19813_v14 = vpop.f32.mrb[41].mxu0 }
 0x75c   : > { %v15315_v4 = vpop.f32.mrb[42].mxu0  ;;  %v16816_v5 = vsel %vm2659_vm8, %v16784_v32, 0.0  ;;  %v16817_v14 = vsel %vm2659_vm8, %v16785_v0, 0.0 }
 0x75d   : > { %16661 = vst.msk [vmem:[%s21182_s7 + $0x38] sm:$0xff] %vm2659_vm8, %v16629_v51  ;;  %v19814_v46 = vpop.f32.mrb[43].mxu0  ;;  %v16720_v51 = vadd.f32 %v16719_v27, %v16718_v61 }
 0x75e   : > { %v16818_v46 = vadd.f32 %v16817_v14, %v16816_v5 }
 0x75f   : > { %v15153_v23 = vpop.f32.mrb[32].mxu1 }
 0x760   : > { %v16626_v40 = vadd.f32 %v16594_v39, %v15153_v23  ;;  %v19795_v44 = vpop.f32.mrb[33].mxu1 }
 0x761   : > { %v15156_v19 = vpop.f32.mrb[34].mxu1  ;;  %v16688_v8 = vld [vmem:[%s21182_s7 + $0x10] sm:$0xff]  ;;  %v16787_v44 = vmul.f32 %v16689_v37, %v16689_v37 }
 0x762   : > { %v15418_v34 = vpop.f32.mrb[44].mxu0  ;;  %16658 = vst.msk [vmem:[%s21182_s7 + $0x20] sm:$0xff] %vm2659_vm8, %v16626_v40  ;;  %v19796_v49 = vpop.f32.mrb[35].mxu1  ;;  %v16786_v6 = vmul.f32 %v16688_v8, %v16688_v8  ;;  %v16721_v56 = vsel %vm2659_vm8, %v16688_v8, 0.0  ;;  %v16602_v40 = vld [vmem:[%s21182_s7 + $0x60] sm:$0xff]  ;;  %v16609_v8 = vld [vmem:[%s21182_s7 + $0x98] sm:$0xff] }
 0x763   : > { %v16631_v63 = vadd.f32 %v16599_v13, %v15418_v34  ;;  %v19825_v28 = vpop.f32.mrb[45].mxu0  ;;  %v16722_v23 = vadd.f32 %v16721_v56, %v16720_v51 }
 0x764   : > { %v15421_v2 = vpop.f32.mrb[46].mxu0  ;;  %v16819_v4 = vsel %vm2659_vm8, %v16786_v6, 0.0  ;;  %v16607_v28 = vld [vmem:[%s21182_s7 + $0x88] sm:$0xff] }
 0x765   : > { %16663 = vst.msk [vmem:[%s21182_s7 + $0x48] sm:$0xff] %vm2659_vm8, %v16631_v63  ;;  %v19826_v58 = vpop.f32.mrb[47].mxu0  ;;  %v16820_v63 = vadd.f32 %v16819_v4, %v16818_v46 }
 0x766   : > { %v16723_v58 = vsel %vm2659_vm8, %v16689_v37, 0.0  ;;  %v16606_v37 = vld [vmem:[%s21182_s7 + $0x80] sm:$0xff] }
 0x767   : > { %v15259_v9 = vpop.f32.mrb[36].mxu1 }
 0x768   : > { %v16628_v48 = vadd.f32 %v16596_v11, %v15259_v9  ;;  %v19807_v59 = vpop.f32.mrb[37].mxu1 }
 0x769   : > { %v15262_v16 = vpop.f32.mrb[38].mxu1  ;;  %v16690_v7 = vld [vmem:[%s21182_s7 + $0x20] sm:$0xff] }
 0x76a   : > { %v15524_v42 = vpop.f32.mrb[48].mxu0  ;;  %16660 = vst.msk [vmem:[%s21182_s7 + $0x30] sm:$0xff] %vm2659_vm8, %v16628_v48  ;;  %v19808_v62 = vpop.f32.mrb[39].mxu1  ;;  %v16788_v34 = vmul.f32 %v16690_v7, %v16690_v7  ;;  %v16725_v9 = vsel %vm2659_vm8, %v16690_v7, 0.0 }
 0x76b   : > { %v16633_v53 = vadd.f32 %v16601_v57, %v15524_v42  ;;  %v19837_v35 = vpop.f32.mrb[49].mxu0  ;;  %v16691_v42 = vld [vmem:[%s21182_s7 + $0x28] sm:$0xff]  ;;  %v16724_v57 = vadd.f32 %v16723_v58, %v16722_v23  ;;  %v16821_v62 = vsel %vm2659_vm8, %v16787_v44, 0.0 }
 0x76c   : > { %v15527_v47 = vpop.f32.mrb[50].mxu0  ;;  %v16823_v35 = vsel %vm2659_vm8, %v16788_v34, 0.0  ;;  %v16695_v27 = vld [vmem:[%s21182_s7 + $0x48] sm:$0xff] }
 0x76d   : > { %16665 = vst.msk [vmem:[%s21182_s7 + $0x58] sm:$0xff] %vm2659_vm8, %v16633_v53  ;;  %v19838_v15 = vpop.f32.mrb[51].mxu0  ;;  %v16793_v34 = vmul.f32 %v16695_v27, %v16695_v27  ;;  %v16735_v58 = vsel %vm2659_vm8, %v16695_v27, 0.0 }
 0x76e   : > { %v16726_v15 = vadd.f32 %v16725_v9, %v16724_v57 }
 0x76f   : > { %v15365_v52 = vpop.f32.mrb[40].mxu1  ;;  %v16833_v57 = vsel %vm2659_vm8, %v16793_v34, 0.0 }
 0x770   : > { %v16630_v17 = vadd.f32 %v16598_v12, %v15365_v52  ;;  %v19819_v29 = vpop.f32.mrb[41].mxu1  ;;  %v16822_v52 = vadd.f32 %v16821_v62, %v16820_v63  ;;  %v16789_v12 = vmul.f32 %v16691_v42, %v16691_v42 }
 0x771   : > { %v15368_v31 = vpop.f32.mrb[42].mxu1  ;;  %v16692_v16 = vld [vmem:[%s21182_s7 + $0x30] sm:$0xff] }
 0x772   : > { %v15630_v3 = vpop.f32.mrb[52].mxu0  ;;  %16662 = vst.msk [vmem:[%s21182_s7 + $0x40] sm:$0xff] %vm2659_vm8, %v16630_v17  ;;  %v19820_v18 = vpop.f32.mrb[43].mxu1  ;;  %v16790_v17 = vmul.f32 %v16692_v16, %v16692_v16  ;;  %v16824_v29 = vadd.f32 %v16823_v35, %v16822_v52  ;;  %v16727_v31 = vsel %vm2659_vm8, %v16691_v42, 0.0 }
 0x773   : > { %v16635_v43 = vadd.f32 %v16603_v33, %v15630_v3  ;;  %v19849_v60 = vpop.f32.mrb[53].mxu0  ;;  %v16604_v33 = vld [vmem:[%s21182_s7 + $0x70] sm:$0xff] }
 0x774   : > { %v15633_v50 = vpop.f32.mrb[54].mxu0  ;;  %v16827_v32 = vsel %vm2659_vm8, %v16790_v17, 0.0 }
 0x775   : > { %16667 = vst.msk [vmem:[%s21182_s7 + $0x68] sm:$0xff] %vm2659_vm8, %v16635_v43  ;;  %v19850_v1 = vpop.f32.mrb[55].mxu0  ;;  %v16729_v43 = vsel %vm2659_vm8, %v16692_v16, 0.0  ;;  %v16693_v50 = vld [vmem:[%s21182_s7 + $0x38] sm:$0xff] }
 0x776   : > { %v16728_v1 = vadd.f32 %v16727_v31, %v16726_v15  ;;  %v16791_v61 = vmul.f32 %v16693_v50, %v16693_v50 }
 0x777   : > { %v15471_v41 = vpop.f32.mrb[44].mxu1 }
 0x778   : > { %v16632_v38 = vadd.f32 %v16600_v30, %v15471_v41  ;;  %v19831_v55 = vpop.f32.mrb[45].mxu1  ;;  %v16825_v30 = vsel %vm2659_vm8, %v16789_v12, 0.0  ;;  %v16829_v51 = vsel %vm2659_vm8, %v16791_v61, 0.0  ;;  %v16610_v61 = vld [vmem:[%s21182_s7 + $0xa0] sm:$0xff] }
 0x779   : > { %v15474_v25 = vpop.f32.mrb[46].mxu1  ;;  %v16694_v36 = vld [vmem:[%s21182_s7 + $0x40] sm:$0xff] }
 0x77a   : > { %v15736_v26 = vpop.f32.mrb[56].mxu0  ;;  %16664 = vst.msk [vmem:[%s21182_s7 + $0x50] sm:$0xff] %vm2659_vm8, %v16632_v38  ;;  %v19832_v10 = vpop.f32.mrb[47].mxu1  ;;  %v16826_v25 = vadd.f32 %v16825_v30, %v16824_v29  ;;  %v16792_v6 = vmul.f32 %v16694_v36, %v16694_v36 }
 0x77b   : > { %v16637_v54 = vadd.f32 %v16605_v21, %v15736_v26  ;;  %v19861_v24 = vpop.f32.mrb[57].mxu0  ;;  %v16730_v21 = vadd.f32 %v16729_v43, %v16728_v1 }
 0x77c   : > { %v15739_v22 = vpop.f32.mrb[58].mxu0  ;;  %v16828_v10 = vadd.f32 %v16827_v32, %v16826_v25  ;;  %v16731_v24 = vsel %vm2659_vm8, %v16693_v50, 0.0  ;;  %v16831_v7 = vsel %vm2659_vm8, %v16792_v6, 0.0 }
 0x77d   : > { %16669 = vst.msk [vmem:[%s21182_s7 + $0x78] sm:$0xff] %vm2659_vm8, %v16637_v54  ;;  %v19862_v20 = vpop.f32.mrb[59].mxu0  ;;  %v16733_v22 = vsel %vm2659_vm8, %v16694_v36, 0.0  ;;  %v16732_v5 = vadd.f32 %v16731_v24, %v16730_v21  ;;  %v16699_v36 = vld [vmem:[%s21182_s7 + $0x68] sm:$0xff] }
 0x77e   : > { %v16830_v23 = vadd.f32 %v16829_v51, %v16828_v10  ;;  %v16797_v21 = vmul.f32 %v16699_v36, %v16699_v36  ;;  %v16743_v24 = vsel %vm2659_vm8, %v16699_v36, 0.0 }
 0x77f   : > { %v15577_v39 = vpop.f32.mrb[48].mxu1  ;;  %v16734_v46 = vadd.f32 %v16733_v22, %v16732_v5  ;;  %v16615_v5 = vld [vmem:[%s21182_s7 + $0xc8] sm:$0xff] }
 0x780   : > { %v16634_v13 = vadd.f32 %v16602_v40, %v15577_v39  ;;  %v19843_v19 = vpop.f32.mrb[49].mxu1  ;;  %v16611_v40 = vld [vmem:[%s21182_s7 + $0xa8] sm:$0xff] }
 0x781   : > { %v15580_v2 = vpop.f32.mrb[50].mxu1  ;;  %v16696_v56 = vld [vmem:[%s21182_s7 + $0x50] sm:$0xff] }
 0x782   : > { %v15842_v49 = vpop.f32.mrb[60].mxu0  ;;  %16666 = vst.msk [vmem:[%s21182_s7 + $0x60] sm:$0xff] %vm2659_vm8, %v16634_v13  ;;  %v19844_v48 = vpop.f32.mrb[51].mxu1  ;;  %v16794_v13 = vmul.f32 %v16696_v56, %v16696_v56  ;;  %v16737_v9 = vsel %vm2659_vm8, %v16696_v56, 0.0 }
 0x783   : > { %v16639_v11 = vadd.f32 %v16607_v28, %v15842_v49  ;;  %v19873_v59 = vpop.f32.mrb[61].mxu0  ;;  %v16832_v28 = vadd.f32 %v16831_v7, %v16830_v23  ;;  %v16697_v48 = vld [vmem:[%s21182_s7 + $0x58] sm:$0xff] }
 0x784   : > { %v15845_v53 = vpop.f32.mrb[62].mxu0  ;;  %v16736_v59 = vadd.f32 %v16735_v58, %v16734_v46  ;;  %v16835_v16 = vsel %vm2659_vm8, %v16794_v13, 0.0  ;;  %v16795_v15 = vmul.f32 %v16697_v48, %v16697_v48  ;;  %v16739_v43 = vsel %vm2659_vm8, %v16697_v48, 0.0  ;;  %v16612_v58 = vld [vmem:[%s21182_s7 + $0xb0] sm:$0xff] }
 0x785   : > { %16671 = vst.msk [vmem:[%s21182_s7 + $0x88] sm:$0xff] %vm2659_vm8, %v16639_v11  ;;  %v19874_v47 = vpop.f32.mrb[63].mxu0  ;;  %v16834_v62 = vadd.f32 %v16833_v57, %v16832_v28  ;;  %v16841_v46 = vsel %vm2659_vm8, %v16797_v21, 0.0 }
 0x786   : > { %v16738_v53 = vadd.f32 %v16737_v9, %v16736_v59  ;;  %v16608_v47 = vld [vmem:[%s21182_s7 + $0x90] sm:$0xff]  ;;  %v16837_v30 = vsel %vm2659_vm8, %v16795_v15, 0.0 }
 0x787   : > { %v15683_v3 = vpop.f32.mrb[52].mxu1  ;;  %v16836_v29 = vadd.f32 %v16835_v16, %v16834_v62  ;;  %v16617_v62 = vld [vmem:[%s21182_s7 + $0xd8] sm:$0xff] }
 0x788   : > { %v16636_v18 = vadd.f32 %v16604_v33, %v15683_v3  ;;  %v19855_v60 = vpop.f32.mrb[53].mxu1  ;;  %v16613_v33 = vld [vmem:[%s21182_s7 + $0xb8] sm:$0xff] }
 0x789   : > { %v15686_v41 = vpop.f32.mrb[54].mxu1  ;;  %v16698_v42 = vld [vmem:[%s21182_s7 + $0x60] sm:$0xff] }
 0x78a   : > { %v15948_v45 = vpop.f32.mrb[64].mxu0  ;;  %16668 = vst.msk [vmem:[%s21182_s7 + $0x70] sm:$0xff] %vm2659_vm8, %v16636_v18  ;;  %v19856_v55 = vpop.f32.mrb[55].mxu1  ;;  %v16796_v52 = vmul.f32 %v16698_v42, %v16698_v42  ;;  %v16741_v18 = vsel %vm2659_vm8, %v16698_v42, 0.0  ;;  %v16740_v41 = vadd.f32 %v16739_v43, %v16738_v53 }
 0x78b   : > { %v16641_v38 = vadd.f32 %v16609_v8, %v15948_v45  ;;  %v19885_v26 = vpop.f32.mrb[65].mxu0 }
 0x78c   : > { %v15951_v0 = vpop.f32.mrb[66].mxu0  ;;  %v16742_v55 = vadd.f32 %v16741_v18, %v16740_v41  ;;  %v16838_v26 = vadd.f32 %v16837_v30, %v16836_v29  ;;  %v16703_v9 = vld [vmem:[%s21182_s7 + $0x88] sm:$0xff]  ;;  %v16614_v30 = vld [vmem:[%s21182_s7 + $0xc0] sm:$0xff] }
 0x78d   : > { %16673 = vst.msk [vmem:[%s21182_s7 + $0x98] sm:$0xff] %vm2659_vm8, %v16641_v38  ;;  %v19886_v54 = vpop.f32.mrb[67].mxu0  ;;  %v16839_v38 = vsel %vm2659_vm8, %v16796_v52, 0.0  ;;  %v16801_v29 = vmul.f32 %v16703_v9, %v16703_v9  ;;  %v16751_v18 = vsel %vm2659_vm8, %v16703_v9, 0.0 }
 0x78e   : > { %v16840_v6 = vadd.f32 %v16839_v38, %v16838_v26  ;;  %v16744_v51 = vadd.f32 %v16743_v24, %v16742_v55 }
 0x78f   : > { %v15789_v20 = vpop.f32.mrb[56].mxu1 }
 0x790   : > { %v16638_v14 = vadd.f32 %v16606_v37, %v15789_v20  ;;  %v19867_v4 = vpop.f32.mrb[57].mxu1  ;;  %v16701_v20 = vld [vmem:[%s21182_s7 + $0x78] sm:$0xff] }
 0x791   : > { %v15792_v44 = vpop.f32.mrb[58].mxu1  ;;  %v16700_v8 = vld [vmem:[%s21182_s7 + $0x70] sm:$0xff]  ;;  %v16799_v13 = vmul.f32 %v16701_v20, %v16701_v20 }
 0x792   : > { %v16054_v39 = vpop.f32.mrb[68].mxu0  ;;  %16670 = vst.msk [vmem:[%s21182_s7 + $0x80] sm:$0xff] %vm2659_vm8, %v16638_v14  ;;  %v19868_v63 = vpop.f32.mrb[59].mxu1  ;;  %v16798_v25 = vmul.f32 %v16700_v8, %v16700_v8  ;;  %v16745_v22 = vsel %vm2659_vm8, %v16700_v8, 0.0  ;;  %v16842_v44 = vadd.f32 %v16841_v46, %v16840_v6 }
 0x793   : > { %v16643_v19 = vadd.f32 %v16611_v40, %v16054_v39  ;;  %v19897_v49 = vpop.f32.mrb[69].mxu0  ;;  %v16746_v40 = vadd.f32 %v16745_v22, %v16744_v51  ;;  %v16845_v57 = vsel %vm2659_vm8, %v16799_v13, 0.0 }
 0x794   : > { %v16057_v2 = vpop.f32.mrb[70].mxu0  ;;  %v16843_v23 = vsel %vm2659_vm8, %v16798_v25, 0.0  ;;  %v16747_v49 = vsel %vm2659_vm8, %v16701_v20, 0.0 }
 0x795   : > { %16675 = vst.msk [vmem:[%s21182_s7 + $0xa8] sm:$0xff] %vm2659_vm8, %v16643_v19  ;;  %v19898_v11 = vpop.f32.mrb[71].mxu0  ;;  %v16844_v63 = vadd.f32 %v16843_v23, %v16842_v44  ;;  %v16748_v48 = vadd.f32 %v16747_v49, %v16746_v40 }
 0x797   : > { %v15895_v35 = vpop.f32.mrb[60].mxu1  ;;  %v16846_v15 = vadd.f32 %v16845_v57, %v16844_v63 }
 0x798   : > { %v16640_v12 = vadd.f32 %v16608_v47, %v15895_v35  ;;  %v19879_v17 = vpop.f32.mrb[61].mxu1 }
 0x799   : > { %v15898_v31 = vpop.f32.mrb[62].mxu1  ;;  %v16702_v37 = vld [vmem:[%s21182_s7 + $0x80] sm:$0xff] }
 0x79a   : > { %v16160_v3 = vpop.f32.mrb[72].mxu0  ;;  %16672 = vst.msk [vmem:[%s21182_s7 + $0x90] sm:$0xff] %vm2659_vm8, %v16640_v12  ;;  %v19880_v50 = vpop.f32.mrb[63].mxu1  ;;  %v16800_v19 = vmul.f32 %v16702_v37, %v16702_v37  ;;  %v16749_v28 = vsel %vm2659_vm8, %v16702_v37, 0.0 }
 0x79b   : > { %v16645_v60 = vadd.f32 %v16613_v33, %v16160_v3  ;;  %v19909_v1 = vpop.f32.mrb[73].mxu0  ;;  %v16750_v47 = vadd.f32 %v16749_v28, %v16748_v48  ;;  %v16705_v50 = vld [vmem:[%s21182_s7 + $0x98] sm:$0xff] }
 0x79c   : > { %v16163_v45 = vpop.f32.mrb[74].mxu0  ;;  %v16847_v16 = vsel %vm2659_vm8, %v16800_v19, 0.0  ;;  %v16803_v21 = vmul.f32 %v16705_v50, %v16705_v50  ;;  %v16707_v20 = vld [vmem:[%s21182_s7 + $0xa8] sm:$0xff] }
 0x79d   : > { %16677 = vst.msk [vmem:[%s21182_s7 + $0xb8] sm:$0xff] %vm2659_vm8, %v16645_v60  ;;  %v19910_v32 = vpop.f32.mrb[75].mxu0  ;;  %v16848_v31 = vadd.f32 %v16847_v16, %v16846_v15  ;;  %v16752_v36 = vadd.f32 %v16751_v18, %v16750_v47  ;;  %v16849_v45 = vsel %vm2659_vm8, %v16801_v29, 0.0  ;;  %v16759_v49 = vsel %vm2659_vm8, %v16707_v20, 0.0 }
 0x79f   : > { %v16001_v0 = vpop.f32.mrb[64].mxu1  ;;  %v16850_v38 = vadd.f32 %v16849_v45, %v16848_v31 }
 0x7a0   : > { %v16642_v54 = vadd.f32 %v16610_v61, %v16001_v0  ;;  %v19891_v10 = vpop.f32.mrb[65].mxu1  ;;  %v16619_v61 = vld [vmem:[%s21182_s7 + $0xe8] sm:$0xff] }
 0x7a1   : > { %v16004_v56 = vpop.f32.mrb[66].mxu1  ;;  %v16704_v11 = vld [vmem:[%s21182_s7 + $0x90] sm:$0xff] }
 0x7a2   : > { %v16266_v27 = vpop.f32.mrb[76].mxu0  ;;  %16674 = vst.msk [vmem:[%s21182_s7 + $0xa0] sm:$0xff] %vm2659_vm8, %v16642_v54  ;;  %v19892_v14 = vpop.f32.mrb[67].mxu1  ;;  %v16802_v3 = vmul.f32 %v16704_v11, %v16704_v11  ;;  %v16753_v60 = vsel %vm2659_vm8, %v16704_v11, 0.0 }
 0x7a3   : > { %v16647_v7 = vadd.f32 %v16615_v5, %v16266_v27  ;;  %v19921_v4 = vpop.f32.mrb[77].mxu0  ;;  %v16754_v32 = vadd.f32 %v16753_v60, %v16752_v36  ;;  %v16755_v27 = vsel %vm2659_vm8, %v16705_v50, 0.0  ;;  %v16853_v14 = vsel %vm2659_vm8, %v16803_v21, 0.0 }
 0x7a4   : > { %v16269_v39 = vpop.f32.mrb[78].mxu0  ;;  %v16851_v8 = vsel %vm2659_vm8, %v16802_v3, 0.0  ;;  %v16709_v11 = vld [vmem:[%s21182_s7 + $0xb8] sm:$0xff] }
 0x7a5   : > { %16679 = vst.msk [vmem:[%s21182_s7 + $0xc8] sm:$0xff] %vm2659_vm8, %v16647_v7  ;;  %v19922_v34 = vpop.f32.mrb[79].mxu0  ;;  %v16852_v54 = vadd.f32 %v16851_v8, %v16850_v38  ;;  %v16756_v51 = vadd.f32 %v16755_v27, %v16754_v32  ;;  %v16805_v39 = vmul.f32 %v16707_v20, %v16707_v20  ;;  %v16763_v3 = vsel %vm2659_vm8, %v16709_v11, 0.0 }
 0x7a6   : > { %v16616_v34 = vld [vmem:[%s21182_s7 + $0xd0] sm:$0xff] }
 0x7a7   : > { %v16107_v2 = vpop.f32.mrb[68].mxu1  ;;  %v16854_v23 = vadd.f32 %v16853_v14, %v16852_v54 }
 0x7a8   : > { %v16644_v59 = vadd.f32 %v16612_v58, %v16107_v2  ;;  %v19903_v42 = vpop.f32.mrb[69].mxu1  ;;  %v16621_v58 = vld [vmem:[%s21182_s7 + $0xf8] sm:$0xff] }
 0x7a9   : > { %v16110_v35 = vpop.f32.mrb[70].mxu1  ;;  %v16706_v1 = vld [vmem:[%s21182_s7 + $0xa0] sm:$0xff] }
 0x7aa   : > { %v16372_v53 = vpop.f32.mrb[80].mxu0  ;;  %16676 = vst.msk [vmem:[%s21182_s7 + $0xb0] sm:$0xff] %vm2659_vm8, %v16644_v59  ;;  %v19904_v12 = vpop.f32.mrb[71].mxu1  ;;  %v16804_v25 = vmul.f32 %v16706_v1, %v16706_v1  ;;  %v16757_v5 = vsel %vm2659_vm8, %v16706_v1, 0.0 }
 0x7ab   : > { %v16649_v52 = vadd.f32 %v16617_v62, %v16372_v53  ;;  %v19933_v17 = vpop.f32.mrb[81].mxu0  ;;  %v16758_v46 = vadd.f32 %v16757_v5, %v16756_v51  ;;  %v16857_v53 = vsel %vm2659_vm8, %v16805_v39, 0.0  ;;  %v16807_v12 = vmul.f32 %v16709_v11, %v16709_v11 }
 0x7ac   : > { %v16375_v33 = vpop.f32.mrb[82].mxu0  ;;  %v16855_v4 = vsel %vm2659_vm8, %v16804_v25, 0.0  ;;  %v16711_v18 = vld [vmem:[%s21182_s7 + $0xc8] sm:$0xff] }
 0x7ad   : > { %16681 = vst.msk [vmem:[%s21182_s7 + $0xd8] sm:$0xff] %vm2659_vm8, %v16649_v52  ;;  %v19934_v43 = vpop.f32.mrb[83].mxu0  ;;  %v16856_v13 = vadd.f32 %v16855_v4, %v16854_v23  ;;  %v16760_v59 = vadd.f32 %v16759_v49, %v16758_v46  ;;  %v16861_v36 = vsel %vm2659_vm8, %v16807_v12, 0.0  ;;  %v16767_v25 = vsel %vm2659_vm8, %v16711_v18, 0.0 }
 0x7ae   : > { %v16618_v43 = vld [vmem:[%s21182_s7 + $0xe0] sm:$0xff] }
 0x7af   : > { %v16213_v41 = vpop.f32.mrb[72].mxu1  ;;  %v16858_v15 = vadd.f32 %v16857_v53, %v16856_v13 }
 0x7b0   : > { %v16646_v55 = vadd.f32 %v16614_v30, %v16213_v41  ;;  %v19915_v26 = vpop.f32.mrb[73].mxu1 }
 0x7b1   : > { %v16216_v6 = vpop.f32.mrb[74].mxu1  ;;  %v16708_v37 = vld [vmem:[%s21182_s7 + $0xb0] sm:$0xff] }
 0x7b2   : > { %v16478_v0 = vpop.f32.mrb[84].mxu0  ;;  %16678 = vst.msk [vmem:[%s21182_s7 + $0xc0] sm:$0xff] %vm2659_vm8, %v16646_v55  ;;  %v19916_v24 = vpop.f32.mrb[75].mxu1  ;;  %v16806_v40 = vmul.f32 %v16708_v37, %v16708_v37  ;;  %v16761_v28 = vsel %vm2659_vm8, %v16708_v37, 0.0  ;;  %v16809_v55 = vmul.f32 %v16711_v18, %v16711_v18 }
 0x7b3   : > { %v16651_v10 = vadd.f32 %v16619_v61, %v16478_v0  ;;  %v19945_v22 = vpop.f32.mrb[85].mxu0  ;;  %v16762_v35 = vadd.f32 %v16761_v28, %v16760_v59 }
 0x7b4   : > { %v16481_v56 = vpop.f32.mrb[86].mxu0  ;;  %v16859_v62 = vsel %vm2659_vm8, %v16806_v40, 0.0  ;;  %v16713_v61 = vld [vmem:[%s21182_s7 + $0xd8] sm:$0xff]  ;;  %v16865_v54 = vsel %vm2659_vm8, %v16809_v55, 0.0  ;;  %v16620_v22 = vld [vmem:[%s21182_s7 + $0xf0] sm:$0xff] }
 0x7b5   : > { %16683 = vst.msk [vmem:[%s21182_s7 + $0xe8] sm:$0xff] %vm2659_vm8, %v16651_v10  ;;  %v19946_v7 = vpop.f32.mrb[87].mxu0  ;;  %v16860_v29 = vadd.f32 %v16859_v62, %v16858_v15  ;;  %v16764_v60 = vadd.f32 %v16763_v3, %v16762_v35  ;;  %v16811_v37 = vmul.f32 %v16713_v61, %v16713_v61  ;;  %v16771_v46 = vsel %vm2659_vm8, %v16713_v61, 0.0 }
 0x7b7   : > { %v16319_v44 = vpop.f32.mrb[76].mxu1  ;;  %v16862_v32 = vadd.f32 %v16861_v36, %v16860_v29 }
 0x7b8   : > { %v16648_v19 = vadd.f32 %v16616_v34, %v16319_v44  ;;  %v19927_v63 = vpop.f32.mrb[77].mxu1  ;;  %v16869_v34 = vsel %vm2659_vm8, %v16811_v37, 0.0 }
 0x7b9   : > { %v16322_v9 = vpop.f32.mrb[78].mxu1  ;;  %v16710_v48 = vld [vmem:[%s21182_s7 + $0xc0] sm:$0xff] }
 0x7ba   : > { %v16584_v2 = vpop.f32.mrb[88].mxu0  ;;  %16680 = vst.msk [vmem:[%s21182_s7 + $0xd0] sm:$0xff] %vm2659_vm8, %v16648_v19  ;;  %v19928_v57 = vpop.f32.mrb[79].mxu1  ;;  %v16808_v17 = vmul.f32 %v16710_v48, %v16710_v48  ;;  %v16765_v33 = vsel %vm2659_vm8, %v16710_v48, 0.0 }
 0x7bb   : > { %v16653_v42 = vadd.f32 %v16621_v58, %v16584_v2  ;;  %v19957_v16 = vpop.f32.mrb[89].mxu0  ;;  %v16766_v30 = vadd.f32 %v16765_v33, %v16764_v60 }
 0x7bc   : > { %v16587_v47 = vpop.f32.mrb[90].mxu0  ;;  %v16863_v45 = vsel %vm2659_vm8, %v16808_v17, 0.0  ;;  %v16715_v40 = vld [vmem:[%s21182_s7 + $0xe8] sm:$0xff] }
 0x7bd   : > { %16685 = vst.msk [vmem:[%s21182_s7 + $0xf8] sm:$0xff] %vm2659_vm8, %v16653_v42  ;;  %v19958_v52 = vpop.f32.mrb[91].mxu0  ;;  %v16864_v21 = vadd.f32 %v16863_v45, %v16862_v32  ;;  %v16768_v6 = vadd.f32 %v16767_v25, %v16766_v30  ;;  %v16813_v49 = vmul.f32 %v16715_v40, %v16715_v40  ;;  %v16775_v58 = vsel %vm2659_vm8, %v16715_v40, 0.0 }
 0x7bf   : > { %v16425_v31 = vpop.f32.mrb[80].mxu1  ;;  %v16866_v5 = vadd.f32 %v16865_v54, %v16864_v21  ;;  %v16873_v57 = vsel %vm2659_vm8, %v16813_v49, 0.0 }
 0x7c0   : > { %v16650_v50 = vadd.f32 %v16618_v43, %v16425_v31  ;;  %v19939_v1 = vpop.f32.mrb[81].mxu1 }
 0x7c1   : > { %v16428_v8 = vpop.f32.mrb[82].mxu1  ;;  %v16712_v41 = vld [vmem:[%s21182_s7 + $0xd0] sm:$0xff] }
 0x7c2   : > { %16682 = vst.msk [vmem:[%s21182_s7 + $0xe0] sm:$0xff] %vm2659_vm8, %v16650_v50  ;;  %v19940_v38 = vpop.f32.mrb[83].mxu1  ;;  %v16810_v26 = vmul.f32 %v16712_v41, %v16712_v41  ;;  %v16769_v0 = vsel %vm2659_vm8, %v16712_v41, 0.0 }
 0x7c3   : > { %v16770_v27 = vadd.f32 %v16769_v0, %v16768_v6 }
 0x7c4   : > { %v16867_v10 = vsel %vm2659_vm8, %v16810_v26, 0.0  ;;  %v16717_v28 = vld [vmem:[%s21182_s7 + $0xf8] sm:$0xff] }
 0x7c5   : > { %v16868_v14 = vadd.f32 %v16867_v10, %v16866_v5  ;;  %v16772_v44 = vadd.f32 %v16771_v46, %v16770_v27  ;;  %v16815_v42 = vmul.f32 %v16717_v28, %v16717_v28  ;;  %v16779_v62 = vsel %vm2659_vm8, %v16717_v28, 0.0 }
 0x7c7   : > { %v16531_v24 = vpop.f32.mrb[84].mxu1  ;;  %v16870_v63 = vadd.f32 %v16869_v34, %v16868_v14  ;;  %v16877_v52 = vsel %vm2659_vm8, %v16815_v42, 0.0 }
 0x7c8   : > { %v16652_v56 = vadd.f32 %v16620_v22, %v16531_v24  ;;  %v19951_v20 = vpop.f32.mrb[85].mxu1 }
 0x7c9   : > { %v16534_v51 = vpop.f32.mrb[86].mxu1  ;;  %v16714_v7 = vld [vmem:[%s21182_s7 + $0xe0] sm:$0xff] }
 0x7ca   : > { %16684 = vst.msk [vmem:[%s21182_s7 + $0xf0] sm:$0xff] %vm2659_vm8, %v16652_v56  ;;  %v19952_v4 = vpop.f32.mrb[87].mxu1  ;;  %v16773_v23 = vsel %vm2659_vm8, %v16714_v7, 0.0  ;;  %v16812_v39 = vmul.f32 %v16714_v7, %v16714_v7 }
 0x7cb   : > { %v16774_v19 = vadd.f32 %v16773_v23, %v16772_v44 }
 0x7cc   : > { %v16871_v13 = vsel %vm2659_vm8, %v16812_v39, 0.0 }
 0x7cd   : > { %v16872_v2 = vadd.f32 %v16871_v13, %v16870_v63  ;;  %v16776_v11 = vadd.f32 %v16775_v58, %v16774_v19 }
 0x7cf   : > { %v16874_v53 = vadd.f32 %v16873_v57, %v16872_v2 }
 0x7d1   : > { %v16716_v9 = vld [vmem:[%s21182_s7 + $0xf0] sm:$0xff] }
 0x7d2   : > { %v16777_v48 = vsel %vm2659_vm8, %v16716_v9, 0.0  ;;  %v16814_v59 = vmul.f32 %v16716_v9, %v16716_v9 }
 0x7d3   : > { %v16778_v16 = vadd.f32 %v16777_v48, %v16776_v11 }
 0x7d4   : > { %v16875_v35 = vsel %vm2659_vm8, %v16814_v59, 0.0 }
 0x7d5   : > { %v16780_v47 = vadd.f32 %v16779_v62, %v16778_v16  ;;  %v16876_v15 = vadd.f32 %v16875_v35, %v16874_v53 }
 0x7d7   : > { %v16781_v12 = vsel %vm2659_vm8, %v16780_v47, 0.0  ;;  %v16878_v17 = vadd.f32 %v16877_v52, %v16876_v15 }
 0x7d8   : > { %16782 = vadd.xlane.f32.xlu1 %v16781_v12 }
 0x7d9   : > { %v16879_v29 = vsel %vm2659_vm8, %v16878_v17, 0.0 }
 0x7da   : > { %16880 = vadd.xlane.f32.xlu0 %v16879_v29 }
 0x7db   : > { %20038 = shalt.err (!%p20035_p3)
}
 0x7dc   : > { %s20039_s25 = scalar_lea.hbm %s23906_s13, 4096  ;;  %s20043_s8 = scalar_lea.hbm %s23963_s4, 8192 }
 0x7dd   : > { %p20040_p4 = scmp.ne.s32.totalorder %s23906_s13, %s20039_s25  ;;  %p20044_p9 = scmp.lt.u32.totalorder %s23906_s13, %s23963_s4 }
 0x7de   : > { %p20045_p10 = scmp.lt.u32.totalorder %s20043_s8, %s20039_s25  ;;  %p20047_p12 = scmp.lt.u32.totalorder %s20039_s25, %s23906_s13 }
 0x7df   : > { %p20041_p7 = pnand %p20040_p4, %p20170_p5 }
 0x7e0   : > { %p20046_p11 = por %p20045_p10, %p20044_p9 }
 0x7e1   : > { %p20042_p8 = pneg %p20041_p7 }
 0x7e2   : > { %p20048_p13 = por %p20047_p12, %p20046_p11 }
 0x7e4   : > { %p20049_p0 = pnand %p20048_p13, %p20042_p8 }
 0x7e6   : > { %20052 = shalt.err (!%p20049_p0)
}
 0x7e7   : > { %s20100_s11 = smov 128   ;;  %s20101_s12 = smov 8   ;;  %vm16882_vm9 = vcmask 7168   ;;  %vm16884_vm10 = vcmask 15368  }
 0x7e8   : > { %19974 = dma.vmem_to_hbm [thread:$0]  (%p20170_p5), %s23909_s14, 4096, %s23906_s13, %s23913_s15, %s20100_s11, %s20100_s11, %s20101_s12  }
 0x7e9   : > { %s233_s17 = scalar_lea.vmem %s23964_s5, %s17519_s6 }
 0x865   : > { %v16783_v3 = vpop.xlane.xlu1 %16782 }
 0x866   : > { %16883 = vst.msk [vmem:[%s233_s17] sm:$0xff] %vm16882_vm9, %v16783_v3 }
 0x867   : > { %v16881_v33 = vpop.xlane.xlu0 %16880 }
 0x868   : > { %16885 = vst.msk [vmem:[%s233_s17] sm:$0xff] %vm16884_vm10, %v16881_v33 }
 0x869 PF: > { %p19980_p1 = scmp.ge.s32.totalorder %s20087_s21, 2  ;;  %s16922_s23 = sand.u32 1, %s20075_s18  }
 0x86a   : > { %s16923_s28 = scalar_lea.sflag [#allocation6], %s16922_s23 }
 0x86b   : > { %p19977_p2 = pnand %p19980_p1, %p20174_p6 }
 0x86d   : > { %20070 = dma.done.wait (!%p19977_p2), %s16923_s28, 4096  }
 0x86e   : > { %20072 = vsyncadd (!%p19977_p2), %s16923_s28, 4294963200  ;;  %p16_p5 = scmp.ge.s32.totalorder %s20157_s24, 4   ;;  %s23967_s18 = smov %s20079_s19 }
 0x86f   : > { %s23968_s19 = smov %s20083_s20  ;;  %s23969_s20 = smov %s20168_s27 }
 0x870   : > { %s23970_s21 = smov %s20157_s24  ;;  %18 = sbr.rel (!%p16_p5) target bundleno = 3 (0x3), region = 96 }
 0x877   :  { %16935 = vsyncpa [#allocation6], 1 }
 0x878   :  { %16937 = vsyncpa [#allocation6 + $0x1], 1 }

</bundles_post_ra>
